<compile_context>
chip_gen: v7x
topology: tpu7x:2x2x1
jax: 0.10.0
libtpu: 0.0.40
codegen_flags: <defaults>
</compile_context>

<pallas_src>
import functools

import jax
import jax.numpy as jnp
from jax.experimental import pallas as pl
from jax.experimental.pallas import tpu as pltpu


# ----------------------------------------------------------------------------
# Per-generation compiler params
# ----------------------------------------------------------------------------

def _derive_vmem_limit():
    # v7x has 64 MiB VMEM per TensorCore vs 128 MiB on v5e/v6e: derive the scoped
    # limit per generation (~25% headroom) instead of hard-coding 96 MiB.
    try:
        return int(pltpu.get_tpu_info().vmem_capacity_bytes * 3 // 4)
    except Exception:
        return None


_VMEM_LIMIT = _derive_vmem_limit()


def _compiler_params(dimension_semantics):
    kwargs = dict(dimension_semantics=dimension_semantics)
    if _VMEM_LIMIT is not None:
        kwargs["vmem_limit_bytes"] = _VMEM_LIMIT
    return pltpu.CompilerParams(**kwargs)


# Tile sizes: tm=512 is the tiling sweet spot and keeps the per-block working set
# ~2 MiB (fits v7x); tn=128 is lane-dense and matches v5e's 128-wide MXU natively.
_TM = 512
_TN = 128


# ----------------------------------------------------------------------------
# Fused conv kernel: acc += A[tap] @ W[tap]; scale/bias (+residual) (+ReLU) epilogue
# ----------------------------------------------------------------------------

def _conv_taps_kernel(a_ref, w_ref, s_ref, b_ref, *rest, relu, has_res):
    if has_res:
        r_ref, o_ref, acc_ref = rest
    else:
        o_ref, acc_ref = rest

    t = pl.program_id(2)

    @pl.when(t == 0)
    def _init():
        acc_ref[...] = jnp.zeros_like(acc_ref)

    # bf16 x bf16 -> f32 accumulation on the MXU.
    acc_ref[...] += jnp.dot(a_ref[0], w_ref[0], preferred_element_type=jnp.float32)

    @pl.when(t == pl.num_programs(2) - 1)
    def _epilogue():
        out = acc_ref[...] * s_ref[...] + b_ref[...]
        if has_res:
            out = out + r_ref[...].astype(jnp.float32)   # fused residual add
        if relu:
            out = jnp.maximum(out, 0.0)
        o_ref[...] = out.astype(o_ref.dtype)


def fused_conv_matmul(a_taps, w_taps, scale, bias, relu,
                      residual=None, out_dtype=jnp.bfloat16):
    """out = epilogue(sum_t A[t] @ W[t]) with A:(T, M, K), W:(T, K, Nout).

    Grid = (M tiles, Nout tiles, T) with the tap/reduction axis last ("arbitrary");
    M and Nout axes are "parallel". A/W are fed to the MXU in bf16; the f32 VMEM
    accumulator gets the folded-BN scale/bias, optional residual add and ReLU fused
    into its epilogue, so no separate element-wise HBM pass is needed.
    """
    T, M, K = a_taps.shape
    n_out = w_taps.shape[-1]
    tn = _TN if n_out % _TN == 0 else n_out

    # Pick an M tile: largest multiple-of-8 divisor of M up to _TM; if there is no
    # decent divisor, zero-pad M (padded rows are sliced off afterwards).
    m_pad = M
    if M <= _TM:
        tm = M
    else:
        tm = next((c for c in range(_TM, 0, -8) if M % c == 0), 0)
        if tm < 128:
            tm = _TM
            m_pad = pl.cdiv(M, tm) * tm
            a_taps = jnp.pad(a_taps, ((0, 0), (0, m_pad - M), (0, 0)))
            if residual is not None:
                residual = jnp.pad(residual, ((0, m_pad - M), (0, 0)))

    inputs = [a_taps.astype(jnp.bfloat16),
              w_taps.astype(jnp.bfloat16),
              scale.reshape(1, n_out).astype(jnp.float32),
              bias.reshape(1, n_out).astype(jnp.float32)]
    in_specs = [
        pl.BlockSpec((1, tm, K), lambda m, n, t: (t, m, 0)),
        pl.BlockSpec((1, K, tn), lambda m, n, t: (t, 0, n)),
        pl.BlockSpec((1, tn), lambda m, n, t: (0, n)),
        pl.BlockSpec((1, tn), lambda m, n, t: (0, n)),
    ]
    if residual is not None:
        inputs.append(residual)
        in_specs.append(pl.BlockSpec((tm, tn), lambda m, n, t: (m, n)))

    out = pl.pallas_call(
        functools.partial(_conv_taps_kernel, relu=relu,
                          has_res=residual is not None),
        out_shape=jax.ShapeDtypeStruct((m_pad, n_out), out_dtype),
        grid=(m_pad // tm, n_out // tn, T),
        in_specs=in_specs,
        out_specs=pl.BlockSpec((tm, tn), lambda m, n, t: (m, n)),
        scratch_shapes=[pltpu.VMEM((tm, tn), jnp.float32)],
        compiler_params=_compiler_params(("parallel", "parallel", "arbitrary")),
    )(*inputs)
    return out[:M] if m_pad != M else out


# ----------------------------------------------------------------------------
# Conv wrappers (JAX glue: shifted-window slicing, padding, reshapes)
# ----------------------------------------------------------------------------

def conv3x3_bn(x, p, stride, relu, residual=None):
    """3x3 conv (pad=1) + folded BN (+fused residual add) (+ReLU) via a 9-tap
    reduction matmul; K = C per tap is 128-aligned for every ResNet-18 layer."""
    N, H, W, C = x.shape
    w = p["w"]                                        # (3, 3, C, cout)
    cout = w.shape[-1]
    Ho = (H + 2 - 3) // stride + 1
    Wo = (W + 2 - 3) // stride + 1
    xp = jnp.pad(x, ((0, 0), (1, 1), (1, 1), (0, 0)))
    taps = []
    for i in range(3):
        for j in range(3):
            tap = jax.lax.slice(
                xp, (0, i, j, 0),
                (N, i + (Ho - 1) * stride + 1, j + (Wo - 1) * stride + 1, C),
                (1, stride, stride, 1))
            taps.append(tap.reshape(N * Ho * Wo, C))
    # TODO(synk): taps are staged as a (9, M, C) tensor in HBM; a fully halo-in-VMEM
    #             implicit conv would cut activation traffic to ~1x.
    a_taps = jnp.stack(taps, axis=0)                  # (9, M, C)
    w_taps = w.reshape(9, C, cout)                    # tap order matches (i, j) flattening
    res2d = None if residual is None else residual.reshape(N * Ho * Wo, cout)
    out = fused_conv_matmul(a_taps, w_taps, p["scale"], p["bias"], relu,
                            residual=res2d)
    return out.reshape(N, Ho, Wo, cout)


def conv1x1_bn(x, p, stride, relu=False):
    """1x1 conv + folded BN (downsample path): strided subsample then a single matmul."""
    N, H, W, C = x.shape
    w = p["w"]                                        # (1, 1, C, cout)
    cout = w.shape[-1]
    if stride > 1:
        x = x[:, ::stride, ::stride, :]
    Ho, Wo = x.shape[1], x.shape[2]
    a = x.reshape(1, N * Ho * Wo, C)
    out = fused_conv_matmul(a, w.reshape(1, C, cout), p["scale"], p["bias"], relu)
    return out.reshape(N, Ho, Wo, cout)


def stem_conv_bn_relu(x, p):
    """7x7/stride-2 conv + BN + ReLU. Contraction dim K = 7*7*3 = 147 is zero-padded
    to 256 so the lane axis of the patch matrix is a multiple of 128 (dense vregs)."""
    N, H, W, C = x.shape
    w = p["w"]                                        # (7, 7, 3, 64)
    cout = w.shape[-1]
    k, s, pad = 7, 2, 3
    Ho = (H + 2 * pad - k) // s + 1
    Wo = (W + 2 * pad - k) // s + 1
    xp = jnp.pad(x, ((0, 0), (pad, pad), (pad, pad), (0, 0)))
    cols = []
    for i in range(k):
        for j in range(k):
            tap = jax.lax.slice(
                xp, (0, i, j, 0),
                (N, i + (Ho - 1) * s + 1, j + (Wo - 1) * s + 1, C),
                (1, s, s, 1))
            cols.append(tap)
    K = k * k * C                                     # 147
    Kp = ((K + 127) // 128) * 128                     # 256
    cols.append(jnp.zeros((N, Ho, Wo, Kp - K), x.dtype))
    a = jnp.concatenate(cols, axis=-1).reshape(N * Ho * Wo, Kp)
    w2 = jnp.pad(w.reshape(K, cout), ((0, Kp - K), (0, 0)))
    out = fused_conv_matmul(a[None], w2[None], p["scale"], p["bias"], relu=True)
    return out.reshape(N, Ho, Wo, cout)


def maxpool_3x3_s2(x):
    """MaxPool2d(kernel_size=3, stride=2, padding=1) as a fused XLA 9-way maximum
    tree (no 9x stacked HBM intermediate; a Pallas kernel adds nothing here)."""
    N, H, W, C = x.shape
    Ho = (H + 2 - 3) // 2 + 1
    Wo = (W + 2 - 3) // 2 + 1
    neg = jnp.finfo(x.dtype).min
    xp = jnp.pad(x, ((0, 0), (1, 1), (1, 1), (0, 0)), constant_values=neg)
    out = None
    for i in range(3):
        for j in range(3):
            tap = jax.lax.slice(
                xp, (0, i, j, 0),
                (N, i + (Ho - 1) * 2 + 1, j + (Wo - 1) * 2 + 1, C),
                (1, 2, 2, 1))
            out = tap if out is None else jnp.maximum(out, tap)
    return out


# ----------------------------------------------------------------------------
# Global average pool (Pallas, tiled over channels so the grid has >1 parallel step)
# ----------------------------------------------------------------------------

def _gap_kernel(x_ref, o_ref):
    o_ref[...] = jnp.mean(x_ref[...].astype(jnp.float32), axis=1)


def global_avg_pool(x):
    """x:(N, H*W, C) -> (N, C) mean over the spatial axis (adaptive avg pool to 1x1)."""
    N, HW, C = x.shape
    tc = _TN if C % _TN == 0 else C
    return pl.pallas_call(
        _gap_kernel,
        out_shape=jax.ShapeDtypeStruct((N, C), jnp.float32),
        grid=(C // tc,),
        in_specs=[pl.BlockSpec((N, HW, tc), lambda j: (0, 0, j))],
        out_specs=pl.BlockSpec((N, tc), lambda j: (0, j)),
        compiler_params=_compiler_params(("parallel",)),
    )(x)


# ----------------------------------------------------------------------------
# BasicBlock (residual add + ReLU fused into conv2's epilogue)
# ----------------------------------------------------------------------------

def basic_block(x, p, stride):
    out1 = conv3x3_bn(x, p["conv1"], stride, relu=True)
    identity = conv1x1_bn(x, p["down"], stride) if "down" in p else x
    return conv3x3_bn(out1, p["conv2"], 1, relu=True, residual=identity)


# ----------------------------------------------------------------------------
# Deterministic synthetic parameters (shapes of torchvision resnet18 + fc->1)
# ----------------------------------------------------------------------------

class ParamGen:
    def __init__(self, key):
        self.key = key

    def next(self):
        self.key, sub = jax.random.split(self.key)
        return sub


def make_conv_bn_params(gen, kh, kw, cin, cout):
    std = (2.0 / (kh * kw * cin)) ** 0.5
    w = jax.random.normal(gen.next(), (kh, kw, cin, cout), jnp.float32) * std
    gamma = 1.0 + 0.1 * jax.random.normal(gen.next(), (cout,), jnp.float32)
    beta = 0.1 * jax.random.normal(gen.next(), (cout,), jnp.float32)
    mean = 0.1 * jax.random.normal(gen.next(), (cout,), jnp.float32)
    var = 1.0 + 0.1 * jnp.abs(jax.random.normal(gen.next(), (cout,), jnp.float32))
    eps = 1e-5
    scale = gamma / jnp.sqrt(var + eps)
    bias = beta - mean * scale
    return {"w": w, "scale": scale, "bias": bias}


def make_resnet18_params(key):
    gen = ParamGen(key)
    params = {"stem": make_conv_bn_params(gen, 7, 7, 3, 64)}

    def make_block(cin, cout, stride):
        b = {"conv1": make_conv_bn_params(gen, 3, 3, cin, cout),
             "conv2": make_conv_bn_params(gen, 3, 3, cout, cout)}
        if stride != 1 or cin != cout:
            b["down"] = make_conv_bn_params(gen, 1, 1, cin, cout)
        return b

    cfg = [(64, 64, 1), (64, 128, 2), (128, 256, 2), (256, 512, 2)]
    params["layers"] = [[make_block(cin, cout, s), make_block(cout, cout, 1)]
                        for (cin, cout, s) in cfg]

    fc_std = (1.0 / 512.0) ** 0.5
    params["fc_w"] = jax.random.normal(gen.next(), (512, 1), jnp.float32) * fc_std
    params["fc_b"] = jax.random.normal(gen.next(), (1,), jnp.float32) * fc_std
    return params


# ----------------------------------------------------------------------------
# Full forward pass (equivalent to CTRPredictor.forward)
# ----------------------------------------------------------------------------

def ctr_predictor_forward(x_nchw, params):
    # NCHW (PyTorch) -> NHWC so the channel axis maps to the 128-lane dimension.
    x = jnp.transpose(x_nchw, (0, 2, 3, 1)).astype(jnp.float32)

    # stem: conv7x7/s2 + BN + ReLU, then maxpool3x3/s2
    x = stem_conv_bn_relu(x, params["stem"])
    x = maxpool_3x3_s2(x)

    # 4 stages x 2 BasicBlocks
    for layer, s in zip(params["layers"], (1, 2, 2, 2)):
        x = basic_block(x, layer[0], s)
        x = basic_block(x, layer[1], 1)

    # global average pool + fc(512 -> 1)
    N, H, W, C = x.shape
    pooled = global_avg_pool(x.reshape(N, H * W, C))         # (N, 512) f32
    # Final Linear(512 -> 1): a 1-lane-wide Pallas matmul is pure overhead
    # (masked stores, wasted MXU width), so plain XLA handles it.
    return pooled @ params["fc_w"] + params["fc_b"]           # (N, 1)


# ----------------------------------------------------------------------------
# main
# ----------------------------------------------------------------------------

if __name__ == "__main__":
    key = jax.random.PRNGKey(0)
    pkey, xkey = jax.random.split(key)

    params = make_resnet18_params(pkey)
    x = jax.random.normal(xkey, (2, 3, 32, 32), jnp.float32)   # small NCHW input

    fwd = jax.jit(ctr_predictor_forward)
    out = fwd(x, params)
    jax.block_until_ready(out)

    assert out.shape == (2, 1), out.shape
    assert bool(jnp.all(jnp.isfinite(out)))
    print("KERNEL_OK")
</pallas_src>

<mosaic_0001>
module attributes {stable_mosaic.version = 11 : i64} {
  func.func @_conv_taps_kernel(%arg0: i32, %arg1: i32, %arg2: i32, %arg3: memref<1x512x256xbf16, #tpu.memory_space<vmem>>, %arg4: memref<1x256x64xbf16, #tpu.memory_space<vmem>>, %arg5: memref<1x64xf32, #tpu.memory_space<vmem>>, %arg6: memref<1x64xf32, #tpu.memory_space<vmem>>, %arg7: memref<512x64xbf16, #tpu.memory_space<vmem>>, %arg8: memref<512x64xf32, #tpu.memory_space<vmem>>) attributes {dimension_semantics = [#tpu.dimension_semantics<parallel>, #tpu.dimension_semantics<parallel>, #tpu.dimension_semantics<arbitrary>], iteration_bounds = array<i64: 1, 1, 1>, scalar_prefetch = 0 : i64, scratch_operands = 1 : i64, tpu.core_type = #tpu.core_type<tc>, window_params = [{transform_indices = @transform_0, window_bounds = array<i64: 1, 512, 256>}, {transform_indices = @transform_1, window_bounds = array<i64: 1, 256, 64>}, {transform_indices = @transform_2, window_bounds = array<i64: 1, 64>}, {transform_indices = @transform_3, window_bounds = array<i64: 1, 64>}, {transform_indices = @transform_4, window_bounds = array<i64: 512, 64>}]} {
    %c0_i32 = arith.constant 0 : i32
    %0 = arith.cmpi eq, %arg2, %c0_i32 : i32
    %1 = arith.extui %0 : i1 to i32
    %c0_i32_0 = arith.constant 0 : i32
    %2 = arith.cmpi ne, %1, %c0_i32_0 : i32
    scf.if %2 {
      %cst_12 = arith.constant 0.000000e+00 : f32
      %14 = vector.broadcast %cst_12 : f32 to vector<512x64xf32>
      %c0_13 = arith.constant 0 : index
      %c0_14 = arith.constant 0 : index
      %15 = vector.load %arg8[%c0_13, %c0_14] : memref<512x64xf32, #tpu.memory_space<vmem>>, vector<512x64xf32>
      tpu.vector_store %arg8[%c0_13, %c0_14], %14 {strides = array<i32>} : memref<512x64xf32, #tpu.memory_space<vmem>>, vector<512x64xf32>,
    } else {
    }
    %c0 = arith.constant 0 : index
    %c0_1 = arith.constant 0 : index
    %3 = vector.load %arg8[%c0, %c0_1] : memref<512x64xf32, #tpu.memory_space<vmem>>, vector<512x64xf32>
    %c0_2 = arith.constant 0 : index
    %c0_3 = arith.constant 0 : index
    %c0_4 = arith.constant 0 : index
    %4 = vector.load %arg3[%c0_2, %c0_3, %c0_4] : memref<1x512x256xbf16, #tpu.memory_space<vmem>>, vector<1x512x256xbf16>
    %5 = vector.shape_cast %4 : vector<1x512x256xbf16> to vector<512x256xbf16>
    %c0_5 = arith.constant 0 : index
    %c0_6 = arith.constant 0 : index
    %c0_7 = arith.constant 0 : index
    %6 = vector.load %arg4[%c0_5, %c0_6, %c0_7] : memref<1x256x64xbf16, #tpu.memory_space<vmem>>, vector<1x256x64xbf16>
    %7 = vector.shape_cast %6 : vector<1x256x64xbf16> to vector<256x64xbf16>
    %cst = arith.constant dense<0.000000e+00> : vector<512x64xf32>
    %8 = tpu.matmul %5, %7, %cst {dimension_numbers = #tpu.dot_dimension_numbers<[1], [0], [0], [1], [0, 0, 1, 1], [], []>} : vector<512x256xbf16>, vector<256x64xbf16>, vector<512x64xf32> -> vector<512x64xf32>
    %9 = arith.addf %3, %8 : vector<512x64xf32>
    %c0_8 = arith.constant 0 : index
    %c0_9 = arith.constant 0 : index
    %10 = vector.load %arg8[%c0_8, %c0_9] : memref<512x64xf32, #tpu.memory_space<vmem>>, vector<512x64xf32>
    tpu.vector_store %arg8[%c0_8, %c0_9], %9 {strides = array<i32>} : memref<512x64xf32, #tpu.memory_space<vmem>>, vector<512x64xf32>,
    %c0_i32_10 = arith.constant 0 : i32
    %11 = arith.cmpi eq, %arg2, %c0_i32_10 : i32
    %12 = arith.extui %11 : i1 to i32
    %c0_i32_11 = arith.constant 0 : i32
    %13 = arith.cmpi ne, %12, %c0_i32_11 : i32
    scf.if %13 {
      %c0_12 = arith.constant 0 : index
      %c0_13 = arith.constant 0 : index
      %14 = vector.load %arg8[%c0_12, %c0_13] : memref<512x64xf32, #tpu.memory_space<vmem>>, vector<512x64xf32>
      %c0_14 = arith.constant 0 : index
      %c0_15 = arith.constant 0 : index
      %15 = vector.load %arg5[%c0_14, %c0_15] : memref<1x64xf32, #tpu.memory_space<vmem>>, vector<1x64xf32>
      %16 = vector.broadcast %15 : vector<1x64xf32> to vector<512x64xf32>
      %17 = arith.mulf %14, %16 : vector<512x64xf32>
      %c0_16 = arith.constant 0 : index
      %c0_17 = arith.constant 0 : index
      %18 = vector.load %arg6[%c0_16, %c0_17] : memref<1x64xf32, #tpu.memory_space<vmem>>, vector<1x64xf32>
      %19 = vector.broadcast %18 : vector<1x64xf32> to vector<512x64xf32>
      %20 = arith.addf %17, %19 : vector<512x64xf32>
      %cst_18 = arith.constant 0.000000e+00 : f32
      %21 = vector.broadcast %cst_18 : f32 to vector<512x64xf32>
      %22 = arith.maximumf %20, %21 : vector<512x64xf32>
      %23 = arith.truncf %22 : vector<512x64xf32> to vector<512x64xbf16>
      %c0_19 = arith.constant 0 : index
      %c0_20 = arith.constant 0 : index
      %24 = vector.load %arg7[%c0_19, %c0_20] : memref<512x64xbf16, #tpu.memory_space<vmem>>, vector<512x64xbf16>
      tpu.vector_store %arg7[%c0_19, %c0_20], %23 {strides = array<i32>} : memref<512x64xbf16, #tpu.memory_space<vmem>>, vector<512x64xbf16>,
    } else {
    }
    return
  }
  func.func @transform_0(%arg0: i32, %arg1: i32, %arg2: i32) -> (i32, i32, i32) {
    %c0_i32 = arith.constant 0 : i32
    %c0_i32_0 = arith.constant 0 : i32
    return %arg2, %arg0, %c0_i32 : i32, i32, i32
  }
  func.func @transform_1(%arg0: i32, %arg1: i32, %arg2: i32) -> (i32, i32, i32) {
    %c0_i32 = arith.constant 0 : i32
    %c0_i32_0 = arith.constant 0 : i32
    return %arg2, %c0_i32, %arg1 : i32, i32, i32
  }
  func.func @transform_2(%arg0: i32, %arg1: i32, %arg2: i32) -> (i32, i32) {
    %c0_i32 = arith.constant 0 : i32
    %c0_i32_0 = arith.constant 0 : i32
    return %c0_i32, %arg1 : i32, i32
  }
  func.func @transform_3(%arg0: i32, %arg1: i32, %arg2: i32) -> (i32, i32) {
    %c0_i32 = arith.constant 0 : i32
    %c0_i32_0 = arith.constant 0 : i32
    return %c0_i32, %arg1 : i32, i32
  }
  func.func @transform_4(%arg0: i32, %arg1: i32, %arg2: i32) -> (i32, i32) {
    %c0_i32 = arith.constant 0 : i32
    return %arg0, %arg1 : i32, i32
  }
}

module attributes {stable_mosaic.version = 11 : i64} {
  func.func @_conv_taps_kernel(%arg0: i32, %arg1: i32, %arg2: i32, %arg3: memref<1x128x64xbf16, #tpu.memory_space<vmem>>, %arg4: memref<1x64x64xbf16, #tpu.memory_space<vmem>>, %arg5: memref<1x64xf32, #tpu.memory_space<vmem>>, %arg6: memref<1x64xf32, #tpu.memory_space<vmem>>, %arg7: memref<128x64xbf16, #tpu.memory_space<vmem>>, %arg8: memref<128x64xf32, #tpu.memory_space<vmem>>) attributes {dimension_semantics = [#tpu.dimension_semantics<parallel>, #tpu.dimension_semantics<parallel>, #tpu.dimension_semantics<arbitrary>], iteration_bounds = array<i64: 1, 1, 9>, scalar_prefetch = 0 : i64, scratch_operands = 1 : i64, tpu.core_type = #tpu.core_type<tc>, window_params = [{transform_indices = @transform_0, window_bounds = array<i64: 1, 128, 64>}, {transform_indices = @transform_1, window_bounds = array<i64: 1, 64, 64>}, {transform_indices = @transform_2, window_bounds = array<i64: 1, 64>}, {transform_indices = @transform_3, window_bounds = array<i64: 1, 64>}, {transform_indices = @transform_4, window_bounds = array<i64: 128, 64>}]} {
    %c0_i32 = arith.constant 0 : i32
    %0 = arith.cmpi eq, %arg2, %c0_i32 : i32
    %1 = arith.extui %0 : i1 to i32
    %c0_i32_0 = arith.constant 0 : i32
    %2 = arith.cmpi ne, %1, %c0_i32_0 : i32
    scf.if %2 {
      %cst_11 = arith.constant 0.000000e+00 : f32
      %14 = vector.broadcast %cst_11 : f32 to vector<128x64xf32>
      %c0_12 = arith.constant 0 : index
      %c0_13 = arith.constant 0 : index
      %15 = vector.load %arg8[%c0_12, %c0_13] : memref<128x64xf32, #tpu.memory_space<vmem>>, vector<128x64xf32>
      tpu.vector_store %arg8[%c0_12, %c0_13], %14 {strides = array<i32>} : memref<128x64xf32, #tpu.memory_space<vmem>>, vector<128x64xf32>,
    } else {
    }
    %c0 = arith.constant 0 : index
    %c0_1 = arith.constant 0 : index
    %3 = vector.load %arg8[%c0, %c0_1] : memref<128x64xf32, #tpu.memory_space<vmem>>, vector<128x64xf32>
    %c0_2 = arith.constant 0 : index
    %c0_3 = arith.constant 0 : index
    %c0_4 = arith.constant 0 : index
    %4 = vector.load %arg3[%c0_2, %c0_3, %c0_4] : memref<1x128x64xbf16, #tpu.memory_space<vmem>>, vector<1x128x64xbf16>
    %5 = vector.shape_cast %4 : vector<1x128x64xbf16> to vector<128x64xbf16>
    %c0_5 = arith.constant 0 : index
    %c0_6 = arith.constant 0 : index
    %c0_7 = arith.constant 0 : index
    %6 = vector.load %arg4[%c0_5, %c0_6, %c0_7] : memref<1x64x64xbf16, #tpu.memory_space<vmem>>, vector<1x64x64xbf16>
    %7 = vector.shape_cast %6 : vector<1x64x64xbf16> to vector<64x64xbf16>
    %cst = arith.constant dense<0.000000e+00> : vector<128x64xf32>
    %8 = tpu.matmul %5, %7, %cst {dimension_numbers = #tpu.dot_dimension_numbers<[1], [0], [0], [1], [0, 0, 1, 1], [], []>} : vector<128x64xbf16>, vector<64x64xbf16>, vector<128x64xf32> -> vector<128x64xf32>
    %9 = arith.addf %3, %8 : vector<128x64xf32>
    %c0_8 = arith.constant 0 : index
    %c0_9 = arith.constant 0 : index
    %10 = vector.load %arg8[%c0_8, %c0_9] : memref<128x64xf32, #tpu.memory_space<vmem>>, vector<128x64xf32>
    tpu.vector_store %arg8[%c0_8, %c0_9], %9 {strides = array<i32>} : memref<128x64xf32, #tpu.memory_space<vmem>>, vector<128x64xf32>,
    %c8_i32 = arith.constant 8 : i32
    %11 = arith.cmpi eq, %arg2, %c8_i32 : i32
    %12 = arith.extui %11 : i1 to i32
    %c0_i32_10 = arith.constant 0 : i32
    %13 = arith.cmpi ne, %12, %c0_i32_10 : i32
    scf.if %13 {
      %c0_11 = arith.constant 0 : index
      %c0_12 = arith.constant 0 : index
      %14 = vector.load %arg8[%c0_11, %c0_12] : memref<128x64xf32, #tpu.memory_space<vmem>>, vector<128x64xf32>
      %c0_13 = arith.constant 0 : index
      %c0_14 = arith.constant 0 : index
      %15 = vector.load %arg5[%c0_13, %c0_14] : memref<1x64xf32, #tpu.memory_space<vmem>>, vector<1x64xf32>
      %16 = vector.broadcast %15 : vector<1x64xf32> to vector<128x64xf32>
      %17 = arith.mulf %14, %16 : vector<128x64xf32>
      %c0_15 = arith.constant 0 : index
      %c0_16 = arith.constant 0 : index
      %18 = vector.load %arg6[%c0_15, %c0_16] : memref<1x64xf32, #tpu.memory_space<vmem>>, vector<1x64xf32>
      %19 = vector.broadcast %18 : vector<1x64xf32> to vector<128x64xf32>
      %20 = arith.addf %17, %19 : vector<128x64xf32>
      %cst_17 = arith.constant 0.000000e+00 : f32
      %21 = vector.broadcast %cst_17 : f32 to vector<128x64xf32>
      %22 = arith.maximumf %20, %21 : vector<128x64xf32>
      %23 = arith.truncf %22 : vector<128x64xf32> to vector<128x64xbf16>
      %c0_18 = arith.constant 0 : index
      %c0_19 = arith.constant 0 : index
      %24 = vector.load %arg7[%c0_18, %c0_19] : memref<128x64xbf16, #tpu.memory_space<vmem>>, vector<128x64xbf16>
      tpu.vector_store %arg7[%c0_18, %c0_19], %23 {strides = array<i32>} : memref<128x64xbf16, #tpu.memory_space<vmem>>, vector<128x64xbf16>,
    } else {
    }
    return
  }
  func.func @transform_0(%arg0: i32, %arg1: i32, %arg2: i32) -> (i32, i32, i32) {
    %c0_i32 = arith.constant 0 : i32
    %c0_i32_0 = arith.constant 0 : i32
    return %arg2, %arg0, %c0_i32 : i32, i32, i32
  }
  func.func @transform_1(%arg0: i32, %arg1: i32, %arg2: i32) -> (i32, i32, i32) {
    %c0_i32 = arith.constant 0 : i32
    %c0_i32_0 = arith.constant 0 : i32
    return %arg2, %c0_i32, %arg1 : i32, i32, i32
  }
  func.func @transform_2(%arg0: i32, %arg1: i32, %arg2: i32) -> (i32, i32) {
    %c0_i32 = arith.constant 0 : i32
    %c0_i32_0 = arith.constant 0 : i32
    return %c0_i32, %arg1 : i32, i32
  }
  func.func @transform_3(%arg0: i32, %arg1: i32, %arg2: i32) -> (i32, i32) {
    %c0_i32 = arith.constant 0 : i32
    %c0_i32_0 = arith.constant 0 : i32
    return %c0_i32, %arg1 : i32, i32
  }
  func.func @transform_4(%arg0: i32, %arg1: i32, %arg2: i32) -> (i32, i32) {
    %c0_i32 = arith.constant 0 : i32
    return %arg0, %arg1 : i32, i32
  }
}

module attributes {stable_mosaic.version = 11 : i64} {
  func.func @_conv_taps_kernel(%arg0: i32, %arg1: i32, %arg2: i32, %arg3: memref<1x128x64xbf16, #tpu.memory_space<vmem>>, %arg4: memref<1x64x64xbf16, #tpu.memory_space<vmem>>, %arg5: memref<1x64xf32, #tpu.memory_space<vmem>>, %arg6: memref<1x64xf32, #tpu.memory_space<vmem>>, %arg7: memref<128x64xbf16, #tpu.memory_space<vmem>>, %arg8: memref<128x64xbf16, #tpu.memory_space<vmem>>, %arg9: memref<128x64xf32, #tpu.memory_space<vmem>>) attributes {dimension_semantics = [#tpu.dimension_semantics<parallel>, #tpu.dimension_semantics<parallel>, #tpu.dimension_semantics<arbitrary>], iteration_bounds = array<i64: 1, 1, 9>, scalar_prefetch = 0 : i64, scratch_operands = 1 : i64, tpu.core_type = #tpu.core_type<tc>, window_params = [{transform_indices = @transform_0, window_bounds = array<i64: 1, 128, 64>}, {transform_indices = @transform_1, window_bounds = array<i64: 1, 64, 64>}, {transform_indices = @transform_2, window_bounds = array<i64: 1, 64>}, {transform_indices = @transform_3, window_bounds = array<i64: 1, 64>}, {transform_indices = @transform_4, window_bounds = array<i64: 128, 64>}, {transform_indices = @transform_5, window_bounds = array<i64: 128, 64>}]} {
    %c0_i32 = arith.constant 0 : i32
    %0 = arith.cmpi eq, %arg2, %c0_i32 : i32
    %1 = arith.extui %0 : i1 to i32
    %c0_i32_0 = arith.constant 0 : i32
    %2 = arith.cmpi ne, %1, %c0_i32_0 : i32
    scf.if %2 {
      %cst_11 = arith.constant 0.000000e+00 : f32
      %14 = vector.broadcast %cst_11 : f32 to vector<128x64xf32>
      %c0_12 = arith.constant 0 : index
      %c0_13 = arith.constant 0 : index
      %15 = vector.load %arg9[%c0_12, %c0_13] : memref<128x64xf32, #tpu.memory_space<vmem>>, vector<128x64xf32>
      tpu.vector_store %arg9[%c0_12, %c0_13], %14 {strides = array<i32>} : memref<128x64xf32, #tpu.memory_space<vmem>>, vector<128x64xf32>,
    } else {
    }
    %c0 = arith.constant 0 : index
    %c0_1 = arith.constant 0 : index
    %3 = vector.load %arg9[%c0, %c0_1] : memref<128x64xf32, #tpu.memory_space<vmem>>, vector<128x64xf32>
    %c0_2 = arith.constant 0 : index
    %c0_3 = arith.constant 0 : index
    %c0_4 = arith.constant 0 : index
    %4 = vector.load %arg3[%c0_2, %c0_3, %c0_4] : memref<1x128x64xbf16, #tpu.memory_space<vmem>>, vector<1x128x64xbf16>
    %5 = vector.shape_cast %4 : vector<1x128x64xbf16> to vector<128x64xbf16>
    %c0_5 = arith.constant 0 : index
    %c0_6 = arith.constant 0 : index
    %c0_7 = arith.constant 0 : index
    %6 = vector.load %arg4[%c0_5, %c0_6, %c0_7] : memref<1x64x64xbf16, #tpu.memory_space<vmem>>, vector<1x64x64xbf16>
    %7 = vector.shape_cast %6 : vector<1x64x64xbf16> to vector<64x64xbf16>
    %cst = arith.constant dense<0.000000e+00> : vector<128x64xf32>
    %8 = tpu.matmul %5, %7, %cst {dimension_numbers = #tpu.dot_dimension_numbers<[1], [0], [0], [1], [0, 0, 1, 1], [], []>} : vector<128x64xbf16>, vector<64x64xbf16>, vector<128x64xf32> -> vector<128x64xf32>
    %9 = arith.addf %3, %8 : vector<128x64xf32>
    %c0_8 = arith.constant 0 : index
    %c0_9 = arith.constant 0 : index
    %10 = vector.load %arg9[%c0_8, %c0_9] : memref<128x64xf32, #tpu.memory_space<vmem>>, vector<128x64xf32>
    tpu.vector_store %arg9[%c0_8, %c0_9], %9 {strides = array<i32>} : memref<128x64xf32, #tpu.memory_space<vmem>>, vector<128x64xf32>,
    %c8_i32 = arith.constant 8 : i32
    %11 = arith.cmpi eq, %arg2, %c8_i32 : i32
    %12 = arith.extui %11 : i1 to i32
    %c0_i32_10 = arith.constant 0 : i32
    %13 = arith.cmpi ne, %12, %c0_i32_10 : i32
    scf.if %13 {
      %c0_11 = arith.constant 0 : index
      %c0_12 = arith.constant 0 : index
      %14 = vector.load %arg9[%c0_11, %c0_12] : memref<128x64xf32, #tpu.memory_space<vmem>>, vector<128x64xf32>
      %c0_13 = arith.constant 0 : index
      %c0_14 = arith.constant 0 : index
      %15 = vector.load %arg5[%c0_13, %c0_14] : memref<1x64xf32, #tpu.memory_space<vmem>>, vector<1x64xf32>
      %16 = vector.broadcast %15 : vector<1x64xf32> to vector<128x64xf32>
      %17 = arith.mulf %14, %16 : vector<128x64xf32>
      %c0_15 = arith.constant 0 : index
      %c0_16 = arith.constant 0 : index
      %18 = vector.load %arg6[%c0_15, %c0_16] : memref<1x64xf32, #tpu.memory_space<vmem>>, vector<1x64xf32>
      %19 = vector.broadcast %18 : vector<1x64xf32> to vector<128x64xf32>
      %20 = arith.addf %17, %19 : vector<128x64xf32>
      %c0_17 = arith.constant 0 : index
      %c0_18 = arith.constant 0 : index
      %21 = vector.load %arg7[%c0_17, %c0_18] : memref<128x64xbf16, #tpu.memory_space<vmem>>, vector<128x64xbf16>
      %22 = arith.extf %21 : vector<128x64xbf16> to vector<128x64xf32>
      %23 = arith.addf %20, %22 : vector<128x64xf32>
      %cst_19 = arith.constant 0.000000e+00 : f32
      %24 = vector.broadcast %cst_19 : f32 to vector<128x64xf32>
      %25 = arith.maximumf %23, %24 : vector<128x64xf32>
      %26 = arith.truncf %25 : vector<128x64xf32> to vector<128x64xbf16>
      %c0_20 = arith.constant 0 : index
      %c0_21 = arith.constant 0 : index
      %27 = vector.load %arg8[%c0_20, %c0_21] : memref<128x64xbf16, #tpu.memory_space<vmem>>, vector<128x64xbf16>
      tpu.vector_store %arg8[%c0_20, %c0_21], %26 {strides = array<i32>} : memref<128x64xbf16, #tpu.memory_space<vmem>>, vector<128x64xbf16>,
    } else {
    }
    return
  }
  func.func @transform_0(%arg0: i32, %arg1: i32, %arg2: i32) -> (i32, i32, i32) {
    %c0_i32 = arith.constant 0 : i32
    %c0_i32_0 = arith.constant 0 : i32
    return %arg2, %arg0, %c0_i32 : i32, i32, i32
  }
  func.func @transform_1(%arg0: i32, %arg1: i32, %arg2: i32) -> (i32, i32, i32) {
    %c0_i32 = arith.constant 0 : i32
    %c0_i32_0 = arith.constant 0 : i32
    return %arg2, %c0_i32, %arg1 : i32, i32, i32
  }
  func.func @transform_2(%arg0: i32, %arg1: i32, %arg2: i32) -> (i32, i32) {
    %c0_i32 = arith.constant 0 : i32
    %c0_i32_0 = arith.constant 0 : i32
    return %c0_i32, %arg1 : i32, i32
  }
  func.func @transform_3(%arg0: i32, %arg1: i32, %arg2: i32) -> (i32, i32) {
    %c0_i32 = arith.constant 0 : i32
    %c0_i32_0 = arith.constant 0 : i32
    return %c0_i32, %arg1 : i32, i32
  }
  func.func @transform_4(%arg0: i32, %arg1: i32, %arg2: i32) -> (i32, i32) {
    %c0_i32 = arith.constant 0 : i32
    return %arg0, %arg1 : i32, i32
  }
  func.func @transform_5(%arg0: i32, %arg1: i32, %arg2: i32) -> (i32, i32) {
    %c0_i32 = arith.constant 0 : i32
    return %arg0, %arg1 : i32, i32
  }
}

module attributes {stable_mosaic.version = 11 : i64} {
  func.func @_conv_taps_kernel(%arg0: i32, %arg1: i32, %arg2: i32, %arg3: memref<1x32x64xbf16, #tpu.memory_space<vmem>>, %arg4: memref<1x64x128xbf16, #tpu.memory_space<vmem>>, %arg5: memref<1x128xf32, #tpu.memory_space<vmem>>, %arg6: memref<1x128xf32, #tpu.memory_space<vmem>>, %arg7: memref<32x128xbf16, #tpu.memory_space<vmem>>, %arg8: memref<32x128xf32, #tpu.memory_space<vmem>>) attributes {dimension_semantics = [#tpu.dimension_semantics<parallel>, #tpu.dimension_semantics<parallel>, #tpu.dimension_semantics<arbitrary>], iteration_bounds = array<i64: 1, 1, 9>, scalar_prefetch = 0 : i64, scratch_operands = 1 : i64, tpu.core_type = #tpu.core_type<tc>, window_params = [{transform_indices = @transform_0, window_bounds = array<i64: 1, 32, 64>}, {transform_indices = @transform_1, window_bounds = array<i64: 1, 64, 128>}, {transform_indices = @transform_2, window_bounds = array<i64: 1, 128>}, {transform_indices = @transform_3, window_bounds = array<i64: 1, 128>}, {transform_indices = @transform_4, window_bounds = array<i64: 32, 128>}]} {
    %c0_i32 = arith.constant 0 : i32
    %0 = arith.cmpi eq, %arg2, %c0_i32 : i32
    %1 = arith.extui %0 : i1 to i32
    %c0_i32_0 = arith.constant 0 : i32
    %2 = arith.cmpi ne, %1, %c0_i32_0 : i32
    scf.if %2 {
      %cst_11 = arith.constant 0.000000e+00 : f32
      %14 = vector.broadcast %cst_11 : f32 to vector<32x128xf32>
      %c0_12 = arith.constant 0 : index
      %c0_13 = arith.constant 0 : index
      %15 = vector.load %arg8[%c0_12, %c0_13] : memref<32x128xf32, #tpu.memory_space<vmem>>, vector<32x128xf32>
      tpu.vector_store %arg8[%c0_12, %c0_13], %14 {strides = array<i32>} : memref<32x128xf32, #tpu.memory_space<vmem>>, vector<32x128xf32>,
    } else {
    }
    %c0 = arith.constant 0 : index
    %c0_1 = arith.constant 0 : index
    %3 = vector.load %arg8[%c0, %c0_1] : memref<32x128xf32, #tpu.memory_space<vmem>>, vector<32x128xf32>
    %c0_2 = arith.constant 0 : index
    %c0_3 = arith.constant 0 : index
    %c0_4 = arith.constant 0 : index
    %4 = vector.load %arg3[%c0_2, %c0_3, %c0_4] : memref<1x32x64xbf16, #tpu.memory_space<vmem>>, vector<1x32x64xbf16>
    %5 = vector.shape_cast %4 : vector<1x32x64xbf16> to vector<32x64xbf16>
    %c0_5 = arith.constant 0 : index
    %c0_6 = arith.constant 0 : index
    %c0_7 = arith.constant 0 : index
    %6 = vector.load %arg4[%c0_5, %c0_6, %c0_7] : memref<1x64x128xbf16, #tpu.memory_space<vmem>>, vector<1x64x128xbf16>
    %7 = vector.shape_cast %6 : vector<1x64x128xbf16> to vector<64x128xbf16>
    %cst = arith.constant dense<0.000000e+00> : vector<32x128xf32>
    %8 = tpu.matmul %5, %7, %cst {dimension_numbers = #tpu.dot_dimension_numbers<[1], [0], [0], [1], [0, 0, 1, 1], [], []>} : vector<32x64xbf16>, vector<64x128xbf16>, vector<32x128xf32> -> vector<32x128xf32>
    %9 = arith.addf %3, %8 : vector<32x128xf32>
    %c0_8 = arith.constant 0 : index
    %c0_9 = arith.constant 0 : index
    %10 = vector.load %arg8[%c0_8, %c0_9] : memref<32x128xf32, #tpu.memory_space<vmem>>, vector<32x128xf32>
    tpu.vector_store %arg8[%c0_8, %c0_9], %9 {strides = array<i32>} : memref<32x128xf32, #tpu.memory_space<vmem>>, vector<32x128xf32>,
    %c8_i32 = arith.constant 8 : i32
    %11 = arith.cmpi eq, %arg2, %c8_i32 : i32
    %12 = arith.extui %11 : i1 to i32
    %c0_i32_10 = arith.constant 0 : i32
    %13 = arith.cmpi ne, %12, %c0_i32_10 : i32
    scf.if %13 {
      %c0_11 = arith.constant 0 : index
      %c0_12 = arith.constant 0 : index
      %14 = vector.load %arg8[%c0_11, %c0_12] : memref<32x128xf32, #tpu.memory_space<vmem>>, vector<32x128xf32>
      %c0_13 = arith.constant 0 : index
      %c0_14 = arith.constant 0 : index
      %15 = vector.load %arg5[%c0_13, %c0_14] : memref<1x128xf32, #tpu.memory_space<vmem>>, vector<1x128xf32>
      %16 = vector.broadcast %15 : vector<1x128xf32> to vector<32x128xf32>
      %17 = arith.mulf %14, %16 : vector<32x128xf32>
      %c0_15 = arith.constant 0 : index
      %c0_16 = arith.constant 0 : index
      %18 = vector.load %arg6[%c0_15, %c0_16] : memref<1x128xf32, #tpu.memory_space<vmem>>, vector<1x128xf32>
      %19 = vector.broadcast %18 : vector<1x128xf32> to vector<32x128xf32>
      %20 = arith.addf %17, %19 : vector<32x128xf32>
      %cst_17 = arith.constant 0.000000e+00 : f32
      %21 = vector.broadcast %cst_17 : f32 to vector<32x128xf32>
      %22 = arith.maximumf %20, %21 : vector<32x128xf32>
      %23 = arith.truncf %22 : vector<32x128xf32> to vector<32x128xbf16>
      %c0_18 = arith.constant 0 : index
      %c0_19 = arith.constant 0 : index
      %24 = vector.load %arg7[%c0_18, %c0_19] : memref<32x128xbf16, #tpu.memory_space<vmem>>, vector<32x128xbf16>
      tpu.vector_store %arg7[%c0_18, %c0_19], %23 {strides = array<i32>} : memref<32x128xbf16, #tpu.memory_space<vmem>>, vector<32x128xbf16>,
    } else {
    }
    return
  }
  func.func @transform_0(%arg0: i32, %arg1: i32, %arg2: i32) -> (i32, i32, i32) {
    %c0_i32 = arith.constant 0 : i32
    %c0_i32_0 = arith.constant 0 : i32
    return %arg2, %arg0, %c0_i32 : i32, i32, i32
  }
  func.func @transform_1(%arg0: i32, %arg1: i32, %arg2: i32) -> (i32, i32, i32) {
    %c0_i32 = arith.constant 0 : i32
    %c0_i32_0 = arith.constant 0 : i32
    return %arg2, %c0_i32, %arg1 : i32, i32, i32
  }
  func.func @transform_2(%arg0: i32, %arg1: i32, %arg2: i32) -> (i32, i32) {
    %c0_i32 = arith.constant 0 : i32
    %c0_i32_0 = arith.constant 0 : i32
    return %c0_i32, %arg1 : i32, i32
  }
  func.func @transform_3(%arg0: i32, %arg1: i32, %arg2: i32) -> (i32, i32) {
    %c0_i32 = arith.constant 0 : i32
    %c0_i32_0 = arith.constant 0 : i32
    return %c0_i32, %arg1 : i32, i32
  }
  func.func @transform_4(%arg0: i32, %arg1: i32, %arg2: i32) -> (i32, i32) {
    %c0_i32 = arith.constant 0 : i32
    return %arg0, %arg1 : i32, i32
  }
}

module attributes {stable_mosaic.version = 11 : i64} {
  func.func @_conv_taps_kernel(%arg0: i32, %arg1: i32, %arg2: i32, %arg3: memref<1x32x64xbf16, #tpu.memory_space<vmem>>, %arg4: memref<1x64x128xbf16, #tpu.memory_space<vmem>>, %arg5: memref<1x128xf32, #tpu.memory_space<vmem>>, %arg6: memref<1x128xf32, #tpu.memory_space<vmem>>, %arg7: memref<32x128xbf16, #tpu.memory_space<vmem>>, %arg8: memref<32x128xf32, #tpu.memory_space<vmem>>) attributes {dimension_semantics = [#tpu.dimension_semantics<parallel>, #tpu.dimension_semantics<parallel>, #tpu.dimension_semantics<arbitrary>], iteration_bounds = array<i64: 1, 1, 1>, scalar_prefetch = 0 : i64, scratch_operands = 1 : i64, tpu.core_type = #tpu.core_type<tc>, window_params = [{transform_indices = @transform_0, window_bounds = array<i64: 1, 32, 64>}, {transform_indices = @transform_1, window_bounds = array<i64: 1, 64, 128>}, {transform_indices = @transform_2, window_bounds = array<i64: 1, 128>}, {transform_indices = @transform_3, window_bounds = array<i64: 1, 128>}, {transform_indices = @transform_4, window_bounds = array<i64: 32, 128>}]} {
    %c0_i32 = arith.constant 0 : i32
    %0 = arith.cmpi eq, %arg2, %c0_i32 : i32
    %1 = arith.extui %0 : i1 to i32
    %c0_i32_0 = arith.constant 0 : i32
    %2 = arith.cmpi ne, %1, %c0_i32_0 : i32
    scf.if %2 {
      %cst_12 = arith.constant 0.000000e+00 : f32
      %14 = vector.broadcast %cst_12 : f32 to vector<32x128xf32>
      %c0_13 = arith.constant 0 : index
      %c0_14 = arith.constant 0 : index
      %15 = vector.load %arg8[%c0_13, %c0_14] : memref<32x128xf32, #tpu.memory_space<vmem>>, vector<32x128xf32>
      tpu.vector_store %arg8[%c0_13, %c0_14], %14 {strides = array<i32>} : memref<32x128xf32, #tpu.memory_space<vmem>>, vector<32x128xf32>,
    } else {
    }
    %c0 = arith.constant 0 : index
    %c0_1 = arith.constant 0 : index
    %3 = vector.load %arg8[%c0, %c0_1] : memref<32x128xf32, #tpu.memory_space<vmem>>, vector<32x128xf32>
    %c0_2 = arith.constant 0 : index
    %c0_3 = arith.constant 0 : index
    %c0_4 = arith.constant 0 : index
    %4 = vector.load %arg3[%c0_2, %c0_3, %c0_4] : memref<1x32x64xbf16, #tpu.memory_space<vmem>>, vector<1x32x64xbf16>
    %5 = vector.shape_cast %4 : vector<1x32x64xbf16> to vector<32x64xbf16>
    %c0_5 = arith.constant 0 : index
    %c0_6 = arith.constant 0 : index
    %c0_7 = arith.constant 0 : index
    %6 = vector.load %arg4[%c0_5, %c0_6, %c0_7] : memref<1x64x128xbf16, #tpu.memory_space<vmem>>, vector<1x64x128xbf16>
    %7 = vector.shape_cast %6 : vector<1x64x128xbf16> to vector<64x128xbf16>
    %cst = arith.constant dense<0.000000e+00> : vector<32x128xf32>
    %8 = tpu.matmul %5, %7, %cst {dimension_numbers = #tpu.dot_dimension_numbers<[1], [0], [0], [1], [0, 0, 1, 1], [], []>} : vector<32x64xbf16>, vector<64x128xbf16>, vector<32x128xf32> -> vector<32x128xf32>
    %9 = arith.addf %3, %8 : vector<32x128xf32>
    %c0_8 = arith.constant 0 : index
    %c0_9 = arith.constant 0 : index
    %10 = vector.load %arg8[%c0_8, %c0_9] : memref<32x128xf32, #tpu.memory_space<vmem>>, vector<32x128xf32>
    tpu.vector_store %arg8[%c0_8, %c0_9], %9 {strides = array<i32>} : memref<32x128xf32, #tpu.memory_space<vmem>>, vector<32x128xf32>,
    %c0_i32_10 = arith.constant 0 : i32
    %11 = arith.cmpi eq, %arg2, %c0_i32_10 : i32
    %12 = arith.extui %11 : i1 to i32
    %c0_i32_11 = arith.constant 0 : i32
    %13 = arith.cmpi ne, %12, %c0_i32_11 : i32
    scf.if %13 {
      %c0_12 = arith.constant 0 : index
      %c0_13 = arith.constant 0 : index
      %14 = vector.load %arg8[%c0_12, %c0_13] : memref<32x128xf32, #tpu.memory_space<vmem>>, vector<32x128xf32>
      %c0_14 = arith.constant 0 : index
      %c0_15 = arith.constant 0 : index
      %15 = vector.load %arg5[%c0_14, %c0_15] : memref<1x128xf32, #tpu.memory_space<vmem>>, vector<1x128xf32>
      %16 = vector.broadcast %15 : vector<1x128xf32> to vector<32x128xf32>
      %17 = arith.mulf %14, %16 : vector<32x128xf32>
      %c0_16 = arith.constant 0 : index
      %c0_17 = arith.constant 0 : index
      %18 = vector.load %arg6[%c0_16, %c0_17] : memref<1x128xf32, #tpu.memory_space<vmem>>, vector<1x128xf32>
      %19 = vector.broadcast %18 : vector<1x128xf32> to vector<32x128xf32>
      %20 = arith.addf %17, %19 : vector<32x128xf32>
      %21 = arith.truncf %20 : vector<32x128xf32> to vector<32x128xbf16>
      %c0_18 = arith.constant 0 : index
      %c0_19 = arith.constant 0 : index
      %22 = vector.load %arg7[%c0_18, %c0_19] : memref<32x128xbf16, #tpu.memory_space<vmem>>, vector<32x128xbf16>
      tpu.vector_store %arg7[%c0_18, %c0_19], %21 {strides = array<i32>} : memref<32x128xbf16, #tpu.memory_space<vmem>>, vector<32x128xbf16>,
    } else {
    }
    return
  }
  func.func @transform_0(%arg0: i32, %arg1: i32, %arg2: i32) -> (i32, i32, i32) {
    %c0_i32 = arith.constant 0 : i32
    %c0_i32_0 = arith.constant 0 : i32
    return %arg2, %arg0, %c0_i32 : i32, i32, i32
  }
  func.func @transform_1(%arg0: i32, %arg1: i32, %arg2: i32) -> (i32, i32, i32) {
    %c0_i32 = arith.constant 0 : i32
    %c0_i32_0 = arith.constant 0 : i32
    return %arg2, %c0_i32, %arg1 : i32, i32, i32
  }
  func.func @transform_2(%arg0: i32, %arg1: i32, %arg2: i32) -> (i32, i32) {
    %c0_i32 = arith.constant 0 : i32
    %c0_i32_0 = arith.constant 0 : i32
    return %c0_i32, %arg1 : i32, i32
  }
  func.func @transform_3(%arg0: i32, %arg1: i32, %arg2: i32) -> (i32, i32) {
    %c0_i32 = arith.constant 0 : i32
    %c0_i32_0 = arith.constant 0 : i32
    return %c0_i32, %arg1 : i32, i32
  }
  func.func @transform_4(%arg0: i32, %arg1: i32, %arg2: i32) -> (i32, i32) {
    %c0_i32 = arith.constant 0 : i32
    return %arg0, %arg1 : i32, i32
  }
}

module attributes {stable_mosaic.version = 11 : i64} {
  func.func @_conv_taps_kernel(%arg0: i32, %arg1: i32, %arg2: i32, %arg3: memref<1x32x128xbf16, #tpu.memory_space<vmem>>, %arg4: memref<1x128x128xbf16, #tpu.memory_space<vmem>>, %arg5: memref<1x128xf32, #tpu.memory_space<vmem>>, %arg6: memref<1x128xf32, #tpu.memory_space<vmem>>, %arg7: memref<32x128xbf16, #tpu.memory_space<vmem>>, %arg8: memref<32x128xf32, #tpu.memory_space<vmem>>) attributes {dimension_semantics = [#tpu.dimension_semantics<parallel>, #tpu.dimension_semantics<parallel>, #tpu.dimension_semantics<arbitrary>], iteration_bounds = array<i64: 1, 1, 9>, scalar_prefetch = 0 : i64, scratch_operands = 1 : i64, tpu.core_type = #tpu.core_type<tc>, window_params = [{transform_indices = @transform_0, window_bounds = array<i64: 1, 32, 128>}, {transform_indices = @transform_1, window_bounds = array<i64: 1, 128, 128>}, {transform_indices = @transform_2, window_bounds = array<i64: 1, 128>}, {transform_indices = @transform_3, window_bounds = array<i64: 1, 128>}, {transform_indices = @transform_4, window_bounds = array<i64: 32, 128>}]} {
    %c0_i32 = arith.constant 0 : i32
    %0 = arith.cmpi eq, %arg2, %c0_i32 : i32
    %1 = arith.extui %0 : i1 to i32
    %c0_i32_0 = arith.constant 0 : i32
    %2 = arith.cmpi ne, %1, %c0_i32_0 : i32
    scf.if %2 {
      %cst_11 = arith.constant 0.000000e+00 : f32
      %14 = vector.broadcast %cst_11 : f32 to vector<32x128xf32>
      %c0_12 = arith.constant 0 : index
      %c0_13 = arith.constant 0 : index
      %15 = vector.load %arg8[%c0_12, %c0_13] : memref<32x128xf32, #tpu.memory_space<vmem>>, vector<32x128xf32>
      tpu.vector_store %arg8[%c0_12, %c0_13], %14 {strides = array<i32>} : memref<32x128xf32, #tpu.memory_space<vmem>>, vector<32x128xf32>,
    } else {
    }
    %c0 = arith.constant 0 : index
    %c0_1 = arith.constant 0 : index
    %3 = vector.load %arg8[%c0, %c0_1] : memref<32x128xf32, #tpu.memory_space<vmem>>, vector<32x128xf32>
    %c0_2 = arith.constant 0 : index
    %c0_3 = arith.constant 0 : index
    %c0_4 = arith.constant 0 : index
    %4 = vector.load %arg3[%c0_2, %c0_3, %c0_4] : memref<1x32x128xbf16, #tpu.memory_space<vmem>>, vector<1x32x128xbf16>
    %5 = vector.shape_cast %4 : vector<1x32x128xbf16> to vector<32x128xbf16>
    %c0_5 = arith.constant 0 : index
    %c0_6 = arith.constant 0 : index
    %c0_7 = arith.constant 0 : index
    %6 = vector.load %arg4[%c0_5, %c0_6, %c0_7] : memref<1x128x128xbf16, #tpu.memory_space<vmem>>, vector<1x128x128xbf16>
    %7 = vector.shape_cast %6 : vector<1x128x128xbf16> to vector<128x128xbf16>
    %cst = arith.constant dense<0.000000e+00> : vector<32x128xf32>
    %8 = tpu.matmul %5, %7, %cst {dimension_numbers = #tpu.dot_dimension_numbers<[1], [0], [0], [1], [0, 0, 1, 1], [], []>} : vector<32x128xbf16>, vector<128x128xbf16>, vector<32x128xf32> -> vector<32x128xf32>
    %9 = arith.addf %3, %8 : vector<32x128xf32>
    %c0_8 = arith.constant 0 : index
    %c0_9 = arith.constant 0 : index
    %10 = vector.load %arg8[%c0_8, %c0_9] : memref<32x128xf32, #tpu.memory_space<vmem>>, vector<32x128xf32>
    tpu.vector_store %arg8[%c0_8, %c0_9], %9 {strides = array<i32>} : memref<32x128xf32, #tpu.memory_space<vmem>>, vector<32x128xf32>,
    %c8_i32 = arith.constant 8 : i32
    %11 = arith.cmpi eq, %arg2, %c8_i32 : i32
    %12 = arith.extui %11 : i1 to i32
    %c0_i32_10 = arith.constant 0 : i32
    %13 = arith.cmpi ne, %12, %c0_i32_10 : i32
    scf.if %13 {
      %c0_11 = arith.constant 0 : index
      %c0_12 = arith.constant 0 : index
      %14 = vector.load %arg8[%c0_11, %c0_12] : memref<32x128xf32, #tpu.memory_space<vmem>>, vector<32x128xf32>
      %c0_13 = arith.constant 0 : index
      %c0_14 = arith.constant 0 : index
      %15 = vector.load %arg5[%c0_13, %c0_14] : memref<1x128xf32, #tpu.memory_space<vmem>>, vector<1x128xf32>
      %16 = vector.broadcast %15 : vector<1x128xf32> to vector<32x128xf32>
      %17 = arith.mulf %14, %16 : vector<32x128xf32>
      %c0_15 = arith.constant 0 : index
      %c0_16 = arith.constant 0 : index
      %18 = vector.load %arg6[%c0_15, %c0_16] : memref<1x128xf32, #tpu.memory_space<vmem>>, vector<1x128xf32>
      %19 = vector.broadcast %18 : vector<1x128xf32> to vector<32x128xf32>
      %20 = arith.addf %17, %19 : vector<32x128xf32>
      %cst_17 = arith.constant 0.000000e+00 : f32
      %21 = vector.broadcast %cst_17 : f32 to vector<32x128xf32>
      %22 = arith.maximumf %20, %21 : vector<32x128xf32>
      %23 = arith.truncf %22 : vector<32x128xf32> to vector<32x128xbf16>
      %c0_18 = arith.constant 0 : index
      %c0_19 = arith.constant 0 : index
      %24 = vector.load %arg7[%c0_18, %c0_19] : memref<32x128xbf16, #tpu.memory_space<vmem>>, vector<32x128xbf16>
      tpu.vector_store %arg7[%c0_18, %c0_19], %23 {strides = array<i32>} : memref<32x128xbf16, #tpu.memory_space<vmem>>, vector<32x128xbf16>,
    } else {
    }
    return
  }
  func.func @transform_0(%arg0: i32, %arg1: i32, %arg2: i32) -> (i32, i32, i32) {
    %c0_i32 = arith.constant 0 : i32
    %c0_i32_0 = arith.constant 0 : i32
    return %arg2, %arg0, %c0_i32 : i32, i32, i32
  }
  func.func @transform_1(%arg0: i32, %arg1: i32, %arg2: i32) -> (i32, i32, i32) {
    %c0_i32 = arith.constant 0 : i32
    %c0_i32_0 = arith.constant 0 : i32
    return %arg2, %c0_i32, %arg1 : i32, i32, i32
  }
  func.func @transform_2(%arg0: i32, %arg1: i32, %arg2: i32) -> (i32, i32) {
    %c0_i32 = arith.constant 0 : i32
    %c0_i32_0 = arith.constant 0 : i32
    return %c0_i32, %arg1 : i32, i32
  }
  func.func @transform_3(%arg0: i32, %arg1: i32, %arg2: i32) -> (i32, i32) {
    %c0_i32 = arith.constant 0 : i32
    %c0_i32_0 = arith.constant 0 : i32
    return %c0_i32, %arg1 : i32, i32
  }
  func.func @transform_4(%arg0: i32, %arg1: i32, %arg2: i32) -> (i32, i32) {
    %c0_i32 = arith.constant 0 : i32
    return %arg0, %arg1 : i32, i32
  }
}

module attributes {stable_mosaic.version = 11 : i64} {
  func.func @_conv_taps_kernel(%arg0: i32, %arg1: i32, %arg2: i32, %arg3: memref<1x32x128xbf16, #tpu.memory_space<vmem>>, %arg4: memref<1x128x128xbf16, #tpu.memory_space<vmem>>, %arg5: memref<1x128xf32, #tpu.memory_space<vmem>>, %arg6: memref<1x128xf32, #tpu.memory_space<vmem>>, %arg7: memref<32x128xbf16, #tpu.memory_space<vmem>>, %arg8: memref<32x128xbf16, #tpu.memory_space<vmem>>, %arg9: memref<32x128xf32, #tpu.memory_space<vmem>>) attributes {dimension_semantics = [#tpu.dimension_semantics<parallel>, #tpu.dimension_semantics<parallel>, #tpu.dimension_semantics<arbitrary>], iteration_bounds = array<i64: 1, 1, 9>, scalar_prefetch = 0 : i64, scratch_operands = 1 : i64, tpu.core_type = #tpu.core_type<tc>, window_params = [{transform_indices = @transform_0, window_bounds = array<i64: 1, 32, 128>}, {transform_indices = @transform_1, window_bounds = array<i64: 1, 128, 128>}, {transform_indices = @transform_2, window_bounds = array<i64: 1, 128>}, {transform_indices = @transform_3, window_bounds = array<i64: 1, 128>}, {transform_indices = @transform_4, window_bounds = array<i64: 32, 128>}, {transform_indices = @transform_5, window_bounds = array<i64: 32, 128>}]} {
    %c0_i32 = arith.constant 0 : i32
    %0 = arith.cmpi eq, %arg2, %c0_i32 : i32
    %1 = arith.extui %0 : i1 to i32
    %c0_i32_0 = arith.constant 0 : i32
    %2 = arith.cmpi ne, %1, %c0_i32_0 : i32
    scf.if %2 {
      %cst_11 = arith.constant 0.000000e+00 : f32
      %14 = vector.broadcast %cst_11 : f32 to vector<32x128xf32>
      %c0_12 = arith.constant 0 : index
      %c0_13 = arith.constant 0 : index
      %15 = vector.load %arg9[%c0_12, %c0_13] : memref<32x128xf32, #tpu.memory_space<vmem>>, vector<32x128xf32>
      tpu.vector_store %arg9[%c0_12, %c0_13], %14 {strides = array<i32>} : memref<32x128xf32, #tpu.memory_space<vmem>>, vector<32x128xf32>,
    } else {
    }
    %c0 = arith.constant 0 : index
    %c0_1 = arith.constant 0 : index
    %3 = vector.load %arg9[%c0, %c0_1] : memref<32x128xf32, #tpu.memory_space<vmem>>, vector<32x128xf32>
    %c0_2 = arith.constant 0 : index
    %c0_3 = arith.constant 0 : index
    %c0_4 = arith.constant 0 : index
    %4 = vector.load %arg3[%c0_2, %c0_3, %c0_4] : memref<1x32x128xbf16, #tpu.memory_space<vmem>>, vector<1x32x128xbf16>
    %5 = vector.shape_cast %4 : vector<1x32x128xbf16> to vector<32x128xbf16>
    %c0_5 = arith.constant 0 : index
    %c0_6 = arith.constant 0 : index
    %c0_7 = arith.constant 0 : index
    %6 = vector.load %arg4[%c0_5, %c0_6, %c0_7] : memref<1x128x128xbf16, #tpu.memory_space<vmem>>, vector<1x128x128xbf16>
    %7 = vector.shape_cast %6 : vector<1x128x128xbf16> to vector<128x128xbf16>
    %cst = arith.constant dense<0.000000e+00> : vector<32x128xf32>
    %8 = tpu.matmul %5, %7, %cst {dimension_numbers = #tpu.dot_dimension_numbers<[1], [0], [0], [1], [0, 0, 1, 1], [], []>} : vector<32x128xbf16>, vector<128x128xbf16>, vector<32x128xf32> -> vector<32x128xf32>
    %9 = arith.addf %3, %8 : vector<32x128xf32>
    %c0_8 = arith.constant 0 : index
    %c0_9 = arith.constant 0 : index
    %10 = vector.load %arg9[%c0_8, %c0_9] : memref<32x128xf32, #tpu.memory_space<vmem>>, vector<32x128xf32>
    tpu.vector_store %arg9[%c0_8, %c0_9], %9 {strides = array<i32>} : memref<32x128xf32, #tpu.memory_space<vmem>>, vector<32x128xf32>,
    %c8_i32 = arith.constant 8 : i32
    %11 = arith.cmpi eq, %arg2, %c8_i32 : i32
    %12 = arith.extui %11 : i1 to i32
    %c0_i32_10 = arith.constant 0 : i32
    %13 = arith.cmpi ne, %12, %c0_i32_10 : i32
    scf.if %13 {
      %c0_11 = arith.constant 0 : index
      %c0_12 = arith.constant 0 : index
      %14 = vector.load %arg9[%c0_11, %c0_12] : memref<32x128xf32, #tpu.memory_space<vmem>>, vector<32x128xf32>
      %c0_13 = arith.constant 0 : index
      %c0_14 = arith.constant 0 : index
      %15 = vector.load %arg5[%c0_13, %c0_14] : memref<1x128xf32, #tpu.memory_space<vmem>>, vector<1x128xf32>
      %16 = vector.broadcast %15 : vector<1x128xf32> to vector<32x128xf32>
      %17 = arith.mulf %14, %16 : vector<32x128xf32>
      %c0_15 = arith.constant 0 : index
      %c0_16 = arith.constant 0 : index
      %18 = vector.load %arg6[%c0_15, %c0_16] : memref<1x128xf32, #tpu.memory_space<vmem>>, vector<1x128xf32>
      %19 = vector.broadcast %18 : vector<1x128xf32> to vector<32x128xf32>
      %20 = arith.addf %17, %19 : vector<32x128xf32>
      %c0_17 = arith.constant 0 : index
      %c0_18 = arith.constant 0 : index
      %21 = vector.load %arg7[%c0_17, %c0_18] : memref<32x128xbf16, #tpu.memory_space<vmem>>, vector<32x128xbf16>
      %22 = arith.extf %21 : vector<32x128xbf16> to vector<32x128xf32>
      %23 = arith.addf %20, %22 : vector<32x128xf32>
      %cst_19 = arith.constant 0.000000e+00 : f32
      %24 = vector.broadcast %cst_19 : f32 to vector<32x128xf32>
      %25 = arith.maximumf %23, %24 : vector<32x128xf32>
      %26 = arith.truncf %25 : vector<32x128xf32> to vector<32x128xbf16>
      %c0_20 = arith.constant 0 : index
      %c0_21 = arith.constant 0 : index
      %27 = vector.load %arg8[%c0_20, %c0_21] : memref<32x128xbf16, #tpu.memory_space<vmem>>, vector<32x128xbf16>
      tpu.vector_store %arg8[%c0_20, %c0_21], %26 {strides = array<i32>} : memref<32x128xbf16, #tpu.memory_space<vmem>>, vector<32x128xbf16>,
    } else {
    }
    return
  }
  func.func @transform_0(%arg0: i32, %arg1: i32, %arg2: i32) -> (i32, i32, i32) {
    %c0_i32 = arith.constant 0 : i32
    %c0_i32_0 = arith.constant 0 : i32
    return %arg2, %arg0, %c0_i32 : i32, i32, i32
  }
  func.func @transform_1(%arg0: i32, %arg1: i32, %arg2: i32) -> (i32, i32, i32) {
    %c0_i32 = arith.constant 0 : i32
    %c0_i32_0 = arith.constant 0 : i32
    return %arg2, %c0_i32, %arg1 : i32, i32, i32
  }
  func.func @transform_2(%arg0: i32, %arg1: i32, %arg2: i32) -> (i32, i32) {
    %c0_i32 = arith.constant 0 : i32
    %c0_i32_0 = arith.constant 0 : i32
    return %c0_i32, %arg1 : i32, i32
  }
  func.func @transform_3(%arg0: i32, %arg1: i32, %arg2: i32) -> (i32, i32) {
    %c0_i32 = arith.constant 0 : i32
    %c0_i32_0 = arith.constant 0 : i32
    return %c0_i32, %arg1 : i32, i32
  }
  func.func @transform_4(%arg0: i32, %arg1: i32, %arg2: i32) -> (i32, i32) {
    %c0_i32 = arith.constant 0 : i32
    return %arg0, %arg1 : i32, i32
  }
  func.func @transform_5(%arg0: i32, %arg1: i32, %arg2: i32) -> (i32, i32) {
    %c0_i32 = arith.constant 0 : i32
    return %arg0, %arg1 : i32, i32
  }
}

module attributes {stable_mosaic.version = 11 : i64} {
  func.func @_conv_taps_kernel(%arg0: i32, %arg1: i32, %arg2: i32, %arg3: memref<1x8x128xbf16, #tpu.memory_space<vmem>>, %arg4: memref<1x128x128xbf16, #tpu.memory_space<vmem>>, %arg5: memref<1x128xf32, #tpu.memory_space<vmem>>, %arg6: memref<1x128xf32, #tpu.memory_space<vmem>>, %arg7: memref<8x128xbf16, #tpu.memory_space<vmem>>, %arg8: memref<8x128xf32, #tpu.memory_space<vmem>>) attributes {dimension_semantics = [#tpu.dimension_semantics<parallel>, #tpu.dimension_semantics<parallel>, #tpu.dimension_semantics<arbitrary>], iteration_bounds = array<i64: 1, 2, 9>, scalar_prefetch = 0 : i64, scratch_operands = 1 : i64, tpu.core_type = #tpu.core_type<tc>, window_params = [{transform_indices = @transform_0, window_bounds = array<i64: 1, 8, 128>}, {transform_indices = @transform_1, window_bounds = array<i64: 1, 128, 128>}, {transform_indices = @transform_2, window_bounds = array<i64: 1, 128>}, {transform_indices = @transform_3, window_bounds = array<i64: 1, 128>}, {transform_indices = @transform_4, window_bounds = array<i64: 8, 128>}]} {
    %c0_i32 = arith.constant 0 : i32
    %0 = arith.cmpi eq, %arg2, %c0_i32 : i32
    %1 = arith.extui %0 : i1 to i32
    %c0_i32_0 = arith.constant 0 : i32
    %2 = arith.cmpi ne, %1, %c0_i32_0 : i32
    scf.if %2 {
      %cst_11 = arith.constant 0.000000e+00 : f32
      %14 = vector.broadcast %cst_11 : f32 to vector<8x128xf32>
      %c0_12 = arith.constant 0 : index
      %c0_13 = arith.constant 0 : index
      %15 = vector.load %arg8[%c0_12, %c0_13] : memref<8x128xf32, #tpu.memory_space<vmem>>, vector<8x128xf32>
      tpu.vector_store %arg8[%c0_12, %c0_13], %14 {strides = array<i32>} : memref<8x128xf32, #tpu.memory_space<vmem>>, vector<8x128xf32>,
    } else {
    }
    %c0 = arith.constant 0 : index
    %c0_1 = arith.constant 0 : index
    %3 = vector.load %arg8[%c0, %c0_1] : memref<8x128xf32, #tpu.memory_space<vmem>>, vector<8x128xf32>
    %c0_2 = arith.constant 0 : index
    %c0_3 = arith.constant 0 : index
    %c0_4 = arith.constant 0 : index
    %4 = vector.load %arg3[%c0_2, %c0_3, %c0_4] : memref<1x8x128xbf16, #tpu.memory_space<vmem>>, vector<1x8x128xbf16>
    %5 = vector.shape_cast %4 : vector<1x8x128xbf16> to vector<8x128xbf16>
    %c0_5 = arith.constant 0 : index
    %c0_6 = arith.constant 0 : index
    %c0_7 = arith.constant 0 : index
    %6 = vector.load %arg4[%c0_5, %c0_6, %c0_7] : memref<1x128x128xbf16, #tpu.memory_space<vmem>>, vector<1x128x128xbf16>
    %7 = vector.shape_cast %6 : vector<1x128x128xbf16> to vector<128x128xbf16>
    %cst = arith.constant dense<0.000000e+00> : vector<8x128xf32>
    %8 = tpu.matmul %5, %7, %cst {dimension_numbers = #tpu.dot_dimension_numbers<[1], [0], [0], [1], [0, 0, 1, 1], [], []>} : vector<8x128xbf16>, vector<128x128xbf16>, vector<8x128xf32> -> vector<8x128xf32>
    %9 = arith.addf %3, %8 : vector<8x128xf32>
    %c0_8 = arith.constant 0 : index
    %c0_9 = arith.constant 0 : index
    %10 = vector.load %arg8[%c0_8, %c0_9] : memref<8x128xf32, #tpu.memory_space<vmem>>, vector<8x128xf32>
    tpu.vector_store %arg8[%c0_8, %c0_9], %9 {strides = array<i32>} : memref<8x128xf32, #tpu.memory_space<vmem>>, vector<8x128xf32>,
    %c8_i32 = arith.constant 8 : i32
    %11 = arith.cmpi eq, %arg2, %c8_i32 : i32
    %12 = arith.extui %11 : i1 to i32
    %c0_i32_10 = arith.constant 0 : i32
    %13 = arith.cmpi ne, %12, %c0_i32_10 : i32
    scf.if %13 {
      %c0_11 = arith.constant 0 : index
      %c0_12 = arith.constant 0 : index
      %14 = vector.load %arg8[%c0_11, %c0_12] : memref<8x128xf32, #tpu.memory_space<vmem>>, vector<8x128xf32>
      %c0_13 = arith.constant 0 : index
      %c0_14 = arith.constant 0 : index
      %15 = vector.load %arg5[%c0_13, %c0_14] : memref<1x128xf32, #tpu.memory_space<vmem>>, vector<1x128xf32>
      %16 = vector.broadcast %15 : vector<1x128xf32> to vector<8x128xf32>
      %17 = arith.mulf %14, %16 : vector<8x128xf32>
      %c0_15 = arith.constant 0 : index
      %c0_16 = arith.constant 0 : index
      %18 = vector.load %arg6[%c0_15, %c0_16] : memref<1x128xf32, #tpu.memory_space<vmem>>, vector<1x128xf32>
      %19 = vector.broadcast %18 : vector<1x128xf32> to vector<8x128xf32>
      %20 = arith.addf %17, %19 : vector<8x128xf32>
      %cst_17 = arith.constant 0.000000e+00 : f32
      %21 = vector.broadcast %cst_17 : f32 to vector<8x128xf32>
      %22 = arith.maximumf %20, %21 : vector<8x128xf32>
      %23 = arith.truncf %22 : vector<8x128xf32> to vector<8x128xbf16>
      %c0_18 = arith.constant 0 : index
      %c0_19 = arith.constant 0 : index
      %24 = vector.load %arg7[%c0_18, %c0_19] : memref<8x128xbf16, #tpu.memory_space<vmem>>, vector<8x128xbf16>
      tpu.vector_store %arg7[%c0_18, %c0_19], %23 {strides = array<i32>} : memref<8x128xbf16, #tpu.memory_space<vmem>>, vector<8x128xbf16>,
    } else {
    }
    return
  }
  func.func @transform_0(%arg0: i32, %arg1: i32, %arg2: i32) -> (i32, i32, i32) {
    %c0_i32 = arith.constant 0 : i32
    %c0_i32_0 = arith.constant 0 : i32
    return %arg2, %arg0, %c0_i32 : i32, i32, i32
  }
  func.func @transform_1(%arg0: i32, %arg1: i32, %arg2: i32) -> (i32, i32, i32) {
    %c0_i32 = arith.constant 0 : i32
    %c0_i32_0 = arith.constant 0 : i32
    return %arg2, %c0_i32, %arg1 : i32, i32, i32
  }
  func.func @transform_2(%arg0: i32, %arg1: i32, %arg2: i32) -> (i32, i32) {
    %c0_i32 = arith.constant 0 : i32
    %c0_i32_0 = arith.constant 0 : i32
    return %c0_i32, %arg1 : i32, i32
  }
  func.func @transform_3(%arg0: i32, %arg1: i32, %arg2: i32) -> (i32, i32) {
    %c0_i32 = arith.constant 0 : i32
    %c0_i32_0 = arith.constant 0 : i32
    return %c0_i32, %arg1 : i32, i32
  }
  func.func @transform_4(%arg0: i32, %arg1: i32, %arg2: i32) -> (i32, i32) {
    %c0_i32 = arith.constant 0 : i32
    return %arg0, %arg1 : i32, i32
  }
}

module attributes {stable_mosaic.version = 11 : i64} {
  func.func @_conv_taps_kernel(%arg0: i32, %arg1: i32, %arg2: i32, %arg3: memref<1x8x128xbf16, #tpu.memory_space<vmem>>, %arg4: memref<1x128x128xbf16, #tpu.memory_space<vmem>>, %arg5: memref<1x128xf32, #tpu.memory_space<vmem>>, %arg6: memref<1x128xf32, #tpu.memory_space<vmem>>, %arg7: memref<8x128xbf16, #tpu.memory_space<vmem>>, %arg8: memref<8x128xf32, #tpu.memory_space<vmem>>) attributes {dimension_semantics = [#tpu.dimension_semantics<parallel>, #tpu.dimension_semantics<parallel>, #tpu.dimension_semantics<arbitrary>], iteration_bounds = array<i64: 1, 2, 1>, scalar_prefetch = 0 : i64, scratch_operands = 1 : i64, tpu.core_type = #tpu.core_type<tc>, window_params = [{transform_indices = @transform_0, window_bounds = array<i64: 1, 8, 128>}, {transform_indices = @transform_1, window_bounds = array<i64: 1, 128, 128>}, {transform_indices = @transform_2, window_bounds = array<i64: 1, 128>}, {transform_indices = @transform_3, window_bounds = array<i64: 1, 128>}, {transform_indices = @transform_4, window_bounds = array<i64: 8, 128>}]} {
    %c0_i32 = arith.constant 0 : i32
    %0 = arith.cmpi eq, %arg2, %c0_i32 : i32
    %1 = arith.extui %0 : i1 to i32
    %c0_i32_0 = arith.constant 0 : i32
    %2 = arith.cmpi ne, %1, %c0_i32_0 : i32
    scf.if %2 {
      %cst_12 = arith.constant 0.000000e+00 : f32
      %14 = vector.broadcast %cst_12 : f32 to vector<8x128xf32>
      %c0_13 = arith.constant 0 : index
      %c0_14 = arith.constant 0 : index
      %15 = vector.load %arg8[%c0_13, %c0_14] : memref<8x128xf32, #tpu.memory_space<vmem>>, vector<8x128xf32>
      tpu.vector_store %arg8[%c0_13, %c0_14], %14 {strides = array<i32>} : memref<8x128xf32, #tpu.memory_space<vmem>>, vector<8x128xf32>,
    } else {
    }
    %c0 = arith.constant 0 : index
    %c0_1 = arith.constant 0 : index
    %3 = vector.load %arg8[%c0, %c0_1] : memref<8x128xf32, #tpu.memory_space<vmem>>, vector<8x128xf32>
    %c0_2 = arith.constant 0 : index
    %c0_3 = arith.constant 0 : index
    %c0_4 = arith.constant 0 : index
    %4 = vector.load %arg3[%c0_2, %c0_3, %c0_4] : memref<1x8x128xbf16, #tpu.memory_space<vmem>>, vector<1x8x128xbf16>
    %5 = vector.shape_cast %4 : vector<1x8x128xbf16> to vector<8x128xbf16>
    %c0_5 = arith.constant 0 : index
    %c0_6 = arith.constant 0 : index
    %c0_7 = arith.constant 0 : index
    %6 = vector.load %arg4[%c0_5, %c0_6, %c0_7] : memref<1x128x128xbf16, #tpu.memory_space<vmem>>, vector<1x128x128xbf16>
    %7 = vector.shape_cast %6 : vector<1x128x128xbf16> to vector<128x128xbf16>
    %cst = arith.constant dense<0.000000e+00> : vector<8x128xf32>
    %8 = tpu.matmul %5, %7, %cst {dimension_numbers = #tpu.dot_dimension_numbers<[1], [0], [0], [1], [0, 0, 1, 1], [], []>} : vector<8x128xbf16>, vector<128x128xbf16>, vector<8x128xf32> -> vector<8x128xf32>
    %9 = arith.addf %3, %8 : vector<8x128xf32>
    %c0_8 = arith.constant 0 : index
    %c0_9 = arith.constant 0 : index
    %10 = vector.load %arg8[%c0_8, %c0_9] : memref<8x128xf32, #tpu.memory_space<vmem>>, vector<8x128xf32>
    tpu.vector_store %arg8[%c0_8, %c0_9], %9 {strides = array<i32>} : memref<8x128xf32, #tpu.memory_space<vmem>>, vector<8x128xf32>,
    %c0_i32_10 = arith.constant 0 : i32
    %11 = arith.cmpi eq, %arg2, %c0_i32_10 : i32
    %12 = arith.extui %11 : i1 to i32
    %c0_i32_11 = arith.constant 0 : i32
    %13 = arith.cmpi ne, %12, %c0_i32_11 : i32
    scf.if %13 {
      %c0_12 = arith.constant 0 : index
      %c0_13 = arith.constant 0 : index
      %14 = vector.load %arg8[%c0_12, %c0_13] : memref<8x128xf32, #tpu.memory_space<vmem>>, vector<8x128xf32>
      %c0_14 = arith.constant 0 : index
      %c0_15 = arith.constant 0 : index
      %15 = vector.load %arg5[%c0_14, %c0_15] : memref<1x128xf32, #tpu.memory_space<vmem>>, vector<1x128xf32>
      %16 = vector.broadcast %15 : vector<1x128xf32> to vector<8x128xf32>
      %17 = arith.mulf %14, %16 : vector<8x128xf32>
      %c0_16 = arith.constant 0 : index
      %c0_17 = arith.constant 0 : index
      %18 = vector.load %arg6[%c0_16, %c0_17] : memref<1x128xf32, #tpu.memory_space<vmem>>, vector<1x128xf32>
      %19 = vector.broadcast %18 : vector<1x128xf32> to vector<8x128xf32>
      %20 = arith.addf %17, %19 : vector<8x128xf32>
      %21 = arith.truncf %20 : vector<8x128xf32> to vector<8x128xbf16>
      %c0_18 = arith.constant 0 : index
      %c0_19 = arith.constant 0 : index
      %22 = vector.load %arg7[%c0_18, %c0_19] : memref<8x128xbf16, #tpu.memory_space<vmem>>, vector<8x128xbf16>
      tpu.vector_store %arg7[%c0_18, %c0_19], %21 {strides = array<i32>} : memref<8x128xbf16, #tpu.memory_space<vmem>>, vector<8x128xbf16>,
    } else {
    }
    return
  }
  func.func @transform_0(%arg0: i32, %arg1: i32, %arg2: i32) -> (i32, i32, i32) {
    %c0_i32 = arith.constant 0 : i32
    %c0_i32_0 = arith.constant 0 : i32
    return %arg2, %arg0, %c0_i32 : i32, i32, i32
  }
  func.func @transform_1(%arg0: i32, %arg1: i32, %arg2: i32) -> (i32, i32, i32) {
    %c0_i32 = arith.constant 0 : i32
    %c0_i32_0 = arith.constant 0 : i32
    return %arg2, %c0_i32, %arg1 : i32, i32, i32
  }
  func.func @transform_2(%arg0: i32, %arg1: i32, %arg2: i32) -> (i32, i32) {
    %c0_i32 = arith.constant 0 : i32
    %c0_i32_0 = arith.constant 0 : i32
    return %c0_i32, %arg1 : i32, i32
  }
  func.func @transform_3(%arg0: i32, %arg1: i32, %arg2: i32) -> (i32, i32) {
    %c0_i32 = arith.constant 0 : i32
    %c0_i32_0 = arith.constant 0 : i32
    return %c0_i32, %arg1 : i32, i32
  }
  func.func @transform_4(%arg0: i32, %arg1: i32, %arg2: i32) -> (i32, i32) {
    %c0_i32 = arith.constant 0 : i32
    return %arg0, %arg1 : i32, i32
  }
}

module attributes {stable_mosaic.version = 11 : i64} {
  func.func @_conv_taps_kernel(%arg0: i32, %arg1: i32, %arg2: i32, %arg3: memref<1x8x256xbf16, #tpu.memory_space<vmem>>, %arg4: memref<1x256x128xbf16, #tpu.memory_space<vmem>>, %arg5: memref<1x128xf32, #tpu.memory_space<vmem>>, %arg6: memref<1x128xf32, #tpu.memory_space<vmem>>, %arg7: memref<8x128xbf16, #tpu.memory_space<vmem>>, %arg8: memref<8x128xbf16, #tpu.memory_space<vmem>>, %arg9: memref<8x128xf32, #tpu.memory_space<vmem>>) attributes {dimension_semantics = [#tpu.dimension_semantics<parallel>, #tpu.dimension_semantics<parallel>, #tpu.dimension_semantics<arbitrary>], iteration_bounds = array<i64: 1, 2, 9>, scalar_prefetch = 0 : i64, scratch_operands = 1 : i64, tpu.core_type = #tpu.core_type<tc>, window_params = [{transform_indices = @transform_0, window_bounds = array<i64: 1, 8, 256>}, {transform_indices = @transform_1, window_bounds = array<i64: 1, 256, 128>}, {transform_indices = @transform_2, window_bounds = array<i64: 1, 128>}, {transform_indices = @transform_3, window_bounds = array<i64: 1, 128>}, {transform_indices = @transform_4, window_bounds = array<i64: 8, 128>}, {transform_indices = @transform_5, window_bounds = array<i64: 8, 128>}]} {
    %c0_i32 = arith.constant 0 : i32
    %0 = arith.cmpi eq, %arg2, %c0_i32 : i32
    %1 = arith.extui %0 : i1 to i32
    %c0_i32_0 = arith.constant 0 : i32
    %2 = arith.cmpi ne, %1, %c0_i32_0 : i32
    scf.if %2 {
      %cst_11 = arith.constant 0.000000e+00 : f32
      %14 = vector.broadcast %cst_11 : f32 to vector<8x128xf32>
      %c0_12 = arith.constant 0 : index
      %c0_13 = arith.constant 0 : index
      %15 = vector.load %arg9[%c0_12, %c0_13] : memref<8x128xf32, #tpu.memory_space<vmem>>, vector<8x128xf32>
      tpu.vector_store %arg9[%c0_12, %c0_13], %14 {strides = array<i32>} : memref<8x128xf32, #tpu.memory_space<vmem>>, vector<8x128xf32>,
    } else {
    }
    %c0 = arith.constant 0 : index
    %c0_1 = arith.constant 0 : index
    %3 = vector.load %arg9[%c0, %c0_1] : memref<8x128xf32, #tpu.memory_space<vmem>>, vector<8x128xf32>
    %c0_2 = arith.constant 0 : index
    %c0_3 = arith.constant 0 : index
    %c0_4 = arith.constant 0 : index
    %4 = vector.load %arg3[%c0_2, %c0_3, %c0_4] : memref<1x8x256xbf16, #tpu.memory_space<vmem>>, vector<1x8x256xbf16>
    %5 = vector.shape_cast %4 : vector<1x8x256xbf16> to vector<8x256xbf16>
    %c0_5 = arith.constant 0 : index
    %c0_6 = arith.constant 0 : index
    %c0_7 = arith.constant 0 : index
    %6 = vector.load %arg4[%c0_5, %c0_6, %c0_7] : memref<1x256x128xbf16, #tpu.memory_space<vmem>>, vector<1x256x128xbf16>
    %7 = vector.shape_cast %6 : vector<1x256x128xbf16> to vector<256x128xbf16>
    %cst = arith.constant dense<0.000000e+00> : vector<8x128xf32>
    %8 = tpu.matmul %5, %7, %cst {dimension_numbers = #tpu.dot_dimension_numbers<[1], [0], [0], [1], [0, 0, 1, 1], [], []>} : vector<8x256xbf16>, vector<256x128xbf16>, vector<8x128xf32> -> vector<8x128xf32>
    %9 = arith.addf %3, %8 : vector<8x128xf32>
    %c0_8 = arith.constant 0 : index
    %c0_9 = arith.constant 0 : index
    %10 = vector.load %arg9[%c0_8, %c0_9] : memref<8x128xf32, #tpu.memory_space<vmem>>, vector<8x128xf32>
    tpu.vector_store %arg9[%c0_8, %c0_9], %9 {strides = array<i32>} : memref<8x128xf32, #tpu.memory_space<vmem>>, vector<8x128xf32>,
    %c8_i32 = arith.constant 8 : i32
    %11 = arith.cmpi eq, %arg2, %c8_i32 : i32
    %12 = arith.extui %11 : i1 to i32
    %c0_i32_10 = arith.constant 0 : i32
    %13 = arith.cmpi ne, %12, %c0_i32_10 : i32
    scf.if %13 {
      %c0_11 = arith.constant 0 : index
      %c0_12 = arith.constant 0 : index
      %14 = vector.load %arg9[%c0_11, %c0_12] : memref<8x128xf32, #tpu.memory_space<vmem>>, vector<8x128xf32>
      %c0_13 = arith.constant 0 : index
      %c0_14 = arith.constant 0 : index
      %15 = vector.load %arg5[%c0_13, %c0_14] : memref<1x128xf32, #tpu.memory_space<vmem>>, vector<1x128xf32>
      %16 = vector.broadcast %15 : vector<1x128xf32> to vector<8x128xf32>
      %17 = arith.mulf %14, %16 : vector<8x128xf32>
      %c0_15 = arith.constant 0 : index
      %c0_16 = arith.constant 0 : index
      %18 = vector.load %arg6[%c0_15, %c0_16] : memref<1x128xf32, #tpu.memory_space<vmem>>, vector<1x128xf32>
      %19 = vector.broadcast %18 : vector<1x128xf32> to vector<8x128xf32>
      %20 = arith.addf %17, %19 : vector<8x128xf32>
      %c0_17 = arith.constant 0 : index
      %c0_18 = arith.constant 0 : index
      %21 = vector.load %arg7[%c0_17, %c0_18] : memref<8x128xbf16, #tpu.memory_space<vmem>>, vector<8x128xbf16>
      %22 = arith.extf %21 : vector<8x128xbf16> to vector<8x128xf32>
      %23 = arith.addf %20, %22 : vector<8x128xf32>
      %cst_19 = arith.constant 0.000000e+00 : f32
      %24 = vector.broadcast %cst_19 : f32 to vector<8x128xf32>
      %25 = arith.maximumf %23, %24 : vector<8x128xf32>
      %26 = arith.truncf %25 : vector<8x128xf32> to vector<8x128xbf16>
      %c0_20 = arith.constant 0 : index
      %c0_21 = arith.constant 0 : index
      %27 = vector.load %arg8[%c0_20, %c0_21] : memref<8x128xbf16, #tpu.memory_space<vmem>>, vector<8x128xbf16>
      tpu.vector_store %arg8[%c0_20, %c0_21], %26 {strides = array<i32>} : memref<8x128xbf16, #tpu.memory_space<vmem>>, vector<8x128xbf16>,
    } else {
    }
    return
  }
  func.func @transform_0(%arg0: i32, %arg1: i32, %arg2: i32) -> (i32, i32, i32) {
    %c0_i32 = arith.constant 0 : i32
    %c0_i32_0 = arith.constant 0 : i32
    return %arg2, %arg0, %c0_i32 : i32, i32, i32
  }
  func.func @transform_1(%arg0: i32, %arg1: i32, %arg2: i32) -> (i32, i32, i32) {
    %c0_i32 = arith.constant 0 : i32
    %c0_i32_0 = arith.constant 0 : i32
    return %arg2, %c0_i32, %arg1 : i32, i32, i32
  }
  func.func @transform_2(%arg0: i32, %arg1: i32, %arg2: i32) -> (i32, i32) {
    %c0_i32 = arith.constant 0 : i32
    %c0_i32_0 = arith.constant 0 : i32
    return %c0_i32, %arg1 : i32, i32
  }
  func.func @transform_3(%arg0: i32, %arg1: i32, %arg2: i32) -> (i32, i32) {
    %c0_i32 = arith.constant 0 : i32
    %c0_i32_0 = arith.constant 0 : i32
    return %c0_i32, %arg1 : i32, i32
  }
  func.func @transform_4(%arg0: i32, %arg1: i32, %arg2: i32) -> (i32, i32) {
    %c0_i32 = arith.constant 0 : i32
    return %arg0, %arg1 : i32, i32
  }
  func.func @transform_5(%arg0: i32, %arg1: i32, %arg2: i32) -> (i32, i32) {
    %c0_i32 = arith.constant 0 : i32
    return %arg0, %arg1 : i32, i32
  }
}

module attributes {stable_mosaic.version = 11 : i64} {
  func.func @_conv_taps_kernel(%arg0: i32, %arg1: i32, %arg2: i32, %arg3: memref<1x8x256xbf16, #tpu.memory_space<vmem>>, %arg4: memref<1x256x128xbf16, #tpu.memory_space<vmem>>, %arg5: memref<1x128xf32, #tpu.memory_space<vmem>>, %arg6: memref<1x128xf32, #tpu.memory_space<vmem>>, %arg7: memref<8x128xbf16, #tpu.memory_space<vmem>>, %arg8: memref<8x128xf32, #tpu.memory_space<vmem>>) attributes {dimension_semantics = [#tpu.dimension_semantics<parallel>, #tpu.dimension_semantics<parallel>, #tpu.dimension_semantics<arbitrary>], iteration_bounds = array<i64: 1, 2, 9>, scalar_prefetch = 0 : i64, scratch_operands = 1 : i64, tpu.core_type = #tpu.core_type<tc>, window_params = [{transform_indices = @transform_0, window_bounds = array<i64: 1, 8, 256>}, {transform_indices = @transform_1, window_bounds = array<i64: 1, 256, 128>}, {transform_indices = @transform_2, window_bounds = array<i64: 1, 128>}, {transform_indices = @transform_3, window_bounds = array<i64: 1, 128>}, {transform_indices = @transform_4, window_bounds = array<i64: 8, 128>}]} {
    %c0_i32 = arith.constant 0 : i32
    %0 = arith.cmpi eq, %arg2, %c0_i32 : i32
    %1 = arith.extui %0 : i1 to i32
    %c0_i32_0 = arith.constant 0 : i32
    %2 = arith.cmpi ne, %1, %c0_i32_0 : i32
    scf.if %2 {
      %cst_11 = arith.constant 0.000000e+00 : f32
      %14 = vector.broadcast %cst_11 : f32 to vector<8x128xf32>
      %c0_12 = arith.constant 0 : index
      %c0_13 = arith.constant 0 : index
      %15 = vector.load %arg8[%c0_12, %c0_13] : memref<8x128xf32, #tpu.memory_space<vmem>>, vector<8x128xf32>
      tpu.vector_store %arg8[%c0_12, %c0_13], %14 {strides = array<i32>} : memref<8x128xf32, #tpu.memory_space<vmem>>, vector<8x128xf32>,
    } else {
    }
    %c0 = arith.constant 0 : index
    %c0_1 = arith.constant 0 : index
    %3 = vector.load %arg8[%c0, %c0_1] : memref<8x128xf32, #tpu.memory_space<vmem>>, vector<8x128xf32>
    %c0_2 = arith.constant 0 : index
    %c0_3 = arith.constant 0 : index
    %c0_4 = arith.constant 0 : index
    %4 = vector.load %arg3[%c0_2, %c0_3, %c0_4] : memref<1x8x256xbf16, #tpu.memory_space<vmem>>, vector<1x8x256xbf16>
    %5 = vector.shape_cast %4 : vector<1x8x256xbf16> to vector<8x256xbf16>
    %c0_5 = arith.constant 0 : index
    %c0_6 = arith.constant 0 : index
    %c0_7 = arith.constant 0 : index
    %6 = vector.load %arg4[%c0_5, %c0_6, %c0_7] : memref<1x256x128xbf16, #tpu.memory_space<vmem>>, vector<1x256x128xbf16>
    %7 = vector.shape_cast %6 : vector<1x256x128xbf16> to vector<256x128xbf16>
    %cst = arith.constant dense<0.000000e+00> : vector<8x128xf32>
    %8 = tpu.matmul %5, %7, %cst {dimension_numbers = #tpu.dot_dimension_numbers<[1], [0], [0], [1], [0, 0, 1, 1], [], []>} : vector<8x256xbf16>, vector<256x128xbf16>, vector<8x128xf32> -> vector<8x128xf32>
    %9 = arith.addf %3, %8 : vector<8x128xf32>
    %c0_8 = arith.constant 0 : index
    %c0_9 = arith.constant 0 : index
    %10 = vector.load %arg8[%c0_8, %c0_9] : memref<8x128xf32, #tpu.memory_space<vmem>>, vector<8x128xf32>
    tpu.vector_store %arg8[%c0_8, %c0_9], %9 {strides = array<i32>} : memref<8x128xf32, #tpu.memory_space<vmem>>, vector<8x128xf32>,
    %c8_i32 = arith.constant 8 : i32
    %11 = arith.cmpi eq, %arg2, %c8_i32 : i32
    %12 = arith.extui %11 : i1 to i32
    %c0_i32_10 = arith.constant 0 : i32
    %13 = arith.cmpi ne, %12, %c0_i32_10 : i32
    scf.if %13 {
      %c0_11 = arith.constant 0 : index
      %c0_12 = arith.constant 0 : index
      %14 = vector.load %arg8[%c0_11, %c0_12] : memref<8x128xf32, #tpu.memory_space<vmem>>, vector<8x128xf32>
      %c0_13 = arith.constant 0 : index
      %c0_14 = arith.constant 0 : index
      %15 = vector.load %arg5[%c0_13, %c0_14] : memref<1x128xf32, #tpu.memory_space<vmem>>, vector<1x128xf32>
      %16 = vector.broadcast %15 : vector<1x128xf32> to vector<8x128xf32>
      %17 = arith.mulf %14, %16 : vector<8x128xf32>
      %c0_15 = arith.constant 0 : index
      %c0_16 = arith.constant 0 : index
      %18 = vector.load %arg6[%c0_15, %c0_16] : memref<1x128xf32, #tpu.memory_space<vmem>>, vector<1x128xf32>
      %19 = vector.broadcast %18 : vector<1x128xf32> to vector<8x128xf32>
      %20 = arith.addf %17, %19 : vector<8x128xf32>
      %cst_17 = arith.constant 0.000000e+00 : f32
      %21 = vector.broadcast %cst_17 : f32 to vector<8x128xf32>
      %22 = arith.maximumf %20, %21 : vector<8x128xf32>
      %23 = arith.truncf %22 : vector<8x128xf32> to vector<8x128xbf16>
      %c0_18 = arith.constant 0 : index
      %c0_19 = arith.constant 0 : index
      %24 = vector.load %arg7[%c0_18, %c0_19] : memref<8x128xbf16, #tpu.memory_space<vmem>>, vector<8x128xbf16>
      tpu.vector_store %arg7[%c0_18, %c0_19], %23 {strides = array<i32>} : memref<8x128xbf16, #tpu.memory_space<vmem>>, vector<8x128xbf16>,
    } else {
    }
    return
  }
  func.func @transform_0(%arg0: i32, %arg1: i32, %arg2: i32) -> (i32, i32, i32) {
    %c0_i32 = arith.constant 0 : i32
    %c0_i32_0 = arith.constant 0 : i32
    return %arg2, %arg0, %c0_i32 : i32, i32, i32
  }
  func.func @transform_1(%arg0: i32, %arg1: i32, %arg2: i32) -> (i32, i32, i32) {
    %c0_i32 = arith.constant 0 : i32
    %c0_i32_0 = arith.constant 0 : i32
    return %arg2, %c0_i32, %arg1 : i32, i32, i32
  }
  func.func @transform_2(%arg0: i32, %arg1: i32, %arg2: i32) -> (i32, i32) {
    %c0_i32 = arith.constant 0 : i32
    %c0_i32_0 = arith.constant 0 : i32
    return %c0_i32, %arg1 : i32, i32
  }
  func.func @transform_3(%arg0: i32, %arg1: i32, %arg2: i32) -> (i32, i32) {
    %c0_i32 = arith.constant 0 : i32
    %c0_i32_0 = arith.constant 0 : i32
    return %c0_i32, %arg1 : i32, i32
  }
  func.func @transform_4(%arg0: i32, %arg1: i32, %arg2: i32) -> (i32, i32) {
    %c0_i32 = arith.constant 0 : i32
    return %arg0, %arg1 : i32, i32
  }
}

module attributes {stable_mosaic.version = 11 : i64} {
  func.func @_conv_taps_kernel(%arg0: i32, %arg1: i32, %arg2: i32, %arg3: memref<1x2x256xbf16, #tpu.memory_space<vmem>>, %arg4: memref<1x256x128xbf16, #tpu.memory_space<vmem>>, %arg5: memref<1x128xf32, #tpu.memory_space<vmem>>, %arg6: memref<1x128xf32, #tpu.memory_space<vmem>>, %arg7: memref<2x128xbf16, #tpu.memory_space<vmem>>, %arg8: memref<2x128xf32, #tpu.memory_space<vmem>>) attributes {dimension_semantics = [#tpu.dimension_semantics<parallel>, #tpu.dimension_semantics<parallel>, #tpu.dimension_semantics<arbitrary>], iteration_bounds = array<i64: 1, 4, 9>, scalar_prefetch = 0 : i64, scratch_operands = 1 : i64, tpu.core_type = #tpu.core_type<tc>, window_params = [{transform_indices = @transform_0, window_bounds = array<i64: 1, 2, 256>}, {transform_indices = @transform_1, window_bounds = array<i64: 1, 256, 128>}, {transform_indices = @transform_2, window_bounds = array<i64: 1, 128>}, {transform_indices = @transform_3, window_bounds = array<i64: 1, 128>}, {transform_indices = @transform_4, window_bounds = array<i64: 2, 128>}]} {
    %c0_i32 = arith.constant 0 : i32
    %0 = arith.cmpi eq, %arg2, %c0_i32 : i32
    %1 = arith.extui %0 : i1 to i32
    %c0_i32_0 = arith.constant 0 : i32
    %2 = arith.cmpi ne, %1, %c0_i32_0 : i32
    scf.if %2 {
      %cst_11 = arith.constant 0.000000e+00 : f32
      %14 = vector.broadcast %cst_11 : f32 to vector<2x128xf32>
      %c0_12 = arith.constant 0 : index
      %c0_13 = arith.constant 0 : index
      %15 = vector.load %arg8[%c0_12, %c0_13] : memref<2x128xf32, #tpu.memory_space<vmem>>, vector<2x128xf32>
      tpu.vector_store %arg8[%c0_12, %c0_13], %14 {strides = array<i32>} : memref<2x128xf32, #tpu.memory_space<vmem>>, vector<2x128xf32>,
    } else {
    }
    %c0 = arith.constant 0 : index
    %c0_1 = arith.constant 0 : index
    %3 = vector.load %arg8[%c0, %c0_1] : memref<2x128xf32, #tpu.memory_space<vmem>>, vector<2x128xf32>
    %c0_2 = arith.constant 0 : index
    %c0_3 = arith.constant 0 : index
    %c0_4 = arith.constant 0 : index
    %4 = vector.load %arg3[%c0_2, %c0_3, %c0_4] : memref<1x2x256xbf16, #tpu.memory_space<vmem>>, vector<1x2x256xbf16>
    %5 = vector.shape_cast %4 : vector<1x2x256xbf16> to vector<2x256xbf16>
    %c0_5 = arith.constant 0 : index
    %c0_6 = arith.constant 0 : index
    %c0_7 = arith.constant 0 : index
    %6 = vector.load %arg4[%c0_5, %c0_6, %c0_7] : memref<1x256x128xbf16, #tpu.memory_space<vmem>>, vector<1x256x128xbf16>
    %7 = vector.shape_cast %6 : vector<1x256x128xbf16> to vector<256x128xbf16>
    %cst = arith.constant dense<0.000000e+00> : vector<2x128xf32>
    %8 = tpu.matmul %5, %7, %cst {dimension_numbers = #tpu.dot_dimension_numbers<[1], [0], [0], [1], [0, 0, 1, 1], [], []>} : vector<2x256xbf16>, vector<256x128xbf16>, vector<2x128xf32> -> vector<2x128xf32>
    %9 = arith.addf %3, %8 : vector<2x128xf32>
    %c0_8 = arith.constant 0 : index
    %c0_9 = arith.constant 0 : index
    %10 = vector.load %arg8[%c0_8, %c0_9] : memref<2x128xf32, #tpu.memory_space<vmem>>, vector<2x128xf32>
    tpu.vector_store %arg8[%c0_8, %c0_9], %9 {strides = array<i32>} : memref<2x128xf32, #tpu.memory_space<vmem>>, vector<2x128xf32>,
    %c8_i32 = arith.constant 8 : i32
    %11 = arith.cmpi eq, %arg2, %c8_i32 : i32
    %12 = arith.extui %11 : i1 to i32
    %c0_i32_10 = arith.constant 0 : i32
    %13 = arith.cmpi ne, %12, %c0_i32_10 : i32
    scf.if %13 {
      %c0_11 = arith.constant 0 : index
      %c0_12 = arith.constant 0 : index
      %14 = vector.load %arg8[%c0_11, %c0_12] : memref<2x128xf32, #tpu.memory_space<vmem>>, vector<2x128xf32>
      %c0_13 = arith.constant 0 : index
      %c0_14 = arith.constant 0 : index
      %15 = vector.load %arg5[%c0_13, %c0_14] : memref<1x128xf32, #tpu.memory_space<vmem>>, vector<1x128xf32>
      %16 = vector.broadcast %15 : vector<1x128xf32> to vector<2x128xf32>
      %17 = arith.mulf %14, %16 : vector<2x128xf32>
      %c0_15 = arith.constant 0 : index
      %c0_16 = arith.constant 0 : index
      %18 = vector.load %arg6[%c0_15, %c0_16] : memref<1x128xf32, #tpu.memory_space<vmem>>, vector<1x128xf32>
      %19 = vector.broadcast %18 : vector<1x128xf32> to vector<2x128xf32>
      %20 = arith.addf %17, %19 : vector<2x128xf32>
      %cst_17 = arith.constant 0.000000e+00 : f32
      %21 = vector.broadcast %cst_17 : f32 to vector<2x128xf32>
      %22 = arith.maximumf %20, %21 : vector<2x128xf32>
      %23 = arith.truncf %22 : vector<2x128xf32> to vector<2x128xbf16>
      %c0_18 = arith.constant 0 : index
      %c0_19 = arith.constant 0 : index
      %24 = vector.load %arg7[%c0_18, %c0_19] : memref<2x128xbf16, #tpu.memory_space<vmem>>, vector<2x128xbf16>
      tpu.vector_store %arg7[%c0_18, %c0_19], %23 {strides = array<i32>} : memref<2x128xbf16, #tpu.memory_space<vmem>>, vector<2x128xbf16>,
    } else {
    }
    return
  }
  func.func @transform_0(%arg0: i32, %arg1: i32, %arg2: i32) -> (i32, i32, i32) {
    %c0_i32 = arith.constant 0 : i32
    %c0_i32_0 = arith.constant 0 : i32
    return %arg2, %arg0, %c0_i32 : i32, i32, i32
  }
  func.func @transform_1(%arg0: i32, %arg1: i32, %arg2: i32) -> (i32, i32, i32) {
    %c0_i32 = arith.constant 0 : i32
    %c0_i32_0 = arith.constant 0 : i32
    return %arg2, %c0_i32, %arg1 : i32, i32, i32
  }
  func.func @transform_2(%arg0: i32, %arg1: i32, %arg2: i32) -> (i32, i32) {
    %c0_i32 = arith.constant 0 : i32
    %c0_i32_0 = arith.constant 0 : i32
    return %c0_i32, %arg1 : i32, i32
  }
  func.func @transform_3(%arg0: i32, %arg1: i32, %arg2: i32) -> (i32, i32) {
    %c0_i32 = arith.constant 0 : i32
    %c0_i32_0 = arith.constant 0 : i32
    return %c0_i32, %arg1 : i32, i32
  }
  func.func @transform_4(%arg0: i32, %arg1: i32, %arg2: i32) -> (i32, i32) {
    %c0_i32 = arith.constant 0 : i32
    return %arg0, %arg1 : i32, i32
  }
}

module attributes {stable_mosaic.version = 11 : i64} {
  func.func @_conv_taps_kernel(%arg0: i32, %arg1: i32, %arg2: i32, %arg3: memref<1x2x256xbf16, #tpu.memory_space<vmem>>, %arg4: memref<1x256x128xbf16, #tpu.memory_space<vmem>>, %arg5: memref<1x128xf32, #tpu.memory_space<vmem>>, %arg6: memref<1x128xf32, #tpu.memory_space<vmem>>, %arg7: memref<2x128xbf16, #tpu.memory_space<vmem>>, %arg8: memref<2x128xf32, #tpu.memory_space<vmem>>) attributes {dimension_semantics = [#tpu.dimension_semantics<parallel>, #tpu.dimension_semantics<parallel>, #tpu.dimension_semantics<arbitrary>], iteration_bounds = array<i64: 1, 4, 1>, scalar_prefetch = 0 : i64, scratch_operands = 1 : i64, tpu.core_type = #tpu.core_type<tc>, window_params = [{transform_indices = @transform_0, window_bounds = array<i64: 1, 2, 256>}, {transform_indices = @transform_1, window_bounds = array<i64: 1, 256, 128>}, {transform_indices = @transform_2, window_bounds = array<i64: 1, 128>}, {transform_indices = @transform_3, window_bounds = array<i64: 1, 128>}, {transform_indices = @transform_4, window_bounds = array<i64: 2, 128>}]} {
    %c0_i32 = arith.constant 0 : i32
    %0 = arith.cmpi eq, %arg2, %c0_i32 : i32
    %1 = arith.extui %0 : i1 to i32
    %c0_i32_0 = arith.constant 0 : i32
    %2 = arith.cmpi ne, %1, %c0_i32_0 : i32
    scf.if %2 {
      %cst_12 = arith.constant 0.000000e+00 : f32
      %14 = vector.broadcast %cst_12 : f32 to vector<2x128xf32>
      %c0_13 = arith.constant 0 : index
      %c0_14 = arith.constant 0 : index
      %15 = vector.load %arg8[%c0_13, %c0_14] : memref<2x128xf32, #tpu.memory_space<vmem>>, vector<2x128xf32>
      tpu.vector_store %arg8[%c0_13, %c0_14], %14 {strides = array<i32>} : memref<2x128xf32, #tpu.memory_space<vmem>>, vector<2x128xf32>,
    } else {
    }
    %c0 = arith.constant 0 : index
    %c0_1 = arith.constant 0 : index
    %3 = vector.load %arg8[%c0, %c0_1] : memref<2x128xf32, #tpu.memory_space<vmem>>, vector<2x128xf32>
    %c0_2 = arith.constant 0 : index
    %c0_3 = arith.constant 0 : index
    %c0_4 = arith.constant 0 : index
    %4 = vector.load %arg3[%c0_2, %c0_3, %c0_4] : memref<1x2x256xbf16, #tpu.memory_space<vmem>>, vector<1x2x256xbf16>
    %5 = vector.shape_cast %4 : vector<1x2x256xbf16> to vector<2x256xbf16>
    %c0_5 = arith.constant 0 : index
    %c0_6 = arith.constant 0 : index
    %c0_7 = arith.constant 0 : index
    %6 = vector.load %arg4[%c0_5, %c0_6, %c0_7] : memref<1x256x128xbf16, #tpu.memory_space<vmem>>, vector<1x256x128xbf16>
    %7 = vector.shape_cast %6 : vector<1x256x128xbf16> to vector<256x128xbf16>
    %cst = arith.constant dense<0.000000e+00> : vector<2x128xf32>
    %8 = tpu.matmul %5, %7, %cst {dimension_numbers = #tpu.dot_dimension_numbers<[1], [0], [0], [1], [0, 0, 1, 1], [], []>} : vector<2x256xbf16>, vector<256x128xbf16>, vector<2x128xf32> -> vector<2x128xf32>
    %9 = arith.addf %3, %8 : vector<2x128xf32>
    %c0_8 = arith.constant 0 : index
    %c0_9 = arith.constant 0 : index
    %10 = vector.load %arg8[%c0_8, %c0_9] : memref<2x128xf32, #tpu.memory_space<vmem>>, vector<2x128xf32>
    tpu.vector_store %arg8[%c0_8, %c0_9], %9 {strides = array<i32>} : memref<2x128xf32, #tpu.memory_space<vmem>>, vector<2x128xf32>,
    %c0_i32_10 = arith.constant 0 : i32
    %11 = arith.cmpi eq, %arg2, %c0_i32_10 : i32
    %12 = arith.extui %11 : i1 to i32
    %c0_i32_11 = arith.constant 0 : i32
    %13 = arith.cmpi ne, %12, %c0_i32_11 : i32
    scf.if %13 {
      %c0_12 = arith.constant 0 : index
      %c0_13 = arith.constant 0 : index
      %14 = vector.load %arg8[%c0_12, %c0_13] : memref<2x128xf32, #tpu.memory_space<vmem>>, vector<2x128xf32>
      %c0_14 = arith.constant 0 : index
      %c0_15 = arith.constant 0 : index
      %15 = vector.load %arg5[%c0_14, %c0_15] : memref<1x128xf32, #tpu.memory_space<vmem>>, vector<1x128xf32>
      %16 = vector.broadcast %15 : vector<1x128xf32> to vector<2x128xf32>
      %17 = arith.mulf %14, %16 : vector<2x128xf32>
      %c0_16 = arith.constant 0 : index
      %c0_17 = arith.constant 0 : index
      %18 = vector.load %arg6[%c0_16, %c0_17] : memref<1x128xf32, #tpu.memory_space<vmem>>, vector<1x128xf32>
      %19 = vector.broadcast %18 : vector<1x128xf32> to vector<2x128xf32>
      %20 = arith.addf %17, %19 : vector<2x128xf32>
      %21 = arith.truncf %20 : vector<2x128xf32> to vector<2x128xbf16>
      %c0_18 = arith.constant 0 : index
      %c0_19 = arith.constant 0 : index
      %22 = vector.load %arg7[%c0_18, %c0_19] : memref<2x128xbf16, #tpu.memory_space<vmem>>, vector<2x128xbf16>
      tpu.vector_store %arg7[%c0_18, %c0_19], %21 {strides = array<i32>} : memref<2x128xbf16, #tpu.memory_space<vmem>>, vector<2x128xbf16>,
    } else {
    }
    return
  }
  func.func @transform_0(%arg0: i32, %arg1: i32, %arg2: i32) -> (i32, i32, i32) {
    %c0_i32 = arith.constant 0 : i32
    %c0_i32_0 = arith.constant 0 : i32
    return %arg2, %arg0, %c0_i32 : i32, i32, i32
  }
  func.func @transform_1(%arg0: i32, %arg1: i32, %arg2: i32) -> (i32, i32, i32) {
    %c0_i32 = arith.constant 0 : i32
    %c0_i32_0 = arith.constant 0 : i32
    return %arg2, %c0_i32, %arg1 : i32, i32, i32
  }
  func.func @transform_2(%arg0: i32, %arg1: i32, %arg2: i32) -> (i32, i32) {
    %c0_i32 = arith.constant 0 : i32
    %c0_i32_0 = arith.constant 0 : i32
    return %c0_i32, %arg1 : i32, i32
  }
  func.func @transform_3(%arg0: i32, %arg1: i32, %arg2: i32) -> (i32, i32) {
    %c0_i32 = arith.constant 0 : i32
    %c0_i32_0 = arith.constant 0 : i32
    return %c0_i32, %arg1 : i32, i32
  }
  func.func @transform_4(%arg0: i32, %arg1: i32, %arg2: i32) -> (i32, i32) {
    %c0_i32 = arith.constant 0 : i32
    return %arg0, %arg1 : i32, i32
  }
}

module attributes {stable_mosaic.version = 11 : i64} {
  func.func @_conv_taps_kernel(%arg0: i32, %arg1: i32, %arg2: i32, %arg3: memref<1x2x512xbf16, #tpu.memory_space<vmem>>, %arg4: memref<1x512x128xbf16, #tpu.memory_space<vmem>>, %arg5: memref<1x128xf32, #tpu.memory_space<vmem>>, %arg6: memref<1x128xf32, #tpu.memory_space<vmem>>, %arg7: memref<2x128xbf16, #tpu.memory_space<vmem>>, %arg8: memref<2x128xbf16, #tpu.memory_space<vmem>>, %arg9: memref<2x128xf32, #tpu.memory_space<vmem>>) attributes {dimension_semantics = [#tpu.dimension_semantics<parallel>, #tpu.dimension_semantics<parallel>, #tpu.dimension_semantics<arbitrary>], iteration_bounds = array<i64: 1, 4, 9>, scalar_prefetch = 0 : i64, scratch_operands = 1 : i64, tpu.core_type = #tpu.core_type<tc>, window_params = [{transform_indices = @transform_0, window_bounds = array<i64: 1, 2, 512>}, {transform_indices = @transform_1, window_bounds = array<i64: 1, 512, 128>}, {transform_indices = @transform_2, window_bounds = array<i64: 1, 128>}, {transform_indices = @transform_3, window_bounds = array<i64: 1, 128>}, {transform_indices = @transform_4, window_bounds = array<i64: 2, 128>}, {transform_indices = @transform_5, window_bounds = array<i64: 2, 128>}]} {
    %c0_i32 = arith.constant 0 : i32
    %0 = arith.cmpi eq, %arg2, %c0_i32 : i32
    %1 = arith.extui %0 : i1 to i32
    %c0_i32_0 = arith.constant 0 : i32
    %2 = arith.cmpi ne, %1, %c0_i32_0 : i32
    scf.if %2 {
      %cst_11 = arith.constant 0.000000e+00 : f32
      %14 = vector.broadcast %cst_11 : f32 to vector<2x128xf32>
      %c0_12 = arith.constant 0 : index
      %c0_13 = arith.constant 0 : index
      %15 = vector.load %arg9[%c0_12, %c0_13] : memref<2x128xf32, #tpu.memory_space<vmem>>, vector<2x128xf32>
      tpu.vector_store %arg9[%c0_12, %c0_13], %14 {strides = array<i32>} : memref<2x128xf32, #tpu.memory_space<vmem>>, vector<2x128xf32>,
    } else {
    }
    %c0 = arith.constant 0 : index
    %c0_1 = arith.constant 0 : index
    %3 = vector.load %arg9[%c0, %c0_1] : memref<2x128xf32, #tpu.memory_space<vmem>>, vector<2x128xf32>
    %c0_2 = arith.constant 0 : index
    %c0_3 = arith.constant 0 : index
    %c0_4 = arith.constant 0 : index
    %4 = vector.load %arg3[%c0_2, %c0_3, %c0_4] : memref<1x2x512xbf16, #tpu.memory_space<vmem>>, vector<1x2x512xbf16>
    %5 = vector.shape_cast %4 : vector<1x2x512xbf16> to vector<2x512xbf16>
    %c0_5 = arith.constant 0 : index
    %c0_6 = arith.constant 0 : index
    %c0_7 = arith.constant 0 : index
    %6 = vector.load %arg4[%c0_5, %c0_6, %c0_7] : memref<1x512x128xbf16, #tpu.memory_space<vmem>>, vector<1x512x128xbf16>
    %7 = vector.shape_cast %6 : vector<1x512x128xbf16> to vector<512x128xbf16>
    %cst = arith.constant dense<0.000000e+00> : vector<2x128xf32>
    %8 = tpu.matmul %5, %7, %cst {dimension_numbers = #tpu.dot_dimension_numbers<[1], [0], [0], [1], [0, 0, 1, 1], [], []>} : vector<2x512xbf16>, vector<512x128xbf16>, vector<2x128xf32> -> vector<2x128xf32>
    %9 = arith.addf %3, %8 : vector<2x128xf32>
    %c0_8 = arith.constant 0 : index
    %c0_9 = arith.constant 0 : index
    %10 = vector.load %arg9[%c0_8, %c0_9] : memref<2x128xf32, #tpu.memory_space<vmem>>, vector<2x128xf32>
    tpu.vector_store %arg9[%c0_8, %c0_9], %9 {strides = array<i32>} : memref<2x128xf32, #tpu.memory_space<vmem>>, vector<2x128xf32>,
    %c8_i32 = arith.constant 8 : i32
    %11 = arith.cmpi eq, %arg2, %c8_i32 : i32
    %12 = arith.extui %11 : i1 to i32
    %c0_i32_10 = arith.constant 0 : i32
    %13 = arith.cmpi ne, %12, %c0_i32_10 : i32
    scf.if %13 {
      %c0_11 = arith.constant 0 : index
      %c0_12 = arith.constant 0 : index
      %14 = vector.load %arg9[%c0_11, %c0_12] : memref<2x128xf32, #tpu.memory_space<vmem>>, vector<2x128xf32>
      %c0_13 = arith.constant 0 : index
      %c0_14 = arith.constant 0 : index
      %15 = vector.load %arg5[%c0_13, %c0_14] : memref<1x128xf32, #tpu.memory_space<vmem>>, vector<1x128xf32>
      %16 = vector.broadcast %15 : vector<1x128xf32> to vector<2x128xf32>
      %17 = arith.mulf %14, %16 : vector<2x128xf32>
      %c0_15 = arith.constant 0 : index
      %c0_16 = arith.constant 0 : index
      %18 = vector.load %arg6[%c0_15, %c0_16] : memref<1x128xf32, #tpu.memory_space<vmem>>, vector<1x128xf32>
      %19 = vector.broadcast %18 : vector<1x128xf32> to vector<2x128xf32>
      %20 = arith.addf %17, %19 : vector<2x128xf32>
      %c0_17 = arith.constant 0 : index
      %c0_18 = arith.constant 0 : index
      %21 = vector.load %arg7[%c0_17, %c0_18] : memref<2x128xbf16, #tpu.memory_space<vmem>>, vector<2x128xbf16>
      %22 = arith.extf %21 : vector<2x128xbf16> to vector<2x128xf32>
      %23 = arith.addf %20, %22 : vector<2x128xf32>
      %cst_19 = arith.constant 0.000000e+00 : f32
      %24 = vector.broadcast %cst_19 : f32 to vector<2x128xf32>
      %25 = arith.maximumf %23, %24 : vector<2x128xf32>
      %26 = arith.truncf %25 : vector<2x128xf32> to vector<2x128xbf16>
      %c0_20 = arith.constant 0 : index
      %c0_21 = arith.constant 0 : index
      %27 = vector.load %arg8[%c0_20, %c0_21] : memref<2x128xbf16, #tpu.memory_space<vmem>>, vector<2x128xbf16>
      tpu.vector_store %arg8[%c0_20, %c0_21], %26 {strides = array<i32>} : memref<2x128xbf16, #tpu.memory_space<vmem>>, vector<2x128xbf16>,
    } else {
    }
    return
  }
  func.func @transform_0(%arg0: i32, %arg1: i32, %arg2: i32) -> (i32, i32, i32) {
    %c0_i32 = arith.constant 0 : i32
    %c0_i32_0 = arith.constant 0 : i32
    return %arg2, %arg0, %c0_i32 : i32, i32, i32
  }
  func.func @transform_1(%arg0: i32, %arg1: i32, %arg2: i32) -> (i32, i32, i32) {
    %c0_i32 = arith.constant 0 : i32
    %c0_i32_0 = arith.constant 0 : i32
    return %arg2, %c0_i32, %arg1 : i32, i32, i32
  }
  func.func @transform_2(%arg0: i32, %arg1: i32, %arg2: i32) -> (i32, i32) {
    %c0_i32 = arith.constant 0 : i32
    %c0_i32_0 = arith.constant 0 : i32
    return %c0_i32, %arg1 : i32, i32
  }
  func.func @transform_3(%arg0: i32, %arg1: i32, %arg2: i32) -> (i32, i32) {
    %c0_i32 = arith.constant 0 : i32
    %c0_i32_0 = arith.constant 0 : i32
    return %c0_i32, %arg1 : i32, i32
  }
  func.func @transform_4(%arg0: i32, %arg1: i32, %arg2: i32) -> (i32, i32) {
    %c0_i32 = arith.constant 0 : i32
    return %arg0, %arg1 : i32, i32
  }
  func.func @transform_5(%arg0: i32, %arg1: i32, %arg2: i32) -> (i32, i32) {
    %c0_i32 = arith.constant 0 : i32
    return %arg0, %arg1 : i32, i32
  }
}

module attributes {stable_mosaic.version = 11 : i64} {
  func.func @_conv_taps_kernel(%arg0: i32, %arg1: i32, %arg2: i32, %arg3: memref<1x2x512xbf16, #tpu.memory_space<vmem>>, %arg4: memref<1x512x128xbf16, #tpu.memory_space<vmem>>, %arg5: memref<1x128xf32, #tpu.memory_space<vmem>>, %arg6: memref<1x128xf32, #tpu.memory_space<vmem>>, %arg7: memref<2x128xbf16, #tpu.memory_space<vmem>>, %arg8: memref<2x128xf32, #tpu.memory_space<vmem>>) attributes {dimension_semantics = [#tpu.dimension_semantics<parallel>, #tpu.dimension_semantics<parallel>, #tpu.dimension_semantics<arbitrary>], iteration_bounds = array<i64: 1, 4, 9>, scalar_prefetch = 0 : i64, scratch_operands = 1 : i64, tpu.core_type = #tpu.core_type<tc>, window_params = [{transform_indices = @transform_0, window_bounds = array<i64: 1, 2, 512>}, {transform_indices = @transform_1, window_bounds = array<i64: 1, 512, 128>}, {transform_indices = @transform_2, window_bounds = array<i64: 1, 128>}, {transform_indices = @transform_3, window_bounds = array<i64: 1, 128>}, {transform_indices = @transform_4, window_bounds = array<i64: 2, 128>}]} {
    %c0_i32 = arith.constant 0 : i32
    %0 = arith.cmpi eq, %arg2, %c0_i32 : i32
    %1 = arith.extui %0 : i1 to i32
    %c0_i32_0 = arith.constant 0 : i32
    %2 = arith.cmpi ne, %1, %c0_i32_0 : i32
    scf.if %2 {
      %cst_11 = arith.constant 0.000000e+00 : f32
      %14 = vector.broadcast %cst_11 : f32 to vector<2x128xf32>
      %c0_12 = arith.constant 0 : index
      %c0_13 = arith.constant 0 : index
      %15 = vector.load %arg8[%c0_12, %c0_13] : memref<2x128xf32, #tpu.memory_space<vmem>>, vector<2x128xf32>
      tpu.vector_store %arg8[%c0_12, %c0_13], %14 {strides = array<i32>} : memref<2x128xf32, #tpu.memory_space<vmem>>, vector<2x128xf32>,
    } else {
    }
    %c0 = arith.constant 0 : index
    %c0_1 = arith.constant 0 : index
    %3 = vector.load %arg8[%c0, %c0_1] : memref<2x128xf32, #tpu.memory_space<vmem>>, vector<2x128xf32>
    %c0_2 = arith.constant 0 : index
    %c0_3 = arith.constant 0 : index
    %c0_4 = arith.constant 0 : index
    %4 = vector.load %arg3[%c0_2, %c0_3, %c0_4] : memref<1x2x512xbf16, #tpu.memory_space<vmem>>, vector<1x2x512xbf16>
    %5 = vector.shape_cast %4 : vector<1x2x512xbf16> to vector<2x512xbf16>
    %c0_5 = arith.constant 0 : index
    %c0_6 = arith.constant 0 : index
    %c0_7 = arith.constant 0 : index
    %6 = vector.load %arg4[%c0_5, %c0_6, %c0_7] : memref<1x512x128xbf16, #tpu.memory_space<vmem>>, vector<1x512x128xbf16>
    %7 = vector.shape_cast %6 : vector<1x512x128xbf16> to vector<512x128xbf16>
    %cst = arith.constant dense<0.000000e+00> : vector<2x128xf32>
    %8 = tpu.matmul %5, %7, %cst {dimension_numbers = #tpu.dot_dimension_numbers<[1], [0], [0], [1], [0, 0, 1, 1], [], []>} : vector<2x512xbf16>, vector<512x128xbf16>, vector<2x128xf32> -> vector<2x128xf32>
    %9 = arith.addf %3, %8 : vector<2x128xf32>
    %c0_8 = arith.constant 0 : index
    %c0_9 = arith.constant 0 : index
    %10 = vector.load %arg8[%c0_8, %c0_9] : memref<2x128xf32, #tpu.memory_space<vmem>>, vector<2x128xf32>
    tpu.vector_store %arg8[%c0_8, %c0_9], %9 {strides = array<i32>} : memref<2x128xf32, #tpu.memory_space<vmem>>, vector<2x128xf32>,
    %c8_i32 = arith.constant 8 : i32
    %11 = arith.cmpi eq, %arg2, %c8_i32 : i32
    %12 = arith.extui %11 : i1 to i32
    %c0_i32_10 = arith.constant 0 : i32
    %13 = arith.cmpi ne, %12, %c0_i32_10 : i32
    scf.if %13 {
      %c0_11 = arith.constant 0 : index
      %c0_12 = arith.constant 0 : index
      %14 = vector.load %arg8[%c0_11, %c0_12] : memref<2x128xf32, #tpu.memory_space<vmem>>, vector<2x128xf32>
      %c0_13 = arith.constant 0 : index
      %c0_14 = arith.constant 0 : index
      %15 = vector.load %arg5[%c0_13, %c0_14] : memref<1x128xf32, #tpu.memory_space<vmem>>, vector<1x128xf32>
      %16 = vector.broadcast %15 : vector<1x128xf32> to vector<2x128xf32>
      %17 = arith.mulf %14, %16 : vector<2x128xf32>
      %c0_15 = arith.constant 0 : index
      %c0_16 = arith.constant 0 : index
      %18 = vector.load %arg6[%c0_15, %c0_16] : memref<1x128xf32, #tpu.memory_space<vmem>>, vector<1x128xf32>
      %19 = vector.broadcast %18 : vector<1x128xf32> to vector<2x128xf32>
      %20 = arith.addf %17, %19 : vector<2x128xf32>
      %cst_17 = arith.constant 0.000000e+00 : f32
      %21 = vector.broadcast %cst_17 : f32 to vector<2x128xf32>
      %22 = arith.maximumf %20, %21 : vector<2x128xf32>
      %23 = arith.truncf %22 : vector<2x128xf32> to vector<2x128xbf16>
      %c0_18 = arith.constant 0 : index
      %c0_19 = arith.constant 0 : index
      %24 = vector.load %arg7[%c0_18, %c0_19] : memref<2x128xbf16, #tpu.memory_space<vmem>>, vector<2x128xbf16>
      tpu.vector_store %arg7[%c0_18, %c0_19], %23 {strides = array<i32>} : memref<2x128xbf16, #tpu.memory_space<vmem>>, vector<2x128xbf16>,
    } else {
    }
    return
  }
  func.func @transform_0(%arg0: i32, %arg1: i32, %arg2: i32) -> (i32, i32, i32) {
    %c0_i32 = arith.constant 0 : i32
    %c0_i32_0 = arith.constant 0 : i32
    return %arg2, %arg0, %c0_i32 : i32, i32, i32
  }
  func.func @transform_1(%arg0: i32, %arg1: i32, %arg2: i32) -> (i32, i32, i32) {
    %c0_i32 = arith.constant 0 : i32
    %c0_i32_0 = arith.constant 0 : i32
    return %arg2, %c0_i32, %arg1 : i32, i32, i32
  }
  func.func @transform_2(%arg0: i32, %arg1: i32, %arg2: i32) -> (i32, i32) {
    %c0_i32 = arith.constant 0 : i32
    %c0_i32_0 = arith.constant 0 : i32
    return %c0_i32, %arg1 : i32, i32
  }
  func.func @transform_3(%arg0: i32, %arg1: i32, %arg2: i32) -> (i32, i32) {
    %c0_i32 = arith.constant 0 : i32
    %c0_i32_0 = arith.constant 0 : i32
    return %c0_i32, %arg1 : i32, i32
  }
  func.func @transform_4(%arg0: i32, %arg1: i32, %arg2: i32) -> (i32, i32) {
    %c0_i32 = arith.constant 0 : i32
    return %arg0, %arg1 : i32, i32
  }
}

module attributes {stable_mosaic.version = 11 : i64} {
  func.func @_gap_kernel(%arg0: i32, %arg1: memref<2x1x128xbf16, #tpu.memory_space<vmem>>, %arg2: memref<2x128xf32, #tpu.memory_space<vmem>>) attributes {dimension_semantics = [#tpu.dimension_semantics<parallel>], iteration_bounds = array<i64: 4>, scalar_prefetch = 0 : i64, scratch_operands = 0 : i64, tpu.core_type = #tpu.core_type<tc>, window_params = [{transform_indices = @transform_0, window_bounds = array<i64: 2, 1, 128>}, {transform_indices = @transform_1, window_bounds = array<i64: 2, 128>}]} {
    %c0 = arith.constant 0 : index
    %c0_0 = arith.constant 0 : index
    %c0_1 = arith.constant 0 : index
    %0 = vector.load %arg1[%c0, %c0_0, %c0_1] : memref<2x1x128xbf16, #tpu.memory_space<vmem>>, vector<2x1x128xbf16>
    %1 = arith.extf %0 : vector<2x1x128xbf16> to vector<2x1x128xf32>
    %cst = arith.constant dense<0.000000e+00> : vector<2x128xf32>
    %2 = vector.multi_reduction <add>, %1, %cst [1] : vector<2x1x128xf32> to vector<2x128xf32>
    %cst_2 = arith.constant 1.000000e+00 : f32
    %3 = vector.broadcast %cst_2 : f32 to vector<2x128xf32>
    %4 = arith.divf %2, %3 : vector<2x128xf32>
    %c0_3 = arith.constant 0 : index
    %c0_4 = arith.constant 0 : index
    %5 = vector.load %arg2[%c0_3, %c0_4] : memref<2x128xf32, #tpu.memory_space<vmem>>, vector<2x128xf32>
    tpu.vector_store %arg2[%c0_3, %c0_4], %4 {strides = array<i32>} : memref<2x128xf32, #tpu.memory_space<vmem>>, vector<2x128xf32>,
    return
  }
  func.func @transform_0(%arg0: i32) -> (i32, i32, i32) {
    %c0_i32 = arith.constant 0 : i32
    %c0_i32_0 = arith.constant 0 : i32
    %c0_i32_1 = arith.constant 0 : i32
    return %c0_i32, %c0_i32_0, %arg0 : i32, i32, i32
  }
  func.func @transform_1(%arg0: i32) -> (i32, i32) {
    %c0_i32 = arith.constant 0 : i32
    %c0_i32_0 = arith.constant 0 : i32
    return %c0_i32, %arg0 : i32, i32
  }
}

</mosaic_0001>

<bundles_post_ra>
// kernel: ctr_predictor_forward.24
= control target key start
LH: loop header
LB: loop body
LE: loop exit
PB: predicated region body
PF: predicated region fallthrough
CT: control target
= control target key end

     0   :  { %s1070_s15 = smov 0   ;;  %s1072_s16 = smov 0   ;;  %s1271_s0 = inlined_call_operand.vmem [shape: bf16[9,128,64], index: 0, kind: input, shape index: {}]   ;;  %s1272_s1 = inlined_call_operand.vmem [shape: bf16[9,64,64], index: 1, kind: input, shape index: {}]   ;;  %s1273_s2 = inlined_call_operand.vmem [shape: f32[1,64], index: 2, kind: input, shape index: {}]   ;;  %s1274_s3 = inlined_call_operand.vmem [shape: f32[1,64], index: 3, kind: input, shape index: {}]   ;;  %s1275_s4 = inlined_call_operand.vmem [shape: bf16[128,64], index: 4, kind: output, shape index: {}]  }
   0x1   :  { %s1074_s17 = smov 0  }
   0x2 LB: > { %s26_s18 = sadd.s32 1, %s1038_s16  ;;  %p872_p0 = scmp.ge.s32.totalorder %s1042_s17, 1  ;;  %s1042_s17 = sphi %s1074_s17, %s14_s17   ;;  %s1038_s16 = sphi %s1072_s16, %s1277_s16   ;;  %s1034_s15 = sphi %s1070_s15, %s1276_s15  }
   0x3   : > { %p27_p1 = scmp.ge.s32.totalorder %s26_s18, 9  ;;  %p221_p2 = scmp.lt.s32.totalorder %s1042_s17, 10 }
   0x5   : > { %s1279_s18 = smov (%p27_p1, %s26_s18), 0  ;;  %p222_p3 = pnand %p872_p0, %p221_p2 }
   0x6   : > { %p269_p4 = scmp.lt.s32.totalorder (!%p222_p3), %s1034_s15, 8  ;;  %p877_p5 = scmp.ne.s32.totalorder (!%p222_p3), %s1034_s15, 0 }
   0x7   : > { %225 = sbr.rel (%p222_p3) target bundleno = 285 (0x11d), region = 36 }
   0xe   : > { %s270_s19 = scalar_select %p269_p4, %s1034_s15, 8 }
   0xf   : > { %305 = sbr.rel (%p877_p5) target bundleno = 24 (0x18), region = 40  ;;  %vm306_vm0 = vcmask (!%p877_p5), 523264   ;;  %v1044_v0 = vmov (!%p877_p5), 0.0  }
  0x10   : > { %s921_s20 = sshll.u32 %s270_s19, 6  ;;  %s922_s21 = sshll.u32 %s270_s19, 5  ;;  %307 = vst.msk [vmem:[#allocation2] sm:$0xff] (!%p877_p5), %vm306_vm0, %v1044_v0  ;;  %308 = vst.msk [vmem:[#allocation2 + $0x8] sm:$0xff] (!%p877_p5), %vm306_vm0, %v1044_v0 }
  0x11   : > { %s1095_s24 = scalar_lea.vmem %s1271_s0, %s921_s20  ;;  %s1100_s27 = scalar_lea.vmem %s1272_s1, %s922_s21  ;;  %309 = vst.msk [vmem:[#allocation2 + $0x10] sm:$0xff] (!%p877_p5), %vm306_vm0, %v1044_v0  ;;  %310 = vst.msk [vmem:[#allocation2 + $0x18] sm:$0xff] (!%p877_p5), %vm306_vm0, %v1044_v0 }
  0x12   : > { %311 = vst.msk [vmem:[#allocation2 + $0x20] sm:$0xff] (!%p877_p5), %vm306_vm0, %v1044_v0  ;;  %312 = vst.msk [vmem:[#allocation2 + $0x28] sm:$0xff] (!%p877_p5), %vm306_vm0, %v1044_v0 }
  0x13   : > { %313 = vst.msk [vmem:[#allocation2 + $0x30] sm:$0xff] (!%p877_p5), %vm306_vm0, %v1044_v0  ;;  %314 = vst.msk [vmem:[#allocation2 + $0x38] sm:$0xff] (!%p877_p5), %vm306_vm0, %v1044_v0 }
  0x14   : > { %315 = vst.msk [vmem:[#allocation2 + $0x40] sm:$0xff] (!%p877_p5), %vm306_vm0, %v1044_v0  ;;  %316 = vst.msk [vmem:[#allocation2 + $0x48] sm:$0xff] (!%p877_p5), %vm306_vm0, %v1044_v0 }
  0x15   : > { %317 = vst.msk [vmem:[#allocation2 + $0x50] sm:$0xff] (!%p877_p5), %vm306_vm0, %v1044_v0  ;;  %318 = vst.msk [vmem:[#allocation2 + $0x58] sm:$0xff] (!%p877_p5), %vm306_vm0, %v1044_v0 }
  0x16   : > { %319 = vst.msk [vmem:[#allocation2 + $0x60] sm:$0xff] %vm306_vm0, %v1044_v0  ;;  %320 = vst.msk [vmem:[#allocation2 + $0x68] sm:$0xff] %vm306_vm0, %v1044_v0 }
  0x17   : > { %321 = vst.msk [vmem:[#allocation2 + $0x70] sm:$0xff] %vm306_vm0, %v1044_v0  ;;  %322 = vst.msk [vmem:[#allocation2 + $0x78] sm:$0xff] %vm306_vm0, %v1044_v0 }
  0x18 PF: > { %v1008_v1 = vld [vmem:[%s1100_s27] sm:$0xff]   ;;  %v1009_v2 = vld [vmem:[%s1100_s27 + $0x8] sm:$0xff]   ;;  %v1010_v3 = vld [vmem:[%s1100_s27 + $0x10] sm:$0xff]   ;;  %vm427_vm1 = vcmask 523264   ;;  %p898_p6 = scmp.ne.s32.totalorder %s1034_s15, 8 }
  0x19   : > { %951 = vmatprep.subr.bf16.mxu0 %v1008_v1  ;;  %975 = vmatprep.subr.bf16.mxu1 %v1008_v1  ;;  %v1012_v4 = vld [vmem:[%s1095_s24] sm:$0xff]   ;;  %v1011_v6 = vld [vmem:[%s1100_s27 + $0x18] sm:$0xff]   ;;  %v1014_v7 = vld [vmem:[%s1095_s24 + $0x8] sm:$0xff]   ;;  %vm727_vm2 = vcmask (!%p898_p6), 519168  }
  0x1a   : > { %952 = vmatpush3.bf16.msra.mxu0 %v1008_v1  ;;  %979 = vmatpush3.bf16.msra.mxu1 %v1008_v1  ;;  %v1013_v5 = vld [vmem:[%s1095_s24 + $0x20] sm:$0xff]   ;;  %v1015_v8 = vld [vmem:[%s1095_s24 + $0x28] sm:$0xff]   ;;  %v1016_v9 = vld [vmem:[%s1095_s24 + $0x10] sm:$0xff]  }
  0x1b   : > { %953 = vmatprep.subr.bf16.mxu0 %v1009_v2  ;;  %976 = vmatprep.subr.bf16.mxu1 %v1009_v2  ;;  %v1017_v10 = vld [vmem:[%s1095_s24 + $0x30] sm:$0xff]   ;;  %v1018_v11 = vld [vmem:[%s1095_s24 + $0x18] sm:$0xff]   ;;  %v323_v15 = vld [vmem:[#allocation2] sm:$0xff] }
  0x1c   : > { %959 = vmatprep.mubr.msk.bf16.mxu0 %vm427_vm1, %v1012_v4  ;;  %967 = vmatprep.mubr.msk.bf16.mxu1 %vm427_vm1, %v1013_v5  ;;  %v1019_v12 = vld [vmem:[%s1095_s24 + $0x38] sm:$0xff]   ;;  %v325_v13 = vld [vmem:[#allocation2 + $0x10] sm:$0xff]  ;;  %v324_v25 = vld [vmem:[#allocation2 + $0x8] sm:$0xff] }
  0x1d   : > { %v331_v16 = vld [vmem:[#allocation2 + $0x40] sm:$0xff]  ;;  %v326_v19 = vld [vmem:[#allocation2 + $0x18] sm:$0xff]  ;;  %v332_v26 = vld [vmem:[#allocation2 + $0x48] sm:$0xff] }
  0x1e   : > { %954 = vmatpush3.bf16.msra.mxu0 %v1009_v2  ;;  %980 = vmatpush3.bf16.msra.mxu1 %v1009_v2  ;;  %v333_v14 = vld [vmem:[#allocation2 + $0x50] sm:$0xff]  ;;  %v334_v20 = vld [vmem:[#allocation2 + $0x58] sm:$0xff]  ;;  %v327_v39 = vld [vmem:[#allocation2 + $0x20] sm:$0xff] }
  0x1f   : > { %955 = vmatprep.subr.bf16.mxu0 %v1010_v3  ;;  %977 = vmatprep.subr.bf16.mxu1 %v1010_v3  ;;  %v329_v37 = vld [vmem:[#allocation2 + $0x30] sm:$0xff]  ;;  %v335_v40 = vld [vmem:[#allocation2 + $0x60] sm:$0xff]  ;;  %v330_v43 = vld [vmem:[#allocation2 + $0x38] sm:$0xff] }
  0x20   : > { %v337_v38 = vld [vmem:[#allocation2 + $0x70] sm:$0xff]  ;;  %v338_v44 = vld [vmem:[#allocation2 + $0x78] sm:$0xff]  ;;  %v328_v49 = vld [vmem:[#allocation2 + $0x28] sm:$0xff] }
  0x21   : > { %v336_v50 = vld [vmem:[#allocation2 + $0x68] sm:$0xff]  ;;  %v1159_v62 = vld [vmem:[%s1273_s2] ss:$0 sm:$0xff] (!%p898_p6) }
  0x22   : > { %956 = vmatpush3.bf16.msra.mxu0 %v1010_v3  ;;  %981 = vmatpush3.bf16.msra.mxu1 %v1010_v3  ;;  %v1164_v63 = vld [vmem:[%s1274_s3] ss:$0 sm:$0xff] (!%p898_p6) }
  0x23   : > { %957 = vmatprep.subr.bf16.mxu0 %v1011_v6  ;;  %978 = vmatprep.subr.bf16.mxu1 %v1011_v6 }
  0x26   : > { %958 = vmatpush3.bf16.msra.mxu0 %v1011_v6  ;;  %982 = vmatpush3.bf16.msra.mxu1 %v1011_v6 }
  0x29   : > { %960 = vmatmul.mubr.msk.bf16.vlgmr.msra.gmra.mrb[0].mxu0 %vm427_vm1, %v1014_v7  ;;  %968 = vmatmul.mubr.msk.bf16.vlgmr.msra.gmra.mrb[0].mxu1 %vm427_vm1, %v1015_v8 }
  0x2a   : > { %963 = vmatprep.mubr.msk.bf16.mxu0 %vm427_vm1, %v1016_v9  ;;  %971 = vmatprep.mubr.msk.bf16.mxu1 %vm427_vm1, %v1017_v10 }
  0x31   : > { %964 = vmatmul.mubr.msk.bf16.gmra.mrb[4].mxu0 %vm427_vm1, %v1018_v11  ;;  %972 = vmatmul.mubr.msk.bf16.gmra.mrb[4].mxu1 %vm427_vm1, %v1019_v12 }
  0xfc   : > { %v961_v17 = vpop.f32.mrb[0].mxu0  ;;  %v969_v18 = vpop.f32.mrb[0].mxu1 }
  0xfd   : > { %v551_v21 = vadd.f32 %v961_v17, %v325_v13  ;;  %v559_v22 = vadd.f32 %v969_v18, %v333_v14  ;;  %v486_v23 = vpop.f32.mrb[1].mxu0  ;;  %v518_v24 = vpop.f32.mrb[1].mxu1 }
  0xfe   : > { %v549_v27 = vadd.f32 %v486_v23, %v323_v15  ;;  %v557_v28 = vadd.f32 %v518_v24, %v331_v16  ;;  %v962_v29 = vpop.f32.mrb[2].mxu0  ;;  %v970_v30 = vpop.f32.mrb[2].mxu1 }
  0xff   : > { %567 = vst.msk [vmem:[#allocation2 + $0x10] sm:$0xff] %vm427_vm1, %v551_v21  ;;  %575 = vst.msk [vmem:[#allocation2 + $0x50] sm:$0xff] %vm427_vm1, %v559_v22  ;;  %v552_v31 = vadd.f32 %v962_v29, %v326_v19  ;;  %v560_v32 = vadd.f32 %v970_v30, %v334_v20  ;;  %v489_v33 = vpop.f32.mrb[3].mxu0  ;;  %v521_v34 = vpop.f32.mrb[3].mxu1 }
 0x100   : > { %565 = vst.msk [vmem:[#allocation2] sm:$0xff] %vm427_vm1, %v549_v27  ;;  %573 = vst.msk [vmem:[#allocation2 + $0x40] sm:$0xff] %vm427_vm1, %v557_v28  ;;  %v550_v35 = vadd.f32 %v489_v33, %v324_v25  ;;  %v558_v36 = vadd.f32 %v521_v34, %v332_v26 }
 0x101   : > { %568 = vst.msk [vmem:[#allocation2 + $0x18] sm:$0xff] %vm427_vm1, %v552_v31  ;;  %576 = vst.msk [vmem:[#allocation2 + $0x58] sm:$0xff] %vm427_vm1, %v560_v32 }
 0x102   : > { %566 = vst.msk [vmem:[#allocation2 + $0x8] sm:$0xff] %vm427_vm1, %v550_v35  ;;  %574 = vst.msk [vmem:[#allocation2 + $0x48] sm:$0xff] %vm427_vm1, %v558_v36 }
 0x104   : > { %v965_v41 = vpop.f32.mrb[4].mxu0  ;;  %v973_v42 = vpop.f32.mrb[4].mxu1  ;;  %584 = sbr.rel (%p898_p6) target bundleno = 285 (0x11d), region = 44 }
 0x105   : > { %v555_v45 = vadd.f32 %v965_v41, %v329_v37  ;;  %v563_v46 = vadd.f32 %v973_v42, %v337_v38  ;;  %v502_v47 = vpop.f32.mrb[5].mxu0  ;;  %v534_v48 = vpop.f32.mrb[5].mxu1 }
 0x106   : > { %v553_v51 = vadd.f32 %v502_v47, %v327_v39  ;;  %v561_v52 = vadd.f32 %v534_v48, %v335_v40  ;;  %v966_v53 = vpop.f32.mrb[6].mxu0  ;;  %v974_v54 = vpop.f32.mrb[6].mxu1  ;;  %v587_v2 = vld [vmem:[#allocation2 + $0x10] sm:$0xff] (!%p898_p6) }
 0x107   : > { %571 = vst.msk [vmem:[#allocation2 + $0x30] sm:$0xff] %vm427_vm1, %v555_v45  ;;  %579 = vst.msk [vmem:[#allocation2 + $0x70] sm:$0xff] %vm427_vm1, %v563_v46  ;;  %v556_v55 = vadd.f32 %v966_v53, %v330_v43  ;;  %v564_v56 = vadd.f32 %v974_v54, %v338_v44  ;;  %v505_v57 = vpop.f32.mrb[7].mxu0  ;;  %v537_v58 = vpop.f32.mrb[7].mxu1  ;;  %v585_v61 = vld [vmem:[#allocation2] sm:$0xff] (!%p898_p6)  ;;  %v610_v5 = vmul.f32 (!%p898_p6), %v1159_v62, %v587_v2  ;;  %v595_v33 = vld [vmem:[#allocation2 + $0x50] sm:$0xff] (!%p898_p6) }
 0x108   : > { %569 = vst.msk [vmem:[#allocation2 + $0x20] sm:$0xff] %vm427_vm1, %v553_v51  ;;  %577 = vst.msk [vmem:[#allocation2 + $0x60] sm:$0xff] %vm427_vm1, %v561_v52  ;;  %v554_v59 = vadd.f32 %v505_v57, %v328_v49  ;;  %v562_v60 = vadd.f32 %v537_v58, %v336_v50  ;;  %v608_v0 = vmul.f32 (!%p898_p6), %v1159_v62, %v585_v61  ;;  %v588_v3 = vld [vmem:[#allocation2 + $0x18] sm:$0xff] (!%p898_p6)  ;;  %v593_v27 = vld [vmem:[#allocation2 + $0x40] sm:$0xff] (!%p898_p6) }
 0x109   : > { %572 = vst.msk [vmem:[#allocation2 + $0x38] sm:$0xff] %vm427_vm1, %v556_v55  ;;  %580 = vst.msk [vmem:[#allocation2 + $0x78] sm:$0xff] %vm427_vm1, %v564_v56  ;;  %v586_v1 = vld [vmem:[#allocation2 + $0x8] sm:$0xff] (!%p898_p6)  ;;  %v611_v6 = vmul.f32 (!%p898_p6), %v1159_v62, %v588_v3  ;;  %v633_v16 = vadd.f32 (!%p898_p6), %v1164_v63, %v610_v5  ;;  %v596_v34 = vld [vmem:[#allocation2 + $0x58] sm:$0xff] (!%p898_p6)  ;;  %v616_v45 = vmul.f32 (!%p898_p6), %v1159_v62, %v593_v27 }
 0x10a   : > { %570 = vst.msk [vmem:[#allocation2 + $0x28] sm:$0xff] %vm427_vm1, %v554_v59  ;;  %578 = vst.msk [vmem:[#allocation2 + $0x68] sm:$0xff] %vm427_vm1, %v562_v60  ;;  %v609_v4 = vmul.f32 (!%p898_p6), %v1159_v62, %v586_v1  ;;  %v631_v10 = vadd.f32 (!%p898_p6), %v1164_v63, %v608_v0  ;;  %v594_v32 = vld [vmem:[#allocation2 + $0x48] sm:$0xff] (!%p898_p6)  ;;  %v618_v49 = vmul.f32 (!%p898_p6), %v1159_v62, %v595_v33 }
 0x10b   : > { %v634_v17 = vadd.f32 %v1164_v63, %v611_v6  ;;  %v649_v24 = vmax.f32 %v633_v16, 0.0  ;;  %v617_v48 = vmul.f32 %v1159_v62, %v594_v32  ;;  %v619_v50 = vmul.f32 %v1159_v62, %v596_v34 }
 0x10c   : > { %v632_v15 = vadd.f32 %v1164_v63, %v609_v4  ;;  %v647_v19 = vmax.f32 %v631_v10, 0.0  ;;  %v639_v51 = vadd.f32 %v1164_v63, %v616_v45  ;;  %v641_v56 = vadd.f32 %v1164_v63, %v618_v49 }
 0x10d   : > { %v650_v25 = vmax.f32 %v634_v17, 0.0  ;;  %v925_v36 = vpack.c.bf16 %v649_v24, %v649_v24  ;;  %v640_v55 = vadd.f32 %v1164_v63, %v617_v48  ;;  %v642_v57 = vadd.f32 %v1164_v63, %v619_v50 }
 0x10e   : > { %v591_v9 = vld [vmem:[#allocation2 + $0x30] sm:$0xff]  ;;  %v648_v23 = vmax.f32 %v632_v15, 0.0  ;;  %v923_v28 = vpack.c.bf16 %v647_v19, %v647_v19  ;;  %v655_v59 = vmax.f32 %v639_v51, 0.0  ;;  %v657_v2 = vmax.f32 %v641_v56, 0.0 }
 0x10f   : > { %v589_v7 = vld [vmem:[#allocation2 + $0x20] sm:$0xff]  ;;  %v614_v13 = vmul.f32 %v1159_v62, %v591_v9  ;;  %v926_v37 = vpack.c.bf16 %v650_v25, %v650_v25  ;;  %v599_v41 = vld [vmem:[#allocation2 + $0x70] sm:$0xff]  ;;  %730 = vst.msk [vmem:[%s1275_s4 + $0x8] sm:$0xf] %vm727_vm2, %v925_v36  ;;  %v656_v1 = vmax.f32 %v640_v55, 0.0  ;;  %v658_v3 = vmax.f32 %v642_v57, 0.0 }
 0x110   : > { %v612_v11 = vmul.f32 %v1159_v62, %v589_v7  ;;  %v592_v14 = vld [vmem:[#allocation2 + $0x38] sm:$0xff]  ;;  %v924_v35 = vpack.c.bf16 %v648_v23, %v648_v23  ;;  %v597_v39 = vld [vmem:[#allocation2 + $0x60] sm:$0xff]  ;;  %728 = vst.msk [vmem:[%s1275_s4] sm:$0xf] %vm727_vm2, %v923_v28  ;;  %v622_v54 = vmul.f32 %v1159_v62, %v599_v41  ;;  %v931_v5 = vpack.c.bf16 %v655_v59, %v655_v59 }
 0x111   : > { %v590_v8 = vld [vmem:[#allocation2 + $0x28] sm:$0xff]  ;;  %v615_v18 = vmul.f32 %v1159_v62, %v592_v14  ;;  %v637_v22 = vadd.f32 %v1164_v63, %v614_v13  ;;  %v600_v46 = vld [vmem:[#allocation2 + $0x78] sm:$0xff]  ;;  %731 = vst.msk [vmem:[%s1275_s4 + $0xc] sm:$0xf] %vm727_vm2, %v926_v37  ;;  %v620_v52 = vmul.f32 %v1159_v62, %v597_v39  ;;  %v932_v9 = vpack.c.bf16 %v656_v1, %v656_v1 }
 0x112   : > { %v613_v12 = vmul.f32 %v1159_v62, %v590_v8  ;;  %v635_v20 = vadd.f32 %v1164_v63, %v612_v11  ;;  %v598_v40 = vld [vmem:[#allocation2 + $0x68] sm:$0xff]  ;;  %729 = vst.msk [vmem:[%s1275_s4 + $0x4] sm:$0xf] %vm727_vm2, %v924_v35  ;;  %v623_v58 = vmul.f32 %v1159_v62, %v600_v46  ;;  %v645_v0 = vadd.f32 %v1164_v63, %v622_v54 }
 0x113   : > { %v638_v26 = vadd.f32 %v1164_v63, %v615_v18  ;;  %v653_v31 = vmax.f32 %v637_v22, 0.0  ;;  %v621_v53 = vmul.f32 %v1159_v62, %v598_v40  ;;  %v643_v60 = vadd.f32 %v1164_v63, %v620_v52  ;;  %736 = vst.msk [vmem:[%s1275_s4 + $0x20] sm:$0xf] %vm727_vm2, %v931_v5  ;;  %737 = vst.msk [vmem:[%s1275_s4 + $0x24] sm:$0xf] %vm727_vm2, %v932_v9 }
 0x114   : > { %v636_v21 = vadd.f32 %v1164_v63, %v613_v12  ;;  %v651_v29 = vmax.f32 %v635_v20, 0.0  ;;  %v646_v4 = vadd.f32 %v1164_v63, %v623_v58  ;;  %v661_v8 = vmax.f32 %v645_v0, 0.0 }
 0x115   : > { %v654_v38 = vmax.f32 %v638_v26, 0.0  ;;  %v929_v44 = vpack.c.bf16 %v653_v31, %v653_v31  ;;  %v644_v61 = vadd.f32 %v1164_v63, %v621_v53  ;;  %v659_v6 = vmax.f32 %v643_v60, 0.0 }
 0x116   : > { %v652_v30 = vmax.f32 %v636_v21, 0.0  ;;  %v927_v42 = vpack.c.bf16 %v651_v29, %v651_v29  ;;  %v933_v10 = vpack.c.bf16 %v657_v2, %v657_v2  ;;  %v934_v11 = vpack.c.bf16 %v658_v3, %v658_v3 }
 0x117   : > { %v930_v47 = vpack.c.bf16 %v654_v38, %v654_v38  ;;  %734 = vst.msk [vmem:[%s1275_s4 + $0x18] sm:$0xf] %vm727_vm2, %v929_v44  ;;  %v660_v7 = vmax.f32 %v644_v61, 0.0  ;;  %v662_v62 = vmax.f32 %v646_v4, 0.0  ;;  %v935_v12 = vpack.c.bf16 %v659_v6, %v659_v6 }
 0x118   : > { %v928_v43 = vpack.c.bf16 %v652_v30, %v652_v30  ;;  %732 = vst.msk [vmem:[%s1275_s4 + $0x10] sm:$0xf] %vm727_vm2, %v927_v42  ;;  %v937_v14 = vpack.c.bf16 %v661_v8, %v661_v8  ;;  %738 = vst.msk [vmem:[%s1275_s4 + $0x28] sm:$0xf] %vm727_vm2, %v933_v10 }
 0x119   : > { %735 = vst.msk [vmem:[%s1275_s4 + $0x1c] sm:$0xf] %vm727_vm2, %v930_v47  ;;  %v936_v13 = vpack.c.bf16 %v660_v7, %v660_v7  ;;  %739 = vst.msk [vmem:[%s1275_s4 + $0x2c] sm:$0xf] %vm727_vm2, %v934_v11  ;;  %v938_v63 = vpack.c.bf16 %v662_v62, %v662_v62 }
 0x11a   : > { %733 = vst.msk [vmem:[%s1275_s4 + $0x14] sm:$0xf] %vm727_vm2, %v928_v43  ;;  %740 = vst.msk [vmem:[%s1275_s4 + $0x30] sm:$0xf] %vm727_vm2, %v935_v12 }
 0x11b   : > { %741 = vst.msk [vmem:[%s1275_s4 + $0x34] sm:$0xf] %vm727_vm2, %v936_v13  ;;  %742 = vst.msk [vmem:[%s1275_s4 + $0x38] sm:$0xf] %vm727_vm2, %v937_v14 }
 0x11c   : > { %743 = vst.msk [vmem:[%s1275_s4 + $0x3c] sm:$0xf] %vm727_vm2, %v938_v63 }
 0x11d PF: > { %s14_s17 = sadd.s32 1, %s1042_s17   ;;  %s1276_s15 = smov %s1038_s16 }
 0x11e   : > { %p11_p7 = scmp.ge.s32.totalorder %s14_s17, 11   ;;  %s1277_s16 = smov %s1279_s18 }
 0x120   :  { %13 = sbr.rel (!%p11_p7) target bundleno = 2 (0x2), region = 83 }

// kernel: ctr_predictor_forward.25
= control target key start
LH: loop header
LB: loop body
LE: loop exit
PB: predicated region body
PF: predicated region fallthrough
CT: control target
= control target key end

     0   :  { %s1241_s18 = smov 0   ;;  %s1243_s19 = smov 0   ;;  %s1466_s0 = inlined_call_operand.vmem [shape: bf16[9,128,64], index: 0, kind: input, shape index: {}]   ;;  %s1467_s1 = inlined_call_operand.vmem [shape: bf16[9,64,64], index: 1, kind: input, shape index: {}]   ;;  %s1468_s2 = inlined_call_operand.vmem [shape: f32[1,64], index: 2, kind: input, shape index: {}]   ;;  %s1469_s3 = inlined_call_operand.vmem [shape: f32[1,64], index: 3, kind: input, shape index: {}]   ;;  %s1470_s4 = inlined_call_operand.vmem [shape: bf16[128,64], index: 4, kind: input, shape index: {}]   ;;  %s1471_s5 = inlined_call_operand.vmem [shape: bf16[128,64], index: 5, kind: output, shape index: {}]  }
   0x1   :  { %s1245_s20 = smov 0  }
   0x2 LB: > { %s27_s21 = sadd.s32 1, %s1204_s19  ;;  %p999_p0 = scmp.ge.s32.totalorder %s1208_s20, 1  ;;  %s1208_s20 = sphi %s1245_s20, %s15_s20   ;;  %s1204_s19 = sphi %s1243_s19, %s1473_s19   ;;  %s1200_s18 = sphi %s1241_s18, %s1472_s18  }
   0x3   : > { %p28_p1 = scmp.ge.s32.totalorder %s27_s21, 9  ;;  %p262_p2 = scmp.lt.s32.totalorder %s1208_s20, 10 }
   0x5   : > { %s1475_s21 = smov (%p28_p1, %s27_s21), 0  ;;  %p263_p3 = pnand %p999_p0, %p262_p2 }
   0x6   : > { %p320_p4 = scmp.lt.s32.totalorder (!%p263_p3), %s1200_s18, 8  ;;  %p1004_p5 = scmp.ne.s32.totalorder (!%p263_p3), %s1200_s18, 0 }
   0x7   : > { %266 = sbr.rel (%p263_p3) target bundleno = 294 (0x126), region = 40 }
   0xe   : > { %s321_s22 = scalar_select %p320_p4, %s1200_s18, 8 }
   0xf   : > { %365 = sbr.rel (%p1004_p5) target bundleno = 24 (0x18), region = 44  ;;  %vm366_vm0 = vcmask (!%p1004_p5), 523264   ;;  %v1210_v0 = vmov (!%p1004_p5), 0.0  }
  0x10   : > { %s1048_s23 = sshll.u32 %s321_s22, 6  ;;  %s1049_s24 = sshll.u32 %s321_s22, 5  ;;  %367 = vst.msk [vmem:[#allocation2] sm:$0xff] (!%p1004_p5), %vm366_vm0, %v1210_v0  ;;  %368 = vst.msk [vmem:[#allocation2 + $0x8] sm:$0xff] (!%p1004_p5), %vm366_vm0, %v1210_v0 }
  0x11   : > { %s1266_s27 = scalar_lea.vmem %s1466_s0, %s1048_s23  ;;  %s1271_s30 = scalar_lea.vmem %s1467_s1, %s1049_s24  ;;  %369 = vst.msk [vmem:[#allocation2 + $0x10] sm:$0xff] (!%p1004_p5), %vm366_vm0, %v1210_v0  ;;  %370 = vst.msk [vmem:[#allocation2 + $0x18] sm:$0xff] (!%p1004_p5), %vm366_vm0, %v1210_v0 }
  0x12   : > { %371 = vst.msk [vmem:[#allocation2 + $0x20] sm:$0xff] (!%p1004_p5), %vm366_vm0, %v1210_v0  ;;  %372 = vst.msk [vmem:[#allocation2 + $0x28] sm:$0xff] (!%p1004_p5), %vm366_vm0, %v1210_v0 }
  0x13   : > { %373 = vst.msk [vmem:[#allocation2 + $0x30] sm:$0xff] (!%p1004_p5), %vm366_vm0, %v1210_v0  ;;  %374 = vst.msk [vmem:[#allocation2 + $0x38] sm:$0xff] (!%p1004_p5), %vm366_vm0, %v1210_v0 }
  0x14   : > { %375 = vst.msk [vmem:[#allocation2 + $0x40] sm:$0xff] (!%p1004_p5), %vm366_vm0, %v1210_v0  ;;  %376 = vst.msk [vmem:[#allocation2 + $0x48] sm:$0xff] (!%p1004_p5), %vm366_vm0, %v1210_v0 }
  0x15   : > { %377 = vst.msk [vmem:[#allocation2 + $0x50] sm:$0xff] (!%p1004_p5), %vm366_vm0, %v1210_v0  ;;  %378 = vst.msk [vmem:[#allocation2 + $0x58] sm:$0xff] (!%p1004_p5), %vm366_vm0, %v1210_v0 }
  0x16   : > { %379 = vst.msk [vmem:[#allocation2 + $0x60] sm:$0xff] %vm366_vm0, %v1210_v0  ;;  %380 = vst.msk [vmem:[#allocation2 + $0x68] sm:$0xff] %vm366_vm0, %v1210_v0 }
  0x17   : > { %381 = vst.msk [vmem:[#allocation2 + $0x70] sm:$0xff] %vm366_vm0, %v1210_v0  ;;  %382 = vst.msk [vmem:[#allocation2 + $0x78] sm:$0xff] %vm366_vm0, %v1210_v0 }
  0x18 PF: > { %v1174_v1 = vld [vmem:[%s1271_s30] sm:$0xff]   ;;  %v1175_v2 = vld [vmem:[%s1271_s30 + $0x8] sm:$0xff]   ;;  %v1176_v3 = vld [vmem:[%s1271_s30 + $0x10] sm:$0xff]   ;;  %vm487_vm1 = vcmask 523264   ;;  %p1025_p6 = scmp.ne.s32.totalorder %s1200_s18, 8 }
  0x19   : > { %1117 = vmatprep.subr.bf16.mxu0 %v1174_v1  ;;  %1141 = vmatprep.subr.bf16.mxu1 %v1174_v1  ;;  %v1178_v4 = vld [vmem:[%s1266_s27] sm:$0xff]   ;;  %v1177_v6 = vld [vmem:[%s1271_s30 + $0x18] sm:$0xff]   ;;  %v1180_v7 = vld [vmem:[%s1266_s27 + $0x8] sm:$0xff]   ;;  %vm835_vm2 = vcmask (!%p1025_p6), 519168  }
  0x1a   : > { %1118 = vmatpush3.bf16.msra.mxu0 %v1174_v1  ;;  %1145 = vmatpush3.bf16.msra.mxu1 %v1174_v1  ;;  %v1179_v5 = vld [vmem:[%s1266_s27 + $0x20] sm:$0xff]   ;;  %v1181_v8 = vld [vmem:[%s1266_s27 + $0x28] sm:$0xff]   ;;  %v1182_v9 = vld [vmem:[%s1266_s27 + $0x10] sm:$0xff]  }
  0x1b   : > { %1119 = vmatprep.subr.bf16.mxu0 %v1175_v2  ;;  %1142 = vmatprep.subr.bf16.mxu1 %v1175_v2  ;;  %v1183_v10 = vld [vmem:[%s1266_s27 + $0x30] sm:$0xff]   ;;  %v1184_v11 = vld [vmem:[%s1266_s27 + $0x18] sm:$0xff]   ;;  %v383_v15 = vld [vmem:[#allocation2] sm:$0xff] }
  0x1c   : > { %1125 = vmatprep.mubr.msk.bf16.mxu0 %vm487_vm1, %v1178_v4  ;;  %1133 = vmatprep.mubr.msk.bf16.mxu1 %vm487_vm1, %v1179_v5  ;;  %v1185_v12 = vld [vmem:[%s1266_s27 + $0x38] sm:$0xff]   ;;  %v385_v13 = vld [vmem:[#allocation2 + $0x10] sm:$0xff]  ;;  %v384_v25 = vld [vmem:[#allocation2 + $0x8] sm:$0xff] }
  0x1d   : > { %v391_v16 = vld [vmem:[#allocation2 + $0x40] sm:$0xff]  ;;  %v386_v19 = vld [vmem:[#allocation2 + $0x18] sm:$0xff]  ;;  %v392_v26 = vld [vmem:[#allocation2 + $0x48] sm:$0xff] }
  0x1e   : > { %1120 = vmatpush3.bf16.msra.mxu0 %v1175_v2  ;;  %1146 = vmatpush3.bf16.msra.mxu1 %v1175_v2  ;;  %v393_v14 = vld [vmem:[#allocation2 + $0x50] sm:$0xff]  ;;  %v394_v20 = vld [vmem:[#allocation2 + $0x58] sm:$0xff]  ;;  %v387_v39 = vld [vmem:[#allocation2 + $0x20] sm:$0xff] }
  0x1f   : > { %1121 = vmatprep.subr.bf16.mxu0 %v1176_v3  ;;  %1143 = vmatprep.subr.bf16.mxu1 %v1176_v3  ;;  %v389_v37 = vld [vmem:[#allocation2 + $0x30] sm:$0xff]  ;;  %v395_v40 = vld [vmem:[#allocation2 + $0x60] sm:$0xff]  ;;  %v390_v43 = vld [vmem:[#allocation2 + $0x38] sm:$0xff] }
  0x20   : > { %v397_v38 = vld [vmem:[#allocation2 + $0x70] sm:$0xff]  ;;  %v398_v44 = vld [vmem:[#allocation2 + $0x78] sm:$0xff]  ;;  %v388_v49 = vld [vmem:[#allocation2 + $0x28] sm:$0xff] }
  0x21   : > { %v396_v50 = vld [vmem:[#allocation2 + $0x68] sm:$0xff]  ;;  %v1330_v62 = vld [vmem:[%s1468_s2] ss:$0 sm:$0xff] (!%p1025_p6) }
  0x22   : > { %1122 = vmatpush3.bf16.msra.mxu0 %v1176_v3  ;;  %1147 = vmatpush3.bf16.msra.mxu1 %v1176_v3  ;;  %v1335_v63 = vld [vmem:[%s1469_s3] ss:$0 sm:$0xff] (!%p1025_p6) }
  0x23   : > { %1123 = vmatprep.subr.bf16.mxu0 %v1177_v6  ;;  %1144 = vmatprep.subr.bf16.mxu1 %v1177_v6  ;;  %v1067_v1 = vld [vmem:[%s1470_s4] sm:$0xff] (!%p1025_p6)  }
  0x24   : > { %v1068_v4 = vunpack.c.l.bf16 (!%p1025_p6), %v1067_v1 }
  0x26   : > { %1124 = vmatpush3.bf16.msra.mxu0 %v1177_v6  ;;  %1148 = vmatpush3.bf16.msra.mxu1 %v1177_v6  ;;  %v1069_v6 = vunpack.c.h.bf16 (!%p1025_p6), %v1067_v1 }
  0x29   : > { %1126 = vmatmul.mubr.msk.bf16.vlgmr.msra.gmra.mrb[0].mxu0 %vm487_vm1, %v1180_v7  ;;  %1134 = vmatmul.mubr.msk.bf16.vlgmr.msra.gmra.mrb[0].mxu1 %vm487_vm1, %v1181_v8  ;;  %v1098_v8 = vld [vmem:[%s1470_s4 + $0x8] sm:$0xff] (!%p1025_p6)  }
  0x2a   : > { %1129 = vmatprep.mubr.msk.bf16.mxu0 %vm487_vm1, %v1182_v9  ;;  %1137 = vmatprep.mubr.msk.bf16.mxu1 %vm487_vm1, %v1183_v10 }
  0x31   : > { %1130 = vmatmul.mubr.msk.bf16.gmra.mrb[4].mxu0 %vm487_vm1, %v1184_v11  ;;  %1138 = vmatmul.mubr.msk.bf16.gmra.mrb[4].mxu1 %vm487_vm1, %v1185_v12  ;;  %v1072_v12 = vunpack.c.l.bf16 (!%p1025_p6), %v1098_v8 }
  0xfc   : > { %v1127_v17 = vpop.f32.mrb[0].mxu0  ;;  %v1135_v18 = vpop.f32.mrb[0].mxu1 }
  0xfd   : > { %v611_v21 = vadd.f32 %v1127_v17, %v385_v13  ;;  %v619_v22 = vadd.f32 %v1135_v18, %v393_v14  ;;  %v546_v23 = vpop.f32.mrb[1].mxu0  ;;  %v578_v24 = vpop.f32.mrb[1].mxu1  ;;  %v1073_v14 = vunpack.c.h.bf16 (!%p1025_p6), %v1098_v8 }
  0xfe   : > { %v609_v27 = vadd.f32 %v546_v23, %v383_v15  ;;  %v617_v28 = vadd.f32 %v578_v24, %v391_v16  ;;  %v1128_v29 = vpop.f32.mrb[2].mxu0  ;;  %v1136_v30 = vpop.f32.mrb[2].mxu1  ;;  %v1099_v15 = vld [vmem:[%s1470_s4 + $0x10] sm:$0xff] (!%p1025_p6)  }
  0xff   : > { %627 = vst.msk [vmem:[#allocation2 + $0x10] sm:$0xff] %vm487_vm1, %v611_v21  ;;  %635 = vst.msk [vmem:[#allocation2 + $0x50] sm:$0xff] %vm487_vm1, %v619_v22  ;;  %v612_v31 = vadd.f32 %v1128_v29, %v386_v19  ;;  %v620_v32 = vadd.f32 %v1136_v30, %v394_v20  ;;  %v549_v33 = vpop.f32.mrb[3].mxu0  ;;  %v581_v34 = vpop.f32.mrb[3].mxu1  ;;  %v1076_v21 = vunpack.c.l.bf16 (!%p1025_p6), %v1099_v15  ;;  %v1100_v22 = vld [vmem:[%s1470_s4 + $0x18] sm:$0xff] (!%p1025_p6)  }
 0x100   : > { %625 = vst.msk [vmem:[#allocation2] sm:$0xff] %vm487_vm1, %v609_v27  ;;  %633 = vst.msk [vmem:[#allocation2 + $0x40] sm:$0xff] %vm487_vm1, %v617_v28  ;;  %v610_v35 = vadd.f32 %v549_v33, %v384_v25  ;;  %v618_v36 = vadd.f32 %v581_v34, %v392_v26  ;;  %v1077_v26 = vunpack.c.h.bf16 (!%p1025_p6), %v1099_v15 }
 0x101   : > { %628 = vst.msk [vmem:[#allocation2 + $0x18] sm:$0xff] %vm487_vm1, %v612_v31  ;;  %636 = vst.msk [vmem:[#allocation2 + $0x58] sm:$0xff] %vm487_vm1, %v620_v32 }
 0x102   : > { %626 = vst.msk [vmem:[#allocation2 + $0x8] sm:$0xff] %vm487_vm1, %v610_v35  ;;  %634 = vst.msk [vmem:[#allocation2 + $0x48] sm:$0xff] %vm487_vm1, %v618_v36  ;;  %v1080_v35 = vunpack.c.l.bf16 (!%p1025_p6), %v1100_v22 }
 0x104   : > { %v1131_v41 = vpop.f32.mrb[4].mxu0  ;;  %v1139_v42 = vpop.f32.mrb[4].mxu1  ;;  %644 = sbr.rel (%p1025_p6) target bundleno = 294 (0x126), region = 48 }
 0x105   : > { %v615_v45 = vadd.f32 %v1131_v41, %v389_v37  ;;  %v623_v46 = vadd.f32 %v1139_v42, %v397_v38  ;;  %v562_v47 = vpop.f32.mrb[5].mxu0  ;;  %v594_v48 = vpop.f32.mrb[5].mxu1 }
 0x106   : > { %v613_v51 = vadd.f32 %v562_v47, %v387_v39  ;;  %v621_v52 = vadd.f32 %v594_v48, %v395_v40  ;;  %v1132_v53 = vpop.f32.mrb[6].mxu0  ;;  %v1140_v54 = vpop.f32.mrb[6].mxu1  ;;  %v647_v3 = vld [vmem:[#allocation2 + $0x10] sm:$0xff] (!%p1025_p6) }
 0x107   : > { %631 = vst.msk [vmem:[#allocation2 + $0x30] sm:$0xff] %vm487_vm1, %v615_v45  ;;  %639 = vst.msk [vmem:[#allocation2 + $0x70] sm:$0xff] %vm487_vm1, %v623_v46  ;;  %v616_v55 = vadd.f32 %v1132_v53, %v390_v43  ;;  %v624_v56 = vadd.f32 %v1140_v54, %v398_v44  ;;  %v565_v57 = vpop.f32.mrb[7].mxu0  ;;  %v597_v58 = vpop.f32.mrb[7].mxu1  ;;  %v645_v61 = vld [vmem:[#allocation2] sm:$0xff] (!%p1025_p6)  ;;  %v670_v7 = vmul.f32 (!%p1025_p6), %v1330_v62, %v647_v3  ;;  %v1081_v54 = vunpack.c.h.bf16 (!%p1025_p6), %v1100_v22 }
 0x108   : > { %629 = vst.msk [vmem:[#allocation2 + $0x20] sm:$0xff] %vm487_vm1, %v613_v51  ;;  %637 = vst.msk [vmem:[#allocation2 + $0x60] sm:$0xff] %vm487_vm1, %v621_v52  ;;  %v614_v59 = vadd.f32 %v565_v57, %v388_v49  ;;  %v622_v60 = vadd.f32 %v597_v58, %v396_v50  ;;  %v668_v0 = vmul.f32 (!%p1025_p6), %v1330_v62, %v645_v61  ;;  %v648_v9 = vld [vmem:[#allocation2 + $0x18] sm:$0xff] (!%p1025_p6)  ;;  %v653_v44 = vld [vmem:[#allocation2 + $0x40] sm:$0xff] (!%p1025_p6) }
 0x109   : > { %632 = vst.msk [vmem:[#allocation2 + $0x38] sm:$0xff] %vm487_vm1, %v616_v55  ;;  %640 = vst.msk [vmem:[#allocation2 + $0x78] sm:$0xff] %vm487_vm1, %v624_v56  ;;  %v646_v2 = vld [vmem:[#allocation2 + $0x8] sm:$0xff] (!%p1025_p6)  ;;  %v671_v13 = vmul.f32 (!%p1025_p6), %v1330_v62, %v648_v9  ;;  %v693_v19 = vadd.f32 (!%p1025_p6), %v1335_v63, %v670_v7  ;;  %v1101_v45 = vld [vmem:[%s1470_s4 + $0x20] sm:$0xff] (!%p1025_p6)  }
 0x10a   : > { %630 = vst.msk [vmem:[#allocation2 + $0x28] sm:$0xff] %vm487_vm1, %v614_v59  ;;  %638 = vst.msk [vmem:[#allocation2 + $0x68] sm:$0xff] %vm487_vm1, %v622_v60  ;;  %v669_v5 = vmul.f32 (!%p1025_p6), %v1330_v62, %v646_v2  ;;  %v691_v11 = vadd.f32 (!%p1025_p6), %v1335_v63, %v668_v0  ;;  %v654_v50 = vld [vmem:[#allocation2 + $0x48] sm:$0xff] (!%p1025_p6)  ;;  %v655_v55 = vld [vmem:[#allocation2 + $0x50] sm:$0xff] (!%p1025_p6)  ;;  %v676_v59 = vmul.f32 (!%p1025_p6), %v1330_v62, %v653_v44  ;;  %v1084_v60 = vunpack.c.l.bf16 (!%p1025_p6), %v1101_v45 }
 0x10b   : > { %v694_v24 = vadd.f32 %v1335_v63, %v671_v13  ;;  %v741_v28 = vadd.f32 %v1072_v12, %v693_v19  ;;  %v1102_v56 = vld [vmem:[%s1470_s4 + $0x28] sm:$0xff]   ;;  %v656_v61 = vld [vmem:[#allocation2 + $0x58] sm:$0xff]  ;;  %v677_v2 = vmul.f32 %v1330_v62, %v654_v50  ;;  %v1085_v3 = vunpack.c.h.bf16 %v1101_v45 }
 0x10c   : > { %v692_v18 = vadd.f32 %v1335_v63, %v669_v5  ;;  %v739_v23 = vadd.f32 %v1068_v4, %v691_v11  ;;  %v1103_v5 = vld [vmem:[%s1470_s4 + $0x30] sm:$0xff]   ;;  %v699_v7 = vadd.f32 %v1335_v63, %v676_v59  ;;  %v678_v8 = vmul.f32 %v1330_v62, %v655_v55 }
 0x10d   : > { %v742_v33 = vadd.f32 %v1073_v14, %v694_v24  ;;  %v757_v37 = vmax.f32 %v741_v28, 0.0  ;;  %v1088_v9 = vunpack.c.l.bf16 %v1102_v56  ;;  %v700_v12 = vadd.f32 %v1335_v63, %v677_v2  ;;  %v1104_v24 = vld [vmem:[%s1470_s4 + $0x38] sm:$0xff]  }
 0x10e   : > { %v651_v17 = vld [vmem:[#allocation2 + $0x30] sm:$0xff]  ;;  %v740_v27 = vadd.f32 %v1069_v6, %v692_v18  ;;  %v755_v32 = vmax.f32 %v739_v23, 0.0  ;;  %v679_v13 = vmul.f32 %v1330_v62, %v656_v61  ;;  %v1089_v14 = vunpack.c.h.bf16 %v1102_v56 }
 0x10f   : > { %v649_v10 = vld [vmem:[#allocation2 + $0x20] sm:$0xff]  ;;  %v674_v30 = vmul.f32 %v1330_v62, %v651_v17  ;;  %v758_v41 = vmax.f32 %v742_v33, 0.0  ;;  %v1052_v47 = vpack.c.bf16 %v757_v37, %v757_v37  ;;  %v747_v15 = vadd.f32 %v1084_v60, %v699_v7  ;;  %v659_v19 = vld [vmem:[#allocation2 + $0x70] sm:$0xff] }
 0x110   : > { %v672_v20 = vmul.f32 %v1330_v62, %v649_v10  ;;  %v652_v31 = vld [vmem:[#allocation2 + $0x38] sm:$0xff]  ;;  %v756_v36 = vmax.f32 %v740_v27, 0.0  ;;  %v1050_v40 = vpack.c.bf16 %v755_v32, %v755_v32  ;;  %v657_v4 = vld [vmem:[#allocation2 + $0x60] sm:$0xff]  ;;  %v1092_v18 = vunpack.c.l.bf16 %v1103_v5 }
 0x111   : > { %v650_v16 = vld [vmem:[#allocation2 + $0x28] sm:$0xff]  ;;  %v697_v39 = vadd.f32 %v1335_v63, %v674_v30  ;;  %v675_v43 = vmul.f32 %v1330_v62, %v652_v31  ;;  %v1053_v51 = vpack.c.bf16 %v758_v41, %v758_v41  ;;  %838 = vst.msk [vmem:[%s1471_s5 + $0x8] sm:$0xf] %vm835_vm2, %v1052_v47  ;;  %v680_v17 = vmul.f32 %v1330_v62, %v657_v4  ;;  %v660_v33 = vld [vmem:[#allocation2 + $0x78] sm:$0xff] }
 0x112   : > { %v673_v25 = vmul.f32 %v1330_v62, %v650_v16  ;;  %v695_v29 = vadd.f32 %v1335_v63, %v672_v20  ;;  %v1051_v46 = vpack.c.bf16 %v756_v36, %v756_v36  ;;  %836 = vst.msk [vmem:[%s1471_s5] sm:$0xf] %vm835_vm2, %v1050_v40  ;;  %v658_v10 = vld [vmem:[#allocation2 + $0x68] sm:$0xff]  ;;  %v701_v16 = vadd.f32 %v1335_v63, %v678_v8 }
 0x113   : > { %v745_v49 = vadd.f32 %v1080_v35, %v697_v39  ;;  %v698_v53 = vadd.f32 %v1335_v63, %v675_v43  ;;  %839 = vst.msk [vmem:[%s1471_s5 + $0xc] sm:$0xf] %vm835_vm2, %v1053_v51  ;;  %v702_v22 = vadd.f32 %v1335_v63, %v679_v13  ;;  %v681_v23 = vmul.f32 %v1330_v62, %v658_v10 }
 0x114   : > { %v696_v34 = vadd.f32 %v1335_v63, %v673_v25  ;;  %v743_v38 = vadd.f32 %v1076_v21, %v695_v29  ;;  %837 = vst.msk [vmem:[%s1471_s5 + $0x4] sm:$0xf] %vm835_vm2, %v1051_v46  ;;  %v748_v21 = vadd.f32 %v1085_v3, %v700_v12  ;;  %v763_v25 = vmax.f32 %v747_v15, 0.0 }
 0x115   : > { %v761_v58 = vmax.f32 %v745_v49, 0.0  ;;  %v746_v1 = vadd.f32 %v1081_v54, %v698_v53  ;;  %v703_v27 = vadd.f32 %v1335_v63, %v680_v17  ;;  %v1093_v28 = vunpack.c.h.bf16 %v1103_v5 }
 0x116   : > { %v744_v42 = vadd.f32 %v1077_v26, %v696_v34  ;;  %v759_v48 = vmax.f32 %v743_v38, 0.0  ;;  %v749_v26 = vadd.f32 %v1088_v9, %v701_v16  ;;  %v764_v29 = vmax.f32 %v748_v21, 0.0 }
 0x117   : > { %v1056_v6 = vpack.c.bf16 %v761_v58, %v761_v58  ;;  %v762_v11 = vmax.f32 %v746_v1, 0.0  ;;  %v750_v30 = vadd.f32 %v1089_v14, %v702_v22  ;;  %v704_v31 = vadd.f32 %v1335_v63, %v681_v23 }
 0x118   : > { %v760_v52 = vmax.f32 %v744_v42, 0.0  ;;  %v1054_v57 = vpack.c.bf16 %v759_v48, %v759_v48  ;;  %v682_v32 = vmul.f32 %v1330_v62, %v659_v19  ;;  %v1058_v34 = vpack.c.bf16 %v763_v25, %v763_v25 }
 0x119   : > { %842 = vst.msk [vmem:[%s1471_s5 + $0x18] sm:$0xf] %vm835_vm2, %v1056_v6  ;;  %v1057_v20 = vpack.c.bf16 %v762_v11, %v762_v11  ;;  %v765_v35 = vmax.f32 %v749_v26, 0.0  ;;  %v751_v36 = vadd.f32 %v1092_v18, %v703_v27  ;;  %v1096_v37 = vunpack.c.l.bf16 %v1104_v24 }
 0x11a   : > { %v1055_v0 = vpack.c.bf16 %v760_v52, %v760_v52  ;;  %840 = vst.msk [vmem:[%s1471_s5 + $0x10] sm:$0xf] %vm835_vm2, %v1054_v57  ;;  %v1059_v38 = vpack.c.bf16 %v764_v29, %v764_v29  ;;  %v766_v39 = vmax.f32 %v750_v30, 0.0  ;;  %v752_v40 = vadd.f32 %v1093_v28, %v704_v31  ;;  %844 = vst.msk [vmem:[%s1471_s5 + $0x20] sm:$0xf] %vm835_vm2, %v1058_v34 }
 0x11b   : > { %843 = vst.msk [vmem:[%s1471_s5 + $0x1c] sm:$0xf] %vm835_vm2, %v1057_v20  ;;  %v705_v41 = vadd.f32 %v1335_v63, %v682_v32  ;;  %v1060_v42 = vpack.c.bf16 %v765_v35, %v765_v35  ;;  %v767_v43 = vmax.f32 %v751_v36, 0.0  ;;  %v683_v44 = vmul.f32 %v1330_v62, %v660_v33 }
 0x11c   : > { %841 = vst.msk [vmem:[%s1471_s5 + $0x14] sm:$0xf] %vm835_vm2, %v1055_v0  ;;  %v1097_v45 = vunpack.c.h.bf16 %v1104_v24  ;;  %845 = vst.msk [vmem:[%s1471_s5 + $0x24] sm:$0xf] %vm835_vm2, %v1059_v38  ;;  %v1061_v46 = vpack.c.bf16 %v766_v39, %v766_v39  ;;  %v768_v47 = vmax.f32 %v752_v40, 0.0 }
 0x11d   : > { %v753_v48 = vadd.f32 %v1096_v37, %v705_v41  ;;  %846 = vst.msk [vmem:[%s1471_s5 + $0x28] sm:$0xf] %vm835_vm2, %v1060_v42  ;;  %v1062_v49 = vpack.c.bf16 %v767_v43, %v767_v43  ;;  %v706_v50 = vadd.f32 %v1335_v63, %v683_v44 }
 0x11e   : > { %847 = vst.msk [vmem:[%s1471_s5 + $0x2c] sm:$0xf] %vm835_vm2, %v1061_v46  ;;  %v1063_v62 = vpack.c.bf16 %v768_v47, %v768_v47 }
 0x11f   : > { %v769_v51 = vmax.f32 %v753_v48, 0.0  ;;  %848 = vst.msk [vmem:[%s1471_s5 + $0x30] sm:$0xf] %vm835_vm2, %v1062_v49  ;;  %v754_v52 = vadd.f32 %v1097_v45, %v706_v50 }
 0x120   : > { %849 = vst.msk [vmem:[%s1471_s5 + $0x34] sm:$0xf] %vm835_vm2, %v1063_v62 }
 0x121   : > { %v1064_v53 = vpack.c.bf16 %v769_v51, %v769_v51  ;;  %v770_v63 = vmax.f32 %v754_v52, 0.0 }
 0x123   : > { %850 = vst.msk [vmem:[%s1471_s5 + $0x38] sm:$0xf] %vm835_vm2, %v1064_v53  ;;  %v1065_v54 = vpack.c.bf16 %v770_v63, %v770_v63 }
 0x125   : > { %851 = vst.msk [vmem:[%s1471_s5 + $0x3c] sm:$0xf] %vm835_vm2, %v1065_v54 }
 0x126 PF: > { %s15_s20 = sadd.s32 1, %s1208_s20   ;;  %s1472_s18 = smov %s1204_s19 }
 0x127   : > { %p12_p7 = scmp.ge.s32.totalorder %s15_s20, 11   ;;  %s1473_s19 = smov %s1475_s21 }
 0x129   :  { %14 = sbr.rel (!%p12_p7) target bundleno = 2 (0x2), region = 90 }

// kernel: ctr_predictor_forward.23
= control target key start
LH: loop header
LB: loop body
LE: loop exit
PB: predicated region body
PF: predicated region fallthrough
CT: control target
= control target key end

     0   :  { %v2037_v0 = vmov 0   ;;  %vm22_vm0 = vcmask 523264   ;;  %v2038_v19 = vmov 0.0   ;;  %vm1610_vm1 = vcmask 519168   ;;  %s2936_s1 = inlined_call_operand.vmem [shape: bf16[1,256,64], index: 1, kind: input, shape index: {}]   ;;  %s2937_s0 = inlined_call_operand.vmem [shape: bf16[1,512,256], index: 0, kind: input, shape index: {}]   ;;  %s2938_s2 = inlined_call_operand.vmem [shape: f32[1,64], index: 2, kind: input, shape index: {}]   ;;  %s2939_s3 = inlined_call_operand.vmem [shape: f32[1,64], index: 3, kind: input, shape index: {}]   ;;  %s2940_s4 = inlined_call_operand.vmem [shape: bf16[512,64], index: 4, kind: output, shape index: {}]  }
   0x1   :  { %663 = vmatprep.subr.bf16.mxu0 %v2037_v0  ;;  %1889 = vmatprep.subr.bf16.mxu1 %v2037_v0  ;;  %v1923_v1 = vld [vmem:[%s2936_s1] sm:$0xff]   ;;  %v1924_v2 = vld [vmem:[%s2936_s1 + $0x8] sm:$0xff]   ;;  %v1925_v3 = vld [vmem:[%s2936_s1 + $0x10] sm:$0xff]   ;;  %23 = vst.msk [vmem:[#allocation2] sm:$0xff] %vm22_vm0, %v2038_v19 }
   0x2   :  { %664 = vmatpush1.bf16.msra.mxu0 %v1923_v1  ;;  %1905 = vmatpush1.bf16.msra.mxu1 %v1923_v1  ;;  %v1926_v4 = vld [vmem:[%s2936_s1 + $0x18] sm:$0xff]   ;;  %v1927_v5 = vld [vmem:[%s2936_s1 + $0x20] sm:$0xff]   ;;  %v1928_v7 = vld [vmem:[%s2936_s1 + $0x28] sm:$0xff]   ;;  %24 = vst.msk [vmem:[#allocation2 + $0x8] sm:$0xff] %vm22_vm0, %v2038_v19 }
   0x3   :  { %665 = vmatprep.subr.bf16.mxu0 %v2037_v0  ;;  %1890 = vmatprep.subr.bf16.mxu1 %v2037_v0  ;;  %v1941_v6 = vld [vmem:[%s2937_s0 + $0x4] ss:$8 sps:$4 sm:$0xff]   ;;  %v1929_v9 = vld [vmem:[%s2936_s1 + $0x30] sm:$0xff]   ;;  %v1930_v10 = vld [vmem:[%s2936_s1 + $0x38] sm:$0xff]   ;;  %25 = vst.msk [vmem:[#allocation2 + $0x10] sm:$0xff] %vm22_vm0, %v2038_v19 }
   0x4   :  { %v1944_v8 = vld [vmem:[%s2937_s0 + $0x104] ss:$8 sps:$4 sm:$0xff]   ;;  %695 = vmatprep.mubr.bf16.mxu0 %v1941_v6  ;;  %v1933_v13 = vld [vmem:[%s2936_s1 + $0x50] sm:$0xff]   ;;  %v1934_v14 = vld [vmem:[%s2936_s1 + $0x58] sm:$0xff]   ;;  %26 = vst.msk [vmem:[#allocation2 + $0x18] sm:$0xff] %vm22_vm0, %v2038_v19 }
   0x5   :  { %823 = vmatprep.mubr.bf16.mxu1 %v1944_v8  ;;  %v1931_v11 = vld [vmem:[%s2936_s1 + $0x40] sm:$0xff]   ;;  %v1932_v12 = vld [vmem:[%s2936_s1 + $0x48] sm:$0xff]   ;;  %v1937_v17 = vld [vmem:[%s2936_s1 + $0x70] sm:$0xff]   ;;  %27 = vst.msk [vmem:[#allocation2 + $0x20] sm:$0xff] %vm22_vm0, %v2038_v19 }
   0x6   :  { %666 = vmatpush1.bf16.msra.mxu0 %v1924_v2  ;;  %1906 = vmatpush1.bf16.msra.mxu1 %v1924_v2  ;;  %v1935_v15 = vld [vmem:[%s2936_s1 + $0x60] sm:$0xff]   ;;  %v1936_v16 = vld [vmem:[%s2936_s1 + $0x68] sm:$0xff]   ;;  %v2148_v18 = vld [vmem:[%s2936_s1 + $0x78] sm:$0xff]   ;;  %28 = vst.msk [vmem:[#allocation2 + $0x28] sm:$0xff] %vm22_vm0, %v2038_v19 }
   0x7   :  { %667 = vmatprep.subr.bf16.mxu0 %v2037_v0  ;;  %1891 = vmatprep.subr.bf16.mxu1 %v2037_v0  ;;  %29 = vst.msk [vmem:[#allocation2 + $0x30] sm:$0xff] %vm22_vm0, %v2038_v19  ;;  %30 = vst.msk [vmem:[#allocation2 + $0x38] sm:$0xff] %vm22_vm0, %v2038_v19  ;;  %v1939_v20 = vld [vmem:[%s2937_s0] ss:$8 sps:$4 sm:$0xff]   ;;  %v1945_v22 = vld [vmem:[%s2937_s0 + $0x14] ss:$8 sps:$4 sm:$0xff]  }
   0x8   :  { %31 = vst.msk [vmem:[#allocation2 + $0x40] sm:$0xff] %vm22_vm0, %v2038_v19  ;;  %32 = vst.msk [vmem:[#allocation2 + $0x48] sm:$0xff] %vm22_vm0, %v2038_v19  ;;  %v1942_v21 = vld [vmem:[%s2937_s0 + $0x100] ss:$8 sps:$4 sm:$0xff]   ;;  %v1947_v23 = vld [vmem:[%s2937_s0 + $0x114] ss:$8 sps:$4 sm:$0xff]  }
   0x9   :  { %33 = vst.msk [vmem:[#allocation2 + $0x50] sm:$0xff] %vm22_vm0, %v2038_v19  ;;  %34 = vst.msk [vmem:[#allocation2 + $0x58] sm:$0xff] %vm22_vm0, %v2038_v19  ;;  %v1949_v24 = vld [vmem:[%s2937_s0 + $0x10] ss:$8 sps:$4 sm:$0xff]   ;;  %v1951_v26 = vld [vmem:[%s2937_s0 + $0x24] ss:$8 sps:$4 sm:$0xff]  }
   0xa   :  { %668 = vmatpush1.bf16.msra.mxu0 %v1925_v3  ;;  %1907 = vmatpush1.bf16.msra.mxu1 %v1925_v3  ;;  %35 = vst.msk [vmem:[#allocation2 + $0x60] sm:$0xff] %vm22_vm0, %v2038_v19  ;;  %36 = vst.msk [vmem:[#allocation2 + $0x68] sm:$0xff] %vm22_vm0, %v2038_v19  ;;  %v1950_v25 = vld [vmem:[%s2937_s0 + $0x110] ss:$8 sps:$4 sm:$0xff]   ;;  %v1953_v27 = vld [vmem:[%s2937_s0 + $0x124] ss:$8 sps:$4 sm:$0xff]  }
   0xb   :  { %669 = vmatprep.subr.bf16.mxu0 %v2037_v0  ;;  %1892 = vmatprep.subr.bf16.mxu1 %v2037_v0  ;;  %37 = vst.msk [vmem:[#allocation2 + $0x70] sm:$0xff] %vm22_vm0, %v2038_v19  ;;  %38 = vst.msk [vmem:[#allocation2 + $0x78] sm:$0xff] %vm22_vm0, %v2038_v19  ;;  %v1955_v28 = vld [vmem:[%s2937_s0 + $0x20] ss:$8 sps:$4 sm:$0xff]   ;;  %v1957_v30 = vld [vmem:[%s2937_s0 + $0x34] ss:$8 sps:$4 sm:$0xff]  }
   0xc   :  { %39 = vst.msk [vmem:[#allocation2 + $0x80] sm:$0xff] %vm22_vm0, %v2038_v19  ;;  %40 = vst.msk [vmem:[#allocation2 + $0x88] sm:$0xff] %vm22_vm0, %v2038_v19  ;;  %v1956_v29 = vld [vmem:[%s2937_s0 + $0x120] ss:$8 sps:$4 sm:$0xff]   ;;  %v1959_v31 = vld [vmem:[%s2937_s0 + $0x134] ss:$8 sps:$4 sm:$0xff]  }
   0xd   :  { %41 = vst.msk [vmem:[#allocation2 + $0x90] sm:$0xff] %vm22_vm0, %v2038_v19  ;;  %42 = vst.msk [vmem:[#allocation2 + $0x98] sm:$0xff] %vm22_vm0, %v2038_v19  ;;  %v1961_v32 = vld [vmem:[%s2937_s0 + $0x30] ss:$8 sps:$4 sm:$0xff]   ;;  %v1963_v34 = vld [vmem:[%s2937_s0 + $0x44] ss:$8 sps:$4 sm:$0xff]  }
   0xe   :  { %670 = vmatpush1.bf16.msra.mxu0 %v1926_v4  ;;  %1908 = vmatpush1.bf16.msra.mxu1 %v1926_v4  ;;  %43 = vst.msk [vmem:[#allocation2 + $0xa0] sm:$0xff] %vm22_vm0, %v2038_v19  ;;  %44 = vst.msk [vmem:[#allocation2 + $0xa8] sm:$0xff] %vm22_vm0, %v2038_v19  ;;  %v1962_v33 = vld [vmem:[%s2937_s0 + $0x130] ss:$8 sps:$4 sm:$0xff]   ;;  %v1965_v35 = vld [vmem:[%s2937_s0 + $0x144] ss:$8 sps:$4 sm:$0xff]  }
   0xf   :  { %671 = vmatprep.subr.bf16.mxu0 %v2037_v0  ;;  %1893 = vmatprep.subr.bf16.mxu1 %v2037_v0  ;;  %45 = vst.msk [vmem:[#allocation2 + $0xb0] sm:$0xff] %vm22_vm0, %v2038_v19  ;;  %46 = vst.msk [vmem:[#allocation2 + $0xb8] sm:$0xff] %vm22_vm0, %v2038_v19  ;;  %v1967_v36 = vld [vmem:[%s2937_s0 + $0x40] ss:$8 sps:$4 sm:$0xff]   ;;  %v1969_v38 = vld [vmem:[%s2937_s0 + $0x54] ss:$8 sps:$4 sm:$0xff]  }
  0x10   :  { %47 = vst.msk [vmem:[#allocation2 + $0xc0] sm:$0xff] %vm22_vm0, %v2038_v19  ;;  %48 = vst.msk [vmem:[#allocation2 + $0xc8] sm:$0xff] %vm22_vm0, %v2038_v19  ;;  %v1968_v37 = vld [vmem:[%s2937_s0 + $0x140] ss:$8 sps:$4 sm:$0xff]   ;;  %v1971_v39 = vld [vmem:[%s2937_s0 + $0x154] ss:$8 sps:$4 sm:$0xff]  }
  0x11   :  { %49 = vst.msk [vmem:[#allocation2 + $0xd0] sm:$0xff] %vm22_vm0, %v2038_v19  ;;  %50 = vst.msk [vmem:[#allocation2 + $0xd8] sm:$0xff] %vm22_vm0, %v2038_v19  ;;  %v1973_v40 = vld [vmem:[%s2937_s0 + $0x50] ss:$8 sps:$4 sm:$0xff]   ;;  %v1975_v42 = vld [vmem:[%s2937_s0 + $0x64] ss:$8 sps:$4 sm:$0xff]  }
  0x12   :  { %672 = vmatpush1.bf16.msra.mxu0 %v1927_v5  ;;  %1909 = vmatpush1.bf16.msra.mxu1 %v1927_v5  ;;  %51 = vst.msk [vmem:[#allocation2 + $0xe0] sm:$0xff] %vm22_vm0, %v2038_v19  ;;  %52 = vst.msk [vmem:[#allocation2 + $0xe8] sm:$0xff] %vm22_vm0, %v2038_v19  ;;  %v1974_v41 = vld [vmem:[%s2937_s0 + $0x150] ss:$8 sps:$4 sm:$0xff]   ;;  %v1977_v43 = vld [vmem:[%s2937_s0 + $0x164] ss:$8 sps:$4 sm:$0xff]  }
  0x13   :  { %673 = vmatprep.subr.bf16.mxu0 %v2037_v0  ;;  %1894 = vmatprep.subr.bf16.mxu1 %v2037_v0  ;;  %53 = vst.msk [vmem:[#allocation2 + $0xf0] sm:$0xff] %vm22_vm0, %v2038_v19  ;;  %54 = vst.msk [vmem:[#allocation2 + $0xf8] sm:$0xff] %vm22_vm0, %v2038_v19  ;;  %v1979_v44 = vld [vmem:[%s2937_s0 + $0x60] ss:$8 sps:$4 sm:$0xff]   ;;  %v1981_v46 = vld [vmem:[%s2937_s0 + $0x74] ss:$8 sps:$4 sm:$0xff]  }
  0x14   :  { %55 = vst.msk [vmem:[#allocation2 + $0x100] sm:$0xff] %vm22_vm0, %v2038_v19  ;;  %56 = vst.msk [vmem:[#allocation2 + $0x108] sm:$0xff] %vm22_vm0, %v2038_v19  ;;  %v1980_v45 = vld [vmem:[%s2937_s0 + $0x160] ss:$8 sps:$4 sm:$0xff]   ;;  %v1983_v47 = vld [vmem:[%s2937_s0 + $0x174] ss:$8 sps:$4 sm:$0xff]  }
  0x15   :  { %57 = vst.msk [vmem:[#allocation2 + $0x110] sm:$0xff] %vm22_vm0, %v2038_v19  ;;  %58 = vst.msk [vmem:[#allocation2 + $0x118] sm:$0xff] %vm22_vm0, %v2038_v19  ;;  %v1985_v48 = vld [vmem:[%s2937_s0 + $0x70] ss:$8 sps:$4 sm:$0xff]   ;;  %v1987_v50 = vld [vmem:[%s2937_s0 + $0x84] ss:$8 sps:$4 sm:$0xff]  }
  0x16   :  { %674 = vmatpush1.bf16.msra.mxu0 %v1928_v7  ;;  %1910 = vmatpush1.bf16.msra.mxu1 %v1928_v7  ;;  %59 = vst.msk [vmem:[#allocation2 + $0x120] sm:$0xff] %vm22_vm0, %v2038_v19  ;;  %60 = vst.msk [vmem:[#allocation2 + $0x128] sm:$0xff] %vm22_vm0, %v2038_v19  ;;  %v1986_v49 = vld [vmem:[%s2937_s0 + $0x170] ss:$8 sps:$4 sm:$0xff]   ;;  %v1989_v51 = vld [vmem:[%s2937_s0 + $0x184] ss:$8 sps:$4 sm:$0xff]  }
  0x17   :  { %675 = vmatprep.subr.bf16.mxu0 %v2037_v0  ;;  %1895 = vmatprep.subr.bf16.mxu1 %v2037_v0  ;;  %61 = vst.msk [vmem:[#allocation2 + $0x130] sm:$0xff] %vm22_vm0, %v2038_v19  ;;  %62 = vst.msk [vmem:[#allocation2 + $0x138] sm:$0xff] %vm22_vm0, %v2038_v19  ;;  %v1991_v52 = vld [vmem:[%s2937_s0 + $0x80] ss:$8 sps:$4 sm:$0xff]   ;;  %v1993_v54 = vld [vmem:[%s2937_s0 + $0x94] ss:$8 sps:$4 sm:$0xff]  }
  0x18   :  { %63 = vst.msk [vmem:[#allocation2 + $0x140] sm:$0xff] %vm22_vm0, %v2038_v19  ;;  %64 = vst.msk [vmem:[#allocation2 + $0x148] sm:$0xff] %vm22_vm0, %v2038_v19  ;;  %v1992_v53 = vld [vmem:[%s2937_s0 + $0x180] ss:$8 sps:$4 sm:$0xff]   ;;  %v1995_v55 = vld [vmem:[%s2937_s0 + $0x194] ss:$8 sps:$4 sm:$0xff]  }
  0x19   :  { %65 = vst.msk [vmem:[#allocation2 + $0x150] sm:$0xff] %vm22_vm0, %v2038_v19  ;;  %66 = vst.msk [vmem:[#allocation2 + $0x158] sm:$0xff] %vm22_vm0, %v2038_v19  ;;  %v1997_v56 = vld [vmem:[%s2937_s0 + $0x90] ss:$8 sps:$4 sm:$0xff]   ;;  %v1999_v58 = vld [vmem:[%s2937_s0 + $0xa4] ss:$8 sps:$4 sm:$0xff]  }
  0x1a   :  { %676 = vmatpush1.bf16.msra.mxu0 %v1929_v9  ;;  %1911 = vmatpush1.bf16.msra.mxu1 %v1929_v9  ;;  %67 = vst.msk [vmem:[#allocation2 + $0x160] sm:$0xff] %vm22_vm0, %v2038_v19  ;;  %68 = vst.msk [vmem:[#allocation2 + $0x168] sm:$0xff] %vm22_vm0, %v2038_v19  ;;  %v1998_v57 = vld [vmem:[%s2937_s0 + $0x190] ss:$8 sps:$4 sm:$0xff]   ;;  %v2001_v59 = vld [vmem:[%s2937_s0 + $0x1a4] ss:$8 sps:$4 sm:$0xff]  }
  0x1b   :  { %677 = vmatprep.subr.bf16.mxu0 %v2037_v0  ;;  %1896 = vmatprep.subr.bf16.mxu1 %v2037_v0  ;;  %69 = vst.msk [vmem:[#allocation2 + $0x170] sm:$0xff] %vm22_vm0, %v2038_v19  ;;  %70 = vst.msk [vmem:[#allocation2 + $0x178] sm:$0xff] %vm22_vm0, %v2038_v19  ;;  %v2003_v60 = vld [vmem:[%s2937_s0 + $0xa0] ss:$8 sps:$4 sm:$0xff]   ;;  %v2005_v62 = vld [vmem:[%s2937_s0 + $0xb4] ss:$8 sps:$4 sm:$0xff]  }
  0x1c   :  { %71 = vst.msk [vmem:[#allocation2 + $0x180] sm:$0xff] %vm22_vm0, %v2038_v19  ;;  %72 = vst.msk [vmem:[#allocation2 + $0x188] sm:$0xff] %vm22_vm0, %v2038_v19  ;;  %v2004_v61 = vld [vmem:[%s2937_s0 + $0x1a0] ss:$8 sps:$4 sm:$0xff]   ;;  %v2007_v63 = vld [vmem:[%s2937_s0 + $0x1b4] ss:$8 sps:$4 sm:$0xff]  }
  0x1d   :  { %73 = vst.msk [vmem:[#allocation2 + $0x190] sm:$0xff] %vm22_vm0, %v2038_v19  ;;  %74 = vst.msk [vmem:[#allocation2 + $0x198] sm:$0xff] %vm22_vm0, %v2038_v19  ;;  %v2010_v1 = vld [vmem:[%s2937_s0 + $0x1b0] ss:$8 sps:$4 sm:$0xff]   ;;  %v2011_v2 = vld [vmem:[%s2937_s0 + $0xc4] ss:$8 sps:$4 sm:$0xff]  }
  0x1e   :  { %678 = vmatpush1.bf16.msra.mxu0 %v1930_v10  ;;  %1912 = vmatpush1.bf16.msra.mxu1 %v1930_v10  ;;  %75 = vst.msk [vmem:[#allocation2 + $0x1a0] sm:$0xff] %vm22_vm0, %v2038_v19  ;;  %76 = vst.msk [vmem:[#allocation2 + $0x1a8] sm:$0xff] %vm22_vm0, %v2038_v19  ;;  %v2013_v3 = vld [vmem:[%s2937_s0 + $0x1c4] ss:$8 sps:$4 sm:$0xff]   ;;  %v2015_v4 = vld [vmem:[%s2937_s0 + $0xc0] ss:$8 sps:$4 sm:$0xff]  }
  0x1f   :  { %679 = vmatprep.subr.bf16.mxu0 %v2037_v0  ;;  %1897 = vmatprep.subr.bf16.mxu1 %v2037_v0  ;;  %77 = vst.msk [vmem:[#allocation2 + $0x1b0] sm:$0xff] %vm22_vm0, %v2038_v19  ;;  %78 = vst.msk [vmem:[#allocation2 + $0x1b8] sm:$0xff] %vm22_vm0, %v2038_v19  ;;  %v2016_v5 = vld [vmem:[%s2937_s0 + $0x1c0] ss:$8 sps:$4 sm:$0xff]   ;;  %v2017_v6 = vld [vmem:[%s2937_s0 + $0xd4] ss:$8 sps:$4 sm:$0xff]  }
  0x20   :  { %79 = vst.msk [vmem:[#allocation2 + $0x1c0] sm:$0xff] %vm22_vm0, %v2038_v19  ;;  %80 = vst.msk [vmem:[#allocation2 + $0x1c8] sm:$0xff] %vm22_vm0, %v2038_v19  ;;  %v2019_v7 = vld [vmem:[%s2937_s0 + $0x1d4] ss:$8 sps:$4 sm:$0xff]   ;;  %v2021_v8 = vld [vmem:[%s2937_s0 + $0xd0] ss:$8 sps:$4 sm:$0xff]  }
  0x21   :  { %81 = vst.msk [vmem:[#allocation2 + $0x1d0] sm:$0xff] %vm22_vm0, %v2038_v19  ;;  %82 = vst.msk [vmem:[#allocation2 + $0x1d8] sm:$0xff] %vm22_vm0, %v2038_v19  ;;  %v2022_v9 = vld [vmem:[%s2937_s0 + $0x1d0] ss:$8 sps:$4 sm:$0xff]   ;;  %v2023_v10 = vld [vmem:[%s2937_s0 + $0xe4] ss:$8 sps:$4 sm:$0xff]  }
  0x22   :  { %680 = vmatpush1.bf16.msra.mxu0 %v1931_v11  ;;  %1913 = vmatpush1.bf16.msra.mxu1 %v1931_v11  ;;  %83 = vst.msk [vmem:[#allocation2 + $0x1e0] sm:$0xff] %vm22_vm0, %v2038_v19  ;;  %84 = vst.msk [vmem:[#allocation2 + $0x1e8] sm:$0xff] %vm22_vm0, %v2038_v19  ;;  %v2025_v11 = vld [vmem:[%s2937_s0 + $0x1e4] ss:$8 sps:$4 sm:$0xff]  }
  0x23   :  { %681 = vmatprep.subr.bf16.mxu0 %v2037_v0  ;;  %1898 = vmatprep.subr.bf16.mxu1 %v2037_v0  ;;  %85 = vst.msk [vmem:[#allocation2 + $0x1f0] sm:$0xff] %vm22_vm0, %v2038_v19  ;;  %86 = vst.msk [vmem:[#allocation2 + $0x1f8] sm:$0xff] %vm22_vm0, %v2038_v19  ;;  %v119_v19 = vld [vmem:[#allocation2 + $0x100] sm:$0xff] }
  0x26   :  { %682 = vmatpush1.bf16.msra.mxu0 %v1932_v12  ;;  %1914 = vmatpush1.bf16.msra.mxu1 %v1932_v12  ;;  %v2027_v12 = vld [vmem:[%s2937_s0 + $0xe0] ss:$8 sps:$4 sm:$0xff]  }
  0x27   :  { %683 = vmatprep.subr.bf16.mxu0 %v2037_v0  ;;  %1899 = vmatprep.subr.bf16.mxu1 %v2037_v0 }
  0x2a   :  { %684 = vmatpush1.bf16.msra.mxu0 %v1933_v13  ;;  %1915 = vmatpush1.bf16.msra.mxu1 %v1933_v13  ;;  %v2028_v13 = vld [vmem:[%s2937_s0 + $0x1e0] ss:$8 sps:$4 sm:$0xff]  }
  0x2b   :  { %685 = vmatprep.subr.bf16.mxu0 %v2037_v0  ;;  %1900 = vmatprep.subr.bf16.mxu1 %v2037_v0 }
  0x2e   :  { %686 = vmatpush1.bf16.msra.mxu0 %v1934_v14  ;;  %1916 = vmatpush1.bf16.msra.mxu1 %v1934_v14  ;;  %v2029_v14 = vld [vmem:[%s2937_s0 + $0xf4] ss:$8 sps:$4 sm:$0xff]  }
  0x2f   :  { %687 = vmatprep.subr.bf16.mxu0 %v2037_v0  ;;  %1901 = vmatprep.subr.bf16.mxu1 %v2037_v0 }
  0x32   :  { %688 = vmatpush1.bf16.msra.mxu0 %v1935_v15  ;;  %1917 = vmatpush1.bf16.msra.mxu1 %v1935_v15  ;;  %v2031_v15 = vld [vmem:[%s2937_s0 + $0x1f4] ss:$8 sps:$4 sm:$0xff]  }
  0x33   :  { %689 = vmatprep.subr.bf16.mxu0 %v2037_v0  ;;  %1902 = vmatprep.subr.bf16.mxu1 %v2037_v0 }
  0x36   :  { %690 = vmatpush1.bf16.msra.mxu0 %v1936_v16  ;;  %1918 = vmatpush1.bf16.msra.mxu1 %v1936_v16  ;;  %v2033_v16 = vld [vmem:[%s2937_s0 + $0xf0] ss:$8 sps:$4 sm:$0xff]  }
  0x37   :  { %691 = vmatprep.subr.bf16.mxu0 %v2037_v0  ;;  %1903 = vmatprep.subr.bf16.mxu1 %v2037_v0 }
  0x3a   :  { %692 = vmatpush1.bf16.msra.mxu0 %v1937_v17  ;;  %1919 = vmatpush1.bf16.msra.mxu1 %v1937_v17  ;;  %v2034_v17 = vld [vmem:[%s2937_s0 + $0x1f0] ss:$8 sps:$4 sm:$0xff]  }
  0x3b   :  { %693 = vmatprep.subr.bf16.mxu0 %v2037_v0  ;;  %1904 = vmatprep.subr.bf16.mxu1 %v2037_v0  ;;  %v2009_v0 = vld [vmem:[%s2937_s0 + $0xb0] ss:$8 sps:$4 sm:$0xff]  }
  0x3e   :  { %694 = vmatpush1.bf16.msra.mxu0 %v2148_v18  ;;  %1920 = vmatpush1.bf16.msra.mxu1 %v2148_v18  ;;  %v87_v18 = vld [vmem:[#allocation2] sm:$0xff] }
  0x41   :  { %696 = vmatmul.mubr.bf16.vlgmr.msra.gmra.mrb[0].mxu0 %v1939_v20  ;;  %824 = vmatmul.mubr.bf16.vlgmr.msra.gmra.mrb[0].mxu1 %v1942_v21 }
  0x42   :  { %703 = vmatprep.mubr.bf16.mxu0 %v1945_v22  ;;  %831 = vmatprep.mubr.bf16.mxu1 %v1947_v23  ;;  %v88_v22 = vld [vmem:[#allocation2 + $0x8] sm:$0xff] }
  0x43   :  { %v120_v23 = vld [vmem:[#allocation2 + $0x108] sm:$0xff] }
  0x49   :  { %704 = vmatmul.mubr.bf16.gmra.mrb[4].mxu0 %v1949_v24  ;;  %832 = vmatmul.mubr.bf16.gmra.mrb[4].mxu1 %v1950_v25 }
  0x4a   :  { %711 = vmatprep.mubr.bf16.mxu0 %v1951_v26  ;;  %839 = vmatprep.mubr.bf16.mxu1 %v1953_v27 }
  0x51   :  { %712 = vmatmul.mubr.bf16.gmra.mrb[8].mxu0 %v1955_v28  ;;  %840 = vmatmul.mubr.bf16.gmra.mrb[8].mxu1 %v1956_v29 }
  0x52   :  { %719 = vmatprep.mubr.bf16.mxu0 %v1957_v30  ;;  %847 = vmatprep.mubr.bf16.mxu1 %v1959_v31 }
  0x59   :  { %720 = vmatmul.mubr.bf16.gmra.mrb[12].mxu0 %v1961_v32  ;;  %848 = vmatmul.mubr.bf16.gmra.mrb[12].mxu1 %v1962_v33 }
  0x5a   :  { %727 = vmatprep.mubr.bf16.mxu0 %v1963_v34  ;;  %855 = vmatprep.mubr.bf16.mxu1 %v1965_v35  ;;  %v89_v34 = vld [vmem:[#allocation2 + $0x10] sm:$0xff] }
  0x5b   :  { %v121_v35 = vld [vmem:[#allocation2 + $0x110] sm:$0xff] }
  0x61   :  { %728 = vmatmul.mubr.bf16.gmra.mrb[16].mxu0 %v1967_v36  ;;  %856 = vmatmul.mubr.bf16.gmra.mrb[16].mxu1 %v1968_v37  ;;  %v2475_v36 = vld [vmem:[%s2938_s2] ss:$0 sm:$0xff] }
  0x62   :  { %735 = vmatprep.mubr.bf16.mxu0 %v1969_v38  ;;  %863 = vmatprep.mubr.bf16.mxu1 %v1971_v39  ;;  %v90_v39 = vld [vmem:[#allocation2 + $0x18] sm:$0xff] }
  0x69   :  { %736 = vmatmul.mubr.bf16.gmra.mrb[20].mxu0 %v1973_v40  ;;  %864 = vmatmul.mubr.bf16.gmra.mrb[20].mxu1 %v1974_v41  ;;  %v122_v40 = vld [vmem:[#allocation2 + $0x118] sm:$0xff] }
  0x6a   :  { %743 = vmatprep.mubr.bf16.mxu0 %v1975_v42  ;;  %871 = vmatprep.mubr.bf16.mxu1 %v1977_v43 }
  0x71   :  { %744 = vmatmul.mubr.bf16.gmra.mrb[24].mxu0 %v1979_v44  ;;  %872 = vmatmul.mubr.bf16.gmra.mrb[24].mxu1 %v1980_v45 }
  0x72   :  { %751 = vmatprep.mubr.bf16.mxu0 %v1981_v46  ;;  %879 = vmatprep.mubr.bf16.mxu1 %v1983_v47  ;;  %v2480_v46 = vld [vmem:[%s2939_s3] ss:$0 sm:$0xff] }
  0x79   :  { %752 = vmatmul.mubr.bf16.gmra.mrb[28].mxu0 %v1985_v48  ;;  %880 = vmatmul.mubr.bf16.gmra.mrb[28].mxu1 %v1986_v49 }
  0x7a   :  { %759 = vmatprep.mubr.bf16.mxu0 %v1987_v50  ;;  %887 = vmatprep.mubr.bf16.mxu1 %v1989_v51 }
  0x81   :  { %760 = vmatmul.mubr.bf16.gmra.mrb[32].mxu0 %v1991_v52  ;;  %888 = vmatmul.mubr.bf16.gmra.mrb[32].mxu1 %v1992_v53 }
  0x82   :  { %767 = vmatprep.mubr.bf16.mxu0 %v1993_v54  ;;  %895 = vmatprep.mubr.bf16.mxu1 %v1995_v55 }
  0x89   :  { %768 = vmatmul.mubr.bf16.gmra.mrb[36].mxu0 %v1997_v56  ;;  %896 = vmatmul.mubr.bf16.gmra.mrb[36].mxu1 %v1998_v57 }
  0x8a   :  { %775 = vmatprep.mubr.bf16.mxu0 %v1999_v58  ;;  %903 = vmatprep.mubr.bf16.mxu1 %v2001_v59 }
  0x91   :  { %776 = vmatmul.mubr.bf16.gmra.mrb[40].mxu0 %v2003_v60  ;;  %904 = vmatmul.mubr.bf16.gmra.mrb[40].mxu1 %v2004_v61 }
  0x92   :  { %783 = vmatprep.mubr.bf16.mxu0 %v2005_v62  ;;  %911 = vmatprep.mubr.bf16.mxu1 %v2007_v63 }
  0x99   :  { %784 = vmatmul.mubr.bf16.gmra.mrb[44].mxu0 %v2009_v0  ;;  %912 = vmatmul.mubr.bf16.gmra.mrb[44].mxu1 %v2010_v1 }
  0x9a   :  { %791 = vmatprep.mubr.bf16.mxu0 %v2011_v2  ;;  %919 = vmatprep.mubr.bf16.mxu1 %v2013_v3  ;;  %v91_v2 = vld [vmem:[#allocation2 + $0x20] sm:$0xff] }
  0x9b   :  { %v123_v3 = vld [vmem:[#allocation2 + $0x120] sm:$0xff] }
  0xa1   :  { %792 = vmatmul.mubr.bf16.gmra.mrb[48].mxu0 %v2015_v4  ;;  %920 = vmatmul.mubr.bf16.gmra.mrb[48].mxu1 %v2016_v5 }
  0xa2   :  { %799 = vmatprep.mubr.bf16.mxu0 %v2017_v6  ;;  %927 = vmatprep.mubr.bf16.mxu1 %v2019_v7 }
  0xa9   :  { %800 = vmatmul.mubr.bf16.gmra.mrb[52].mxu0 %v2021_v8  ;;  %928 = vmatmul.mubr.bf16.gmra.mrb[52].mxu1 %v2022_v9 }
  0xaa   :  { %807 = vmatprep.mubr.bf16.mxu0 %v2023_v10  ;;  %935 = vmatprep.mubr.bf16.mxu1 %v2025_v11 }
  0xb1   :  { %808 = vmatmul.mubr.bf16.gmra.mrb[56].mxu0 %v2027_v12  ;;  %936 = vmatmul.mubr.bf16.gmra.mrb[56].mxu1 %v2028_v13  ;;  %v92_v12 = vld [vmem:[#allocation2 + $0x28] sm:$0xff] }
  0xb2   :  { %815 = vmatprep.mubr.bf16.mxu0 %v2029_v14  ;;  %943 = vmatprep.mubr.bf16.mxu1 %v2031_v15  ;;  %v124_v13 = vld [vmem:[#allocation2 + $0x128] sm:$0xff] }
  0xb9   :  { %816 = vmatmul.mubr.bf16.gmra.mrb[60].mxu0 %v2033_v16  ;;  %944 = vmatmul.mubr.bf16.gmra.mrb[60].mxu1 %v2034_v17 }
 0x114   :  { %v697_v20 = vpop.f32.mrb[0].mxu0  ;;  %v825_v21 = vpop.f32.mrb[0].mxu1 }
 0x115   :  { %v952_v24 = vadd.f32 %v697_v20, %v87_v18  ;;  %v984_v25 = vadd.f32 %v825_v21, %v119_v19  ;;  %v699_v26 = vpop.f32.mrb[1].mxu0  ;;  %v827_v27 = vpop.f32.mrb[1].mxu1 }
 0x116   :  { %v700_v28 = vpop.f32.mrb[2].mxu0  ;;  %v828_v29 = vpop.f32.mrb[2].mxu1 }
 0x117   :  { %1017 = vst.msk [vmem:[#allocation2] sm:$0xff] %vm22_vm0, %v952_v24  ;;  %1049 = vst.msk [vmem:[#allocation2 + $0x100] sm:$0xff] %vm22_vm0, %v984_v25  ;;  %v953_v30 = vadd.f32 %v700_v28, %v88_v22  ;;  %v985_v31 = vadd.f32 %v828_v29, %v120_v23  ;;  %v702_v32 = vpop.f32.mrb[3].mxu0  ;;  %v830_v33 = vpop.f32.mrb[3].mxu1 }
 0x119   :  { %1018 = vst.msk [vmem:[#allocation2 + $0x8] sm:$0xff] %vm22_vm0, %v953_v30  ;;  %1050 = vst.msk [vmem:[#allocation2 + $0x108] sm:$0xff] %vm22_vm0, %v985_v31 }
 0x11c   :  { %v705_v37 = vpop.f32.mrb[4].mxu0  ;;  %v833_v38 = vpop.f32.mrb[4].mxu1 }
 0x11d   :  { %v954_v41 = vadd.f32 %v705_v37, %v89_v34  ;;  %v986_v42 = vadd.f32 %v833_v38, %v121_v35  ;;  %v707_v43 = vpop.f32.mrb[5].mxu0  ;;  %v835_v44 = vpop.f32.mrb[5].mxu1 }
 0x11e   :  { %v1084_v45 = vld [vmem:[#allocation2] sm:$0xff]  ;;  %v708_v48 = vpop.f32.mrb[6].mxu0  ;;  %v836_v49 = vpop.f32.mrb[6].mxu1  ;;  %v94_v43 = vld [vmem:[#allocation2 + $0x38] sm:$0xff] }
 0x11f   :  { %v1116_v47 = vld [vmem:[#allocation2 + $0x100] sm:$0xff]  ;;  %v1155_v50 = vmul.f32 %v2475_v36, %v1084_v45  ;;  %1019 = vst.msk [vmem:[#allocation2 + $0x10] sm:$0xff] %vm22_vm0, %v954_v41  ;;  %1051 = vst.msk [vmem:[#allocation2 + $0x110] sm:$0xff] %vm22_vm0, %v986_v42  ;;  %v955_v52 = vadd.f32 %v708_v48, %v90_v39  ;;  %v987_v53 = vadd.f32 %v836_v49, %v122_v40  ;;  %v710_v54 = vpop.f32.mrb[7].mxu0  ;;  %v838_v55 = vpop.f32.mrb[7].mxu1  ;;  %v93_v39 = vld [vmem:[#allocation2 + $0x30] sm:$0xff] }
 0x120   :  { %v1187_v51 = vmul.f32 %v2475_v36, %v1116_v47  ;;  %v1085_v56 = vld [vmem:[#allocation2 + $0x8] sm:$0xff]  ;;  %v125_v40 = vld [vmem:[#allocation2 + $0x130] sm:$0xff]  ;;  %v126_v44 = vld [vmem:[#allocation2 + $0x138] sm:$0xff] }
 0x121   :  { %v1117_v57 = vld [vmem:[#allocation2 + $0x108] sm:$0xff]  ;;  %v1226_v58 = vadd.f32 %v2480_v46, %v1155_v50  ;;  %v1156_v60 = vmul.f32 %v2475_v36, %v1085_v56  ;;  %1020 = vst.msk [vmem:[#allocation2 + $0x18] sm:$0xff] %vm22_vm0, %v955_v52  ;;  %1052 = vst.msk [vmem:[#allocation2 + $0x118] sm:$0xff] %vm22_vm0, %v987_v53 }
 0x122   :  { %v1258_v59 = vadd.f32 %v2480_v46, %v1187_v51  ;;  %v1188_v61 = vmul.f32 %v2475_v36, %v1117_v57 }
 0x123   :  { %v1290_v62 = vmax.f32 %v1226_v58, 0.0  ;;  %v1227_v0 = vadd.f32 %v2480_v46, %v1156_v60 }
 0x124   :  { %v1322_v63 = vmax.f32 %v1258_v59, 0.0  ;;  %v1259_v1 = vadd.f32 %v2480_v46, %v1188_v61  ;;  %v713_v4 = vpop.f32.mrb[8].mxu0  ;;  %v841_v5 = vpop.f32.mrb[8].mxu1 }
 0x125   :  { %v1825_v6 = vpack.c.bf16 %v1290_v62, %v1290_v62  ;;  %v1291_v8 = vmax.f32 %v1227_v0, 0.0  ;;  %v715_v10 = vpop.f32.mrb[9].mxu0  ;;  %v843_v11 = vpop.f32.mrb[9].mxu1  ;;  %v956_v16 = vadd.f32 %v713_v4, %v91_v2  ;;  %v988_v17 = vadd.f32 %v841_v5, %v123_v3 }
 0x126   :  { %v1857_v7 = vpack.c.bf16 %v1322_v63, %v1322_v63  ;;  %v1323_v9 = vmax.f32 %v1259_v1, 0.0  ;;  %v1086_v14 = vld [vmem:[#allocation2 + $0x10] sm:$0xff]  ;;  %v716_v18 = vpop.f32.mrb[10].mxu0  ;;  %v844_v19 = vpop.f32.mrb[10].mxu1 }
 0x127   :  { %v1118_v15 = vld [vmem:[#allocation2 + $0x110] sm:$0xff]  ;;  %1611 = vst.msk [vmem:[%s2940_s4] sm:$0xf] %vm1610_vm1, %v1825_v6  ;;  %v1826_v20 = vpack.c.bf16 %v1291_v8, %v1291_v8  ;;  %v1157_v22 = vmul.f32 %v2475_v36, %v1086_v14  ;;  %v718_v24 = vpop.f32.mrb[11].mxu0  ;;  %v846_v25 = vpop.f32.mrb[11].mxu1  ;;  %v957_v28 = vadd.f32 %v716_v18, %v92_v12  ;;  %v989_v29 = vadd.f32 %v844_v19, %v124_v13  ;;  %v95_v8 = vld [vmem:[#allocation2 + $0x40] sm:$0xff] }
 0x128   :  { %1643 = vst.msk [vmem:[%s2940_s4 + $0x80] sm:$0xf] %vm1610_vm1, %v1857_v7  ;;  %v1858_v21 = vpack.c.bf16 %v1323_v9, %v1323_v9  ;;  %v1189_v23 = vmul.f32 %v2475_v36, %v1118_v15  ;;  %v1087_v26 = vld [vmem:[#allocation2 + $0x18] sm:$0xff]  ;;  %v127_v9 = vld [vmem:[#allocation2 + $0x140] sm:$0xff] }
 0x129   :  { %v1119_v27 = vld [vmem:[#allocation2 + $0x118] sm:$0xff]  ;;  %1021 = vst.msk [vmem:[#allocation2 + $0x20] sm:$0xff] %vm22_vm0, %v956_v16  ;;  %1053 = vst.msk [vmem:[#allocation2 + $0x120] sm:$0xff] %vm22_vm0, %v988_v17  ;;  %v1228_v30 = vadd.f32 %v2480_v46, %v1157_v22  ;;  %v1158_v32 = vmul.f32 %v2475_v36, %v1087_v26  ;;  %v96_v16 = vld [vmem:[#allocation2 + $0x48] sm:$0xff] }
 0x12a   :  { %1612 = vst.msk [vmem:[%s2940_s4 + $0x4] sm:$0xf] %vm1610_vm1, %v1826_v20  ;;  %1644 = vst.msk [vmem:[%s2940_s4 + $0x84] sm:$0xf] %vm1610_vm1, %v1858_v21  ;;  %v1260_v31 = vadd.f32 %v2480_v46, %v1189_v23  ;;  %v1190_v33 = vmul.f32 %v2475_v36, %v1119_v27  ;;  %v128_v17 = vld [vmem:[#allocation2 + $0x148] sm:$0xff] }
 0x12b   :  { %1022 = vst.msk [vmem:[#allocation2 + $0x28] sm:$0xff] %vm22_vm0, %v957_v28  ;;  %1054 = vst.msk [vmem:[#allocation2 + $0x128] sm:$0xff] %vm22_vm0, %v989_v29  ;;  %v1292_v34 = vmax.f32 %v1228_v30, 0.0  ;;  %v1229_v37 = vadd.f32 %v2480_v46, %v1158_v32 }
 0x12c   :  { %v1324_v35 = vmax.f32 %v1260_v31, 0.0  ;;  %v1261_v38 = vadd.f32 %v2480_v46, %v1190_v33  ;;  %v721_v41 = vpop.f32.mrb[12].mxu0  ;;  %v849_v42 = vpop.f32.mrb[12].mxu1 }
 0x12d   :  { %v1827_v45 = vpack.c.bf16 %v1292_v34, %v1292_v34  ;;  %v1293_v48 = vmax.f32 %v1229_v37, 0.0  ;;  %v723_v50 = vpop.f32.mrb[13].mxu0  ;;  %v851_v51 = vpop.f32.mrb[13].mxu1  ;;  %v958_v52 = vadd.f32 %v721_v41, %v93_v39  ;;  %v990_v53 = vadd.f32 %v849_v42, %v125_v40 }
 0x12e   :  { %v1859_v47 = vpack.c.bf16 %v1324_v35, %v1324_v35  ;;  %v1325_v49 = vmax.f32 %v1261_v38, 0.0  ;;  %v724_v54 = vpop.f32.mrb[14].mxu0  ;;  %v852_v55 = vpop.f32.mrb[14].mxu1 }
 0x12f   :  { %1613 = vst.msk [vmem:[%s2940_s4 + $0x8] sm:$0xf] %vm1610_vm1, %v1827_v45  ;;  %v1828_v56 = vpack.c.bf16 %v1293_v48, %v1293_v48  ;;  %v959_v60 = vadd.f32 %v724_v54, %v94_v43  ;;  %v991_v61 = vadd.f32 %v852_v55, %v126_v44  ;;  %v726_v62 = vpop.f32.mrb[15].mxu0  ;;  %v854_v63 = vpop.f32.mrb[15].mxu1  ;;  %v97_v45 = vld [vmem:[#allocation2 + $0x50] sm:$0xff] }
 0x130   :  { %1645 = vst.msk [vmem:[%s2940_s4 + $0x88] sm:$0xf] %vm1610_vm1, %v1859_v47  ;;  %v1860_v57 = vpack.c.bf16 %v1325_v49, %v1325_v49  ;;  %v1088_v58 = vld [vmem:[#allocation2 + $0x20] sm:$0xff]  ;;  %v129_v47 = vld [vmem:[#allocation2 + $0x150] sm:$0xff] }
 0x131   :  { %v1120_v59 = vld [vmem:[#allocation2 + $0x120] sm:$0xff]  ;;  %v1159_v0 = vmul.f32 %v2475_v36, %v1088_v58  ;;  %1023 = vst.msk [vmem:[#allocation2 + $0x30] sm:$0xff] %vm22_vm0, %v958_v52  ;;  %1055 = vst.msk [vmem:[#allocation2 + $0x130] sm:$0xff] %vm22_vm0, %v990_v53 }
 0x132   :  { %v1191_v1 = vmul.f32 %v2475_v36, %v1120_v59  ;;  %1614 = vst.msk [vmem:[%s2940_s4 + $0xc] sm:$0xf] %vm1610_vm1, %v1828_v56  ;;  %1646 = vst.msk [vmem:[%s2940_s4 + $0x8c] sm:$0xf] %vm1610_vm1, %v1860_v57  ;;  %v1089_v2 = vld [vmem:[#allocation2 + $0x28] sm:$0xff] }
 0x133   :  { %v1121_v3 = vld [vmem:[#allocation2 + $0x128] sm:$0xff]  ;;  %1024 = vst.msk [vmem:[#allocation2 + $0x38] sm:$0xff] %vm22_vm0, %v959_v60  ;;  %1056 = vst.msk [vmem:[#allocation2 + $0x138] sm:$0xff] %vm22_vm0, %v991_v61  ;;  %v1230_v4 = vadd.f32 %v2480_v46, %v1159_v0  ;;  %v1160_v6 = vmul.f32 %v2475_v36, %v1089_v2  ;;  %v98_v60 = vld [vmem:[#allocation2 + $0x58] sm:$0xff] }
 0x134   :  { %v1262_v5 = vadd.f32 %v2480_v46, %v1191_v1  ;;  %v1192_v7 = vmul.f32 %v2475_v36, %v1121_v3  ;;  %v729_v14 = vpop.f32.mrb[16].mxu0  ;;  %v857_v15 = vpop.f32.mrb[16].mxu1  ;;  %v130_v61 = vld [vmem:[#allocation2 + $0x158] sm:$0xff] }
 0x135   :  { %v1294_v10 = vmax.f32 %v1230_v4, 0.0  ;;  %v1231_v12 = vadd.f32 %v2480_v46, %v1160_v6  ;;  %v960_v18 = vadd.f32 %v729_v14, %v95_v8  ;;  %v992_v19 = vadd.f32 %v857_v15, %v127_v9  ;;  %v731_v20 = vpop.f32.mrb[17].mxu0  ;;  %v859_v21 = vpop.f32.mrb[17].mxu1 }
 0x136   :  { %v1326_v11 = vmax.f32 %v1262_v5, 0.0  ;;  %v1263_v13 = vadd.f32 %v2480_v46, %v1192_v7  ;;  %v732_v26 = vpop.f32.mrb[18].mxu0  ;;  %v860_v27 = vpop.f32.mrb[18].mxu1 }
 0x137   :  { %v1829_v22 = vpack.c.bf16 %v1294_v10, %v1294_v10  ;;  %v1295_v24 = vmax.f32 %v1231_v12, 0.0  ;;  %1025 = vst.msk [vmem:[#allocation2 + $0x40] sm:$0xff] %vm22_vm0, %v960_v18  ;;  %1057 = vst.msk [vmem:[#allocation2 + $0x140] sm:$0xff] %vm22_vm0, %v992_v19  ;;  %v961_v30 = vadd.f32 %v732_v26, %v96_v16  ;;  %v993_v31 = vadd.f32 %v860_v27, %v128_v17  ;;  %v734_v32 = vpop.f32.mrb[19].mxu0  ;;  %v862_v33 = vpop.f32.mrb[19].mxu1 }
 0x138   :  { %v1861_v23 = vpack.c.bf16 %v1326_v11, %v1326_v11  ;;  %v1327_v25 = vmax.f32 %v1263_v13, 0.0  ;;  %v1090_v28 = vld [vmem:[#allocation2 + $0x30] sm:$0xff]  ;;  %v100_v32 = vld [vmem:[#allocation2 + $0x68] sm:$0xff] }
 0x139   :  { %v1122_v29 = vld [vmem:[#allocation2 + $0x130] sm:$0xff]  ;;  %1615 = vst.msk [vmem:[%s2940_s4 + $0x10] sm:$0xf] %vm1610_vm1, %v1829_v22  ;;  %v1830_v34 = vpack.c.bf16 %v1295_v24, %v1295_v24  ;;  %v1161_v37 = vmul.f32 %v2475_v36, %v1090_v28  ;;  %v99_v22 = vld [vmem:[#allocation2 + $0x60] sm:$0xff]  ;;  %v132_v33 = vld [vmem:[#allocation2 + $0x168] sm:$0xff] }
 0x13a   :  { %1647 = vst.msk [vmem:[%s2940_s4 + $0x90] sm:$0xf] %vm1610_vm1, %v1861_v23  ;;  %v1862_v35 = vpack.c.bf16 %v1327_v25, %v1327_v25  ;;  %v1193_v38 = vmul.f32 %v2475_v36, %v1122_v29  ;;  %v1091_v39 = vld [vmem:[#allocation2 + $0x38] sm:$0xff]  ;;  %v131_v23 = vld [vmem:[#allocation2 + $0x160] sm:$0xff] }
 0x13b   :  { %v1123_v40 = vld [vmem:[#allocation2 + $0x138] sm:$0xff]  ;;  %v1162_v41 = vmul.f32 %v2475_v36, %v1091_v39  ;;  %1026 = vst.msk [vmem:[#allocation2 + $0x48] sm:$0xff] %vm22_vm0, %v961_v30  ;;  %1058 = vst.msk [vmem:[#allocation2 + $0x148] sm:$0xff] %vm22_vm0, %v993_v31  ;;  %v1232_v43 = vadd.f32 %v2480_v46, %v1161_v37 }
 0x13c   :  { %v1194_v42 = vmul.f32 %v2475_v36, %v1123_v40  ;;  %1616 = vst.msk [vmem:[%s2940_s4 + $0x14] sm:$0xf] %vm1610_vm1, %v1830_v34  ;;  %1648 = vst.msk [vmem:[%s2940_s4 + $0x94] sm:$0xf] %vm1610_vm1, %v1862_v35  ;;  %v1264_v44 = vadd.f32 %v2480_v46, %v1193_v38  ;;  %v737_v52 = vpop.f32.mrb[20].mxu0  ;;  %v865_v53 = vpop.f32.mrb[20].mxu1 }
 0x13d   :  { %v1233_v48 = vadd.f32 %v2480_v46, %v1162_v41  ;;  %v1296_v50 = vmax.f32 %v1232_v43, 0.0  ;;  %v962_v56 = vadd.f32 %v737_v52, %v97_v45  ;;  %v994_v57 = vadd.f32 %v865_v53, %v129_v47  ;;  %v739_v58 = vpop.f32.mrb[21].mxu0  ;;  %v867_v59 = vpop.f32.mrb[21].mxu1 }
 0x13e   :  { %v1265_v49 = vadd.f32 %v2480_v46, %v1194_v42  ;;  %v1328_v51 = vmax.f32 %v1264_v44, 0.0  ;;  %v1092_v0 = vld [vmem:[#allocation2 + $0x40] sm:$0xff]  ;;  %v740_v2 = vpop.f32.mrb[22].mxu0  ;;  %v868_v3 = vpop.f32.mrb[22].mxu1 }
 0x13f   :  { %v1297_v54 = vmax.f32 %v1233_v48, 0.0  ;;  %v1831_v62 = vpack.c.bf16 %v1296_v50, %v1296_v50  ;;  %v1124_v1 = vld [vmem:[#allocation2 + $0x140] sm:$0xff]  ;;  %v1163_v6 = vmul.f32 %v2475_v36, %v1092_v0  ;;  %1027 = vst.msk [vmem:[#allocation2 + $0x50] sm:$0xff] %vm22_vm0, %v962_v56  ;;  %1059 = vst.msk [vmem:[#allocation2 + $0x150] sm:$0xff] %vm22_vm0, %v994_v57  ;;  %v742_v8 = vpop.f32.mrb[23].mxu0  ;;  %v870_v9 = vpop.f32.mrb[23].mxu1  ;;  %v963_v12 = vadd.f32 %v740_v2, %v98_v60 }
 0x140   :  { %v1329_v55 = vmax.f32 %v1265_v49, 0.0  ;;  %v1863_v63 = vpack.c.bf16 %v1328_v51, %v1328_v51  ;;  %v1195_v7 = vmul.f32 %v2475_v36, %v1124_v1  ;;  %v995_v13 = vadd.f32 %v868_v3, %v130_v61  ;;  %v101_v56 = vld [vmem:[#allocation2 + $0x70] sm:$0xff]  ;;  %v102_v0 = vld [vmem:[#allocation2 + $0x78] sm:$0xff] }
 0x141   :  { %v1832_v4 = vpack.c.bf16 %v1297_v54, %v1297_v54  ;;  %1617 = vst.msk [vmem:[%s2940_s4 + $0x18] sm:$0xf] %vm1610_vm1, %v1831_v62  ;;  %v1234_v14 = vadd.f32 %v2480_v46, %v1163_v6  ;;  %v133_v57 = vld [vmem:[#allocation2 + $0x170] sm:$0xff]  ;;  %v134_v1 = vld [vmem:[#allocation2 + $0x178] sm:$0xff] }
 0x142   :  { %v1864_v5 = vpack.c.bf16 %v1329_v55, %v1329_v55  ;;  %1649 = vst.msk [vmem:[%s2940_s4 + $0x98] sm:$0xf] %vm1610_vm1, %v1863_v63  ;;  %v1093_v10 = vld [vmem:[#allocation2 + $0x48] sm:$0xff]  ;;  %v1266_v15 = vadd.f32 %v2480_v46, %v1195_v7 }
 0x143   :  { %v1125_v11 = vld [vmem:[#allocation2 + $0x148] sm:$0xff]  ;;  %1618 = vst.msk [vmem:[%s2940_s4 + $0x1c] sm:$0xf] %vm1610_vm1, %v1832_v4  ;;  %v1164_v16 = vmul.f32 %v2475_v36, %v1093_v10  ;;  %v1298_v18 = vmax.f32 %v1234_v14, 0.0 }
 0x144   :  { %1650 = vst.msk [vmem:[%s2940_s4 + $0x9c] sm:$0xf] %vm1610_vm1, %v1864_v5  ;;  %v1196_v17 = vmul.f32 %v2475_v36, %v1125_v11  ;;  %v1330_v19 = vmax.f32 %v1266_v15, 0.0  ;;  %v745_v24 = vpop.f32.mrb[24].mxu0  ;;  %v873_v25 = vpop.f32.mrb[24].mxu1 }
 0x145   :  { %1028 = vst.msk [vmem:[#allocation2 + $0x58] sm:$0xff] %vm22_vm0, %v963_v12  ;;  %1060 = vst.msk [vmem:[#allocation2 + $0x158] sm:$0xff] %vm22_vm0, %v995_v13  ;;  %v1235_v20 = vadd.f32 %v2480_v46, %v1164_v16  ;;  %v1833_v26 = vpack.c.bf16 %v1298_v18, %v1298_v18  ;;  %v747_v30 = vpop.f32.mrb[25].mxu0  ;;  %v875_v31 = vpop.f32.mrb[25].mxu1  ;;  %v964_v37 = vadd.f32 %v745_v24, %v99_v22 }
 0x146   :  { %v1267_v21 = vadd.f32 %v2480_v46, %v1196_v17  ;;  %v1865_v27 = vpack.c.bf16 %v1330_v19, %v1330_v19  ;;  %v1094_v34 = vld [vmem:[#allocation2 + $0x50] sm:$0xff]  ;;  %v996_v38 = vadd.f32 %v873_v25, %v131_v23  ;;  %v748_v39 = vpop.f32.mrb[26].mxu0  ;;  %v876_v40 = vpop.f32.mrb[26].mxu1 }
 0x147   :  { %v1299_v28 = vmax.f32 %v1235_v20, 0.0  ;;  %v1126_v35 = vld [vmem:[#allocation2 + $0x150] sm:$0xff]  ;;  %1619 = vst.msk [vmem:[%s2940_s4 + $0x20] sm:$0xf] %vm1610_vm1, %v1833_v26  ;;  %v1165_v43 = vmul.f32 %v2475_v36, %v1094_v34  ;;  %v750_v45 = vpop.f32.mrb[27].mxu0  ;;  %v878_v47 = vpop.f32.mrb[27].mxu1  ;;  %v965_v48 = vadd.f32 %v748_v39, %v100_v32  ;;  %v997_v49 = vadd.f32 %v876_v40, %v132_v33 }
 0x148   :  { %v1331_v29 = vmax.f32 %v1267_v21, 0.0  ;;  %1651 = vst.msk [vmem:[%s2940_s4 + $0xa0] sm:$0xf] %vm1610_vm1, %v1865_v27  ;;  %v1197_v44 = vmul.f32 %v2475_v36, %v1126_v35 }
 0x149   :  { %v1834_v41 = vpack.c.bf16 %v1299_v28, %v1299_v28  ;;  %1029 = vst.msk [vmem:[#allocation2 + $0x60] sm:$0xff] %vm22_vm0, %v964_v37  ;;  %1061 = vst.msk [vmem:[#allocation2 + $0x160] sm:$0xff] %vm22_vm0, %v996_v38  ;;  %v1236_v50 = vadd.f32 %v2480_v46, %v1165_v43  ;;  %v103_v28 = vld [vmem:[#allocation2 + $0x80] sm:$0xff]  ;;  %v104_v37 = vld [vmem:[#allocation2 + $0x88] sm:$0xff] }
 0x14a   :  { %v1866_v42 = vpack.c.bf16 %v1331_v29, %v1331_v29  ;;  %v1268_v51 = vadd.f32 %v2480_v46, %v1197_v44  ;;  %1030 = vst.msk [vmem:[#allocation2 + $0x68] sm:$0xff] %vm22_vm0, %v965_v48  ;;  %1062 = vst.msk [vmem:[#allocation2 + $0x168] sm:$0xff] %vm22_vm0, %v997_v49  ;;  %v135_v29 = vld [vmem:[#allocation2 + $0x180] sm:$0xff]  ;;  %v136_v38 = vld [vmem:[#allocation2 + $0x188] sm:$0xff] }
 0x14b   :  { %1620 = vst.msk [vmem:[%s2940_s4 + $0x24] sm:$0xf] %vm1610_vm1, %v1834_v41  ;;  %v1300_v58 = vmax.f32 %v1236_v50, 0.0 }
 0x14c   :  { %1652 = vst.msk [vmem:[%s2940_s4 + $0xa4] sm:$0xf] %vm1610_vm1, %v1866_v42  ;;  %v1095_v52 = vld [vmem:[#allocation2 + $0x58] sm:$0xff]  ;;  %v1332_v59 = vmax.f32 %v1268_v51, 0.0  ;;  %v753_v62 = vpop.f32.mrb[28].mxu0  ;;  %v881_v63 = vpop.f32.mrb[28].mxu1 }
 0x14d   :  { %v1127_v53 = vld [vmem:[#allocation2 + $0x158] sm:$0xff]  ;;  %v1166_v54 = vmul.f32 %v2475_v36, %v1095_v52  ;;  %v1835_v2 = vpack.c.bf16 %v1300_v58, %v1300_v58  ;;  %v966_v4 = vadd.f32 %v753_v62, %v101_v56  ;;  %v998_v5 = vadd.f32 %v881_v63, %v133_v57  ;;  %v755_v6 = vpop.f32.mrb[29].mxu0  ;;  %v883_v7 = vpop.f32.mrb[29].mxu1 }
 0x14e   :  { %v1198_v55 = vmul.f32 %v2475_v36, %v1127_v53  ;;  %v1867_v3 = vpack.c.bf16 %v1332_v59, %v1332_v59  ;;  %v756_v10 = vpop.f32.mrb[30].mxu0  ;;  %v884_v11 = vpop.f32.mrb[30].mxu1  ;;  %v105_v6 = vld [vmem:[#allocation2 + $0x90] sm:$0xff] }
 0x14f   :  { %v1237_v60 = vadd.f32 %v2480_v46, %v1166_v54  ;;  %1621 = vst.msk [vmem:[%s2940_s4 + $0x28] sm:$0xf] %vm1610_vm1, %v1835_v2  ;;  %v967_v14 = vadd.f32 %v756_v10, %v102_v0  ;;  %v999_v15 = vadd.f32 %v884_v11, %v134_v1  ;;  %v758_v16 = vpop.f32.mrb[31].mxu0  ;;  %v886_v17 = vpop.f32.mrb[31].mxu1  ;;  %v137_v7 = vld [vmem:[#allocation2 + $0x190] sm:$0xff] }
 0x150   :  { %v1269_v61 = vadd.f32 %v2480_v46, %v1198_v55  ;;  %1653 = vst.msk [vmem:[%s2940_s4 + $0xa8] sm:$0xf] %vm1610_vm1, %v1867_v3  ;;  %v1096_v12 = vld [vmem:[#allocation2 + $0x60] sm:$0xff]  ;;  %v106_v16 = vld [vmem:[#allocation2 + $0x98] sm:$0xff] }
 0x151   :  { %v1301_v8 = vmax.f32 %v1237_v60, 0.0  ;;  %v1128_v13 = vld [vmem:[#allocation2 + $0x160] sm:$0xff]  ;;  %1031 = vst.msk [vmem:[#allocation2 + $0x70] sm:$0xff] %vm22_vm0, %v966_v4  ;;  %1063 = vst.msk [vmem:[#allocation2 + $0x170] sm:$0xff] %vm22_vm0, %v998_v5  ;;  %v1167_v20 = vmul.f32 %v2475_v36, %v1096_v12  ;;  %v1097_v22 = vld [vmem:[#allocation2 + $0x68] sm:$0xff] }
 0x152   :  { %v1333_v9 = vmax.f32 %v1269_v61, 0.0  ;;  %v1199_v21 = vmul.f32 %v2475_v36, %v1128_v13  ;;  %v1129_v23 = vld [vmem:[#allocation2 + $0x168] sm:$0xff]  ;;  %1032 = vst.msk [vmem:[#allocation2 + $0x78] sm:$0xff] %vm22_vm0, %v967_v14  ;;  %1064 = vst.msk [vmem:[#allocation2 + $0x178] sm:$0xff] %vm22_vm0, %v999_v15  ;;  %v1168_v26 = vmul.f32 %v2475_v36, %v1097_v22  ;;  %v138_v17 = vld [vmem:[#allocation2 + $0x198] sm:$0xff] }
 0x153   :  { %v1836_v18 = vpack.c.bf16 %v1301_v8, %v1301_v8  ;;  %v1238_v24 = vadd.f32 %v2480_v46, %v1167_v20  ;;  %v1200_v27 = vmul.f32 %v2475_v36, %v1129_v23 }
 0x154   :  { %v1868_v19 = vpack.c.bf16 %v1333_v9, %v1333_v9  ;;  %v1270_v25 = vadd.f32 %v2480_v46, %v1199_v21  ;;  %v1239_v32 = vadd.f32 %v2480_v46, %v1168_v26  ;;  %v761_v34 = vpop.f32.mrb[32].mxu0  ;;  %v889_v35 = vpop.f32.mrb[32].mxu1 }
 0x155   :  { %1622 = vst.msk [vmem:[%s2940_s4 + $0x2c] sm:$0xf] %vm1610_vm1, %v1836_v18  ;;  %v1302_v30 = vmax.f32 %v1238_v24, 0.0  ;;  %v1271_v33 = vadd.f32 %v2480_v46, %v1200_v27  ;;  %v968_v39 = vadd.f32 %v761_v34, %v103_v28  ;;  %v1000_v40 = vadd.f32 %v889_v35, %v135_v29  ;;  %v763_v41 = vpop.f32.mrb[33].mxu0  ;;  %v891_v42 = vpop.f32.mrb[33].mxu1 }
 0x156   :  { %1654 = vst.msk [vmem:[%s2940_s4 + $0xac] sm:$0xf] %vm1610_vm1, %v1868_v19  ;;  %v1334_v31 = vmax.f32 %v1270_v25, 0.0  ;;  %v1303_v45 = vmax.f32 %v1239_v32, 0.0  ;;  %v764_v50 = vpop.f32.mrb[34].mxu0  ;;  %v892_v51 = vpop.f32.mrb[34].mxu1 }
 0x157   :  { %v1837_v43 = vpack.c.bf16 %v1302_v30, %v1302_v30  ;;  %v1335_v47 = vmax.f32 %v1271_v33, 0.0  ;;  %1033 = vst.msk [vmem:[#allocation2 + $0x80] sm:$0xff] %vm22_vm0, %v968_v39  ;;  %1065 = vst.msk [vmem:[#allocation2 + $0x180] sm:$0xff] %vm22_vm0, %v1000_v40  ;;  %v969_v54 = vadd.f32 %v764_v50, %v104_v37  ;;  %v1001_v55 = vadd.f32 %v892_v51, %v136_v38  ;;  %v766_v56 = vpop.f32.mrb[35].mxu0  ;;  %v894_v57 = vpop.f32.mrb[35].mxu1 }
 0x158   :  { %v1869_v44 = vpack.c.bf16 %v1334_v31, %v1334_v31  ;;  %v1098_v48 = vld [vmem:[#allocation2 + $0x70] sm:$0xff]  ;;  %v1838_v58 = vpack.c.bf16 %v1303_v45, %v1303_v45 }
 0x159   :  { %v1130_v49 = vld [vmem:[#allocation2 + $0x170] sm:$0xff]  ;;  %v1169_v52 = vmul.f32 %v2475_v36, %v1098_v48  ;;  %1623 = vst.msk [vmem:[%s2940_s4 + $0x30] sm:$0xf] %vm1610_vm1, %v1837_v43  ;;  %v1870_v59 = vpack.c.bf16 %v1335_v47, %v1335_v47  ;;  %v1099_v60 = vld [vmem:[#allocation2 + $0x78] sm:$0xff]  ;;  %v107_v43 = vld [vmem:[#allocation2 + $0xa0] sm:$0xff] }
 0x15a   :  { %v1201_v53 = vmul.f32 %v2475_v36, %v1130_v49  ;;  %1655 = vst.msk [vmem:[%s2940_s4 + $0xb0] sm:$0xf] %vm1610_vm1, %v1869_v44  ;;  %v1131_v61 = vld [vmem:[#allocation2 + $0x178] sm:$0xff]  ;;  %v1170_v0 = vmul.f32 %v2475_v36, %v1099_v60  ;;  %1624 = vst.msk [vmem:[%s2940_s4 + $0x34] sm:$0xf] %vm1610_vm1, %v1838_v58  ;;  %v139_v44 = vld [vmem:[#allocation2 + $0x1a0] sm:$0xff] }
 0x15b   :  { %v1240_v62 = vadd.f32 %v2480_v46, %v1169_v52  ;;  %v1202_v1 = vmul.f32 %v2475_v36, %v1131_v61  ;;  %1034 = vst.msk [vmem:[#allocation2 + $0x88] sm:$0xff] %vm22_vm0, %v969_v54  ;;  %1066 = vst.msk [vmem:[#allocation2 + $0x188] sm:$0xff] %vm22_vm0, %v1001_v55  ;;  %v108_v48 = vld [vmem:[#allocation2 + $0xa8] sm:$0xff] }
 0x15c   :  { %v1272_v63 = vadd.f32 %v2480_v46, %v1201_v53  ;;  %1656 = vst.msk [vmem:[%s2940_s4 + $0xb4] sm:$0xf] %vm1610_vm1, %v1870_v59  ;;  %v1241_v4 = vadd.f32 %v2480_v46, %v1170_v0  ;;  %v769_v8 = vpop.f32.mrb[36].mxu0  ;;  %v897_v9 = vpop.f32.mrb[36].mxu1  ;;  %v140_v49 = vld [vmem:[#allocation2 + $0x1a8] sm:$0xff] }
 0x15d   :  { %v1304_v2 = vmax.f32 %v1240_v62, 0.0  ;;  %v1273_v5 = vadd.f32 %v2480_v46, %v1202_v1  ;;  %v771_v14 = vpop.f32.mrb[37].mxu0  ;;  %v899_v15 = vpop.f32.mrb[37].mxu1  ;;  %v970_v20 = vadd.f32 %v769_v8, %v105_v6  ;;  %v1002_v21 = vadd.f32 %v897_v9, %v137_v7 }
 0x15e   :  { %v1336_v3 = vmax.f32 %v1272_v63, 0.0  ;;  %v1305_v12 = vmax.f32 %v1241_v4, 0.0  ;;  %v1100_v18 = vld [vmem:[#allocation2 + $0x80] sm:$0xff]  ;;  %v772_v22 = vpop.f32.mrb[38].mxu0  ;;  %v900_v23 = vpop.f32.mrb[38].mxu1 }
 0x15f   :  { %v1839_v10 = vpack.c.bf16 %v1304_v2, %v1304_v2  ;;  %v1337_v13 = vmax.f32 %v1273_v5, 0.0  ;;  %v1132_v19 = vld [vmem:[#allocation2 + $0x180] sm:$0xff]  ;;  %v1171_v26 = vmul.f32 %v2475_v36, %v1100_v18  ;;  %v774_v28 = vpop.f32.mrb[39].mxu0  ;;  %v902_v29 = vpop.f32.mrb[39].mxu1  ;;  %1035 = vst.msk [vmem:[#allocation2 + $0x90] sm:$0xff] %vm22_vm0, %v970_v20  ;;  %1067 = vst.msk [vmem:[#allocation2 + $0x190] sm:$0xff] %vm22_vm0, %v1002_v21  ;;  %v971_v32 = vadd.f32 %v772_v22, %v106_v16 }
 0x160   :  { %v1871_v11 = vpack.c.bf16 %v1336_v3, %v1336_v3  ;;  %v1840_v24 = vpack.c.bf16 %v1305_v12, %v1305_v12  ;;  %v1203_v27 = vmul.f32 %v2475_v36, %v1132_v19  ;;  %v1003_v33 = vadd.f32 %v900_v23, %v138_v17  ;;  %v109_v12 = vld [vmem:[#allocation2 + $0xb0] sm:$0xff]  ;;  %v110_v20 = vld [vmem:[#allocation2 + $0xb8] sm:$0xff] }
 0x161   :  { %1625 = vst.msk [vmem:[%s2940_s4 + $0x38] sm:$0xf] %vm1610_vm1, %v1839_v10  ;;  %v1872_v25 = vpack.c.bf16 %v1337_v13, %v1337_v13  ;;  %v1242_v34 = vadd.f32 %v2480_v46, %v1171_v26  ;;  %v141_v13 = vld [vmem:[#allocation2 + $0x1b0] sm:$0xff]  ;;  %v142_v21 = vld [vmem:[#allocation2 + $0x1b8] sm:$0xff] }
 0x162   :  { %1657 = vst.msk [vmem:[%s2940_s4 + $0xb8] sm:$0xf] %vm1610_vm1, %v1871_v11  ;;  %v1101_v30 = vld [vmem:[#allocation2 + $0x88] sm:$0xff]  ;;  %1626 = vst.msk [vmem:[%s2940_s4 + $0x3c] sm:$0xf] %vm1610_vm1, %v1840_v24  ;;  %v1274_v35 = vadd.f32 %v2480_v46, %v1203_v27 }
 0x163   :  { %v1133_v31 = vld [vmem:[#allocation2 + $0x188] sm:$0xff]  ;;  %1658 = vst.msk [vmem:[%s2940_s4 + $0xbc] sm:$0xf] %vm1610_vm1, %v1872_v25  ;;  %v1172_v37 = vmul.f32 %v2475_v36, %v1101_v30  ;;  %v1306_v39 = vmax.f32 %v1242_v34, 0.0 }
 0x164   :  { %v1204_v38 = vmul.f32 %v2475_v36, %v1133_v31  ;;  %1036 = vst.msk [vmem:[#allocation2 + $0x98] sm:$0xff] %vm22_vm0, %v971_v32  ;;  %1068 = vst.msk [vmem:[#allocation2 + $0x198] sm:$0xff] %vm22_vm0, %v1003_v33  ;;  %v1338_v40 = vmax.f32 %v1274_v35, 0.0  ;;  %v777_v45 = vpop.f32.mrb[40].mxu0  ;;  %v905_v47 = vpop.f32.mrb[40].mxu1 }
 0x165   :  { %v1243_v41 = vadd.f32 %v2480_v46, %v1172_v37  ;;  %v1841_v50 = vpack.c.bf16 %v1306_v39, %v1306_v39  ;;  %v779_v54 = vpop.f32.mrb[41].mxu0  ;;  %v907_v55 = vpop.f32.mrb[41].mxu1  ;;  %v972_v56 = vadd.f32 %v777_v45, %v107_v43  ;;  %v1004_v57 = vadd.f32 %v905_v47, %v139_v44 }
 0x166   :  { %v1275_v42 = vadd.f32 %v2480_v46, %v1204_v38  ;;  %v1873_v51 = vpack.c.bf16 %v1338_v40, %v1338_v40  ;;  %v780_v58 = vpop.f32.mrb[42].mxu0  ;;  %v908_v59 = vpop.f32.mrb[42].mxu1  ;;  %v1102_v62 = vld [vmem:[#allocation2 + $0x90] sm:$0xff] }
 0x167   :  { %v1307_v52 = vmax.f32 %v1243_v41, 0.0  ;;  %1627 = vst.msk [vmem:[%s2940_s4 + $0x40] sm:$0xf] %vm1610_vm1, %v1841_v50  ;;  %v1134_v63 = vld [vmem:[#allocation2 + $0x190] sm:$0xff]  ;;  %v973_v0 = vadd.f32 %v780_v58, %v108_v48  ;;  %v1005_v1 = vadd.f32 %v908_v59, %v140_v49  ;;  %v782_v2 = vpop.f32.mrb[43].mxu0  ;;  %v910_v3 = vpop.f32.mrb[43].mxu1  ;;  %v1173_v4 = vmul.f32 %v2475_v36, %v1102_v62 }
 0x168   :  { %v1339_v53 = vmax.f32 %v1275_v42, 0.0  ;;  %1659 = vst.msk [vmem:[%s2940_s4 + $0xc0] sm:$0xf] %vm1610_vm1, %v1873_v51  ;;  %v1205_v5 = vmul.f32 %v2475_v36, %v1134_v63  ;;  %v111_v50 = vld [vmem:[#allocation2 + $0xc0] sm:$0xff] }
 0x169   :  { %v1842_v60 = vpack.c.bf16 %v1307_v52, %v1307_v52  ;;  %1037 = vst.msk [vmem:[#allocation2 + $0xa0] sm:$0xff] %vm22_vm0, %v972_v56  ;;  %1069 = vst.msk [vmem:[#allocation2 + $0x1a0] sm:$0xff] %vm22_vm0, %v1004_v57  ;;  %v1244_v8 = vadd.f32 %v2480_v46, %v1173_v4  ;;  %v143_v51 = vld [vmem:[#allocation2 + $0x1c0] sm:$0xff] }
 0x16a   :  { %v1874_v61 = vpack.c.bf16 %v1339_v53, %v1339_v53  ;;  %1038 = vst.msk [vmem:[#allocation2 + $0xa8] sm:$0xff] %vm22_vm0, %v973_v0  ;;  %1070 = vst.msk [vmem:[#allocation2 + $0x1a8] sm:$0xff] %vm22_vm0, %v1005_v1  ;;  %v1276_v9 = vadd.f32 %v2480_v46, %v1205_v5  ;;  %v112_v0 = vld [vmem:[#allocation2 + $0xc8] sm:$0xff] }
 0x16b   :  { %1628 = vst.msk [vmem:[%s2940_s4 + $0x44] sm:$0xf] %vm1610_vm1, %v1842_v60  ;;  %v1103_v6 = vld [vmem:[#allocation2 + $0x98] sm:$0xff]  ;;  %v1308_v14 = vmax.f32 %v1244_v8, 0.0  ;;  %v144_v1 = vld [vmem:[#allocation2 + $0x1c8] sm:$0xff] }
 0x16c   :  { %1660 = vst.msk [vmem:[%s2940_s4 + $0xc4] sm:$0xf] %vm1610_vm1, %v1874_v61  ;;  %v1135_v7 = vld [vmem:[#allocation2 + $0x198] sm:$0xff]  ;;  %v1174_v10 = vmul.f32 %v2475_v36, %v1103_v6  ;;  %v1340_v15 = vmax.f32 %v1276_v9, 0.0  ;;  %v785_v18 = vpop.f32.mrb[44].mxu0  ;;  %v913_v19 = vpop.f32.mrb[44].mxu1 }
 0x16d   :  { %v1206_v11 = vmul.f32 %v2475_v36, %v1135_v7  ;;  %v974_v22 = vadd.f32 %v785_v18, %v109_v12  ;;  %v1006_v23 = vadd.f32 %v913_v19, %v141_v13  ;;  %v787_v24 = vpop.f32.mrb[45].mxu0  ;;  %v915_v25 = vpop.f32.mrb[45].mxu1  ;;  %v1843_v26 = vpack.c.bf16 %v1308_v14, %v1308_v14  ;;  %v2799_v19 = vld [vmem:[%s2938_s2] ss:$0 sm:$0xff] }
 0x16e   :  { %v1245_v16 = vadd.f32 %v2480_v46, %v1174_v10  ;;  %v1875_v27 = vpack.c.bf16 %v1340_v15, %v1340_v15  ;;  %v788_v30 = vpop.f32.mrb[46].mxu0  ;;  %v916_v31 = vpop.f32.mrb[46].mxu1 }
 0x16f   :  { %v1277_v17 = vadd.f32 %v2480_v46, %v1206_v11  ;;  %1039 = vst.msk [vmem:[#allocation2 + $0xb0] sm:$0xff] %vm22_vm0, %v974_v22  ;;  %1071 = vst.msk [vmem:[#allocation2 + $0x1b0] sm:$0xff] %vm22_vm0, %v1006_v23  ;;  %v975_v34 = vadd.f32 %v788_v30, %v110_v20  ;;  %v1007_v35 = vadd.f32 %v916_v31, %v142_v21  ;;  %v790_v37 = vpop.f32.mrb[47].mxu0  ;;  %v918_v38 = vpop.f32.mrb[47].mxu1 }
 0x170   :  { %v1309_v28 = vmax.f32 %v1245_v16, 0.0  ;;  %v1104_v32 = vld [vmem:[#allocation2 + $0xa0] sm:$0xff]  ;;  %1629 = vst.msk [vmem:[%s2940_s4 + $0x48] sm:$0xf] %vm1610_vm1, %v1843_v26  ;;  %1661 = vst.msk [vmem:[%s2940_s4 + $0xc8] sm:$0xf] %vm1610_vm1, %v1875_v27 }
 0x171   :  { %v1341_v29 = vmax.f32 %v1277_v17, 0.0  ;;  %v1136_v33 = vld [vmem:[#allocation2 + $0x1a0] sm:$0xff]  ;;  %v1175_v41 = vmul.f32 %v2475_v36, %v1104_v32  ;;  %v1105_v43 = vld [vmem:[#allocation2 + $0xa8] sm:$0xff]  ;;  %1040 = vst.msk [vmem:[#allocation2 + $0xb8] sm:$0xff] %vm22_vm0, %v975_v34  ;;  %1072 = vst.msk [vmem:[#allocation2 + $0x1b8] sm:$0xff] %vm22_vm0, %v1007_v35 }
 0x172   :  { %v1844_v39 = vpack.c.bf16 %v1309_v28, %v1309_v28  ;;  %v1207_v42 = vmul.f32 %v2475_v36, %v1136_v33  ;;  %v1137_v44 = vld [vmem:[#allocation2 + $0x1a8] sm:$0xff]  ;;  %v1176_v45 = vmul.f32 %v2475_v36, %v1105_v43  ;;  %v113_v26 = vld [vmem:[#allocation2 + $0xd0] sm:$0xff]  ;;  %v114_v37 = vld [vmem:[#allocation2 + $0xd8] sm:$0xff] }
 0x173   :  { %v1876_v40 = vpack.c.bf16 %v1341_v29, %v1341_v29  ;;  %v1208_v47 = vmul.f32 %v2475_v36, %v1137_v44  ;;  %v1246_v48 = vadd.f32 %v2480_v46, %v1175_v41  ;;  %v145_v27 = vld [vmem:[#allocation2 + $0x1d0] sm:$0xff]  ;;  %v146_v38 = vld [vmem:[#allocation2 + $0x1d8] sm:$0xff] }
 0x174   :  { %1630 = vst.msk [vmem:[%s2940_s4 + $0x4c] sm:$0xf] %vm1610_vm1, %v1844_v39  ;;  %v1278_v49 = vadd.f32 %v2480_v46, %v1207_v42  ;;  %v1247_v52 = vadd.f32 %v2480_v46, %v1176_v45  ;;  %v793_v56 = vpop.f32.mrb[48].mxu0  ;;  %v921_v57 = vpop.f32.mrb[48].mxu1 }
 0x175   :  { %1662 = vst.msk [vmem:[%s2940_s4 + $0xcc] sm:$0xf] %vm1610_vm1, %v1876_v40  ;;  %v1279_v53 = vadd.f32 %v2480_v46, %v1208_v47  ;;  %v1310_v54 = vmax.f32 %v1246_v48, 0.0  ;;  %v976_v60 = vadd.f32 %v793_v56, %v111_v50  ;;  %v1008_v61 = vadd.f32 %v921_v57, %v143_v51  ;;  %v795_v62 = vpop.f32.mrb[49].mxu0  ;;  %v923_v63 = vpop.f32.mrb[49].mxu1 }
 0x176   :  { %v1342_v55 = vmax.f32 %v1278_v49, 0.0  ;;  %v1311_v58 = vmax.f32 %v1247_v52, 0.0  ;;  %v1106_v4 = vld [vmem:[#allocation2 + $0xb0] sm:$0xff]  ;;  %v796_v6 = vpop.f32.mrb[50].mxu0  ;;  %v924_v7 = vpop.f32.mrb[50].mxu1 }
 0x177   :  { %v1343_v59 = vmax.f32 %v1279_v53, 0.0  ;;  %v1845_v2 = vpack.c.bf16 %v1310_v54, %v1310_v54  ;;  %v1138_v5 = vld [vmem:[#allocation2 + $0x1b0] sm:$0xff]  ;;  %v1177_v10 = vmul.f32 %v2475_v36, %v1106_v4  ;;  %1041 = vst.msk [vmem:[#allocation2 + $0xc0] sm:$0xff] %vm22_vm0, %v976_v60  ;;  %1073 = vst.msk [vmem:[#allocation2 + $0x1c0] sm:$0xff] %vm22_vm0, %v1008_v61  ;;  %v798_v12 = vpop.f32.mrb[51].mxu0  ;;  %v926_v13 = vpop.f32.mrb[51].mxu1  ;;  %v977_v16 = vadd.f32 %v796_v6, %v112_v0 }
 0x178   :  { %v1877_v3 = vpack.c.bf16 %v1342_v55, %v1342_v55  ;;  %v1846_v8 = vpack.c.bf16 %v1311_v58, %v1311_v58  ;;  %v1209_v11 = vmul.f32 %v2475_v36, %v1138_v5  ;;  %v1107_v14 = vld [vmem:[#allocation2 + $0xb8] sm:$0xff]  ;;  %v1009_v36 = vadd.f32 %v924_v7, %v144_v1  ;;  %v2830_v53 = vld [vmem:[%s2939_s3] ss:$0 sm:$0xff]  ;;  %v116_v4 = vld [vmem:[#allocation2 + $0xe8] sm:$0xff] }
 0x179   :  { %v1878_v9 = vpack.c.bf16 %v1343_v59, %v1343_v59  ;;  %1631 = vst.msk [vmem:[%s2940_s4 + $0x50] sm:$0xf] %vm1610_vm1, %v1845_v2  ;;  %v1139_v15 = vld [vmem:[#allocation2 + $0x1b8] sm:$0xff]  ;;  %v1248_v17 = vadd.f32 %v2480_v46, %v1177_v10  ;;  %v1178_v20 = vmul.f32 %v2799_v19, %v1107_v14  ;;  %v115_v60 = vld [vmem:[#allocation2 + $0xe0] sm:$0xff]  ;;  %v148_v5 = vld [vmem:[#allocation2 + $0x1e8] sm:$0xff] }
 0x17a   :  { %1663 = vst.msk [vmem:[%s2940_s4 + $0xd0] sm:$0xf] %vm1610_vm1, %v1877_v3  ;;  %1632 = vst.msk [vmem:[%s2940_s4 + $0x54] sm:$0xf] %vm1610_vm1, %v1846_v8  ;;  %v1280_v18 = vadd.f32 %v2480_v46, %v1209_v11  ;;  %v1210_v21 = vmul.f32 %v2799_v19, %v1139_v15  ;;  %v147_v61 = vld [vmem:[#allocation2 + $0x1e0] sm:$0xff] }
 0x17b   :  { %1664 = vst.msk [vmem:[%s2940_s4 + $0xd4] sm:$0xf] %vm1610_vm1, %v1878_v9  ;;  %v1312_v22 = vmax.f32 %v1248_v17, 0.0  ;;  %v1249_v24 = vadd.f32 %v2480_v46, %v1178_v20 }
 0x17c   :  { %1042 = vst.msk [vmem:[#allocation2 + $0xc8] sm:$0xff] %vm22_vm0, %v977_v16  ;;  %1074 = vst.msk [vmem:[#allocation2 + $0x1c8] sm:$0xff] %vm22_vm0, %v1009_v36  ;;  %v1344_v23 = vmax.f32 %v1280_v18, 0.0  ;;  %v1281_v25 = vadd.f32 %v2480_v46, %v1210_v21  ;;  %v801_v28 = vpop.f32.mrb[52].mxu0  ;;  %v929_v29 = vpop.f32.mrb[52].mxu1 }
 0x17d   :  { %v1847_v30 = vpack.c.bf16 %v1312_v22, %v1312_v22  ;;  %v1313_v32 = vmax.f32 %v1249_v24, 0.0  ;;  %v803_v34 = vpop.f32.mrb[53].mxu0  ;;  %v931_v35 = vpop.f32.mrb[53].mxu1  ;;  %v978_v41 = vadd.f32 %v801_v28, %v113_v26  ;;  %v1010_v42 = vadd.f32 %v929_v29, %v145_v27 }
 0x17e   :  { %v1879_v31 = vpack.c.bf16 %v1344_v23, %v1344_v23  ;;  %v1345_v33 = vmax.f32 %v1281_v25, 0.0  ;;  %v1108_v39 = vld [vmem:[#allocation2 + $0xc0] sm:$0xff]  ;;  %v804_v43 = vpop.f32.mrb[54].mxu0  ;;  %v932_v44 = vpop.f32.mrb[54].mxu1 }
 0x17f   :  { %v1140_v40 = vld [vmem:[#allocation2 + $0x1c0] sm:$0xff]  ;;  %1633 = vst.msk [vmem:[%s2940_s4 + $0x58] sm:$0xf] %vm1610_vm1, %v1847_v30  ;;  %v1848_v46 = vpack.c.bf16 %v1313_v32, %v1313_v32  ;;  %v1179_v47 = vmul.f32 %v2799_v19, %v1108_v39  ;;  %v806_v49 = vpop.f32.mrb[55].mxu0  ;;  %v934_v50 = vpop.f32.mrb[55].mxu1  ;;  %v979_v51 = vadd.f32 %v804_v43, %v114_v37  ;;  %v1011_v52 = vadd.f32 %v932_v44, %v146_v38  ;;  %v117_v32 = vld [vmem:[#allocation2 + $0xf0] sm:$0xff] }
 0x180   :  { %1665 = vst.msk [vmem:[%s2940_s4 + $0xd8] sm:$0xf] %vm1610_vm1, %v1879_v31  ;;  %v1880_v45 = vpack.c.bf16 %v1345_v33, %v1345_v33  ;;  %v1211_v48 = vmul.f32 %v2799_v19, %v1140_v40  ;;  %v149_v33 = vld [vmem:[#allocation2 + $0x1f0] sm:$0xff] }
 0x181   :  { %1043 = vst.msk [vmem:[#allocation2 + $0xd0] sm:$0xff] %vm22_vm0, %v978_v41  ;;  %1075 = vst.msk [vmem:[#allocation2 + $0x1d0] sm:$0xff] %vm22_vm0, %v1010_v42  ;;  %v1250_v54 = vadd.f32 %v2830_v53, %v1179_v47  ;;  %v118_v41 = vld [vmem:[#allocation2 + $0xf8] sm:$0xff] }
 0x182   :  { %1634 = vst.msk [vmem:[%s2940_s4 + $0x5c] sm:$0xf] %vm1610_vm1, %v1848_v46  ;;  %1666 = vst.msk [vmem:[%s2940_s4 + $0xdc] sm:$0xf] %vm1610_vm1, %v1880_v45  ;;  %v1282_v55 = vadd.f32 %v2830_v53, %v1211_v48  ;;  %v150_v42 = vld [vmem:[#allocation2 + $0x1f8] sm:$0xff] }
 0x183   :  { %v1109_v56 = vld [vmem:[#allocation2 + $0xc8] sm:$0xff]  ;;  %1044 = vst.msk [vmem:[#allocation2 + $0xd8] sm:$0xff] %vm22_vm0, %v979_v51  ;;  %1076 = vst.msk [vmem:[#allocation2 + $0x1d8] sm:$0xff] %vm22_vm0, %v1011_v52  ;;  %v1314_v62 = vmax.f32 %v1250_v54, 0.0 }
 0x184   :  { %v1141_v57 = vld [vmem:[#allocation2 + $0x1c8] sm:$0xff]  ;;  %v1180_v58 = vmul.f32 %v2799_v19, %v1109_v56  ;;  %v1346_v63 = vmax.f32 %v1282_v55, 0.0  ;;  %v809_v2 = vpop.f32.mrb[56].mxu0  ;;  %v937_v3 = vpop.f32.mrb[56].mxu1 }
 0x185   :  { %v1212_v59 = vmul.f32 %v2799_v19, %v1141_v57  ;;  %v1849_v6 = vpack.c.bf16 %v1314_v62, %v1314_v62  ;;  %v980_v8 = vadd.f32 %v809_v2, %v115_v60  ;;  %v1012_v9 = vadd.f32 %v937_v3, %v147_v61  ;;  %v811_v10 = vpop.f32.mrb[57].mxu0  ;;  %v939_v11 = vpop.f32.mrb[57].mxu1 }
 0x186   :  { %v1251_v0 = vadd.f32 %v2830_v53, %v1180_v58  ;;  %v1881_v7 = vpack.c.bf16 %v1346_v63, %v1346_v63  ;;  %v812_v14 = vpop.f32.mrb[58].mxu0  ;;  %v940_v15 = vpop.f32.mrb[58].mxu1 }
 0x187   :  { %v1283_v1 = vadd.f32 %v2830_v53, %v1212_v59  ;;  %1635 = vst.msk [vmem:[%s2940_s4 + $0x60] sm:$0xf] %vm1610_vm1, %v1849_v6  ;;  %v981_v17 = vadd.f32 %v812_v14, %v116_v4  ;;  %v1013_v18 = vadd.f32 %v940_v15, %v148_v5  ;;  %v814_v20 = vpop.f32.mrb[59].mxu0  ;;  %v942_v21 = vpop.f32.mrb[59].mxu1 }
 0x188   :  { %v1315_v12 = vmax.f32 %v1251_v0, 0.0  ;;  %1667 = vst.msk [vmem:[%s2940_s4 + $0xe0] sm:$0xf] %vm1610_vm1, %v1881_v7  ;;  %v1110_v16 = vld [vmem:[#allocation2 + $0xd0] sm:$0xff] }
 0x189   :  { %v1347_v13 = vmax.f32 %v1283_v1, 0.0  ;;  %v1142_v36 = vld [vmem:[#allocation2 + $0x1d0] sm:$0xff]  ;;  %1045 = vst.msk [vmem:[#allocation2 + $0xe0] sm:$0xff] %vm22_vm0, %v980_v8  ;;  %1077 = vst.msk [vmem:[#allocation2 + $0x1e0] sm:$0xff] %vm22_vm0, %v1012_v9  ;;  %v1181_v24 = vmul.f32 %v2799_v19, %v1110_v16 }
 0x18a   :  { %v1850_v22 = vpack.c.bf16 %v1315_v12, %v1315_v12  ;;  %v1213_v25 = vmul.f32 %v2799_v19, %v1142_v36  ;;  %v1111_v26 = vld [vmem:[#allocation2 + $0xd8] sm:$0xff]  ;;  %1046 = vst.msk [vmem:[#allocation2 + $0xe8] sm:$0xff] %vm22_vm0, %v981_v17  ;;  %1078 = vst.msk [vmem:[#allocation2 + $0x1e8] sm:$0xff] %vm22_vm0, %v1013_v18 }
 0x18b   :  { %v1882_v23 = vpack.c.bf16 %v1347_v13, %v1347_v13  ;;  %v1143_v27 = vld [vmem:[#allocation2 + $0x1d8] sm:$0xff]  ;;  %v1252_v28 = vadd.f32 %v2830_v53, %v1181_v24  ;;  %v1182_v30 = vmul.f32 %v2799_v19, %v1111_v26 }
 0x18c   :  { %1636 = vst.msk [vmem:[%s2940_s4 + $0x64] sm:$0xf] %vm1610_vm1, %v1850_v22  ;;  %v1284_v29 = vadd.f32 %v2830_v53, %v1213_v25  ;;  %v1214_v31 = vmul.f32 %v2799_v19, %v1143_v27  ;;  %v817_v39 = vpop.f32.mrb[60].mxu0  ;;  %v945_v40 = vpop.f32.mrb[60].mxu1 }
 0x18d   :  { %1668 = vst.msk [vmem:[%s2940_s4 + $0xe4] sm:$0xf] %vm1610_vm1, %v1882_v23  ;;  %v1316_v34 = vmax.f32 %v1252_v28, 0.0  ;;  %v1253_v37 = vadd.f32 %v2830_v53, %v1182_v30  ;;  %v982_v43 = vadd.f32 %v817_v39, %v117_v32  ;;  %v1014_v44 = vadd.f32 %v945_v40, %v149_v33  ;;  %v819_v46 = vpop.f32.mrb[61].mxu0  ;;  %v947_v45 = vpop.f32.mrb[61].mxu1 }
 0x18e   :  { %v1348_v35 = vmax.f32 %v1284_v29, 0.0  ;;  %v1285_v38 = vadd.f32 %v2830_v53, %v1214_v31  ;;  %v820_v54 = vpop.f32.mrb[62].mxu0  ;;  %v948_v55 = vpop.f32.mrb[62].mxu1 }
 0x18f   :  { %v1851_v47 = vpack.c.bf16 %v1316_v34, %v1316_v34  ;;  %v1317_v49 = vmax.f32 %v1253_v37, 0.0  ;;  %1047 = vst.msk [vmem:[#allocation2 + $0xf0] sm:$0xff] %vm22_vm0, %v982_v43  ;;  %1079 = vst.msk [vmem:[#allocation2 + $0x1f0] sm:$0xff] %vm22_vm0, %v1014_v44  ;;  %v983_v58 = vadd.f32 %v820_v54, %v118_v41  ;;  %v1015_v59 = vadd.f32 %v948_v55, %v150_v42  ;;  %v822_v60 = vpop.f32.mrb[63].mxu0  ;;  %v950_v61 = vpop.f32.mrb[63].mxu1 }
 0x190   :  { %v1883_v48 = vpack.c.bf16 %v1348_v35, %v1348_v35  ;;  %v1349_v50 = vmax.f32 %v1285_v38, 0.0  ;;  %v1112_v51 = vld [vmem:[#allocation2 + $0xe0] sm:$0xff] }
 0x191   :  { %v1144_v52 = vld [vmem:[#allocation2 + $0x1e0] sm:$0xff]  ;;  %v1183_v56 = vmul.f32 %v2799_v19, %v1112_v51  ;;  %1637 = vst.msk [vmem:[%s2940_s4 + $0x68] sm:$0xf] %vm1610_vm1, %v1851_v47  ;;  %v1852_v62 = vpack.c.bf16 %v1317_v49, %v1317_v49  ;;  %v1113_v0 = vld [vmem:[#allocation2 + $0xe8] sm:$0xff] }
 0x192   :  { %v1215_v57 = vmul.f32 %v2799_v19, %v1144_v52  ;;  %1669 = vst.msk [vmem:[%s2940_s4 + $0xe8] sm:$0xf] %vm1610_vm1, %v1883_v48  ;;  %v1884_v63 = vpack.c.bf16 %v1349_v50, %v1349_v50  ;;  %v1145_v1 = vld [vmem:[#allocation2 + $0x1e8] sm:$0xff]  ;;  %v1184_v4 = vmul.f32 %v2799_v19, %v1113_v0 }
 0x193   :  { %v1254_v2 = vadd.f32 %v2830_v53, %v1183_v56  ;;  %v1216_v5 = vmul.f32 %v2799_v19, %v1145_v1  ;;  %1048 = vst.msk [vmem:[#allocation2 + $0xf8] sm:$0xff] %vm22_vm0, %v983_v58  ;;  %1080 = vst.msk [vmem:[#allocation2 + $0x1f8] sm:$0xff] %vm22_vm0, %v1015_v59 }
 0x194   :  { %v1286_v3 = vadd.f32 %v2830_v53, %v1215_v57  ;;  %1638 = vst.msk [vmem:[%s2940_s4 + $0x6c] sm:$0xf] %vm1610_vm1, %v1852_v62  ;;  %1670 = vst.msk [vmem:[%s2940_s4 + $0xec] sm:$0xf] %vm1610_vm1, %v1884_v63  ;;  %v1255_v8 = vadd.f32 %v2830_v53, %v1184_v4 }
 0x195   :  { %v1318_v6 = vmax.f32 %v1254_v2, 0.0  ;;  %v1287_v9 = vadd.f32 %v2830_v53, %v1216_v5 }
 0x196   :  { %v1350_v7 = vmax.f32 %v1286_v3, 0.0  ;;  %v1319_v12 = vmax.f32 %v1255_v8, 0.0  ;;  %v1114_v14 = vld [vmem:[#allocation2 + $0xf0] sm:$0xff] }
 0x197   :  { %v1853_v10 = vpack.c.bf16 %v1318_v6, %v1318_v6  ;;  %v1351_v13 = vmax.f32 %v1287_v9, 0.0  ;;  %v1146_v15 = vld [vmem:[#allocation2 + $0x1f0] sm:$0xff]  ;;  %v1185_v17 = vmul.f32 %v2799_v19, %v1114_v14 }
 0x198   :  { %v1885_v11 = vpack.c.bf16 %v1350_v7, %v1350_v7  ;;  %v1854_v16 = vpack.c.bf16 %v1319_v12, %v1319_v12  ;;  %v1217_v18 = vmul.f32 %v2799_v19, %v1146_v15 }
 0x199   :  { %1639 = vst.msk [vmem:[%s2940_s4 + $0x70] sm:$0xf] %vm1610_vm1, %v1853_v10  ;;  %v1886_v36 = vpack.c.bf16 %v1351_v13, %v1351_v13  ;;  %v1256_v22 = vadd.f32 %v2830_v53, %v1185_v17 }
 0x19a   :  { %1671 = vst.msk [vmem:[%s2940_s4 + $0xf0] sm:$0xf] %vm1610_vm1, %v1885_v11  ;;  %v1115_v20 = vld [vmem:[#allocation2 + $0xf8] sm:$0xff]  ;;  %1640 = vst.msk [vmem:[%s2940_s4 + $0x74] sm:$0xf] %vm1610_vm1, %v1854_v16  ;;  %v1288_v23 = vadd.f32 %v2830_v53, %v1217_v18 }
 0x19b   :  { %v1147_v21 = vld [vmem:[#allocation2 + $0x1f8] sm:$0xff]  ;;  %1672 = vst.msk [vmem:[%s2940_s4 + $0xf4] sm:$0xf] %vm1610_vm1, %v1886_v36  ;;  %v1186_v24 = vmul.f32 %v2799_v19, %v1115_v20  ;;  %v1320_v26 = vmax.f32 %v1256_v22, 0.0 }
 0x19c   :  { %v1218_v25 = vmul.f32 %v2799_v19, %v1147_v21  ;;  %v1352_v27 = vmax.f32 %v1288_v23, 0.0 }
 0x19d   :  { %v1257_v28 = vadd.f32 %v2830_v53, %v1186_v24  ;;  %v1855_v30 = vpack.c.bf16 %v1320_v26, %v1320_v26 }
 0x19e   :  { %v1289_v29 = vadd.f32 %v2830_v53, %v1218_v25  ;;  %v1887_v31 = vpack.c.bf16 %v1352_v27, %v1352_v27 }
 0x19f   :  { %v1321_v32 = vmax.f32 %v1257_v28, 0.0  ;;  %1641 = vst.msk [vmem:[%s2940_s4 + $0x78] sm:$0xf] %vm1610_vm1, %v1855_v30 }
 0x1a0   :  { %v1353_v33 = vmax.f32 %v1289_v29, 0.0  ;;  %1673 = vst.msk [vmem:[%s2940_s4 + $0xf8] sm:$0xf] %vm1610_vm1, %v1887_v31 }
 0x1a1   :  { %v1856_v19 = vpack.c.bf16 %v1321_v32, %v1321_v32 }
 0x1a2   :  { %v1888_v34 = vpack.c.bf16 %v1353_v33, %v1353_v33 }
 0x1a3   :  { %1642 = vst.msk [vmem:[%s2940_s4 + $0x7c] sm:$0xf] %vm1610_vm1, %v1856_v19 }
 0x1a4   :  { %1674 = vst.msk [vmem:[%s2940_s4 + $0xfc] sm:$0xf] %vm1610_vm1, %v1888_v34 }

// kernel: ctr_predictor_forward.28
= control target key start
LH: loop header
LB: loop body
LE: loop exit
PB: predicated region body
PF: predicated region fallthrough
CT: control target
= control target key end

     0   :  { %s747_s15 = smov 0   ;;  %s749_s16 = smov 0   ;;  %s798_s0 = inlined_call_operand.vmem [shape: bf16[9,32,64], index: 0, kind: input, shape index: {}]   ;;  %s799_s1 = inlined_call_operand.vmem [shape: bf16[9,64,128], index: 1, kind: input, shape index: {}]   ;;  %s800_s2 = inlined_call_operand.vmem [shape: f32[1,128], index: 2, kind: input, shape index: {}]   ;;  %s801_s3 = inlined_call_operand.vmem [shape: f32[1,128], index: 3, kind: input, shape index: {}]   ;;  %s802_s4 = inlined_call_operand.vmem [shape: bf16[32,128], index: 4, kind: output, shape index: {}]  }
   0x1   :  { %s751_s17 = smov 0  }
   0x2 LB: > { %s26_s18 = sadd.s32 1, %s715_s16  ;;  %p606_p0 = scmp.ge.s32.totalorder %s719_s17, 1  ;;  %s719_s17 = sphi %s751_s17, %s14_s17   ;;  %s715_s16 = sphi %s749_s16, %s804_s16   ;;  %s711_s15 = sphi %s747_s15, %s803_s15  }
   0x3   : > { %p27_p1 = scmp.ge.s32.totalorder %s26_s18, 9  ;;  %p221_p2 = scmp.lt.s32.totalorder %s719_s17, 10 }
   0x5   : > { %s806_s18 = smov (%p27_p1, %s26_s18), 0  ;;  %p222_p3 = pnand %p606_p0, %p221_p2 }
   0x6   : > { %p269_p4 = scmp.lt.s32.totalorder (!%p222_p3), %s711_s15, 8  ;;  %p611_p5 = scmp.ne.s32.totalorder (!%p222_p3), %s711_s15, 0 }
   0x7   : > { %225 = sbr.rel (%p222_p3) target bundleno = 273 (0x111), region = 36 }
   0xe   : > { %s270_s19 = scalar_select %p269_p4, %s711_s15, 8 }
   0xf   : > { %305 = sbr.rel (%p611_p5) target bundleno = 22 (0x16), region = 40  ;;  %v721_v0 = vmov (!%p611_p5), 0.0  }
  0x10   : > { %s631_s20 = sshll.u32 %s270_s19, 4  ;;  %s632_s21 = sshll.u32 %s270_s19, 5  ;;  %306 = vst [vmem:[#allocation2] sm:$0xff] (!%p611_p5), %v721_v0  ;;  %307 = vst [vmem:[#allocation2 + $0x8] sm:$0xff] (!%p611_p5), %v721_v0 }
  0x11   : > { %s276_s24 = scalar_lea.vmem %s798_s0, %s631_s20  ;;  %s285_s27 = scalar_lea.vmem %s799_s1, %s632_s21  ;;  %308 = vst [vmem:[#allocation2 + $0x10] sm:$0xff] (!%p611_p5), %v721_v0  ;;  %309 = vst [vmem:[#allocation2 + $0x18] sm:$0xff] (!%p611_p5), %v721_v0 }
  0x16 PF: > { %v691_v1 = vld [vmem:[%s285_s27] sm:$0xff]   ;;  %v692_v2 = vld [vmem:[%s285_s27 + $0x8] sm:$0xff]   ;;  %v693_v3 = vld [vmem:[%s285_s27 + $0x10] sm:$0xff]   ;;  %vm360_vm0 = vcmask 523264   ;;  %p620_p6 = scmp.ne.s32.totalorder %s711_s15, 8 }
  0x17   : > { %654 = vmatprep.subr.bf16.mxu0 %v691_v1  ;;  %v695_v4 = vld [vmem:[%s276_s24] sm:$0xff]   ;;  %v694_v5 = vld [vmem:[%s285_s27 + $0x18] sm:$0xff]   ;;  %v696_v6 = vld [vmem:[%s276_s24 + $0x8] sm:$0xff]  }
  0x18   : > { %655 = vmatpush3.bf16.msra.mxu0 %v691_v1  ;;  %662 = vmatprep.mubr.msk.bf16.mxu0 %vm360_vm0, %v695_v4  ;;  %v312_v7 = vld [vmem:[#allocation2 + $0x10] sm:$0xff]  ;;  %v310_v8 = vld [vmem:[#allocation2] sm:$0xff]  ;;  %v313_v10 = vld [vmem:[#allocation2 + $0x18] sm:$0xff] }
  0x19   : > { %656 = vmatprep.subr.bf16.mxu0 %v692_v2  ;;  %v311_v13 = vld [vmem:[#allocation2 + $0x8] sm:$0xff]  ;;  %v621_v21 = vld [vmem:[%s800_s2] ss:$0 sm:$0xff] (!%p620_p6) }
  0x1a   : > { %v622_v24 = vld [vmem:[%s801_s3] ss:$0 sm:$0xff] (!%p620_p6) }
  0x1c   : > { %657 = vmatpush3.bf16.msra.mxu0 %v692_v2 }
  0x1d   : > { %658 = vmatprep.subr.bf16.mxu0 %v693_v3 }
  0x20   : > { %659 = vmatpush3.bf16.msra.mxu0 %v693_v3 }
  0x21   : > { %660 = vmatprep.subr.bf16.mxu0 %v694_v5 }
  0x24   : > { %661 = vmatpush3.bf16.msra.mxu0 %v694_v5 }
  0x27   : > { %663 = vmatmul.mubr.msk.bf16.vlgmr.msra.gmra.mrb[0].mxu0 %vm360_vm0, %v696_v6 }
  0xfa   : > { %v664_v9 = vpop.f32.mrb[0].mxu0  ;;  %427 = sbr.rel (%p620_p6) target bundleno = 273 (0x111), region = 44 }
  0xfb   : > { %v418_v11 = vadd.f32 %v664_v9, %v312_v7  ;;  %v401_v12 = vpop.f32.mrb[1].mxu0 }
  0xfc   : > { %v416_v14 = vadd.f32 %v401_v12, %v310_v8  ;;  %v665_v15 = vpop.f32.mrb[2].mxu0 }
  0xfd   : > { %422 = vst [vmem:[#allocation2 + $0x10] sm:$0xff] %v418_v11  ;;  %v419_v16 = vadd.f32 %v665_v15, %v313_v10  ;;  %v404_v17 = vpop.f32.mrb[3].mxu0 }
  0xfe   : > { %420 = vst [vmem:[#allocation2] sm:$0xff] %v416_v14  ;;  %v417_v18 = vadd.f32 %v404_v17, %v311_v13 }
  0xff   : > { %423 = vst [vmem:[#allocation2 + $0x18] sm:$0xff] %v419_v16 }
 0x100   : > { %421 = vst [vmem:[#allocation2 + $0x8] sm:$0xff] %v417_v18 }
 0x104   : > { %v430_v25 = vld [vmem:[#allocation2 + $0x10] sm:$0xff] }
 0x105   : > { %v428_v19 = vld [vmem:[#allocation2] sm:$0xff]  ;;  %v441_v27 = vmul.f32 %v621_v21, %v430_v25 }
 0x106   : > { %v439_v22 = vmul.f32 %v621_v21, %v428_v19  ;;  %v431_v26 = vld [vmem:[#allocation2 + $0x18] sm:$0xff] }
 0x107   : > { %v429_v20 = vld [vmem:[#allocation2 + $0x8] sm:$0xff]  ;;  %v442_v28 = vmul.f32 %v621_v21, %v431_v26  ;;  %v452_v31 = vadd.f32 %v622_v24, %v441_v27 }
 0x108   : > { %v440_v23 = vmul.f32 %v621_v21, %v429_v20  ;;  %v450_v29 = vadd.f32 %v622_v24, %v439_v22 }
 0x109   : > { %v453_v32 = vadd.f32 %v622_v24, %v442_v28  ;;  %v456_v35 = vmax.f32 %v452_v31, 0.0 }
 0x10a   : > { %v451_v30 = vadd.f32 %v622_v24, %v440_v23  ;;  %v454_v33 = vmax.f32 %v450_v29, 0.0 }
 0x10b   : > { %v457_v36 = vmax.f32 %v453_v32, 0.0 }
 0x10c   : > { %v455_v34 = vmax.f32 %v451_v30, 0.0 }
 0x10d   : > { %v645_v38 = vpack.c.bf16 %v457_v36, %v456_v35 }
 0x10e   : > { %v640_v37 = vpack.c.bf16 %v455_v34, %v454_v33 }
 0x10f   : > { %647 = vst [vmem:[%s802_s4 + $0x8] sm:$0xff] %v645_v38  }
 0x110   : > { %641 = vst [vmem:[%s802_s4] sm:$0xff] %v640_v37  }
 0x111 PF: > { %s14_s17 = sadd.s32 1, %s719_s17   ;;  %s803_s15 = smov %s715_s16 }
 0x112   : > { %p11_p7 = scmp.ge.s32.totalorder %s14_s17, 11   ;;  %s804_s16 = smov %s806_s18 }
 0x114   :  { %13 = sbr.rel (!%p11_p7) target bundleno = 2 (0x2), region = 83 }

// kernel: ctr_predictor_forward.29
= control target key start
LH: loop header
LB: loop body
LE: loop exit
PB: predicated region body
PF: predicated region fallthrough
CT: control target
= control target key end

     0   :  { %vm76_vm0 = vcmask 523264   ;;  %s301_s1 = inlined_call_operand.vmem [shape: bf16[1,64,128], index: 1, kind: input, shape index: {}]   ;;  %s302_s0 = inlined_call_operand.vmem [shape: bf16[1,32,64], index: 0, kind: input, shape index: {}]   ;;  %s303_s2 = inlined_call_operand.vmem [shape: f32[1,128], index: 2, kind: input, shape index: {}]   ;;  %s304_s3 = inlined_call_operand.vmem [shape: f32[1,128], index: 3, kind: input, shape index: {}]   ;;  %s305_s4 = inlined_call_operand.vmem [shape: bf16[32,128], index: 4, kind: output, shape index: {}]  }
   0x1   :  { %v240_v0 = vld [vmem:[%s301_s1] sm:$0xff]   ;;  %v241_v1 = vld [vmem:[%s301_s1 + $0x8] sm:$0xff]   ;;  %v242_v2 = vld [vmem:[%s301_s1 + $0x10] sm:$0xff]  }
   0x2   :  { %228 = vmatprep.subr.bf16.mxu0 %v240_v0  ;;  %v244_v3 = vld [vmem:[%s302_s0] sm:$0xff]   ;;  %v243_v4 = vld [vmem:[%s301_s1 + $0x18] sm:$0xff]   ;;  %v245_v5 = vld [vmem:[%s302_s0 + $0x8] sm:$0xff]  }
   0x3   :  { %229 = vmatpush3.bf16.msra.mxu0 %v240_v0  ;;  %236 = vmatprep.mubr.msk.bf16.mxu0 %vm76_vm0, %v244_v3  ;;  %v201_v6 = vld [vmem:[%s303_s2] ss:$0 sm:$0xff] }
   0x4   :  { %230 = vmatprep.subr.bf16.mxu0 %v241_v1  ;;  %v202_v10 = vld [vmem:[%s304_s3] ss:$0 sm:$0xff] }
   0x7   :  { %231 = vmatpush3.bf16.msra.mxu0 %v241_v1 }
   0x8   :  { %232 = vmatprep.subr.bf16.mxu0 %v242_v2 }
   0xb   :  { %233 = vmatpush3.bf16.msra.mxu0 %v242_v2 }
   0xc   :  { %234 = vmatprep.subr.bf16.mxu0 %v243_v4 }
   0xf   :  { %235 = vmatpush3.bf16.msra.mxu0 %v243_v4 }
  0x12   :  { %237 = vmatmul.mubr.msk.bf16.vlgmr.msra.gmra.mrb[0].mxu0 %vm76_vm0, %v245_v5 }
  0xe5   :  { %v238_v7 = vpop.f32.mrb[0].mxu0 }
  0xe6   :  { %v156_v8 = vmul.f32 %v238_v7, %v201_v6  ;;  %v117_v9 = vpop.f32.mrb[1].mxu0 }
  0xe7   :  { %v154_v11 = vmul.f32 %v201_v6, %v117_v9  ;;  %v239_v12 = vpop.f32.mrb[2].mxu0 }
  0xe8   :  { %v157_v13 = vmul.f32 %v239_v12, %v201_v6  ;;  %v120_v14 = vpop.f32.mrb[3].mxu0  ;;  %v167_v16 = vadd.f32 %v202_v10, %v156_v8 }
  0xe9   :  { %v155_v15 = vmul.f32 %v201_v6, %v120_v14  ;;  %v165_v18 = vadd.f32 %v202_v10, %v154_v11 }
  0xea   :  { %v168_v17 = vadd.f32 %v202_v10, %v157_v13 }
  0xeb   :  { %v166_v19 = vadd.f32 %v202_v10, %v155_v15 }
  0xec   :  { %v219_v20 = vpack.c.bf16 %v168_v17, %v167_v16 }
  0xed   :  { %v214_v21 = vpack.c.bf16 %v166_v19, %v165_v18 }
  0xee   :  { %221 = vst [vmem:[%s305_s4 + $0x8] sm:$0xff] %v219_v20  }
  0xef   :  { %215 = vst [vmem:[%s305_s4] sm:$0xff] %v214_v21  }

// kernel: ctr_predictor_forward.31
= control target key start
LH: loop header
LB: loop body
LE: loop exit
PB: predicated region body
PF: predicated region fallthrough
CT: control target
= control target key end

     0   :  { %s792_s15 = smov 0   ;;  %s794_s16 = smov 0   ;;  %s857_s0 = inlined_call_operand.vmem [shape: bf16[9,32,128], index: 0, kind: input, shape index: {}]   ;;  %s858_s1 = inlined_call_operand.vmem [shape: bf16[9,128,128], index: 1, kind: input, shape index: {}]   ;;  %s859_s2 = inlined_call_operand.vmem [shape: f32[1,128], index: 2, kind: input, shape index: {}]   ;;  %s860_s3 = inlined_call_operand.vmem [shape: f32[1,128], index: 3, kind: input, shape index: {}]   ;;  %s861_s4 = inlined_call_operand.vmem [shape: bf16[32,128], index: 4, kind: output, shape index: {}]  }
   0x1   :  { %s796_s17 = smov 0  }
   0x2 LB: > { %s26_s18 = sadd.s32 1, %s760_s16  ;;  %p633_p0 = scmp.ge.s32.totalorder %s764_s17, 1  ;;  %s764_s17 = sphi %s796_s17, %s14_s17   ;;  %s760_s16 = sphi %s794_s16, %s863_s16   ;;  %s756_s15 = sphi %s792_s15, %s862_s15  }
   0x3   : > { %p27_p1 = scmp.ge.s32.totalorder %s26_s18, 9  ;;  %p221_p2 = scmp.lt.s32.totalorder %s764_s17, 10 }
   0x5   : > { %s865_s18 = smov (%p27_p1, %s26_s18), 0  ;;  %p222_p3 = pnand %p633_p0, %p221_p2 }
   0x6   : > { %p269_p4 = scmp.lt.s32.totalorder (!%p222_p3), %s756_s15, 8  ;;  %p638_p5 = scmp.ne.s32.totalorder (!%p222_p3), %s756_s15, 0 }
   0x7   : > { %225 = sbr.rel (%p222_p3) target bundleno = 289 (0x121), region = 36 }
   0xe   : > { %s270_s19 = scalar_select %p269_p4, %s756_s15, 8 }
   0xf   : > { %305 = sbr.rel (%p638_p5) target bundleno = 22 (0x16), region = 40  ;;  %v766_v0 = vmov (!%p638_p5), 0.0  }
  0x10   : > { %s660_s20 = sshll.u32 %s270_s19, 4  ;;  %s661_s21 = sshll.u32 %s270_s19, 6  ;;  %306 = vst [vmem:[#allocation2] sm:$0xff] (!%p638_p5), %v766_v0  ;;  %307 = vst [vmem:[#allocation2 + $0x8] sm:$0xff] (!%p638_p5), %v766_v0 }
  0x11   : > { %s817_s24 = scalar_lea.vmem %s857_s0, %s660_s20  ;;  %s822_s27 = scalar_lea.vmem %s858_s1, %s661_s21  ;;  %308 = vst [vmem:[#allocation2 + $0x10] sm:$0xff] (!%p638_p5), %v766_v0  ;;  %309 = vst [vmem:[#allocation2 + $0x18] sm:$0xff] (!%p638_p5), %v766_v0 }
  0x16 PF: > { %v732_v1 = vld [vmem:[%s822_s27] sm:$0xff]   ;;  %v733_v2 = vld [vmem:[%s822_s27 + $0x8] sm:$0xff]   ;;  %v734_v3 = vld [vmem:[%s822_s27 + $0x10] sm:$0xff]   ;;  %p649_p6 = scmp.ne.s32.totalorder %s756_s15, 8 }
  0x17   : > { %687 = vmatprep.subr.bf16.mxu0 %v732_v1  ;;  %v735_v4 = vld [vmem:[%s822_s27 + $0x18] sm:$0xff]   ;;  %v740_v5 = vld [vmem:[%s817_s24] sm:$0xff]   ;;  %v737_v7 = vld [vmem:[%s822_s27 + $0x28] sm:$0xff]  }
  0x18   : > { %688 = vmatpush3.bf16.msra.mxu0 %v732_v1  ;;  %703 = vmatprep.mubr.bf16.mxu0 %v740_v5  ;;  %v736_v6 = vld [vmem:[%s822_s27 + $0x20] sm:$0xff]   ;;  %v738_v8 = vld [vmem:[%s822_s27 + $0x30] sm:$0xff]   ;;  %v739_v9 = vld [vmem:[%s822_s27 + $0x38] sm:$0xff]  }
  0x19   : > { %689 = vmatprep.subr.bf16.mxu0 %v733_v2  ;;  %v741_v10 = vld [vmem:[%s817_s24 + $0x8] sm:$0xff]   ;;  %v312_v11 = vld [vmem:[#allocation2 + $0x10] sm:$0xff]  ;;  %v310_v12 = vld [vmem:[#allocation2] sm:$0xff] }
  0x1a   : > { %v313_v14 = vld [vmem:[#allocation2 + $0x18] sm:$0xff]  ;;  %v311_v17 = vld [vmem:[#allocation2 + $0x8] sm:$0xff]  ;;  %v650_v25 = vld [vmem:[%s859_s2] ss:$0 sm:$0xff] (!%p649_p6) }
  0x1b   : > { %v651_v28 = vld [vmem:[%s860_s3] ss:$0 sm:$0xff] (!%p649_p6) }
  0x1c   : > { %690 = vmatpush3.bf16.msra.mxu0 %v733_v2 }
  0x1d   : > { %691 = vmatprep.subr.bf16.mxu0 %v734_v3 }
  0x20   : > { %692 = vmatpush3.bf16.msra.mxu0 %v734_v3 }
  0x21   : > { %693 = vmatprep.subr.bf16.mxu0 %v735_v4 }
  0x24   : > { %694 = vmatpush3.bf16.msra.mxu0 %v735_v4 }
  0x25   : > { %695 = vmatprep.subr.bf16.mxu0 %v736_v6 }
  0x28   : > { %696 = vmatpush3.bf16.msra.mxu0 %v736_v6 }
  0x29   : > { %697 = vmatprep.subr.bf16.mxu0 %v737_v7 }
  0x2c   : > { %698 = vmatpush3.bf16.msra.mxu0 %v737_v7 }
  0x2d   : > { %699 = vmatprep.subr.bf16.mxu0 %v738_v8 }
  0x30   : > { %700 = vmatpush3.bf16.msra.mxu0 %v738_v8 }
  0x31   : > { %701 = vmatprep.subr.bf16.mxu0 %v739_v9 }
  0x34   : > { %702 = vmatpush3.bf16.msra.mxu0 %v739_v9 }
  0x37   : > { %704 = vmatmul.mubr.bf16.vlgmr.msra.gmra.mrb[0].mxu0 %v741_v10 }
 0x10a   : > { %v705_v13 = vpop.f32.mrb[0].mxu0  ;;  %454 = sbr.rel (%p649_p6) target bundleno = 289 (0x121), region = 44 }
 0x10b   : > { %v445_v15 = vadd.f32 %v705_v13, %v312_v11  ;;  %v428_v16 = vpop.f32.mrb[1].mxu0 }
 0x10c   : > { %v443_v18 = vadd.f32 %v428_v16, %v310_v12  ;;  %v706_v19 = vpop.f32.mrb[2].mxu0 }
 0x10d   : > { %449 = vst [vmem:[#allocation2 + $0x10] sm:$0xff] %v445_v15  ;;  %v446_v20 = vadd.f32 %v706_v19, %v313_v14  ;;  %v431_v21 = vpop.f32.mrb[3].mxu0 }
 0x10e   : > { %447 = vst [vmem:[#allocation2] sm:$0xff] %v443_v18  ;;  %v444_v22 = vadd.f32 %v431_v21, %v311_v17 }
 0x10f   : > { %450 = vst [vmem:[#allocation2 + $0x18] sm:$0xff] %v446_v20 }
 0x110   : > { %448 = vst [vmem:[#allocation2 + $0x8] sm:$0xff] %v444_v22 }
 0x114   : > { %v457_v29 = vld [vmem:[#allocation2 + $0x10] sm:$0xff] }
 0x115   : > { %v455_v23 = vld [vmem:[#allocation2] sm:$0xff]  ;;  %v468_v31 = vmul.f32 %v650_v25, %v457_v29 }
 0x116   : > { %v466_v26 = vmul.f32 %v650_v25, %v455_v23  ;;  %v458_v30 = vld [vmem:[#allocation2 + $0x18] sm:$0xff] }
 0x117   : > { %v456_v24 = vld [vmem:[#allocation2 + $0x8] sm:$0xff]  ;;  %v469_v32 = vmul.f32 %v650_v25, %v458_v30  ;;  %v479_v35 = vadd.f32 %v651_v28, %v468_v31 }
 0x118   : > { %v467_v27 = vmul.f32 %v650_v25, %v456_v24  ;;  %v477_v33 = vadd.f32 %v651_v28, %v466_v26 }
 0x119   : > { %v480_v36 = vadd.f32 %v651_v28, %v469_v32  ;;  %v483_v39 = vmax.f32 %v479_v35, 0.0 }
 0x11a   : > { %v478_v34 = vadd.f32 %v651_v28, %v467_v27  ;;  %v481_v37 = vmax.f32 %v477_v33, 0.0 }
 0x11b   : > { %v484_v40 = vmax.f32 %v480_v36, 0.0 }
 0x11c   : > { %v482_v38 = vmax.f32 %v478_v34, 0.0 }
 0x11d   : > { %v674_v42 = vpack.c.bf16 %v484_v40, %v483_v39 }
 0x11e   : > { %v669_v41 = vpack.c.bf16 %v482_v38, %v481_v37 }
 0x11f   : > { %676 = vst [vmem:[%s861_s4 + $0x8] sm:$0xff] %v674_v42  }
 0x120   : > { %670 = vst [vmem:[%s861_s4] sm:$0xff] %v669_v41  }
 0x121 PF: > { %s14_s17 = sadd.s32 1, %s764_s17   ;;  %s862_s15 = smov %s760_s16 }
 0x122   : > { %p11_p7 = scmp.ge.s32.totalorder %s14_s17, 11   ;;  %s863_s16 = smov %s865_s18 }
 0x124   :  { %13 = sbr.rel (!%p11_p7) target bundleno = 2 (0x2), region = 83 }

// kernel: ctr_predictor_forward.30
= control target key start
LH: loop header
LB: loop body
LE: loop exit
PB: predicated region body
PF: predicated region fallthrough
CT: control target
= control target key end

     0   :  { %s897_s18 = smov 0   ;;  %s899_s19 = smov 0   ;;  %s968_s0 = inlined_call_operand.vmem [shape: bf16[9,32,128], index: 0, kind: input, shape index: {}]   ;;  %s969_s1 = inlined_call_operand.vmem [shape: bf16[9,128,128], index: 1, kind: input, shape index: {}]   ;;  %s970_s2 = inlined_call_operand.vmem [shape: f32[1,128], index: 2, kind: input, shape index: {}]   ;;  %s971_s3 = inlined_call_operand.vmem [shape: f32[1,128], index: 3, kind: input, shape index: {}]   ;;  %s972_s4 = inlined_call_operand.vmem [shape: bf16[32,128], index: 4, kind: input, shape index: {}]   ;;  %s973_s5 = inlined_call_operand.vmem [shape: bf16[32,128], index: 5, kind: output, shape index: {}]  }
   0x1   :  { %s901_s20 = smov 0  }
   0x2 LB: > { %s27_s21 = sadd.s32 1, %s860_s19  ;;  %p724_p0 = scmp.ge.s32.totalorder %s864_s20, 1  ;;  %s864_s20 = sphi %s901_s20, %s15_s20   ;;  %s860_s19 = sphi %s899_s19, %s975_s19   ;;  %s856_s18 = sphi %s897_s18, %s974_s18  }
   0x3   : > { %p28_p1 = scmp.ge.s32.totalorder %s27_s21, 9  ;;  %p262_p2 = scmp.lt.s32.totalorder %s864_s20, 10 }
   0x5   : > { %s977_s21 = smov (%p28_p1, %s27_s21), 0  ;;  %p263_p3 = pnand %p724_p0, %p262_p2 }
   0x6   : > { %p320_p4 = scmp.lt.s32.totalorder (!%p263_p3), %s856_s18, 8  ;;  %p729_p5 = scmp.ne.s32.totalorder (!%p263_p3), %s856_s18, 0 }
   0x7   : > { %266 = sbr.rel (%p263_p3) target bundleno = 291 (0x123), region = 40 }
   0xe   : > { %s321_s22 = scalar_select %p320_p4, %s856_s18, 8 }
   0xf   : > { %365 = sbr.rel (%p729_p5) target bundleno = 22 (0x16), region = 44  ;;  %v866_v0 = vmov (!%p729_p5), 0.0  }
  0x10   : > { %s751_s23 = sshll.u32 %s321_s22, 4  ;;  %s752_s24 = sshll.u32 %s321_s22, 6  ;;  %366 = vst [vmem:[#allocation2] sm:$0xff] (!%p729_p5), %v866_v0  ;;  %367 = vst [vmem:[#allocation2 + $0x8] sm:$0xff] (!%p729_p5), %v866_v0 }
  0x11   : > { %s922_s27 = scalar_lea.vmem %s968_s0, %s751_s23  ;;  %s927_s30 = scalar_lea.vmem %s969_s1, %s752_s24  ;;  %368 = vst [vmem:[#allocation2 + $0x10] sm:$0xff] (!%p729_p5), %v866_v0  ;;  %369 = vst [vmem:[#allocation2 + $0x18] sm:$0xff] (!%p729_p5), %v866_v0 }
  0x16 PF: > { %v832_v1 = vld [vmem:[%s927_s30] sm:$0xff]   ;;  %v833_v2 = vld [vmem:[%s927_s30 + $0x8] sm:$0xff]   ;;  %v834_v3 = vld [vmem:[%s927_s30 + $0x10] sm:$0xff]   ;;  %p740_p6 = scmp.ne.s32.totalorder %s856_s18, 8 }
  0x17   : > { %787 = vmatprep.subr.bf16.mxu0 %v832_v1  ;;  %v835_v4 = vld [vmem:[%s927_s30 + $0x18] sm:$0xff]   ;;  %v840_v5 = vld [vmem:[%s922_s27] sm:$0xff]   ;;  %v837_v7 = vld [vmem:[%s927_s30 + $0x28] sm:$0xff]  }
  0x18   : > { %788 = vmatpush3.bf16.msra.mxu0 %v832_v1  ;;  %803 = vmatprep.mubr.bf16.mxu0 %v840_v5  ;;  %v836_v6 = vld [vmem:[%s927_s30 + $0x20] sm:$0xff]   ;;  %v838_v8 = vld [vmem:[%s927_s30 + $0x30] sm:$0xff]   ;;  %v839_v9 = vld [vmem:[%s927_s30 + $0x38] sm:$0xff]  }
  0x19   : > { %789 = vmatprep.subr.bf16.mxu0 %v833_v2  ;;  %v841_v10 = vld [vmem:[%s922_s27 + $0x8] sm:$0xff]   ;;  %v372_v11 = vld [vmem:[#allocation2 + $0x10] sm:$0xff]  ;;  %v370_v12 = vld [vmem:[#allocation2] sm:$0xff] }
  0x1a   : > { %v373_v14 = vld [vmem:[#allocation2 + $0x18] sm:$0xff]  ;;  %v371_v17 = vld [vmem:[#allocation2 + $0x8] sm:$0xff]  ;;  %v741_v25 = vld [vmem:[%s970_s2] ss:$0 sm:$0xff] (!%p740_p6) }
  0x1b   : > { %v742_v28 = vld [vmem:[%s971_s3] ss:$0 sm:$0xff] (!%p740_p6)  ;;  %v775_v35 = vld [vmem:[%s972_s4 + $0x8] sm:$0xff] (!%p740_p6)  }
  0x1c   : > { %790 = vmatpush3.bf16.msra.mxu0 %v833_v2  ;;  %v758_v29 = vld [vmem:[%s972_s4] sm:$0xff] (!%p740_p6)   ;;  %v763_v39 = vunpack.c.l.bf16 (!%p740_p6), %v775_v35  ;;  %v764_v41 = vunpack.c.h.bf16 (!%p740_p6), %v775_v35 }
  0x1d   : > { %791 = vmatprep.subr.bf16.mxu0 %v834_v3  ;;  %v759_v31 = vunpack.c.l.bf16 (!%p740_p6), %v758_v29  ;;  %v760_v32 = vunpack.c.h.bf16 (!%p740_p6), %v758_v29 }
  0x20   : > { %792 = vmatpush3.bf16.msra.mxu0 %v834_v3 }
  0x21   : > { %793 = vmatprep.subr.bf16.mxu0 %v835_v4 }
  0x24   : > { %794 = vmatpush3.bf16.msra.mxu0 %v835_v4 }
  0x25   : > { %795 = vmatprep.subr.bf16.mxu0 %v836_v6 }
  0x28   : > { %796 = vmatpush3.bf16.msra.mxu0 %v836_v6 }
  0x29   : > { %797 = vmatprep.subr.bf16.mxu0 %v837_v7 }
  0x2c   : > { %798 = vmatpush3.bf16.msra.mxu0 %v837_v7 }
  0x2d   : > { %799 = vmatprep.subr.bf16.mxu0 %v838_v8 }
  0x30   : > { %800 = vmatpush3.bf16.msra.mxu0 %v838_v8 }
  0x31   : > { %801 = vmatprep.subr.bf16.mxu0 %v839_v9 }
  0x34   : > { %802 = vmatpush3.bf16.msra.mxu0 %v839_v9 }
  0x37   : > { %804 = vmatmul.mubr.bf16.vlgmr.msra.gmra.mrb[0].mxu0 %v841_v10 }
 0x10a   : > { %v805_v13 = vpop.f32.mrb[0].mxu0  ;;  %514 = sbr.rel (%p740_p6) target bundleno = 291 (0x123), region = 48 }
 0x10b   : > { %v505_v15 = vadd.f32 %v805_v13, %v372_v11  ;;  %v488_v16 = vpop.f32.mrb[1].mxu0 }
 0x10c   : > { %v503_v18 = vadd.f32 %v488_v16, %v370_v12  ;;  %v806_v19 = vpop.f32.mrb[2].mxu0 }
 0x10d   : > { %509 = vst [vmem:[#allocation2 + $0x10] sm:$0xff] %v505_v15  ;;  %v506_v20 = vadd.f32 %v806_v19, %v373_v14  ;;  %v491_v21 = vpop.f32.mrb[3].mxu0 }
 0x10e   : > { %507 = vst [vmem:[#allocation2] sm:$0xff] %v503_v18  ;;  %v504_v22 = vadd.f32 %v491_v21, %v371_v17 }
 0x10f   : > { %510 = vst [vmem:[#allocation2 + $0x18] sm:$0xff] %v506_v20 }
 0x110   : > { %508 = vst [vmem:[#allocation2 + $0x8] sm:$0xff] %v504_v22 }
 0x114   : > { %v517_v30 = vld [vmem:[#allocation2 + $0x10] sm:$0xff] }
 0x115   : > { %v515_v23 = vld [vmem:[#allocation2] sm:$0xff]  ;;  %v528_v34 = vmul.f32 %v741_v25, %v517_v30 }
 0x116   : > { %v526_v26 = vmul.f32 %v741_v25, %v515_v23  ;;  %v518_v33 = vld [vmem:[#allocation2 + $0x18] sm:$0xff] }
 0x117   : > { %v516_v24 = vld [vmem:[#allocation2 + $0x8] sm:$0xff]  ;;  %v529_v38 = vmul.f32 %v741_v25, %v518_v33  ;;  %v539_v40 = vadd.f32 %v742_v28, %v528_v34 }
 0x118   : > { %v527_v27 = vmul.f32 %v741_v25, %v516_v24  ;;  %v537_v36 = vadd.f32 %v742_v28, %v526_v26 }
 0x119   : > { %v540_v44 = vadd.f32 %v742_v28, %v529_v38  ;;  %v551_v45 = vadd.f32 %v763_v39, %v539_v40 }
 0x11a   : > { %v538_v37 = vadd.f32 %v742_v28, %v527_v27  ;;  %v549_v42 = vadd.f32 %v759_v31, %v537_v36 }
 0x11b   : > { %v552_v48 = vadd.f32 %v764_v41, %v540_v44  ;;  %v555_v49 = vmax.f32 %v551_v45, 0.0 }
 0x11c   : > { %v550_v43 = vadd.f32 %v760_v32, %v538_v37  ;;  %v553_v46 = vmax.f32 %v549_v42, 0.0 }
 0x11d   : > { %v556_v51 = vmax.f32 %v552_v48, 0.0 }
 0x11e   : > { %v554_v47 = vmax.f32 %v550_v43, 0.0 }
 0x11f   : > { %v773_v52 = vpack.c.bf16 %v556_v51, %v555_v49 }
 0x120   : > { %v768_v50 = vpack.c.bf16 %v554_v47, %v553_v46 }
 0x121   : > { %776 = vst [vmem:[%s973_s5 + $0x8] sm:$0xff] %v773_v52  }
 0x122   : > { %769 = vst [vmem:[%s973_s5] sm:$0xff] %v768_v50  }
 0x123 PF: > { %s15_s20 = sadd.s32 1, %s864_s20   ;;  %s974_s18 = smov %s860_s19 }
 0x124   : > { %p12_p7 = scmp.ge.s32.totalorder %s15_s20, 11   ;;  %s975_s19 = smov %s977_s21 }
 0x126   :  { %14 = sbr.rel (!%p12_p7) target bundleno = 2 (0x2), region = 90 }

// kernel: ctr_predictor_forward.33
= control target key start
LH: loop header
LB: loop body
LE: loop exit
PB: predicated region body
PF: predicated region fallthrough
CT: control target
= control target key end

     0   :  { %s853_s15 = smov 0   ;;  %s855_s16 = smov 0   ;;  %s994_s0 = inlined_call_operand.vmem [shape: bf16[9,8,128], index: 0, kind: input, shape index: {}]   ;;  %s995_s1 = inlined_call_operand.vmem [shape: bf16[9,128,256], index: 1, kind: input, shape index: {}]   ;;  %s996_s2 = inlined_call_operand.vmem [shape: f32[1,256], index: 2, kind: input, shape index: {}]   ;;  %s997_s3 = inlined_call_operand.vmem [shape: f32[1,256], index: 3, kind: input, shape index: {}]   ;;  %s998_s4 = inlined_call_operand.vmem [shape: bf16[8,256], index: 4, kind: output, shape index: {}]  }
   0x1   :  { %s857_s17 = smov 0   ;;  %s859_s18 = smov 0  }
   0x2   :  { %s861_s19 = smov 0   ;;  %s863_s20 = smov 0  }
   0x3   :  { %s865_s21 = smov 0  }
   0x4 LB: > { %s26_s22 = sadd.s32 1, %s815_s19  ;;  %s29_s23 = sadd.s32 1, %s819_s20  ;;  %s823_s21 = sphi %s865_s21, %s14_s21   ;;  %s819_s20 = sphi %s863_s20, %s1004_s20   ;;  %s815_s19 = sphi %s861_s19, %s1003_s19   ;;  %s811_s18 = sphi %s859_s18, %s1002_s18   ;;  %s807_s17 = sphi %s857_s17, %s1001_s17   ;;  %s803_s16 = sphi %s855_s16, %s1000_s16   ;;  %s799_s15 = sphi %s853_s15, %s999_s15  }
   0x5   : > { %p27_p0 = scmp.ge.s32.totalorder %s26_s22, 9  ;;  %p77_p1 = scmp.ne.s32.totalorder %s803_s16, %s799_s15 }
   0x6   : > { %p78_p2 = scmp.eq.s32.totalorder %s823_s21, 0  ;;  %s70_s27 = sadd.s32 1, %s803_s16 }
   0x7   : > { %s1006_s22 = smov (%p27_p0, %s26_s22), 0  ;;  %s1008_s23 = smov (!%p27_p0, %s29_s23), %s819_s20 }
   0x8   : > { %p79_p3 = por %p78_p2, %p77_p1  ;;  %p31_p4 = scmp.ge.s32.totalorder %s1008_s23, 2 }
   0x9   : > { %s65_s24 = ssub.s32 %s815_s19, %s1006_s22  ;;  %p651_p6 = scmp.ge.s32.totalorder %s823_s21, 18 }
   0xa   : > { %s1010_s23 = smov (%p31_p4, %s1008_s23), 0 }
   0xb   : > { %s66_s25 = ssub.s32 %s819_s20, %s1010_s23  ;;  %183 = sbr.rel (%p651_p6) target bundleno = 34 (0x22), region = 16 }
   0xc   : > { %s67_s26 = sor.u32 %s66_s25, %s65_s24 }
   0xd   : > { %p68_p5 = scmp.eq.s32.totalorder %s67_s26, 0 }
   0xf   : > { %s904_s28 = scalar_select %p68_p5, %s803_s16, %s70_s27  }
  0x12   : > { %196 = sbr.rel (!%p79_p3) target bundleno = 34 (0x22), region = 24  ;;  %s198_s29 = sand.u32 (%p79_p3), 1, %s803_s16  }
  0x13   : > { %s653_s30 = sshll.u32 (%p79_p3), %s815_s19, 5  ;;  %s652_s5 = sshll.u32 (%p79_p3), %s198_s29, 6 }
  0x14   : > { %s202_s6 = sadd.s32 (%p79_p3), %s819_s20, %s653_s30  ;;  %s200_s11 = scalar_lea.vmem (%p79_p3), [#allocation3], %s652_s5 }
  0x15   : > { %s654_s7 = sshll.u32 (%p79_p3), %s202_s6, 2 }
  0x16   : > { %s913_s10 = scalar_lea.vmem (%p79_p3), %s995_s1, %s654_s7 }
  0x17   : > { %v220_v0 = vld [vmem:[%s913_s10] sm:$0xf] (%p79_p3)  ;;  %v222_v1 = vld [vmem:[%s913_s10 + $0x8] sm:$0xf] (%p79_p3)  ;;  %v224_v2 = vld [vmem:[%s913_s10 + $0x10] sm:$0xf] (%p79_p3) }
  0x18   : > { %221 = vst [vmem:[%s200_s11] sm:$0xf] (%p79_p3), %v220_v0  ;;  %223 = vst [vmem:[%s200_s11 + $0x4] sm:$0xf] (%p79_p3), %v222_v1  ;;  %v226_v3 = vld [vmem:[%s913_s10 + $0x18] sm:$0xf] (%p79_p3) }
  0x19   : > { %225 = vst [vmem:[%s200_s11 + $0x8] sm:$0xf] %v224_v2  ;;  %v228_v4 = vld [vmem:[%s913_s10 + $0x20] sm:$0xf]  ;;  %v230_v5 = vld [vmem:[%s913_s10 + $0x28] sm:$0xf] }
  0x1a   : > { %227 = vst [vmem:[%s200_s11 + $0xc] sm:$0xf] %v226_v3  ;;  %229 = vst [vmem:[%s200_s11 + $0x10] sm:$0xf] %v228_v4  ;;  %v232_v6 = vld [vmem:[%s913_s10 + $0x30] sm:$0xf] }
  0x1b   : > { %231 = vst [vmem:[%s200_s11 + $0x14] sm:$0xf] %v230_v5  ;;  %v234_v7 = vld [vmem:[%s913_s10 + $0x38] sm:$0xf]  ;;  %v236_v8 = vld [vmem:[%s913_s10 + $0x40] sm:$0xf] }
  0x1c   : > { %233 = vst [vmem:[%s200_s11 + $0x18] sm:$0xf] %v232_v6  ;;  %235 = vst [vmem:[%s200_s11 + $0x1c] sm:$0xf] %v234_v7  ;;  %v238_v9 = vld [vmem:[%s913_s10 + $0x48] sm:$0xf] }
  0x1d   : > { %237 = vst [vmem:[%s200_s11 + $0x20] sm:$0xf] %v236_v8  ;;  %v240_v10 = vld [vmem:[%s913_s10 + $0x50] sm:$0xf]  ;;  %v242_v11 = vld [vmem:[%s913_s10 + $0x58] sm:$0xf] }
  0x1e   : > { %239 = vst [vmem:[%s200_s11 + $0x24] sm:$0xf] %v238_v9  ;;  %241 = vst [vmem:[%s200_s11 + $0x28] sm:$0xf] %v240_v10  ;;  %v244_v12 = vld [vmem:[%s913_s10 + $0x60] sm:$0xf] }
  0x1f   : > { %243 = vst [vmem:[%s200_s11 + $0x2c] sm:$0xf] %v242_v11  ;;  %v246_v13 = vld [vmem:[%s913_s10 + $0x68] sm:$0xf]  ;;  %v248_v14 = vld [vmem:[%s913_s10 + $0x70] sm:$0xf] }
  0x20   : > { %245 = vst [vmem:[%s200_s11 + $0x30] sm:$0xf] %v244_v12  ;;  %247 = vst [vmem:[%s200_s11 + $0x34] sm:$0xf] %v246_v13  ;;  %v250_v15 = vld [vmem:[%s913_s10 + $0x78] sm:$0xf] }
  0x21   : > { %249 = vst [vmem:[%s200_s11 + $0x38] sm:$0xf] %v248_v14  ;;  %251 = vst [vmem:[%s200_s11 + $0x3c] sm:$0xf] %v250_v15 }
  0x22 PF: > { %p655_p7 = scmp.ge.s32.totalorder %s823_s21, 1  ;;  %p317_p8 = scmp.lt.s32.totalorder %s823_s21, 19 }
  0x24   : > { %p318_p9 = pnand %p655_p7, %p317_p8 }
  0x25   : > { %s324_s12 = sand.u32 (!%p318_p9), 1, %s799_s15   ;;  %p365_p10 = scmp.lt.s32.totalorder (!%p318_p9), %s807_s17, 8 }
  0x26   : > { %321 = sbr.rel (%p318_p9) target bundleno = 317 (0x13d), region = 73  ;;  %s656_s13 = sshll.u32 (!%p318_p9), %s324_s12, 6 }
  0x27   : > { %p372_p11 = scmp.lt.s32.totalorder (!%p318_p9), %s811_s18, 1  ;;  %s326_s12 = scalar_lea.vmem (!%p318_p9), [#allocation3], %s656_s13 }
  0x28   : > { %p659_p12 = scmp.ne.s32.totalorder (!%p318_p9), %s807_s17, 0 }
  0x2d   : > { %s366_s14 = scalar_select %p365_p10, %s807_s17, 8 }
  0x2e   : > { %s1012_s18 = smov (!%p372_p11, %s811_s18), 1  ;;  %390 = sbr.rel (%p659_p12) target bundleno = 53 (0x35), region = 81 }
  0x2f   : > { %s657_s24 = sshll.u32 %s366_s14, 2  ;;  %s374_s5 = scalar_lea.vmem %s996_s2, %s1012_s18  ;;  %v825_v16 = vmov (!%p659_p12), 0.0  }
  0x30   : > { %s943_s27 = scalar_lea.vmem %s994_s0, %s657_s24  ;;  %s377_s7 = scalar_lea.vmem %s997_s3, %s1012_s18  ;;  %391 = vst [vmem:[#allocation2] sm:$0xff] (!%p659_p12), %v825_v16 }
  0x31   : > { %s658_s8 = sshll.u32 %s1012_s18, 2 }
  0x32   : > { %s957_s11 = scalar_lea.vmem %s998_s4, %s658_s8 }
  0x35 PF: > { %v761_v17 = vld [vmem:[%s326_s12] sm:$0xff]   ;;  %v826_v18 = vmov 0.0   ;;  %v762_v19 = vld [vmem:[%s326_s12 + $0x8] sm:$0xff]   ;;  %vm827_vm0 = vmmov 0   ;;  %v763_v20 = vld [vmem:[%s326_s12 + $0x10] sm:$0xff]   ;;  %p668_p13 = scmp.ne.s32.totalorder %s807_s17, 8 }
  0x36   : > { %682 = vmatprep.subr.bf16.mxu0 %v826_v18  ;;  %698 = vmatprep.mubr.msk.bf16.mxu0 %vm827_vm0, %v826_v18  ;;  %v764_v21 = vld [vmem:[%s326_s12 + $0x18] sm:$0xff]   ;;  %v765_v22 = vld [vmem:[%s326_s12 + $0x20] sm:$0xff]   ;;  %v766_v23 = vld [vmem:[%s326_s12 + $0x28] sm:$0xff]  }
  0x37   : > { %683 = vmatpush3.bf16.msra.mxu0 %v761_v17  ;;  %v767_v24 = vld [vmem:[%s326_s12 + $0x30] sm:$0xff]   ;;  %v768_v25 = vld [vmem:[%s326_s12 + $0x38] sm:$0xff]  }
  0x38   : > { %684 = vmatprep.subr.bf16.mxu0 %v826_v18  ;;  %v393_v26 = vld [vmem:[%s943_s27] sm:$0xf] }
  0x39   : > { %v392_v27 = vld [vmem:[#allocation2] sm:$0xff] }
  0x3a   : > { %v669_v34 = vld [vmem:[%s374_s5] ss:$0 sm:$0xff] (!%p668_p13) }
  0x3b   : > { %685 = vmatpush3.bf16.msra.mxu0 %v762_v19  ;;  %v670_v35 = vld [vmem:[%s377_s7] ss:$0 sm:$0xff] (!%p668_p13) }
  0x3c   : > { %686 = vmatprep.subr.bf16.mxu0 %v826_v18 }
  0x3f   : > { %687 = vmatpush3.bf16.msra.mxu0 %v763_v20 }
  0x40   : > { %688 = vmatprep.subr.bf16.mxu0 %v826_v18 }
  0x43   : > { %689 = vmatpush3.bf16.msra.mxu0 %v764_v21 }
  0x44   : > { %690 = vmatprep.subr.bf16.mxu0 %v826_v18 }
  0x47   : > { %691 = vmatpush3.bf16.msra.mxu0 %v765_v22 }
  0x48   : > { %692 = vmatprep.subr.bf16.mxu0 %v826_v18 }
  0x4b   : > { %693 = vmatpush3.bf16.msra.mxu0 %v766_v23 }
  0x4c   : > { %694 = vmatprep.subr.bf16.mxu0 %v826_v18 }
  0x4f   : > { %695 = vmatpush3.bf16.msra.mxu0 %v767_v24 }
  0x50   : > { %696 = vmatprep.subr.bf16.mxu0 %v826_v18 }
  0x53   : > { %697 = vmatpush3.bf16.msra.mxu0 %v768_v25 }
  0x56   : > { %699 = vmatmul.mubr.bf16.vlgmr.msra.gmra.mrb[0].mxu0 %v393_v26 }
 0x126   : > { %503 = sbr.rel (%p668_p13) target bundleno = 317 (0x13d), region = 85 }
 0x129   : > { %v492_v28 = vpop.f32.mrb[0].mxu0 }
 0x12a   : > { %v498_v29 = vadd.f32 %v492_v28, %v392_v27  ;;  %v700_v30 = vpop.f32.mrb[1].mxu0 }
 0x12b   : > { %v495_v31 = vpop.f32.mrb[2].mxu0 }
 0x12c   : > { %499 = vst [vmem:[#allocation2] sm:$0xff] %v498_v29  ;;  %v701_v32 = vpop.f32.mrb[3].mxu0 }
 0x133   : > { %v504_v33 = vld [vmem:[#allocation2] sm:$0xff] }
 0x134   : > { %v512_v36 = vmul.f32 %v669_v34, %v504_v33 }
 0x136   : > { %v520_v37 = vadd.f32 %v670_v35, %v512_v36 }
 0x138   : > { %v521_v38 = vmax.f32 %v520_v37, 0.0 }
 0x13a   : > { %v522_v39 = vpack.c.bf16 %v521_v38, %v521_v38 }
 0x13c   : > { %523 = vst [vmem:[%s957_s11] sm:$0xf] %v522_v39 }
 0x13d PF: > { %s14_s21 = sadd.s32 1, %s823_s21   ;;  %s999_s15 = smov %s803_s16 }
 0x13e   : > { %p11_p0 = scmp.ge.s32.totalorder %s14_s21, 20   ;;  %s1000_s16 = smov %s904_s28 }
 0x13f   : > { %s1001_s17 = smov %s815_s19  ;;  %s1002_s18 = smov %s819_s20 }
 0x140   : > { %s1003_s19 = smov %s1006_s22  ;;  %s1004_s20 = smov %s1010_s23 }
 0x141   :  { %13 = sbr.rel (!%p11_p0) target bundleno = 4 (0x4), region = 129 }

// kernel: ctr_predictor_forward.34
= control target key start
LH: loop header
LB: loop body
LE: loop exit
PB: predicated region body
PF: predicated region fallthrough
CT: control target
= control target key end

     0   :  { %s815_s15 = smov 0   ;;  %s817_s16 = smov 0   ;;  %s908_s0 = inlined_call_operand.vmem [shape: bf16[1,8,128], index: 0, kind: input, shape index: {}]   ;;  %s909_s1 = inlined_call_operand.vmem [shape: bf16[1,128,256], index: 1, kind: input, shape index: {}]   ;;  %s910_s2 = inlined_call_operand.vmem [shape: f32[1,256], index: 2, kind: input, shape index: {}]   ;;  %s911_s3 = inlined_call_operand.vmem [shape: f32[1,256], index: 3, kind: input, shape index: {}]   ;;  %s912_s4 = inlined_call_operand.vmem [shape: bf16[8,256], index: 4, kind: output, shape index: {}]  }
   0x1   :  { %s819_s17 = smov 0   ;;  %s821_s18 = smov 0  }
   0x2   :  { %s823_s19 = smov 0  }
   0x3 LB: > { %s29_s20 = sadd.s32 1, %s782_s18  ;;  %p77_p1 = scmp.ne.s32.totalorder %s774_s16, %s770_s15  ;;  %s786_s19 = sphi %s823_s19, %s14_s19   ;;  %s782_s18 = sphi %s821_s18, %s916_s18   ;;  %s778_s17 = sphi %s819_s17, %s915_s17   ;;  %s774_s16 = sphi %s817_s16, %s914_s16   ;;  %s770_s15 = sphi %s815_s15, %s913_s15  }
   0x4   : > { %p31_p0 = scmp.ge.s32.totalorder %s29_s20, 2  ;;  %p78_p2 = scmp.eq.s32.totalorder %s786_s19, 0 }
   0x5   : > { %s70_s22 = sadd.s32 1, %s774_s16  ;;  %p651_p5 = scmp.ge.s32.totalorder %s786_s19, 2 }
   0x6   : > { %s918_s20 = smov (%p31_p0, %s29_s20), 0  ;;  %p79_p3 = por %p78_p2, %p77_p1 }
   0x7   : > { %s66_s21 = ssub.s32 %s782_s18, %s918_s20  ;;  %193 = sbr.rel (%p651_p5) target bundleno = 28 (0x1c), region = 20 }
   0x8   : > { %p68_p4 = scmp.eq.s32.totalorder %s66_s21, 0 }
   0xa   : > { %s850_s23 = scalar_select %p68_p4, %s774_s16, %s70_s22  }
   0xe   : > { %196 = sbr.rel (!%p79_p3) target bundleno = 28 (0x1c), region = 24  ;;  %s198_s24 = sand.u32 (%p79_p3), 1, %s774_s16  }
   0xf   : > { %s653_s25 = sshll.u32 (%p79_p3), %s782_s18, 2  ;;  %s652_s26 = sshll.u32 (%p79_p3), %s198_s24, 6 }
  0x10   : > { %s858_s29 = scalar_lea.vmem (%p79_p3), %s909_s1, %s653_s25  ;;  %s200_s30 = scalar_lea.vmem (%p79_p3), [#allocation3], %s652_s26 }
  0x11   : > { %v220_v0 = vld [vmem:[%s858_s29] sm:$0xf] (%p79_p3)  ;;  %v222_v1 = vld [vmem:[%s858_s29 + $0x8] sm:$0xf] (%p79_p3)  ;;  %v224_v2 = vld [vmem:[%s858_s29 + $0x10] sm:$0xf] (%p79_p3) }
  0x12   : > { %221 = vst [vmem:[%s200_s30] sm:$0xf] (%p79_p3), %v220_v0  ;;  %223 = vst [vmem:[%s200_s30 + $0x4] sm:$0xf] (%p79_p3), %v222_v1  ;;  %v226_v3 = vld [vmem:[%s858_s29 + $0x18] sm:$0xf] (%p79_p3) }
  0x13   : > { %v228_v4 = vld [vmem:[%s858_s29 + $0x20] sm:$0xf] (%p79_p3)  ;;  %225 = vst [vmem:[%s200_s30 + $0x8] sm:$0xf] (%p79_p3), %v224_v2  ;;  %227 = vst [vmem:[%s200_s30 + $0xc] sm:$0xf] (%p79_p3), %v226_v3 }
  0x14   : > { %229 = vst [vmem:[%s200_s30 + $0x10] sm:$0xf] (%p79_p3), %v228_v4  ;;  %v230_v5 = vld [vmem:[%s858_s29 + $0x28] sm:$0xf] (%p79_p3)  ;;  %v232_v6 = vld [vmem:[%s858_s29 + $0x30] sm:$0xf] (%p79_p3) }
  0x15   : > { %v234_v7 = vld [vmem:[%s858_s29 + $0x38] sm:$0xf]  ;;  %231 = vst [vmem:[%s200_s30 + $0x14] sm:$0xf] %v230_v5  ;;  %233 = vst [vmem:[%s200_s30 + $0x18] sm:$0xf] %v232_v6 }
  0x16   : > { %235 = vst [vmem:[%s200_s30 + $0x1c] sm:$0xf] %v234_v7  ;;  %v236_v8 = vld [vmem:[%s858_s29 + $0x40] sm:$0xf]  ;;  %v238_v9 = vld [vmem:[%s858_s29 + $0x48] sm:$0xf] }
  0x17   : > { %v240_v10 = vld [vmem:[%s858_s29 + $0x50] sm:$0xf]  ;;  %237 = vst [vmem:[%s200_s30 + $0x20] sm:$0xf] %v236_v8  ;;  %239 = vst [vmem:[%s200_s30 + $0x24] sm:$0xf] %v238_v9 }
  0x18   : > { %241 = vst [vmem:[%s200_s30 + $0x28] sm:$0xf] %v240_v10  ;;  %v242_v11 = vld [vmem:[%s858_s29 + $0x58] sm:$0xf]  ;;  %v244_v12 = vld [vmem:[%s858_s29 + $0x60] sm:$0xf] }
  0x19   : > { %v246_v13 = vld [vmem:[%s858_s29 + $0x68] sm:$0xf]  ;;  %243 = vst [vmem:[%s200_s30 + $0x2c] sm:$0xf] %v242_v11  ;;  %245 = vst [vmem:[%s200_s30 + $0x30] sm:$0xf] %v244_v12 }
  0x1a   : > { %247 = vst [vmem:[%s200_s30 + $0x34] sm:$0xf] %v246_v13  ;;  %v248_v14 = vld [vmem:[%s858_s29 + $0x70] sm:$0xf]  ;;  %v250_v15 = vld [vmem:[%s858_s29 + $0x78] sm:$0xf] }
  0x1b   : > { %249 = vst [vmem:[%s200_s30 + $0x38] sm:$0xf] %v248_v14  ;;  %251 = vst [vmem:[%s200_s30 + $0x3c] sm:$0xf] %v250_v15 }
  0x1c PF: > { %p654_p6 = scmp.ge.s32.totalorder %s786_s19, 1  ;;  %p317_p7 = scmp.lt.s32.totalorder %s786_s19, 3 }
  0x1e   : > { %p318_p8 = pnand %p654_p6, %p317_p7 }
  0x1f   : > { %s324_s5 = sand.u32 (!%p318_p8), 1, %s770_s15   ;;  %v788_v16 = vmov (!%p318_p8), 0.0   ;;  %vm789_vm0 = vmmov (!%p318_p8), 0   ;;  %v393_v25 = vld [vmem:[%s908_s0] sm:$0xf] (!%p318_p8)  ;;  %p372_p9 = scmp.lt.s32.totalorder (!%p318_p8), %s778_s17, 1 }
  0x20   : > { %321 = sbr.rel (%p318_p8) target bundleno = 285 (0x11d), region = 73  ;;  %678 = vmatprep.subr.bf16.mxu0 (!%p318_p8), %v788_v16  ;;  %s655_s6 = sshll.u32 (!%p318_p8), %s324_s5, 6  ;;  %694 = vmatprep.mubr.msk.bf16.mxu0 (!%p318_p8), %vm789_vm0, %v788_v16 }
  0x21   : > { %s326_s7 = scalar_lea.vmem (!%p318_p8), [#allocation3], %s655_s6 }
  0x22   : > { %v740_v17 = vld [vmem:[%s326_s7] sm:$0xff] (!%p318_p8)   ;;  %v741_v18 = vld [vmem:[%s326_s7 + $0x8] sm:$0xff] (!%p318_p8)   ;;  %v742_v19 = vld [vmem:[%s326_s7 + $0x10] sm:$0xff] (!%p318_p8)  }
  0x23   : > { %679 = vmatpush3.bf16.msra.mxu0 (!%p318_p8), %v740_v17  ;;  %v743_v20 = vld [vmem:[%s326_s7 + $0x18] sm:$0xff] (!%p318_p8)   ;;  %v744_v21 = vld [vmem:[%s326_s7 + $0x20] sm:$0xff] (!%p318_p8)   ;;  %v745_v22 = vld [vmem:[%s326_s7 + $0x28] sm:$0xff] (!%p318_p8)  }
  0x24   : > { %680 = vmatprep.subr.bf16.mxu0 (!%p318_p8), %v788_v16  ;;  %v746_v23 = vld [vmem:[%s326_s7 + $0x30] sm:$0xff] (!%p318_p8)   ;;  %v747_v24 = vld [vmem:[%s326_s7 + $0x38] sm:$0xff] (!%p318_p8)  }
  0x27   : > { %681 = vmatpush3.bf16.msra.mxu0 %v741_v18  ;;  %s920_s17 = smov (!%p372_p9, %s778_s17), 1 }
  0x28   : > { %682 = vmatprep.subr.bf16.mxu0 %v788_v16  ;;  %s374_s12 = scalar_lea.vmem %s910_s2, %s920_s17  ;;  %s377_s15 = scalar_lea.vmem %s911_s3, %s920_s17 }
  0x29   : > { %v665_v26 = vld [vmem:[%s374_s12] ss:$0 sm:$0xff]  ;;  %s656_s21 = sshll.u32 %s920_s17, 2 }
  0x2a   : > { %v666_v28 = vld [vmem:[%s377_s15] ss:$0 sm:$0xff]  ;;  %s385_s25 = scalar_lea.vmem %s912_s4, %s656_s21 }
  0x2b   : > { %683 = vmatpush3.bf16.msra.mxu0 %v742_v19 }
  0x2c   : > { %684 = vmatprep.subr.bf16.mxu0 %v788_v16 }
  0x2f   : > { %685 = vmatpush3.bf16.msra.mxu0 %v743_v20 }
  0x30   : > { %686 = vmatprep.subr.bf16.mxu0 %v788_v16 }
  0x33   : > { %687 = vmatpush3.bf16.msra.mxu0 %v744_v21 }
  0x34   : > { %688 = vmatprep.subr.bf16.mxu0 %v788_v16 }
  0x37   : > { %689 = vmatpush3.bf16.msra.mxu0 %v745_v22 }
  0x38   : > { %690 = vmatprep.subr.bf16.mxu0 %v788_v16 }
  0x3b   : > { %691 = vmatpush3.bf16.msra.mxu0 %v746_v23 }
  0x3c   : > { %692 = vmatprep.subr.bf16.mxu0 %v788_v16 }
  0x3f   : > { %693 = vmatpush3.bf16.msra.mxu0 %v747_v24 }
  0x42   : > { %695 = vmatmul.mubr.bf16.vlgmr.msra.gmra.mrb[0].mxu0 %v393_v25 }
 0x115   : > { %v492_v27 = vpop.f32.mrb[0].mxu0 }
 0x116   : > { %v511_v29 = vmul.f32 %v665_v26, %v492_v27  ;;  %v696_v30 = vpop.f32.mrb[1].mxu0 }
 0x117   : > { %v495_v31 = vpop.f32.mrb[2].mxu0 }
 0x118   : > { %v519_v32 = vadd.f32 %v666_v28, %v511_v29  ;;  %v697_v33 = vpop.f32.mrb[3].mxu0 }
 0x11a   : > { %v520_v34 = vpack.c.bf16 %v519_v32, %v519_v32 }
 0x11c   : > { %521 = vst [vmem:[%s385_s25] sm:$0xf] %v520_v34 }
 0x11d PF: > { %s14_s19 = sadd.s32 1, %s786_s19   ;;  %s913_s15 = smov %s774_s16 }
 0x11e   : > { %p11_p10 = scmp.ge.s32.totalorder %s14_s19, 4   ;;  %s914_s16 = smov %s850_s23 }
 0x11f   : > { %s915_s17 = smov %s782_s18  ;;  %s916_s18 = smov %s918_s20 }
 0x120   :  { %13 = sbr.rel (!%p11_p10) target bundleno = 3 (0x3), region = 129 }

// kernel: ctr_predictor_forward.35
= control target key start
LH: loop header
LB: loop body
LE: loop exit
PB: predicated region body
PF: predicated region fallthrough
CT: control target
= control target key end

     0   :  { %s1311_s0 = inlined_call_operand.vmem [shape: bf16[9,8,256], index: 0, kind: input, shape index: {}]   ;;  %s1312_s1 = inlined_call_operand.vmem [shape: bf16[9,256,256], index: 1, kind: input, shape index: {}]   ;;  %s1313_s2 = inlined_call_operand.vmem [shape: f32[1,256], index: 2, kind: input, shape index: {}]   ;;  %s1314_s3 = inlined_call_operand.vmem [shape: f32[1,256], index: 3, kind: input, shape index: {}]   ;;  %s1315_s4 = inlined_call_operand.vmem [shape: bf16[8,256], index: 4, kind: input, shape index: {}]   ;;  %s1316_s5 = inlined_call_operand.vmem [shape: bf16[8,256], index: 5, kind: output, shape index: {}]  }
   0x1   :  { %1317 = sst [smem:[#allocation4_spill]] %s1312_s1 }
   0x2   :  { %s1096_s18 = smov 0   ;;  %s1098_s19 = smov 0  }
   0x3   :  { %s1100_s20 = smov 0   ;;  %s1102_s21 = smov 0  }
   0x4   :  { %s1104_s22 = smov 0   ;;  %s1106_s23 = smov 0  }
   0x5   :  { %s1108_s24 = smov 0  }
   0x6 LB: > { %s27_s25 = sadd.s32 1, %s1055_s22  ;;  %s30_s26 = sadd.s32 1, %s1059_s23  ;;  %s1063_s24 = sphi %s1108_s24, %s15_s24   ;;  %s1059_s23 = sphi %s1106_s23, %s1324_s23   ;;  %s1055_s22 = sphi %s1104_s22, %s1323_s22   ;;  %s1051_s21 = sphi %s1102_s21, %s1322_s21   ;;  %s1047_s20 = sphi %s1100_s20, %s1321_s20   ;;  %s1043_s19 = sphi %s1098_s19, %s1320_s19   ;;  %s1039_s18 = sphi %s1096_s18, %s1319_s18  }
   0x7   : > { %p28_p0 = scmp.ge.s32.totalorder %s27_s25, 9  ;;  %p78_p1 = scmp.ne.s32.totalorder %s1043_s19, %s1039_s18 }
   0x8   : > { %p79_p2 = scmp.eq.s32.totalorder %s1063_s24, 0  ;;  %s71_s30 = sadd.s32 1, %s1043_s19 }
   0x9   : > { %s1326_s25 = smov (%p28_p0, %s27_s25), 0  ;;  %s1328_s26 = smov (!%p28_p0, %s30_s26), %s1059_s23 }
   0xa   : > { %p80_p3 = por %p79_p2, %p78_p1  ;;  %p32_p4 = scmp.ge.s32.totalorder %s1328_s26, 2 }
   0xb   : > { %s66_s27 = ssub.s32 %s1055_s22, %s1326_s25  ;;  %p877_p6 = scmp.ge.s32.totalorder %s1063_s24, 18 }
   0xc   : > { %s1330_s26 = smov (%p32_p4, %s1328_s26), 0 }
   0xd   : > { %s67_s28 = ssub.s32 %s1059_s23, %s1330_s26  ;;  %212 = sbr.rel (%p877_p6) target bundleno = 51 (0x33), region = 16 }
   0xe   : > { %s68_s29 = sor.u32 %s67_s28, %s66_s27 }
   0xf   : > { %p69_p5 = scmp.eq.s32.totalorder %s68_s29, 0 }
  0x11   : > { %s1147_s6 = scalar_select %p69_p5, %s1043_s19, %s71_s30  }
  0x14   : > { %227 = sbr.rel (!%p80_p3) target bundleno = 51 (0x33), region = 24  ;;  %s229_s7 = sand.u32 (%p80_p3), 1, %s1043_s19  }
  0x15   : > { %s879_s8 = sshll.u32 (%p80_p3), %s1055_s22, 6  ;;  %s878_s9 = sshll.u32 (%p80_p3), %s229_s7, 7 }
  0x16   : > { %s233_s10 = sadd.s32 (%p80_p3), %s1059_s23, %s879_s8  ;;  %s1318_s1 = sld [smem:[#allocation4_spill]] (%p80_p3) }
  0x17   : > { %s880_s11 = sshll.u32 (%p80_p3), %s233_s10, 2  ;;  %s1161_s15 = scalar_lea.vmem (%p80_p3), [#allocation3], %s878_s9 }
  0x1c   : > { %s1156_s14 = scalar_lea.vmem %s1318_s1, %s880_s11 }
  0x1d   : > { %v251_v0 = vld [vmem:[%s1156_s14] sm:$0xf]  ;;  %v253_v1 = vld [vmem:[%s1156_s14 + $0x8] sm:$0xf]  ;;  %v255_v2 = vld [vmem:[%s1156_s14 + $0x10] sm:$0xf] }
  0x1e   : > { %252 = vst [vmem:[%s1161_s15] sm:$0xf] %v251_v0  ;;  %254 = vst [vmem:[%s1161_s15 + $0x4] sm:$0xf] %v253_v1  ;;  %v257_v3 = vld [vmem:[%s1156_s14 + $0x18] sm:$0xf] }
  0x1f   : > { %256 = vst [vmem:[%s1161_s15 + $0x8] sm:$0xf] %v255_v2  ;;  %v259_v4 = vld [vmem:[%s1156_s14 + $0x20] sm:$0xf]  ;;  %v261_v5 = vld [vmem:[%s1156_s14 + $0x28] sm:$0xf] }
  0x20   : > { %258 = vst [vmem:[%s1161_s15 + $0xc] sm:$0xf] %v257_v3  ;;  %260 = vst [vmem:[%s1161_s15 + $0x10] sm:$0xf] %v259_v4  ;;  %v263_v6 = vld [vmem:[%s1156_s14 + $0x30] sm:$0xf] }
  0x21   : > { %262 = vst [vmem:[%s1161_s15 + $0x14] sm:$0xf] %v261_v5  ;;  %v265_v7 = vld [vmem:[%s1156_s14 + $0x38] sm:$0xf]  ;;  %v267_v8 = vld [vmem:[%s1156_s14 + $0x40] sm:$0xf] }
  0x22   : > { %264 = vst [vmem:[%s1161_s15 + $0x18] sm:$0xf] %v263_v6  ;;  %266 = vst [vmem:[%s1161_s15 + $0x1c] sm:$0xf] %v265_v7  ;;  %v269_v9 = vld [vmem:[%s1156_s14 + $0x48] sm:$0xf] }
  0x23   : > { %268 = vst [vmem:[%s1161_s15 + $0x20] sm:$0xf] %v267_v8  ;;  %v271_v10 = vld [vmem:[%s1156_s14 + $0x50] sm:$0xf]  ;;  %v273_v11 = vld [vmem:[%s1156_s14 + $0x58] sm:$0xf] }
  0x24   : > { %270 = vst [vmem:[%s1161_s15 + $0x24] sm:$0xf] %v269_v9  ;;  %272 = vst [vmem:[%s1161_s15 + $0x28] sm:$0xf] %v271_v10  ;;  %v275_v12 = vld [vmem:[%s1156_s14 + $0x60] sm:$0xf] }
  0x25   : > { %274 = vst [vmem:[%s1161_s15 + $0x2c] sm:$0xf] %v273_v11  ;;  %v277_v13 = vld [vmem:[%s1156_s14 + $0x68] sm:$0xf]  ;;  %v279_v14 = vld [vmem:[%s1156_s14 + $0x70] sm:$0xf] }
  0x26   : > { %276 = vst [vmem:[%s1161_s15 + $0x30] sm:$0xf] %v275_v12  ;;  %278 = vst [vmem:[%s1161_s15 + $0x34] sm:$0xf] %v277_v13  ;;  %v281_v15 = vld [vmem:[%s1156_s14 + $0x78] sm:$0xf] }
  0x27   : > { %280 = vst [vmem:[%s1161_s15 + $0x38] sm:$0xf] %v279_v14  ;;  %v283_v16 = vld [vmem:[%s1156_s14 + $0x80] sm:$0xf]  ;;  %v285_v17 = vld [vmem:[%s1156_s14 + $0x88] sm:$0xf] }
  0x28   : > { %282 = vst [vmem:[%s1161_s15 + $0x3c] sm:$0xf] %v281_v15  ;;  %284 = vst [vmem:[%s1161_s15 + $0x40] sm:$0xf] %v283_v16  ;;  %v287_v18 = vld [vmem:[%s1156_s14 + $0x90] sm:$0xf] }
  0x29   : > { %286 = vst [vmem:[%s1161_s15 + $0x44] sm:$0xf] %v285_v17  ;;  %v289_v19 = vld [vmem:[%s1156_s14 + $0x98] sm:$0xf]  ;;  %v291_v20 = vld [vmem:[%s1156_s14 + $0xa0] sm:$0xf] }
  0x2a   : > { %288 = vst [vmem:[%s1161_s15 + $0x48] sm:$0xf] %v287_v18  ;;  %290 = vst [vmem:[%s1161_s15 + $0x4c] sm:$0xf] %v289_v19  ;;  %v293_v21 = vld [vmem:[%s1156_s14 + $0xa8] sm:$0xf] }
  0x2b   : > { %292 = vst [vmem:[%s1161_s15 + $0x50] sm:$0xf] %v291_v20  ;;  %v295_v22 = vld [vmem:[%s1156_s14 + $0xb0] sm:$0xf]  ;;  %v297_v23 = vld [vmem:[%s1156_s14 + $0xb8] sm:$0xf] }
  0x2c   : > { %294 = vst [vmem:[%s1161_s15 + $0x54] sm:$0xf] %v293_v21  ;;  %296 = vst [vmem:[%s1161_s15 + $0x58] sm:$0xf] %v295_v22  ;;  %v299_v24 = vld [vmem:[%s1156_s14 + $0xc0] sm:$0xf] }
  0x2d   : > { %298 = vst [vmem:[%s1161_s15 + $0x5c] sm:$0xf] %v297_v23  ;;  %v301_v25 = vld [vmem:[%s1156_s14 + $0xc8] sm:$0xf]  ;;  %v303_v26 = vld [vmem:[%s1156_s14 + $0xd0] sm:$0xf] }
  0x2e   : > { %300 = vst [vmem:[%s1161_s15 + $0x60] sm:$0xf] %v299_v24  ;;  %302 = vst [vmem:[%s1161_s15 + $0x64] sm:$0xf] %v301_v25  ;;  %v305_v27 = vld [vmem:[%s1156_s14 + $0xd8] sm:$0xf] }
  0x2f   : > { %304 = vst [vmem:[%s1161_s15 + $0x68] sm:$0xf] %v303_v26  ;;  %v307_v28 = vld [vmem:[%s1156_s14 + $0xe0] sm:$0xf]  ;;  %v309_v29 = vld [vmem:[%s1156_s14 + $0xe8] sm:$0xf] }
  0x30   : > { %306 = vst [vmem:[%s1161_s15 + $0x6c] sm:$0xf] %v305_v27  ;;  %308 = vst [vmem:[%s1161_s15 + $0x70] sm:$0xf] %v307_v28  ;;  %v311_v30 = vld [vmem:[%s1156_s14 + $0xf0] sm:$0xf] }
  0x31   : > { %310 = vst [vmem:[%s1161_s15 + $0x74] sm:$0xf] %v309_v29  ;;  %v313_v31 = vld [vmem:[%s1156_s14 + $0xf8] sm:$0xf]  ;;  %312 = vst [vmem:[%s1161_s15 + $0x78] sm:$0xf] %v311_v30 }
  0x32   : > { %314 = vst [vmem:[%s1161_s15 + $0x7c] sm:$0xf] %v313_v31 }
  0x33 PF: > { %p881_p7 = scmp.ge.s32.totalorder %s1063_s24, 1  ;;  %p423_p8 = scmp.lt.s32.totalorder %s1063_s24, 19 }
  0x35   : > { %p424_p9 = pnand %p881_p7, %p423_p8 }
  0x36   : > { %s430_s16 = sand.u32 (!%p424_p9), 1, %s1039_s18   ;;  %p483_p10 = scmp.lt.s32.totalorder (!%p424_p9), %s1047_s20, 8 }
  0x37   : > { %427 = sbr.rel (%p424_p9) target bundleno = 339 (0x153), region = 77  ;;  %s882_s17 = sshll.u32 (!%p424_p9), %s430_s16, 7 }
  0x38   : > { %p492_p11 = scmp.lt.s32.totalorder (!%p424_p9), %s1051_s21, 1  ;;  %p887_p12 = scmp.ne.s32.totalorder (!%p424_p9), %s1047_s20, 0 }
  0x3e   : > { %s484_s27 = scalar_select %p483_p10, %s1047_s20, 8 }
  0x3f   : > { %s1332_s21 = smov (!%p492_p11, %s1051_s21), 1  ;;  %518 = sbr.rel (%p887_p12) target bundleno = 70 (0x46), region = 85 }
  0x40   : > { %s911_s28 = sshll.u32 %s484_s27, 3  ;;  %s494_s10 = scalar_lea.vmem %s1313_s2, %s1332_s21  ;;  %v1065_v32 = vmov (!%p887_p12), 0.0  }
  0x41   : > { %s1236_s7 = scalar_lea.vmem %s1311_s0, %s911_s28  ;;  %s497_s12 = scalar_lea.vmem %s1314_s3, %s1332_s21  ;;  %519 = vst [vmem:[#allocation2] sm:$0xff] (!%p887_p12), %v1065_v32 }
  0x42   : > { %s885_s13 = sshll.u32 %s1332_s21, 2  ;;  %s1257_s28 = scalar_lea.vmem [#allocation3], %s882_s17 }
  0x43   : > { %s1250_s16 = scalar_lea.vmem %s1315_s4, %s885_s13  ;;  %s1255_s29 = scalar_lea.vmem %s1316_s5, %s885_s13 }
  0x46 PF: > { %v991_v33 = vld [vmem:[%s1257_s28 + $0x40] sm:$0xff]   ;;  %v993_v35 = vld [vmem:[%s1257_s28 + $0x48] sm:$0xff]   ;;  %v995_v37 = vld [vmem:[%s1257_s28 + $0x50] sm:$0xff]   ;;  %p906_p13 = scmp.ne.s32.totalorder %s1047_s20, 8 }
  0x47   : > { %v992_v34 = vld [vmem:[%s1257_s28] sm:$0xff]   ;;  %912 = vmatprep.subr.bf16.mxu0 %v991_v33  ;;  %v994_v36 = vld [vmem:[%s1257_s28 + $0x8] sm:$0xff]   ;;  %v996_v38 = vld [vmem:[%s1257_s28 + $0x10] sm:$0xff]  }
  0x48   : > { %913 = vmatpush3.bf16.msra.mxu0 %v992_v34  ;;  %v997_v39 = vld [vmem:[%s1257_s28 + $0x58] sm:$0xff]   ;;  %v999_v41 = vld [vmem:[%s1257_s28 + $0x60] sm:$0xff]   ;;  %v1001_v43 = vld [vmem:[%s1257_s28 + $0x68] sm:$0xff]  }
  0x49   : > { %914 = vmatprep.subr.bf16.mxu0 %v993_v35  ;;  %v998_v40 = vld [vmem:[%s1257_s28 + $0x18] sm:$0xff]   ;;  %v1000_v42 = vld [vmem:[%s1257_s28 + $0x20] sm:$0xff]   ;;  %v1002_v46 = vld [vmem:[%s1257_s28 + $0x28] sm:$0xff]  }
  0x4a   : > { %v521_v44 = vld [vmem:[%s1236_s7] sm:$0xff]  ;;  %v1003_v47 = vld [vmem:[%s1257_s28 + $0x70] sm:$0xff]  }
  0x4b   : > { %v889_v45 = vcombine.high %v521_v44, %v521_v44  ;;  %v1004_v48 = vld [vmem:[%s1257_s28 + $0x30] sm:$0xff]   ;;  %v1005_v49 = vld [vmem:[%s1257_s28 + $0x78] sm:$0xff]   ;;  %v888_v51 = vcombine.low %v521_v44, %v521_v44 }
  0x4c   : > { %915 = vmatpush3.bf16.msra.mxu0 %v994_v36  ;;  %v1006_v50 = vld [vmem:[%s1257_s28 + $0x38] sm:$0xff]  }
  0x4d   : > { %916 = vmatprep.subr.bf16.mxu0 %v995_v37  ;;  %689 = vmatprep.mubr.bf16.mxu0 %v889_v45  ;;  %v520_v53 = vld [vmem:[#allocation2] sm:$0xff] }
  0x4e   : > { %v907_v60 = vld [vmem:[%s494_s10] ss:$0 sm:$0xff] (!%p906_p13) }
  0x4f   : > { %v908_v61 = vld [vmem:[%s497_s12] ss:$0 sm:$0xff] (!%p906_p13) }
  0x50   : > { %917 = vmatpush3.bf16.msra.mxu0 %v996_v38  ;;  %v720_v63 = vld [vmem:[%s1250_s16] sm:$0xf] (!%p906_p13) }
  0x51   : > { %918 = vmatprep.subr.bf16.mxu0 %v997_v39  ;;  %v721_v0 = vunpack.c.l.bf16 (!%p906_p13), %v720_v63 }
  0x54   : > { %919 = vmatpush3.bf16.msra.mxu0 %v998_v40 }
  0x55   : > { %920 = vmatprep.subr.bf16.mxu0 %v999_v41 }
  0x58   : > { %921 = vmatpush3.bf16.msra.mxu0 %v1000_v42 }
  0x59   : > { %922 = vmatprep.subr.bf16.mxu0 %v1001_v43 }
  0x5c   : > { %923 = vmatpush3.bf16.msra.mxu0 %v1002_v46 }
  0x5d   : > { %924 = vmatprep.subr.bf16.mxu0 %v1003_v47 }
  0x60   : > { %925 = vmatpush3.bf16.msra.mxu0 %v1004_v48 }
  0x61   : > { %926 = vmatprep.subr.bf16.mxu0 %v1005_v49 }
  0x64   : > { %927 = vmatpush3.bf16.msra.mxu0 %v1006_v50 }
  0x67   : > { %690 = vmatmul.mubr.bf16.vlgmr.msra.gmra.mrb[0].mxu0 %v888_v51 }
 0x13a   : > { %v928_v52 = vpop.f32.mrb[0].mxu0  ;;  %702 = sbr.rel (%p906_p13) target bundleno = 339 (0x153), region = 89 }
 0x13b   : > { %v929_v54 = vpop.f32.mrb[1].mxu0 }
 0x13c   : > { %v930_v55 = vadd.f32 %v929_v54, %v928_v52  ;;  %v931_v56 = vpop.f32.mrb[2].mxu0 }
 0x13d   : > { %v932_v57 = vpop.f32.mrb[3].mxu0 }
 0x13e   : > { %v697_v58 = vadd.f32 %v930_v55, %v520_v53 }
 0x140   : > { %698 = vst [vmem:[#allocation2] sm:$0xff] %v697_v58 }
 0x147   : > { %v703_v59 = vld [vmem:[#allocation2] sm:$0xff] }
 0x148   : > { %v711_v62 = vmul.f32 %v907_v60, %v703_v59 }
 0x14a   : > { %v719_v1 = vadd.f32 %v908_v61, %v711_v62 }
 0x14c   : > { %v722_v2 = vadd.f32 %v721_v0, %v719_v1 }
 0x14e   : > { %v723_v3 = vmax.f32 %v722_v2, 0.0 }
 0x150   : > { %v724_v4 = vpack.c.bf16 %v723_v3, %v723_v3 }
 0x152   : > { %725 = vst [vmem:[%s1255_s29] sm:$0xf] %v724_v4 }
 0x153 PF: > { %s15_s24 = sadd.s32 1, %s1063_s24   ;;  %s1319_s18 = smov %s1043_s19 }
 0x154   : > { %p12_p0 = scmp.ge.s32.totalorder %s15_s24, 20   ;;  %s1320_s19 = smov %s1147_s6 }
 0x155   : > { %s1321_s20 = smov %s1055_s22  ;;  %s1322_s21 = smov %s1059_s23 }
 0x156   : > { %s1323_s22 = smov %s1326_s25  ;;  %s1324_s23 = smov %s1330_s26 }
 0x157   :  { %14 = sbr.rel (!%p12_p0) target bundleno = 6 (0x6), region = 136 }

// kernel: ctr_predictor_forward.36
= control target key start
LH: loop header
LB: loop body
LE: loop exit
PB: predicated region body
PF: predicated region fallthrough
CT: control target
= control target key end

     0   :  { %s1011_s15 = smov 0   ;;  %s1013_s16 = smov 0   ;;  %s1220_s0 = inlined_call_operand.vmem [shape: bf16[9,8,256], index: 0, kind: input, shape index: {}]   ;;  %s1221_s1 = inlined_call_operand.vmem [shape: bf16[9,256,256], index: 1, kind: input, shape index: {}]   ;;  %s1222_s2 = inlined_call_operand.vmem [shape: f32[1,256], index: 2, kind: input, shape index: {}]   ;;  %s1223_s3 = inlined_call_operand.vmem [shape: f32[1,256], index: 3, kind: input, shape index: {}]   ;;  %s1224_s4 = inlined_call_operand.vmem [shape: bf16[8,256], index: 4, kind: output, shape index: {}]  }
   0x1   :  { %s1015_s17 = smov 0   ;;  %s1017_s18 = smov 0  }
   0x2   :  { %s1019_s19 = smov 0   ;;  %s1021_s20 = smov 0  }
   0x3   :  { %s1023_s21 = smov 0  }
   0x4 LB: > { %s26_s22 = sadd.s32 1, %s975_s19  ;;  %s29_s23 = sadd.s32 1, %s979_s20  ;;  %s983_s21 = sphi %s1023_s21, %s14_s21   ;;  %s979_s20 = sphi %s1021_s20, %s1230_s20   ;;  %s975_s19 = sphi %s1019_s19, %s1229_s19   ;;  %s971_s18 = sphi %s1017_s18, %s1228_s18   ;;  %s967_s17 = sphi %s1015_s17, %s1227_s17   ;;  %s963_s16 = sphi %s1013_s16, %s1226_s16   ;;  %s959_s15 = sphi %s1011_s15, %s1225_s15  }
   0x5   : > { %p27_p0 = scmp.ge.s32.totalorder %s26_s22, 9  ;;  %p77_p1 = scmp.ne.s32.totalorder %s963_s16, %s959_s15 }
   0x6   : > { %p78_p2 = scmp.eq.s32.totalorder %s983_s21, 0  ;;  %s70_s27 = sadd.s32 1, %s963_s16 }
   0x7   : > { %s1232_s22 = smov (%p27_p0, %s26_s22), 0  ;;  %s1234_s23 = smov (!%p27_p0, %s29_s23), %s979_s20 }
   0x8   : > { %p79_p3 = por %p78_p2, %p77_p1  ;;  %p31_p4 = scmp.ge.s32.totalorder %s1234_s23, 2 }
   0x9   : > { %s65_s24 = ssub.s32 %s975_s19, %s1232_s22  ;;  %p798_p6 = scmp.ge.s32.totalorder %s983_s21, 18 }
   0xa   : > { %s1236_s23 = smov (%p31_p4, %s1234_s23), 0 }
   0xb   : > { %s66_s25 = ssub.s32 %s979_s20, %s1236_s23  ;;  %183 = sbr.rel (%p798_p6) target bundleno = 45 (0x2d), region = 16 }
   0xc   : > { %s67_s26 = sor.u32 %s66_s25, %s65_s24 }
   0xd   : > { %p68_p5 = scmp.eq.s32.totalorder %s67_s26, 0 }
   0xf   : > { %s1062_s28 = scalar_select %p68_p5, %s963_s16, %s70_s27  }
  0x12   : > { %198 = sbr.rel (!%p79_p3) target bundleno = 45 (0x2d), region = 24  ;;  %s200_s29 = sand.u32 (%p79_p3), 1, %s963_s16  }
  0x13   : > { %s800_s30 = sshll.u32 (%p79_p3), %s975_s19, 6  ;;  %s799_s5 = sshll.u32 (%p79_p3), %s200_s29, 7 }
  0x14   : > { %s204_s6 = sadd.s32 (%p79_p3), %s979_s20, %s800_s30  ;;  %s1076_s11 = scalar_lea.vmem (%p79_p3), [#allocation3], %s799_s5 }
  0x15   : > { %s801_s7 = sshll.u32 (%p79_p3), %s204_s6, 2 }
  0x16   : > { %s1071_s10 = scalar_lea.vmem (%p79_p3), %s1221_s1, %s801_s7 }
  0x17   : > { %v222_v0 = vld [vmem:[%s1071_s10] sm:$0xf] (%p79_p3)  ;;  %v224_v1 = vld [vmem:[%s1071_s10 + $0x8] sm:$0xf] (%p79_p3)  ;;  %v226_v2 = vld [vmem:[%s1071_s10 + $0x10] sm:$0xf] (%p79_p3) }
  0x18   : > { %223 = vst [vmem:[%s1076_s11] sm:$0xf] (%p79_p3), %v222_v0  ;;  %225 = vst [vmem:[%s1076_s11 + $0x4] sm:$0xf] (%p79_p3), %v224_v1  ;;  %v228_v3 = vld [vmem:[%s1071_s10 + $0x18] sm:$0xf] (%p79_p3) }
  0x19   : > { %227 = vst [vmem:[%s1076_s11 + $0x8] sm:$0xf] %v226_v2  ;;  %v230_v4 = vld [vmem:[%s1071_s10 + $0x20] sm:$0xf]  ;;  %v232_v5 = vld [vmem:[%s1071_s10 + $0x28] sm:$0xf] }
  0x1a   : > { %229 = vst [vmem:[%s1076_s11 + $0xc] sm:$0xf] %v228_v3  ;;  %231 = vst [vmem:[%s1076_s11 + $0x10] sm:$0xf] %v230_v4  ;;  %v234_v6 = vld [vmem:[%s1071_s10 + $0x30] sm:$0xf] }
  0x1b   : > { %233 = vst [vmem:[%s1076_s11 + $0x14] sm:$0xf] %v232_v5  ;;  %v236_v7 = vld [vmem:[%s1071_s10 + $0x38] sm:$0xf]  ;;  %v238_v8 = vld [vmem:[%s1071_s10 + $0x40] sm:$0xf] }
  0x1c   : > { %235 = vst [vmem:[%s1076_s11 + $0x18] sm:$0xf] %v234_v6  ;;  %237 = vst [vmem:[%s1076_s11 + $0x1c] sm:$0xf] %v236_v7  ;;  %v240_v9 = vld [vmem:[%s1071_s10 + $0x48] sm:$0xf] }
  0x1d   : > { %239 = vst [vmem:[%s1076_s11 + $0x20] sm:$0xf] %v238_v8  ;;  %v242_v10 = vld [vmem:[%s1071_s10 + $0x50] sm:$0xf]  ;;  %v244_v11 = vld [vmem:[%s1071_s10 + $0x58] sm:$0xf] }
  0x1e   : > { %241 = vst [vmem:[%s1076_s11 + $0x24] sm:$0xf] %v240_v9  ;;  %243 = vst [vmem:[%s1076_s11 + $0x28] sm:$0xf] %v242_v10  ;;  %v246_v12 = vld [vmem:[%s1071_s10 + $0x60] sm:$0xf] }
  0x1f   : > { %245 = vst [vmem:[%s1076_s11 + $0x2c] sm:$0xf] %v244_v11  ;;  %v248_v13 = vld [vmem:[%s1071_s10 + $0x68] sm:$0xf]  ;;  %v250_v14 = vld [vmem:[%s1071_s10 + $0x70] sm:$0xf] }
  0x20   : > { %247 = vst [vmem:[%s1076_s11 + $0x30] sm:$0xf] %v246_v12  ;;  %249 = vst [vmem:[%s1076_s11 + $0x34] sm:$0xf] %v248_v13  ;;  %v252_v15 = vld [vmem:[%s1071_s10 + $0x78] sm:$0xf] }
  0x21   : > { %251 = vst [vmem:[%s1076_s11 + $0x38] sm:$0xf] %v250_v14  ;;  %v254_v16 = vld [vmem:[%s1071_s10 + $0x80] sm:$0xf]  ;;  %v256_v17 = vld [vmem:[%s1071_s10 + $0x88] sm:$0xf] }
  0x22   : > { %253 = vst [vmem:[%s1076_s11 + $0x3c] sm:$0xf] %v252_v15  ;;  %255 = vst [vmem:[%s1076_s11 + $0x40] sm:$0xf] %v254_v16  ;;  %v258_v18 = vld [vmem:[%s1071_s10 + $0x90] sm:$0xf] }
  0x23   : > { %257 = vst [vmem:[%s1076_s11 + $0x44] sm:$0xf] %v256_v17  ;;  %v260_v19 = vld [vmem:[%s1071_s10 + $0x98] sm:$0xf]  ;;  %v262_v20 = vld [vmem:[%s1071_s10 + $0xa0] sm:$0xf] }
  0x24   : > { %259 = vst [vmem:[%s1076_s11 + $0x48] sm:$0xf] %v258_v18  ;;  %261 = vst [vmem:[%s1076_s11 + $0x4c] sm:$0xf] %v260_v19  ;;  %v264_v21 = vld [vmem:[%s1071_s10 + $0xa8] sm:$0xf] }
  0x25   : > { %263 = vst [vmem:[%s1076_s11 + $0x50] sm:$0xf] %v262_v20  ;;  %v266_v22 = vld [vmem:[%s1071_s10 + $0xb0] sm:$0xf]  ;;  %v268_v23 = vld [vmem:[%s1071_s10 + $0xb8] sm:$0xf] }
  0x26   : > { %265 = vst [vmem:[%s1076_s11 + $0x54] sm:$0xf] %v264_v21  ;;  %267 = vst [vmem:[%s1076_s11 + $0x58] sm:$0xf] %v266_v22  ;;  %v270_v24 = vld [vmem:[%s1071_s10 + $0xc0] sm:$0xf] }
  0x27   : > { %269 = vst [vmem:[%s1076_s11 + $0x5c] sm:$0xf] %v268_v23  ;;  %v272_v25 = vld [vmem:[%s1071_s10 + $0xc8] sm:$0xf]  ;;  %v274_v26 = vld [vmem:[%s1071_s10 + $0xd0] sm:$0xf] }
  0x28   : > { %271 = vst [vmem:[%s1076_s11 + $0x60] sm:$0xf] %v270_v24  ;;  %273 = vst [vmem:[%s1076_s11 + $0x64] sm:$0xf] %v272_v25  ;;  %v276_v27 = vld [vmem:[%s1071_s10 + $0xd8] sm:$0xf] }
  0x29   : > { %275 = vst [vmem:[%s1076_s11 + $0x68] sm:$0xf] %v274_v26  ;;  %v278_v28 = vld [vmem:[%s1071_s10 + $0xe0] sm:$0xf]  ;;  %v280_v29 = vld [vmem:[%s1071_s10 + $0xe8] sm:$0xf] }
  0x2a   : > { %277 = vst [vmem:[%s1076_s11 + $0x6c] sm:$0xf] %v276_v27  ;;  %279 = vst [vmem:[%s1076_s11 + $0x70] sm:$0xf] %v278_v28  ;;  %v282_v30 = vld [vmem:[%s1071_s10 + $0xf0] sm:$0xf] }
  0x2b   : > { %281 = vst [vmem:[%s1076_s11 + $0x74] sm:$0xf] %v280_v29  ;;  %v284_v31 = vld [vmem:[%s1071_s10 + $0xf8] sm:$0xf]  ;;  %283 = vst [vmem:[%s1076_s11 + $0x78] sm:$0xf] %v282_v30 }
  0x2c   : > { %285 = vst [vmem:[%s1076_s11 + $0x7c] sm:$0xf] %v284_v31 }
  0x2d PF: > { %p802_p7 = scmp.ge.s32.totalorder %s983_s21, 1  ;;  %p383_p8 = scmp.lt.s32.totalorder %s983_s21, 19 }
  0x2f   : > { %p384_p9 = pnand %p802_p7, %p383_p8 }
  0x30   : > { %s390_s12 = sand.u32 (!%p384_p9), 1, %s959_s15   ;;  %p433_p10 = scmp.lt.s32.totalorder (!%p384_p9), %s967_s17, 8 }
  0x31   : > { %387 = sbr.rel (%p384_p9) target bundleno = 331 (0x14b), region = 73  ;;  %s803_s13 = sshll.u32 (!%p384_p9), %s390_s12, 7 }
  0x32   : > { %p442_p11 = scmp.lt.s32.totalorder (!%p384_p9), %s971_s18, 1  ;;  %s1167_s12 = scalar_lea.vmem (!%p384_p9), [#allocation3], %s803_s13 }
  0x33   : > { %p807_p12 = scmp.ne.s32.totalorder (!%p384_p9), %s967_s17, 0 }
  0x38   : > { %s434_s14 = scalar_select %p433_p10, %s967_s17, 8 }
  0x39   : > { %s1238_s18 = smov (!%p442_p11, %s971_s18), 1  ;;  %460 = sbr.rel (%p807_p12) target bundleno = 64 (0x40), region = 81 }
  0x3a   : > { %s831_s24 = sshll.u32 %s434_s14, 3  ;;  %s444_s5 = scalar_lea.vmem %s1222_s2, %s1238_s18  ;;  %v985_v32 = vmov (!%p807_p12), 0.0  }
  0x3b   : > { %s1151_s27 = scalar_lea.vmem %s1220_s0, %s831_s24  ;;  %s447_s7 = scalar_lea.vmem %s1223_s3, %s1238_s18  ;;  %461 = vst [vmem:[#allocation2] sm:$0xff] (!%p807_p12), %v985_v32 }
  0x3c   : > { %s806_s8 = sshll.u32 %s1238_s18, 2 }
  0x3d   : > { %s1165_s11 = scalar_lea.vmem %s1224_s4, %s806_s8 }
  0x40 PF: > { %v911_v33 = vld [vmem:[%s1167_s12 + $0x40] sm:$0xff]   ;;  %v913_v35 = vld [vmem:[%s1167_s12 + $0x48] sm:$0xff]   ;;  %v915_v37 = vld [vmem:[%s1167_s12 + $0x50] sm:$0xff]   ;;  %p826_p13 = scmp.ne.s32.totalorder %s967_s17, 8 }
  0x41   : > { %v912_v34 = vld [vmem:[%s1167_s12] sm:$0xff]   ;;  %832 = vmatprep.subr.bf16.mxu0 %v911_v33  ;;  %v914_v36 = vld [vmem:[%s1167_s12 + $0x8] sm:$0xff]   ;;  %v916_v38 = vld [vmem:[%s1167_s12 + $0x10] sm:$0xff]  }
  0x42   : > { %833 = vmatpush3.bf16.msra.mxu0 %v912_v34  ;;  %v917_v39 = vld [vmem:[%s1167_s12 + $0x58] sm:$0xff]   ;;  %v919_v41 = vld [vmem:[%s1167_s12 + $0x60] sm:$0xff]   ;;  %v921_v43 = vld [vmem:[%s1167_s12 + $0x68] sm:$0xff]  }
  0x43   : > { %834 = vmatprep.subr.bf16.mxu0 %v913_v35  ;;  %v918_v40 = vld [vmem:[%s1167_s12 + $0x18] sm:$0xff]   ;;  %v920_v42 = vld [vmem:[%s1167_s12 + $0x20] sm:$0xff]   ;;  %v922_v46 = vld [vmem:[%s1167_s12 + $0x28] sm:$0xff]  }
  0x44   : > { %v463_v44 = vld [vmem:[%s1151_s27] sm:$0xff]  ;;  %v923_v47 = vld [vmem:[%s1167_s12 + $0x70] sm:$0xff]  }
  0x45   : > { %v809_v45 = vcombine.high %v463_v44, %v463_v44  ;;  %v924_v48 = vld [vmem:[%s1167_s12 + $0x30] sm:$0xff]   ;;  %v925_v49 = vld [vmem:[%s1167_s12 + $0x78] sm:$0xff]   ;;  %v808_v51 = vcombine.low %v463_v44, %v463_v44 }
  0x46   : > { %835 = vmatpush3.bf16.msra.mxu0 %v914_v36  ;;  %v926_v50 = vld [vmem:[%s1167_s12 + $0x38] sm:$0xff]  }
  0x47   : > { %836 = vmatprep.subr.bf16.mxu0 %v915_v37  ;;  %631 = vmatprep.mubr.bf16.mxu0 %v809_v45  ;;  %v462_v53 = vld [vmem:[#allocation2] sm:$0xff] }
  0x48   : > { %v827_v60 = vld [vmem:[%s444_s5] ss:$0 sm:$0xff] (!%p826_p13) }
  0x49   : > { %v828_v61 = vld [vmem:[%s447_s7] ss:$0 sm:$0xff] (!%p826_p13) }
  0x4a   : > { %837 = vmatpush3.bf16.msra.mxu0 %v916_v38 }
  0x4b   : > { %838 = vmatprep.subr.bf16.mxu0 %v917_v39 }
  0x4e   : > { %839 = vmatpush3.bf16.msra.mxu0 %v918_v40 }
  0x4f   : > { %840 = vmatprep.subr.bf16.mxu0 %v919_v41 }
  0x52   : > { %841 = vmatpush3.bf16.msra.mxu0 %v920_v42 }
  0x53   : > { %842 = vmatprep.subr.bf16.mxu0 %v921_v43 }
  0x56   : > { %843 = vmatpush3.bf16.msra.mxu0 %v922_v46 }
  0x57   : > { %844 = vmatprep.subr.bf16.mxu0 %v923_v47 }
  0x5a   : > { %845 = vmatpush3.bf16.msra.mxu0 %v924_v48 }
  0x5b   : > { %846 = vmatprep.subr.bf16.mxu0 %v925_v49 }
  0x5e   : > { %847 = vmatpush3.bf16.msra.mxu0 %v926_v50 }
  0x61   : > { %632 = vmatmul.mubr.bf16.vlgmr.msra.gmra.mrb[0].mxu0 %v808_v51 }
 0x134   : > { %v848_v52 = vpop.f32.mrb[0].mxu0  ;;  %644 = sbr.rel (%p826_p13) target bundleno = 331 (0x14b), region = 85 }
 0x135   : > { %v849_v54 = vpop.f32.mrb[1].mxu0 }
 0x136   : > { %v850_v55 = vadd.f32 %v849_v54, %v848_v52  ;;  %v851_v56 = vpop.f32.mrb[2].mxu0 }
 0x137   : > { %v852_v57 = vpop.f32.mrb[3].mxu0 }
 0x138   : > { %v639_v58 = vadd.f32 %v850_v55, %v462_v53 }
 0x13a   : > { %640 = vst [vmem:[#allocation2] sm:$0xff] %v639_v58 }
 0x141   : > { %v645_v59 = vld [vmem:[#allocation2] sm:$0xff] }
 0x142   : > { %v653_v62 = vmul.f32 %v827_v60, %v645_v59 }
 0x144   : > { %v661_v63 = vadd.f32 %v828_v61, %v653_v62 }
 0x146   : > { %v662_v0 = vmax.f32 %v661_v63, 0.0 }
 0x148   : > { %v663_v1 = vpack.c.bf16 %v662_v0, %v662_v0 }
 0x14a   : > { %664 = vst [vmem:[%s1165_s11] sm:$0xf] %v663_v1 }
 0x14b PF: > { %s14_s21 = sadd.s32 1, %s983_s21   ;;  %s1225_s15 = smov %s963_s16 }
 0x14c   : > { %p11_p0 = scmp.ge.s32.totalorder %s14_s21, 20   ;;  %s1226_s16 = smov %s1062_s28 }
 0x14d   : > { %s1227_s17 = smov %s975_s19  ;;  %s1228_s18 = smov %s979_s20 }
 0x14e   : > { %s1229_s19 = smov %s1232_s22  ;;  %s1230_s20 = smov %s1236_s23 }
 0x14f   :  { %13 = sbr.rel (!%p11_p0) target bundleno = 4 (0x4), region = 129 }

// kernel: ctr_predictor_forward.42
= control target key start
LH: loop header
LB: loop body
LE: loop exit
PB: predicated region body
PF: predicated region fallthrough
CT: control target
= control target key end

     0   :  { %s1312_s0 = inlined_call_operand.vmem [shape: bf16[9,2,512], index: 0, kind: input, shape index: {}, may-alias: {0,5}]   ;;  %s1313_s1 = inlined_call_operand.vmem [shape: bf16[9,2,256], index: 1, kind: input, shape index: {}]   ;;  %s1314_s2 = inlined_call_operand.vmem [shape: bf16[9,256,512], index: 2, kind: input, shape index: {}]   ;;  %s1315_s3 = inlined_call_operand.vmem [shape: f32[1,512], index: 3, kind: input, shape index: {}]   ;;  %s1316_s4 = inlined_call_operand.vmem [shape: f32[1,512], index: 4, kind: input, shape index: {}]   ;;  %s1317_s5 = inlined_call_operand.vmem [shape: bf16[9,2,512], index: 5, kind: output, shape index: {}, may-alias: {0,5}]  }
   0x1   :  { %1319 = sst [smem:[#allocation6_spill]] %s1314_s2 }
   0x2   :  { %s1066_s18 = smov 0   ;;  %s1068_s19 = smov 0  }
   0x3   :  { %s1070_s0 = smov 0   ;;  %s1072_s20 = smov 0  }
   0x4   :  { %s1074_s21 = smov 0   ;;  %s1076_s22 = smov 0  }
   0x5   :  { %s1078_s23 = smov 0   ;;  %s1080_s24 = smov 0  }
   0x6   :  { %s1082_s25 = smov 0  }
   0x7 LB: > { %s28_s26 = sadd.s32 1, %s1024_s23  ;;  %s31_s27 = sadd.s32 1, %s1028_s24  ;;  %s1032_s25 = sphi %s1082_s25, %s16_s25   ;;  %s1028_s24 = sphi %s1080_s24, %s1332_s24   ;;  %s1024_s23 = sphi %s1078_s23, %s1331_s23   ;;  %s1020_s22 = sphi %s1076_s22, %s1330_s22   ;;  %s1016_s21 = sphi %s1074_s21, %s1329_s21   ;;  %s1012_s20 = sphi %s1072_s20, %s1328_s20   ;;  %s1008_s0 = sphi %s1070_s0, %s1327_s0   ;;  %s1004_s19 = sphi %s1068_s19, %s1326_s19   ;;  %s1000_s18 = sphi %s1066_s18, %s1325_s18  }
   0x8   : > { %p29_p0 = scmp.ge.s32.totalorder %s28_s26, 9  ;;  %p79_p1 = scmp.ne.s32.totalorder %s1012_s20, %s1008_s0 }
   0x9   : > { %s816_s28 = sadd.s32 4294967295, %s1032_s25   ;;  %p80_p2 = scmp.eq.s32.totalorder %s1032_s25, 0 }
   0xa   : > { %s1334_s26 = smov (%p29_p0, %s28_s26), 0  ;;  %s1336_s27 = smov (!%p29_p0, %s31_s27), %s1028_s24 }
   0xb   : > { %p33_p3 = scmp.ge.s32.totalorder %s1336_s27, 4  ;;  %s67_s29 = ssub.s32 %s1024_s23, %s1334_s26 }
   0xc   : > { %p1122_p4 = por %p80_p2, %p79_p1  ;;  %p162_p5 = scmp.ne.s32.totalorder %s1004_s19, %s1000_s18 }
   0xd   : > { %s1338_s27 = smov (%p33_p3, %s1336_s27), 0  ;;  %s72_s6 = sadd.s32 1, %s1012_s20 }
   0xe   : > { %1321 = sst [smem:[#allocation5_spill]] %s1338_s27  ;;  %p163_p6 = scmp.eq.s32.totalorder %s816_s28, 35 }
   0xf   : > { %s68_s7 = ssub.s32 %s1028_s24, %s1338_s27  ;;  %s152_s8 = sadd.s32 1, %s1004_s19 }
  0x10   : > { %s69_s9 = sor.u32 %s68_s7, %s67_s29  ;;  %p150_p7 = scmp.eq.s32.totalorder %s68_s7, 0 }
  0x11   : > { %p70_p8 = scmp.eq.s32.totalorder %s69_s9, 0  ;;  %p1134_p9 = por %p163_p6, %p162_p5 }
  0x12   : > { %s1139_s11 = scalar_select %p150_p7, %s1004_s19, %s152_s8  }
  0x13   : > { %s1142_s12 = scalar_select %p70_p8, %s1012_s20, %s72_s6  }
  0x14   : > { %p819_p10 = scmp.ge.s32.totalorder %s1032_s25, 36 }
  0x16   : > { %185 = sbr.rel (%p819_p10) target bundleno = 60 (0x3c), region = 16 }
  0x1d   : > { %199 = sbr.rel (!%p1122_p4) target bundleno = 60 (0x3c), region = 24  ;;  %s201_s13 = sand.u32 (%p1122_p4), 1, %s1012_s20  }
  0x1e   : > { %s821_s14 = sshll.u32 (%p1122_p4), %s1024_s23, 7  ;;  %s820_s15 = sshll.u32 (%p1122_p4), %s201_s13, 7 }
  0x1f   : > { %s205_s16 = sadd.s32 (%p1122_p4), %s1028_s24, %s821_s14  ;;  %s1323_s2 = sld [smem:[#allocation6_spill]] (%p1122_p4) }
  0x20   : > { %s822_s17 = sshll.u32 (%p1122_p4), %s205_s16, 2  ;;  %s1158_s30 = scalar_lea.vmem (%p1122_p4), [#allocation3], %s820_s15 }
  0x25   : > { %s1153_s7 = scalar_lea.vmem %s1323_s2, %s822_s17 }
  0x26   : > { %v223_v0 = vld [vmem:[%s1153_s7] sm:$0xf]  ;;  %v225_v1 = vld [vmem:[%s1153_s7 + $0x10] sm:$0xf] }
  0x27   : > { %v227_v2 = vld [vmem:[%s1153_s7 + $0x20] sm:$0xf]  ;;  %224 = vst [vmem:[%s1158_s30] sm:$0xf] %v223_v0  ;;  %226 = vst [vmem:[%s1158_s30 + $0x4] sm:$0xf] %v225_v1 }
  0x28   : > { %228 = vst [vmem:[%s1158_s30 + $0x8] sm:$0xf] %v227_v2  ;;  %v229_v3 = vld [vmem:[%s1153_s7 + $0x30] sm:$0xf]  ;;  %v231_v4 = vld [vmem:[%s1153_s7 + $0x40] sm:$0xf] }
  0x29   : > { %v233_v5 = vld [vmem:[%s1153_s7 + $0x50] sm:$0xf]  ;;  %230 = vst [vmem:[%s1158_s30 + $0xc] sm:$0xf] %v229_v3  ;;  %232 = vst [vmem:[%s1158_s30 + $0x10] sm:$0xf] %v231_v4 }
  0x2a   : > { %234 = vst [vmem:[%s1158_s30 + $0x14] sm:$0xf] %v233_v5  ;;  %v235_v6 = vld [vmem:[%s1153_s7 + $0x60] sm:$0xf]  ;;  %v237_v7 = vld [vmem:[%s1153_s7 + $0x70] sm:$0xf] }
  0x2b   : > { %v239_v8 = vld [vmem:[%s1153_s7 + $0x80] sm:$0xf]  ;;  %236 = vst [vmem:[%s1158_s30 + $0x18] sm:$0xf] %v235_v6  ;;  %238 = vst [vmem:[%s1158_s30 + $0x1c] sm:$0xf] %v237_v7 }
  0x2c   : > { %240 = vst [vmem:[%s1158_s30 + $0x20] sm:$0xf] %v239_v8  ;;  %v241_v9 = vld [vmem:[%s1153_s7 + $0x90] sm:$0xf]  ;;  %v243_v10 = vld [vmem:[%s1153_s7 + $0xa0] sm:$0xf] }
  0x2d   : > { %v245_v11 = vld [vmem:[%s1153_s7 + $0xb0] sm:$0xf]  ;;  %242 = vst [vmem:[%s1158_s30 + $0x24] sm:$0xf] %v241_v9  ;;  %244 = vst [vmem:[%s1158_s30 + $0x28] sm:$0xf] %v243_v10 }
  0x2e   : > { %246 = vst [vmem:[%s1158_s30 + $0x2c] sm:$0xf] %v245_v11  ;;  %v247_v12 = vld [vmem:[%s1153_s7 + $0xc0] sm:$0xf]  ;;  %v249_v13 = vld [vmem:[%s1153_s7 + $0xd0] sm:$0xf] }
  0x2f   : > { %v251_v14 = vld [vmem:[%s1153_s7 + $0xe0] sm:$0xf]  ;;  %248 = vst [vmem:[%s1158_s30 + $0x30] sm:$0xf] %v247_v12  ;;  %250 = vst [vmem:[%s1158_s30 + $0x34] sm:$0xf] %v249_v13 }
  0x30   : > { %252 = vst [vmem:[%s1158_s30 + $0x38] sm:$0xf] %v251_v14  ;;  %v253_v15 = vld [vmem:[%s1153_s7 + $0xf0] sm:$0xf]  ;;  %v255_v16 = vld [vmem:[%s1153_s7 + $0x100] sm:$0xf] }
  0x31   : > { %v257_v17 = vld [vmem:[%s1153_s7 + $0x110] sm:$0xf]  ;;  %254 = vst [vmem:[%s1158_s30 + $0x3c] sm:$0xf] %v253_v15  ;;  %256 = vst [vmem:[%s1158_s30 + $0x40] sm:$0xf] %v255_v16 }
  0x32   : > { %258 = vst [vmem:[%s1158_s30 + $0x44] sm:$0xf] %v257_v17  ;;  %v259_v18 = vld [vmem:[%s1153_s7 + $0x120] sm:$0xf]  ;;  %v261_v19 = vld [vmem:[%s1153_s7 + $0x130] sm:$0xf] }
  0x33   : > { %v263_v20 = vld [vmem:[%s1153_s7 + $0x140] sm:$0xf]  ;;  %260 = vst [vmem:[%s1158_s30 + $0x48] sm:$0xf] %v259_v18  ;;  %262 = vst [vmem:[%s1158_s30 + $0x4c] sm:$0xf] %v261_v19 }
  0x34   : > { %264 = vst [vmem:[%s1158_s30 + $0x50] sm:$0xf] %v263_v20  ;;  %v265_v21 = vld [vmem:[%s1153_s7 + $0x150] sm:$0xf]  ;;  %v267_v22 = vld [vmem:[%s1153_s7 + $0x160] sm:$0xf] }
  0x35   : > { %v269_v23 = vld [vmem:[%s1153_s7 + $0x170] sm:$0xf]  ;;  %266 = vst [vmem:[%s1158_s30 + $0x54] sm:$0xf] %v265_v21  ;;  %268 = vst [vmem:[%s1158_s30 + $0x58] sm:$0xf] %v267_v22 }
  0x36   : > { %270 = vst [vmem:[%s1158_s30 + $0x5c] sm:$0xf] %v269_v23  ;;  %v271_v24 = vld [vmem:[%s1153_s7 + $0x180] sm:$0xf]  ;;  %v273_v25 = vld [vmem:[%s1153_s7 + $0x190] sm:$0xf] }
  0x37   : > { %v275_v26 = vld [vmem:[%s1153_s7 + $0x1a0] sm:$0xf]  ;;  %272 = vst [vmem:[%s1158_s30 + $0x60] sm:$0xf] %v271_v24  ;;  %274 = vst [vmem:[%s1158_s30 + $0x64] sm:$0xf] %v273_v25 }
  0x38   : > { %276 = vst [vmem:[%s1158_s30 + $0x68] sm:$0xf] %v275_v26  ;;  %v277_v27 = vld [vmem:[%s1153_s7 + $0x1b0] sm:$0xf]  ;;  %v279_v28 = vld [vmem:[%s1153_s7 + $0x1c0] sm:$0xf] }
  0x39   : > { %v281_v29 = vld [vmem:[%s1153_s7 + $0x1d0] sm:$0xf]  ;;  %278 = vst [vmem:[%s1158_s30 + $0x6c] sm:$0xf] %v277_v27  ;;  %280 = vst [vmem:[%s1158_s30 + $0x70] sm:$0xf] %v279_v28 }
  0x3a   : > { %282 = vst [vmem:[%s1158_s30 + $0x74] sm:$0xf] %v281_v29  ;;  %v283_v30 = vld [vmem:[%s1153_s7 + $0x1e0] sm:$0xf]  ;;  %v285_v31 = vld [vmem:[%s1153_s7 + $0x1f0] sm:$0xf] }
  0x3b   : > { %284 = vst [vmem:[%s1158_s30 + $0x78] sm:$0xf] %v283_v30  ;;  %286 = vst [vmem:[%s1158_s30 + $0x7c] sm:$0xf] %v285_v31 }
  0x3c PF: > { %p823_p11 = scmp.ge.s32.totalorder %s1032_s25, 1  ;;  %p384_p12 = scmp.lt.s32.totalorder %s1032_s25, 37 }
  0x3e   : > { %p385_p13 = pnand %p823_p11, %p384_p12 }
  0x3f   : > { %s391_s6 = sand.u32 (!%p385_p13), 1, %s1008_s0   ;;  %s426_s8 = sand.u32 (!%p385_p13), 1, %s1000_s18  }
  0x40   : > { %388 = sbr.rel (%p385_p13) target bundleno = 355 (0x163), region = 73  ;;  %s824_s9 = sshll.u32 (!%p385_p13), %s391_s6, 7 }
  0x41   : > { %p428_p0 = scmp.lt.s32.totalorder (!%p385_p13), %s1016_s21, 8  ;;  %p436_p1 = scmp.lt.s32.totalorder (!%p385_p13), %s1020_s22, 3 }
  0x42   : > { %s1244_s2 = scalar_lea.vmem (!%p385_p13), [#allocation3], %s824_s9  ;;  %s1246_s27 = scalar_lea.vmem (!%p385_p13), [#allocation4], %s426_s8 }
  0x43   : > { %p826_p2 = scmp.ne.s32.totalorder (!%p385_p13), %s1016_s21, 0 }
  0x47   : > { %s429_s13 = scalar_select %p428_p0, %s1016_s21, 8 }
  0x48   : > { %s1229_s14 = scalar_select %p436_p1, %s1020_s22, 3 }
  0x49   : > { %s825_s15 = sshll.u32 %s429_s13, 1  ;;  %446 = sbr.rel (%p826_p2) target bundleno = 80 (0x50), region = 81  ;;  %v1034_v32 = vmov (!%p826_p2), 0.0  }
  0x4a   : > { %s1234_s28 = scalar_lea.vmem %s1313_s1, %s825_s15  ;;  %s438_s30 = scalar_lea.vmem %s1315_s3, %s1229_s14  ;;  %447 = vst [vmem:[#allocation2] sm:$0x3] (!%p826_p2), %v1034_v32 }
  0x4b   : > { %s441_s6 = scalar_lea.vmem %s1316_s4, %s1229_s14 }
  0x50 PF: > { %v946_v33 = vld [vmem:[%s1244_s2 + $0x40] sm:$0xff]   ;;  %v948_v35 = vld [vmem:[%s1244_s2 + $0x48] sm:$0xff]   ;;  %v950_v37 = vld [vmem:[%s1244_s2 + $0x50] sm:$0xff]   ;;  %v494_v42 = vlaneseq  ;;  %v1035_v46 = vmov 1966171168   ;;  %p844_p3 = scmp.ne.s32.totalorder %s1016_s21, 8 }
  0x51   : > { %v947_v34 = vld [vmem:[%s1244_s2] sm:$0xff]   ;;  %850 = vmatprep.subr.bf16.mxu0 %v946_v33  ;;  %v949_v36 = vld [vmem:[%s1244_s2 + $0x8] sm:$0xff]   ;;  %v951_v38 = vld [vmem:[%s1244_s2 + $0x10] sm:$0xff]   ;;  %v492_v47 = vunpack.c.l.s4 %v1035_v46 }
  0x52   : > { %851 = vmatpush3.bf16.msra.mxu0 %v947_v34  ;;  %v952_v39 = vld [vmem:[%s1244_s2 + $0x58] sm:$0xff]   ;;  %v954_v41 = vld [vmem:[%s1244_s2 + $0x60] sm:$0xff]   ;;  %v956_v44 = vld [vmem:[%s1244_s2 + $0x68] sm:$0xff]   ;;  %v495_v48 = vshrl.u32 %v494_v42, 7 }
  0x53   : > { %852 = vmatprep.subr.bf16.mxu0 %v948_v35  ;;  %v953_v40 = vld [vmem:[%s1244_s2 + $0x18] sm:$0xff]   ;;  %v955_v43 = vld [vmem:[%s1244_s2 + $0x20] sm:$0xff]   ;;  %v957_v49 = vld [vmem:[%s1244_s2 + $0x28] sm:$0xff]   ;;  %v493_v51 = vunpack.c.0.s8 %v492_v47 }
  0x54   : > { %v827_v45 = vld.sshfl [vmem:[%s1234_s28] sm:$0x11 pattern:$0x75316420]  ;;  %v958_v52 = vld [vmem:[%s1244_s2 + $0x70] sm:$0xff]  }
  0x55   : > { %v490_v50 = vcombine.high %v827_v45, %v827_v45  ;;  %v496_v53 = vsub.s32 %v493_v51, %v495_v48  ;;  %v959_v54 = vld [vmem:[%s1244_s2 + $0x30] sm:$0xff]   ;;  %v960_v56 = vld [vmem:[%s1244_s2 + $0x78] sm:$0xff]  }
  0x56   : > { %853 = vmatpush3.bf16.msra.mxu0 %v949_v36  ;;  %v961_v57 = vld [vmem:[%s1244_s2 + $0x38] sm:$0xff]  }
  0x57   : > { %854 = vmatprep.subr.bf16.mxu0 %v950_v37  ;;  %v504_v55 = vrot.slane %v490_v50, %v496_v53  ;;  %v497_v58 = vrot.slane %v827_v45, %v496_v53  ;;  %v448_v60 = vld [vmem:[#allocation2] sm:$0x3] }
  0x58   : > { %v845_v3 = vld [vmem:[%s438_s30] ss:$0 sm:$0xff] (!%p844_p3) }
  0x59   : > { %635 = vmatprep.mubr.bf16.mxu0 %v504_v55  ;;  %v846_v4 = vld [vmem:[%s441_s6] ss:$0 sm:$0xff] (!%p844_p3) }
  0x5a   : > { %855 = vmatpush3.bf16.msra.mxu0 %v951_v38 }
  0x5b   : > { %856 = vmatprep.subr.bf16.mxu0 %v952_v39 }
  0x5e   : > { %857 = vmatpush3.bf16.msra.mxu0 %v953_v40 }
  0x5f   : > { %858 = vmatprep.subr.bf16.mxu0 %v954_v41 }
  0x62   : > { %859 = vmatpush3.bf16.msra.mxu0 %v955_v43 }
  0x63   : > { %860 = vmatprep.subr.bf16.mxu0 %v956_v44 }
  0x66   : > { %861 = vmatpush3.bf16.msra.mxu0 %v957_v49 }
  0x67   : > { %862 = vmatprep.subr.bf16.mxu0 %v958_v52 }
  0x6a   : > { %863 = vmatpush3.bf16.msra.mxu0 %v959_v54 }
  0x6b   : > { %864 = vmatprep.subr.bf16.mxu0 %v960_v56 }
  0x6e   : > { %865 = vmatpush3.bf16.msra.mxu0 %v961_v57 }
  0x71   : > { %636 = vmatmul.mubr.bf16.vlgmr.msra.gmra.mrb[0].mxu0 %v497_v58 }
 0x144   : > { %v866_v59 = vpop.f32.mrb[0].mxu0  ;;  %648 = sbr.rel (%p844_p3) target bundleno = 347 (0x15b), region = 85 }
 0x145   : > { %v867_v61 = vpop.f32.mrb[1].mxu0 }
 0x146   : > { %v868_v62 = vadd.f32 %v867_v61, %v866_v59  ;;  %v869_v63 = vpop.f32.mrb[2].mxu0 }
 0x147   : > { %v870_v0 = vpop.f32.mrb[3].mxu0 }
 0x148   : > { %v643_v1 = vadd.f32 %v868_v62, %v448_v60 }
 0x14a   : > { %644 = vst [vmem:[#allocation2] sm:$0x3] %v643_v1 }
 0x151   : > { %v649_v2 = vld [vmem:[#allocation2] sm:$0x3] }
 0x152   : > { %v657_v5 = vmul.f32 %v845_v3, %v649_v2 }
 0x154   : > { %v665_v6 = vadd.f32 %v846_v4, %v657_v5 }
 0x156   : > { %v666_v7 = vmax.f32 %v665_v6, 0.0 }
 0x158   : > { %v667_v8 = vpack.c.bf16 %v666_v7, %v666_v7 }
 0x15a   : > { %668 = vst [vmem:[%s1246_s27] sm:$0x1] %v667_v8 }
 0x15b PF: > { %674 = sbr.rel (!%p1134_p9) target bundleno = 355 (0x163), region = 89  ;;  %s752_s16 = scalar_lea.vmem (%p1134_p9), %s1317_s5, %s1020_s22 }
 0x161   : > { %v693_v9 = vld [vmem:[%s1246_s27] sm:$0x1] (%p1134_p9) }
 0x162   : > { %847 = vst [vmem:[%s752_s16 + $0x10] sm:$0x1] %v693_v9 }
 0x163 PF: > { %s16_s25 = sadd.s32 1, %s1032_s25   ;;  %s1324_s10 = sld [smem:[#allocation5_spill]] }
 0x164   : > { %p13_p4 = scmp.ge.s32.totalorder %s16_s25, 38   ;;  %s1325_s18 = smov %s1004_s19 }
 0x165   : > { %s1326_s19 = smov %s1139_s11  ;;  %s1327_s0 = smov %s1012_s20 }
 0x166   : > { %s1328_s20 = smov %s1142_s12  ;;  %s1329_s21 = smov %s1024_s23 }
 0x167   : > { %s1330_s22 = smov %s1028_s24  ;;  %s1331_s23 = smov %s1334_s26 }
 0x168   :  { %15 = sbr.rel (!%p13_p4) target bundleno = 7 (0x7), region = 164 }
 0x169   : > { %s1332_s24 = smov %s1324_s10 }

// kernel: ctr_predictor_forward.38
= control target key start
LH: loop header
LB: loop body
LE: loop exit
PB: predicated region body
PF: predicated region fallthrough
CT: control target
= control target key end

     0   :  { %s975_s15 = smov 0   ;;  %s977_s16 = smov 0   ;;  %s1136_s0 = inlined_call_operand.vmem [shape: bf16[1,2,256], index: 0, kind: input, shape index: {}]   ;;  %s1137_s1 = inlined_call_operand.vmem [shape: bf16[1,256,512], index: 1, kind: input, shape index: {}]   ;;  %s1138_s2 = inlined_call_operand.vmem [shape: f32[1,512], index: 2, kind: input, shape index: {}]   ;;  %s1139_s3 = inlined_call_operand.vmem [shape: f32[1,512], index: 3, kind: input, shape index: {}]   ;;  %s1140_s4 = inlined_call_operand.vmem [shape: bf16[2,512], index: 4, kind: output, shape index: {}]  }
   0x1   :  { %s979_s17 = smov 0   ;;  %s981_s18 = smov 0  }
   0x2   :  { %s983_s19 = smov 0  }
   0x3 LB: > { %s29_s20 = sadd.s32 1, %s942_s18  ;;  %p77_p1 = scmp.ne.s32.totalorder %s934_s16, %s930_s15  ;;  %s946_s19 = sphi %s983_s19, %s14_s19   ;;  %s942_s18 = sphi %s981_s18, %s1144_s18   ;;  %s938_s17 = sphi %s979_s17, %s1143_s17   ;;  %s934_s16 = sphi %s977_s16, %s1142_s16   ;;  %s930_s15 = sphi %s975_s15, %s1141_s15  }
   0x4   : > { %p31_p0 = scmp.ge.s32.totalorder %s29_s20, 4  ;;  %p78_p2 = scmp.eq.s32.totalorder %s946_s19, 0 }
   0x5   : > { %s70_s22 = sadd.s32 1, %s934_s16  ;;  %p802_p5 = scmp.ge.s32.totalorder %s946_s19, 4 }
   0x6   : > { %s1146_s20 = smov (%p31_p0, %s29_s20), 0  ;;  %p79_p3 = por %p78_p2, %p77_p1 }
   0x7   : > { %s66_s21 = ssub.s32 %s942_s18, %s1146_s20  ;;  %194 = sbr.rel (%p802_p5) target bundleno = 39 (0x27), region = 20 }
   0x8   : > { %p68_p4 = scmp.eq.s32.totalorder %s66_s21, 0 }
   0xa   : > { %s1010_s23 = scalar_select %p68_p4, %s934_s16, %s70_s22  }
   0xe   : > { %197 = sbr.rel (!%p79_p3) target bundleno = 39 (0x27), region = 24  ;;  %s199_s24 = sand.u32 (%p79_p3), 1, %s934_s16  }
   0xf   : > { %s804_s25 = sshll.u32 (%p79_p3), %s942_s18, 2  ;;  %s803_s26 = sshll.u32 (%p79_p3), %s199_s24, 7 }
  0x10   : > { %s1018_s29 = scalar_lea.vmem (%p79_p3), %s1137_s1, %s804_s25  ;;  %s1022_s30 = scalar_lea.vmem (%p79_p3), [#allocation3], %s803_s26 }
  0x11   : > { %v221_v0 = vld [vmem:[%s1018_s29] sm:$0xf] (%p79_p3)  ;;  %v223_v1 = vld [vmem:[%s1018_s29 + $0x10] sm:$0xf] (%p79_p3) }
  0x12   : > { %222 = vst [vmem:[%s1022_s30] sm:$0xf] (%p79_p3), %v221_v0  ;;  %224 = vst [vmem:[%s1022_s30 + $0x4] sm:$0xf] (%p79_p3), %v223_v1  ;;  %v225_v2 = vld [vmem:[%s1018_s29 + $0x20] sm:$0xf] (%p79_p3) }
  0x13   : > { %v227_v3 = vld [vmem:[%s1018_s29 + $0x30] sm:$0xf] (%p79_p3)  ;;  %v229_v4 = vld [vmem:[%s1018_s29 + $0x40] sm:$0xf] (%p79_p3)  ;;  %226 = vst [vmem:[%s1022_s30 + $0x8] sm:$0xf] (%p79_p3), %v225_v2 }
  0x14   : > { %228 = vst [vmem:[%s1022_s30 + $0xc] sm:$0xf] (%p79_p3), %v227_v3  ;;  %230 = vst [vmem:[%s1022_s30 + $0x10] sm:$0xf] (%p79_p3), %v229_v4  ;;  %v231_v5 = vld [vmem:[%s1018_s29 + $0x50] sm:$0xf] (%p79_p3) }
  0x15   : > { %v233_v6 = vld [vmem:[%s1018_s29 + $0x60] sm:$0xf]  ;;  %v235_v7 = vld [vmem:[%s1018_s29 + $0x70] sm:$0xf]  ;;  %232 = vst [vmem:[%s1022_s30 + $0x14] sm:$0xf] %v231_v5 }
  0x16   : > { %234 = vst [vmem:[%s1022_s30 + $0x18] sm:$0xf] %v233_v6  ;;  %236 = vst [vmem:[%s1022_s30 + $0x1c] sm:$0xf] %v235_v7  ;;  %v237_v8 = vld [vmem:[%s1018_s29 + $0x80] sm:$0xf] }
  0x17   : > { %v239_v9 = vld [vmem:[%s1018_s29 + $0x90] sm:$0xf]  ;;  %v241_v10 = vld [vmem:[%s1018_s29 + $0xa0] sm:$0xf]  ;;  %238 = vst [vmem:[%s1022_s30 + $0x20] sm:$0xf] %v237_v8 }
  0x18   : > { %240 = vst [vmem:[%s1022_s30 + $0x24] sm:$0xf] %v239_v9  ;;  %242 = vst [vmem:[%s1022_s30 + $0x28] sm:$0xf] %v241_v10  ;;  %v243_v11 = vld [vmem:[%s1018_s29 + $0xb0] sm:$0xf] }
  0x19   : > { %v245_v12 = vld [vmem:[%s1018_s29 + $0xc0] sm:$0xf]  ;;  %v247_v13 = vld [vmem:[%s1018_s29 + $0xd0] sm:$0xf]  ;;  %244 = vst [vmem:[%s1022_s30 + $0x2c] sm:$0xf] %v243_v11 }
  0x1a   : > { %246 = vst [vmem:[%s1022_s30 + $0x30] sm:$0xf] %v245_v12  ;;  %248 = vst [vmem:[%s1022_s30 + $0x34] sm:$0xf] %v247_v13  ;;  %v249_v14 = vld [vmem:[%s1018_s29 + $0xe0] sm:$0xf] }
  0x1b   : > { %v251_v15 = vld [vmem:[%s1018_s29 + $0xf0] sm:$0xf]  ;;  %v253_v16 = vld [vmem:[%s1018_s29 + $0x100] sm:$0xf]  ;;  %250 = vst [vmem:[%s1022_s30 + $0x38] sm:$0xf] %v249_v14 }
  0x1c   : > { %252 = vst [vmem:[%s1022_s30 + $0x3c] sm:$0xf] %v251_v15  ;;  %254 = vst [vmem:[%s1022_s30 + $0x40] sm:$0xf] %v253_v16  ;;  %v255_v17 = vld [vmem:[%s1018_s29 + $0x110] sm:$0xf] }
  0x1d   : > { %v257_v18 = vld [vmem:[%s1018_s29 + $0x120] sm:$0xf]  ;;  %v259_v19 = vld [vmem:[%s1018_s29 + $0x130] sm:$0xf]  ;;  %256 = vst [vmem:[%s1022_s30 + $0x44] sm:$0xf] %v255_v17 }
  0x1e   : > { %258 = vst [vmem:[%s1022_s30 + $0x48] sm:$0xf] %v257_v18  ;;  %260 = vst [vmem:[%s1022_s30 + $0x4c] sm:$0xf] %v259_v19  ;;  %v261_v20 = vld [vmem:[%s1018_s29 + $0x140] sm:$0xf] }
  0x1f   : > { %v263_v21 = vld [vmem:[%s1018_s29 + $0x150] sm:$0xf]  ;;  %v265_v22 = vld [vmem:[%s1018_s29 + $0x160] sm:$0xf]  ;;  %262 = vst [vmem:[%s1022_s30 + $0x50] sm:$0xf] %v261_v20 }
  0x20   : > { %264 = vst [vmem:[%s1022_s30 + $0x54] sm:$0xf] %v263_v21  ;;  %266 = vst [vmem:[%s1022_s30 + $0x58] sm:$0xf] %v265_v22  ;;  %v267_v23 = vld [vmem:[%s1018_s29 + $0x170] sm:$0xf] }
  0x21   : > { %v269_v24 = vld [vmem:[%s1018_s29 + $0x180] sm:$0xf]  ;;  %v271_v25 = vld [vmem:[%s1018_s29 + $0x190] sm:$0xf]  ;;  %268 = vst [vmem:[%s1022_s30 + $0x5c] sm:$0xf] %v267_v23 }
  0x22   : > { %270 = vst [vmem:[%s1022_s30 + $0x60] sm:$0xf] %v269_v24  ;;  %272 = vst [vmem:[%s1022_s30 + $0x64] sm:$0xf] %v271_v25  ;;  %v273_v26 = vld [vmem:[%s1018_s29 + $0x1a0] sm:$0xf] }
  0x23   : > { %v275_v27 = vld [vmem:[%s1018_s29 + $0x1b0] sm:$0xf]  ;;  %v277_v28 = vld [vmem:[%s1018_s29 + $0x1c0] sm:$0xf]  ;;  %274 = vst [vmem:[%s1022_s30 + $0x68] sm:$0xf] %v273_v26 }
  0x24   : > { %276 = vst [vmem:[%s1022_s30 + $0x6c] sm:$0xf] %v275_v27  ;;  %278 = vst [vmem:[%s1022_s30 + $0x70] sm:$0xf] %v277_v28  ;;  %v279_v29 = vld [vmem:[%s1018_s29 + $0x1d0] sm:$0xf] }
  0x25   : > { %v281_v30 = vld [vmem:[%s1018_s29 + $0x1e0] sm:$0xf]  ;;  %v283_v31 = vld [vmem:[%s1018_s29 + $0x1f0] sm:$0xf]  ;;  %280 = vst [vmem:[%s1022_s30 + $0x74] sm:$0xf] %v279_v29 }
  0x26   : > { %282 = vst [vmem:[%s1022_s30 + $0x78] sm:$0xf] %v281_v30  ;;  %284 = vst [vmem:[%s1022_s30 + $0x7c] sm:$0xf] %v283_v31 }
  0x27 PF: > { %p805_p6 = scmp.ge.s32.totalorder %s946_s19, 1  ;;  %p382_p7 = scmp.lt.s32.totalorder %s946_s19, 5 }
  0x29   : > { %p383_p8 = pnand %p805_p6, %p382_p7 }
  0x2a   : > { %s389_s5 = sand.u32 (!%p383_p8), 1, %s930_s15   ;;  %v807_v32 = vld.sshfl [vmem:[%s1136_s0] sm:$0x11 pattern:$0x75316420] (!%p383_p8)  ;;  %v503_v33 = vlaneseq (!%p383_p8)  ;;  %v949_v58 = vmov (!%p383_p8), 0.0  }
  0x2b   : > { %386 = sbr.rel (%p383_p8) target bundleno = 310 (0x136), region = 73  ;;  %s806_s8 = sshll.u32 (!%p383_p8), %s389_s5, 7  ;;  %v948_v34 = vmov (!%p383_p8), 1966171168   ;;  %v499_v39 = vcombine.high (!%p383_p8), %v807_v32, %v807_v32  ;;  %456 = vst [vmem:[#allocation2] sm:$0x3] (!%p383_p8), %v949_v58 }
  0x2c   : > { %v501_v35 = vunpack.c.l.s4 (!%p383_p8), %v948_v34  ;;  %v504_v36 = vshrl.u32 (!%p383_p8), %v503_v33, 7  ;;  %s1092_s9 = scalar_lea.vmem (!%p383_p8), [#allocation3], %s806_s8  ;;  %p438_p9 = scmp.lt.s32.totalorder (!%p383_p8), %s938_s17, 3 }
  0x2d   : > { %v892_v37 = vld [vmem:[%s1092_s9 + $0x40] sm:$0xff] (!%p383_p8)   ;;  %v894_v41 = vld [vmem:[%s1092_s9 + $0x48] sm:$0xff] (!%p383_p8)   ;;  %v896_v44 = vld [vmem:[%s1092_s9 + $0x50] sm:$0xff] (!%p383_p8)  }
  0x2e   : > { %v893_v38 = vld [vmem:[%s1092_s9] sm:$0xff] (!%p383_p8)   ;;  %v502_v40 = vunpack.c.0.s8 (!%p383_p8), %v501_v35  ;;  %828 = vmatprep.subr.bf16.mxu0 (!%p383_p8), %v892_v37  ;;  %v895_v42 = vld [vmem:[%s1092_s9 + $0x8] sm:$0xff] (!%p383_p8)   ;;  %v897_v46 = vld [vmem:[%s1092_s9 + $0x10] sm:$0xff] (!%p383_p8)  }
  0x2f   : > { %829 = vmatpush3.bf16.msra.mxu0 (!%p383_p8), %v893_v38  ;;  %v898_v47 = vld [vmem:[%s1092_s9 + $0x58] sm:$0xff] (!%p383_p8)   ;;  %v900_v49 = vld [vmem:[%s1092_s9 + $0x60] sm:$0xff] (!%p383_p8)   ;;  %v902_v51 = vld [vmem:[%s1092_s9 + $0x68] sm:$0xff] (!%p383_p8)  }
  0x30   : > { %v505_v43 = vsub.s32 (!%p383_p8), %v502_v40, %v504_v36  ;;  %830 = vmatprep.subr.bf16.mxu0 (!%p383_p8), %v894_v41  ;;  %v899_v48 = vld [vmem:[%s1092_s9 + $0x18] sm:$0xff] (!%p383_p8)   ;;  %v901_v50 = vld [vmem:[%s1092_s9 + $0x20] sm:$0xff] (!%p383_p8)   ;;  %v903_v52 = vld [vmem:[%s1092_s9 + $0x28] sm:$0xff] (!%p383_p8)  }
  0x31   : > { %v904_v53 = vld [vmem:[%s1092_s9 + $0x70] sm:$0xff] (!%p383_p8)   ;;  %v906_v55 = vld [vmem:[%s1092_s9 + $0x78] sm:$0xff] (!%p383_p8)  }
  0x32   : > { %v513_v45 = vrot.slane %v499_v39, %v505_v43  ;;  %v905_v54 = vld [vmem:[%s1092_s9 + $0x30] sm:$0xff]   ;;  %v907_v56 = vld [vmem:[%s1092_s9 + $0x38] sm:$0xff]   ;;  %v506_v57 = vrot.slane %v807_v32, %v505_v43  ;;  %s1148_s17 = smov (!%p438_p9, %s938_s17), 3 }
  0x33   : > { %831 = vmatpush3.bf16.msra.mxu0 %v895_v42  ;;  %v457_v60 = vld [vmem:[#allocation2] sm:$0x3]  ;;  %s440_s12 = scalar_lea.vmem %s1138_s2, %s1148_s17  ;;  %s443_s15 = scalar_lea.vmem %s1139_s3, %s1148_s17 }
  0x34   : > { %644 = vmatprep.mubr.bf16.mxu0 %v513_v45  ;;  %832 = vmatprep.subr.bf16.mxu0 %v896_v44  ;;  %v824_v2 = vld [vmem:[%s440_s12] ss:$0 sm:$0xff]  ;;  %s450_s24 = scalar_lea.vmem %s1140_s4, %s1148_s17 }
  0x35   : > { %v825_v4 = vld [vmem:[%s443_s15] ss:$0 sm:$0xff] }
  0x37   : > { %833 = vmatpush3.bf16.msra.mxu0 %v897_v46 }
  0x38   : > { %834 = vmatprep.subr.bf16.mxu0 %v898_v47 }
  0x3b   : > { %835 = vmatpush3.bf16.msra.mxu0 %v899_v48 }
  0x3c   : > { %836 = vmatprep.subr.bf16.mxu0 %v900_v49 }
  0x3f   : > { %837 = vmatpush3.bf16.msra.mxu0 %v901_v50 }
  0x40   : > { %838 = vmatprep.subr.bf16.mxu0 %v902_v51 }
  0x43   : > { %839 = vmatpush3.bf16.msra.mxu0 %v903_v52 }
  0x44   : > { %840 = vmatprep.subr.bf16.mxu0 %v904_v53 }
  0x47   : > { %841 = vmatpush3.bf16.msra.mxu0 %v905_v54 }
  0x48   : > { %842 = vmatprep.subr.bf16.mxu0 %v906_v55 }
  0x4b   : > { %843 = vmatpush3.bf16.msra.mxu0 %v907_v56 }
  0x4e   : > { %645 = vmatmul.mubr.bf16.vlgmr.msra.gmra.mrb[0].mxu0 %v506_v57 }
 0x121   : > { %v844_v59 = vpop.f32.mrb[0].mxu0 }
 0x122   : > { %v845_v61 = vpop.f32.mrb[1].mxu0 }
 0x123   : > { %v846_v62 = vadd.f32 %v845_v61, %v844_v59  ;;  %v847_v63 = vpop.f32.mrb[2].mxu0 }
 0x124   : > { %v848_v0 = vpop.f32.mrb[3].mxu0 }
 0x125   : > { %v652_v1 = vadd.f32 %v846_v62, %v457_v60 }
 0x127   : > { %653 = vst [vmem:[#allocation2] sm:$0x3] %v652_v1 }
 0x12e   : > { %v657_v3 = vld [vmem:[#allocation2] sm:$0x3] }
 0x12f   : > { %v665_v5 = vmul.f32 %v824_v2, %v657_v3 }
 0x131   : > { %v673_v6 = vadd.f32 %v825_v4, %v665_v5 }
 0x133   : > { %v674_v7 = vpack.c.bf16 %v673_v6, %v673_v6 }
 0x135   : > { %675 = vst [vmem:[%s450_s24] sm:$0x1] %v674_v7 }
 0x136 PF: > { %s14_s19 = sadd.s32 1, %s946_s19   ;;  %s1141_s15 = smov %s934_s16 }
 0x137   : > { %p11_p10 = scmp.ge.s32.totalorder %s14_s19, 6   ;;  %s1142_s16 = smov %s1010_s23 }
 0x138   : > { %s1143_s17 = smov %s942_s18  ;;  %s1144_s18 = smov %s1146_s20 }
 0x139   :  { %13 = sbr.rel (!%p11_p10) target bundleno = 3 (0x3), region = 129 }

// kernel: ctr_predictor_forward.39
= control target key start
LH: loop header
LB: loop body
LE: loop exit
PB: predicated region body
PF: predicated region fallthrough
CT: control target
= control target key end

     0   :  { %s1743_s0 = inlined_call_operand.vmem [shape: bf16[9,2,512], index: 0, kind: input, shape index: {}]   ;;  %s1744_s1 = inlined_call_operand.vmem [shape: bf16[9,512,512], index: 1, kind: input, shape index: {}]   ;;  %s1745_s2 = inlined_call_operand.vmem [shape: f32[1,512], index: 2, kind: input, shape index: {}]   ;;  %s1746_s3 = inlined_call_operand.vmem [shape: f32[1,512], index: 3, kind: input, shape index: {}]   ;;  %s1747_s4 = inlined_call_operand.vmem [shape: bf16[2,512], index: 4, kind: input, shape index: {}]   ;;  %s1748_s5 = inlined_call_operand.vmem [shape: bf16[2,512], index: 5, kind: output, shape index: {}]  }
   0x1   :  { %1750 = sst [smem:[#allocation5_spill]] %s1744_s1 }
   0x2   :  { %s1443_s18 = smov 0   ;;  %s1445_s19 = smov 0  }
   0x3   :  { %s1447_s20 = smov 0   ;;  %s1449_s21 = smov 0  }
   0x4   :  { %s1451_s22 = smov 0   ;;  %s1453_s23 = smov 0  }
   0x5   :  { %s1455_s24 = smov 0  }
   0x6 LB: > { %s27_s25 = sadd.s32 1, %s1401_s22  ;;  %s30_s26 = sadd.s32 1, %s1405_s23  ;;  %s1409_s24 = sphi %s1455_s24, %s15_s24   ;;  %s1405_s23 = sphi %s1453_s23, %s1759_s23   ;;  %s1401_s22 = sphi %s1451_s22, %s1758_s22   ;;  %s1397_s21 = sphi %s1449_s21, %s1757_s21   ;;  %s1393_s20 = sphi %s1447_s20, %s1756_s20   ;;  %s1389_s19 = sphi %s1445_s19, %s1755_s19   ;;  %s1385_s18 = sphi %s1443_s18, %s1754_s18  }
   0x7   : > { %p28_p0 = scmp.ge.s32.totalorder %s27_s25, 9  ;;  %p78_p1 = scmp.ne.s32.totalorder %s1389_s19, %s1385_s18 }
   0x8   : > { %p79_p2 = scmp.eq.s32.totalorder %s1409_s24, 0  ;;  %s71_s30 = sadd.s32 1, %s1389_s19 }
   0x9   : > { %s1761_s25 = smov (%p28_p0, %s27_s25), 0  ;;  %s1763_s26 = smov (!%p28_p0, %s30_s26), %s1405_s23 }
   0xa   : > { %p80_p3 = por %p79_p2, %p78_p1  ;;  %p32_p4 = scmp.ge.s32.totalorder %s1763_s26, 4 }
   0xb   : > { %s66_s27 = ssub.s32 %s1401_s22, %s1761_s25  ;;  %p1175_p6 = scmp.ge.s32.totalorder %s1409_s24, 36 }
   0xc   : > { %s1765_s26 = smov (%p32_p4, %s1763_s26), 0 }
   0xd   : > { %1751 = sst [smem:[#allocation4_spill]] %s1765_s26  ;;  %s67_s28 = ssub.s32 %s1405_s23, %s1765_s26 }
   0xe   : > { %s68_s29 = sor.u32 %s67_s28, %s66_s27  ;;  %212 = sbr.rel (%p1175_p6) target bundleno = 74 (0x4a), region = 16 }
   0xf   : > { %p69_p5 = scmp.eq.s32.totalorder %s68_s29, 0 }
  0x11   : > { %s1494_s6 = scalar_select %p69_p5, %s1389_s19, %s71_s30  }
  0x15   : > { %226 = sbr.rel (!%p80_p3) target bundleno = 74 (0x4a), region = 24  ;;  %s228_s7 = sand.u32 (%p80_p3), 1, %s1389_s19  }
  0x16   : > { %s1177_s8 = sshll.u32 (%p80_p3), %s1401_s22, 8  ;;  %s1176_s9 = sshll.u32 (%p80_p3), %s228_s7, 8 }
  0x17   : > { %s232_s10 = sadd.s32 (%p80_p3), %s1405_s23, %s1177_s8  ;;  %s1752_s1 = sld [smem:[#allocation5_spill]] (%p80_p3) }
  0x18   : > { %s1178_s11 = sshll.u32 (%p80_p3), %s232_s10, 2  ;;  %s1508_s15 = scalar_lea.vmem (%p80_p3), [#allocation3], %s1176_s9 }
  0x1d   : > { %s1503_s14 = scalar_lea.vmem %s1752_s1, %s1178_s11 }
  0x1e   : > { %v250_v0 = vld [vmem:[%s1503_s14] sm:$0xf]  ;;  %v252_v1 = vld [vmem:[%s1503_s14 + $0x10] sm:$0xf] }
  0x1f   : > { %v254_v2 = vld [vmem:[%s1503_s14 + $0x20] sm:$0xf]  ;;  %251 = vst [vmem:[%s1508_s15] sm:$0xf] %v250_v0  ;;  %253 = vst [vmem:[%s1508_s15 + $0x4] sm:$0xf] %v252_v1 }
  0x20   : > { %255 = vst [vmem:[%s1508_s15 + $0x8] sm:$0xf] %v254_v2  ;;  %v256_v3 = vld [vmem:[%s1503_s14 + $0x30] sm:$0xf]  ;;  %v258_v4 = vld [vmem:[%s1503_s14 + $0x40] sm:$0xf] }
  0x21   : > { %v260_v5 = vld [vmem:[%s1503_s14 + $0x50] sm:$0xf]  ;;  %257 = vst [vmem:[%s1508_s15 + $0xc] sm:$0xf] %v256_v3  ;;  %259 = vst [vmem:[%s1508_s15 + $0x10] sm:$0xf] %v258_v4 }
  0x22   : > { %261 = vst [vmem:[%s1508_s15 + $0x14] sm:$0xf] %v260_v5  ;;  %v262_v6 = vld [vmem:[%s1503_s14 + $0x60] sm:$0xf]  ;;  %v264_v7 = vld [vmem:[%s1503_s14 + $0x70] sm:$0xf] }
  0x23   : > { %v266_v8 = vld [vmem:[%s1503_s14 + $0x80] sm:$0xf]  ;;  %263 = vst [vmem:[%s1508_s15 + $0x18] sm:$0xf] %v262_v6  ;;  %265 = vst [vmem:[%s1508_s15 + $0x1c] sm:$0xf] %v264_v7 }
  0x24   : > { %267 = vst [vmem:[%s1508_s15 + $0x20] sm:$0xf] %v266_v8  ;;  %v268_v9 = vld [vmem:[%s1503_s14 + $0x90] sm:$0xf]  ;;  %v270_v10 = vld [vmem:[%s1503_s14 + $0xa0] sm:$0xf] }
  0x25   : > { %v272_v11 = vld [vmem:[%s1503_s14 + $0xb0] sm:$0xf]  ;;  %269 = vst [vmem:[%s1508_s15 + $0x24] sm:$0xf] %v268_v9  ;;  %271 = vst [vmem:[%s1508_s15 + $0x28] sm:$0xf] %v270_v10 }
  0x26   : > { %273 = vst [vmem:[%s1508_s15 + $0x2c] sm:$0xf] %v272_v11  ;;  %v274_v12 = vld [vmem:[%s1503_s14 + $0xc0] sm:$0xf]  ;;  %v276_v13 = vld [vmem:[%s1503_s14 + $0xd0] sm:$0xf] }
  0x27   : > { %v278_v14 = vld [vmem:[%s1503_s14 + $0xe0] sm:$0xf]  ;;  %275 = vst [vmem:[%s1508_s15 + $0x30] sm:$0xf] %v274_v12  ;;  %277 = vst [vmem:[%s1508_s15 + $0x34] sm:$0xf] %v276_v13 }
  0x28   : > { %279 = vst [vmem:[%s1508_s15 + $0x38] sm:$0xf] %v278_v14  ;;  %v280_v15 = vld [vmem:[%s1503_s14 + $0xf0] sm:$0xf]  ;;  %v282_v16 = vld [vmem:[%s1503_s14 + $0x100] sm:$0xf] }
  0x29   : > { %v284_v17 = vld [vmem:[%s1503_s14 + $0x110] sm:$0xf]  ;;  %281 = vst [vmem:[%s1508_s15 + $0x3c] sm:$0xf] %v280_v15  ;;  %283 = vst [vmem:[%s1508_s15 + $0x40] sm:$0xf] %v282_v16 }
  0x2a   : > { %285 = vst [vmem:[%s1508_s15 + $0x44] sm:$0xf] %v284_v17  ;;  %v286_v18 = vld [vmem:[%s1503_s14 + $0x120] sm:$0xf]  ;;  %v288_v19 = vld [vmem:[%s1503_s14 + $0x130] sm:$0xf] }
  0x2b   : > { %v290_v20 = vld [vmem:[%s1503_s14 + $0x140] sm:$0xf]  ;;  %287 = vst [vmem:[%s1508_s15 + $0x48] sm:$0xf] %v286_v18  ;;  %289 = vst [vmem:[%s1508_s15 + $0x4c] sm:$0xf] %v288_v19 }
  0x2c   : > { %291 = vst [vmem:[%s1508_s15 + $0x50] sm:$0xf] %v290_v20  ;;  %v292_v21 = vld [vmem:[%s1503_s14 + $0x150] sm:$0xf]  ;;  %v294_v22 = vld [vmem:[%s1503_s14 + $0x160] sm:$0xf] }
  0x2d   : > { %v296_v23 = vld [vmem:[%s1503_s14 + $0x170] sm:$0xf]  ;;  %293 = vst [vmem:[%s1508_s15 + $0x54] sm:$0xf] %v292_v21  ;;  %295 = vst [vmem:[%s1508_s15 + $0x58] sm:$0xf] %v294_v22 }
  0x2e   : > { %297 = vst [vmem:[%s1508_s15 + $0x5c] sm:$0xf] %v296_v23  ;;  %v298_v24 = vld [vmem:[%s1503_s14 + $0x180] sm:$0xf]  ;;  %v300_v25 = vld [vmem:[%s1503_s14 + $0x190] sm:$0xf] }
  0x2f   : > { %v302_v26 = vld [vmem:[%s1503_s14 + $0x1a0] sm:$0xf]  ;;  %299 = vst [vmem:[%s1508_s15 + $0x60] sm:$0xf] %v298_v24  ;;  %301 = vst [vmem:[%s1508_s15 + $0x64] sm:$0xf] %v300_v25 }
  0x30   : > { %303 = vst [vmem:[%s1508_s15 + $0x68] sm:$0xf] %v302_v26  ;;  %v304_v27 = vld [vmem:[%s1503_s14 + $0x1b0] sm:$0xf]  ;;  %v306_v28 = vld [vmem:[%s1503_s14 + $0x1c0] sm:$0xf] }
  0x31   : > { %v308_v29 = vld [vmem:[%s1503_s14 + $0x1d0] sm:$0xf]  ;;  %305 = vst [vmem:[%s1508_s15 + $0x6c] sm:$0xf] %v304_v27  ;;  %307 = vst [vmem:[%s1508_s15 + $0x70] sm:$0xf] %v306_v28 }
  0x32   : > { %309 = vst [vmem:[%s1508_s15 + $0x74] sm:$0xf] %v308_v29  ;;  %v310_v30 = vld [vmem:[%s1503_s14 + $0x1e0] sm:$0xf]  ;;  %v312_v31 = vld [vmem:[%s1503_s14 + $0x1f0] sm:$0xf] }
  0x33   : > { %v314_v32 = vld [vmem:[%s1503_s14 + $0x200] sm:$0xf]  ;;  %311 = vst [vmem:[%s1508_s15 + $0x78] sm:$0xf] %v310_v30  ;;  %313 = vst [vmem:[%s1508_s15 + $0x7c] sm:$0xf] %v312_v31 }
  0x34   : > { %315 = vst [vmem:[%s1508_s15 + $0x80] sm:$0xf] %v314_v32  ;;  %v316_v33 = vld [vmem:[%s1503_s14 + $0x210] sm:$0xf]  ;;  %v318_v34 = vld [vmem:[%s1503_s14 + $0x220] sm:$0xf] }
  0x35   : > { %v320_v35 = vld [vmem:[%s1503_s14 + $0x230] sm:$0xf]  ;;  %317 = vst [vmem:[%s1508_s15 + $0x84] sm:$0xf] %v316_v33  ;;  %319 = vst [vmem:[%s1508_s15 + $0x88] sm:$0xf] %v318_v34 }
  0x36   : > { %321 = vst [vmem:[%s1508_s15 + $0x8c] sm:$0xf] %v320_v35  ;;  %v322_v36 = vld [vmem:[%s1503_s14 + $0x240] sm:$0xf]  ;;  %v324_v37 = vld [vmem:[%s1503_s14 + $0x250] sm:$0xf] }
  0x37   : > { %v326_v38 = vld [vmem:[%s1503_s14 + $0x260] sm:$0xf]  ;;  %323 = vst [vmem:[%s1508_s15 + $0x90] sm:$0xf] %v322_v36  ;;  %325 = vst [vmem:[%s1508_s15 + $0x94] sm:$0xf] %v324_v37 }
  0x38   : > { %327 = vst [vmem:[%s1508_s15 + $0x98] sm:$0xf] %v326_v38  ;;  %v328_v39 = vld [vmem:[%s1503_s14 + $0x270] sm:$0xf]  ;;  %v330_v40 = vld [vmem:[%s1503_s14 + $0x280] sm:$0xf] }
  0x39   : > { %v332_v41 = vld [vmem:[%s1503_s14 + $0x290] sm:$0xf]  ;;  %329 = vst [vmem:[%s1508_s15 + $0x9c] sm:$0xf] %v328_v39  ;;  %331 = vst [vmem:[%s1508_s15 + $0xa0] sm:$0xf] %v330_v40 }
  0x3a   : > { %333 = vst [vmem:[%s1508_s15 + $0xa4] sm:$0xf] %v332_v41  ;;  %v334_v42 = vld [vmem:[%s1503_s14 + $0x2a0] sm:$0xf]  ;;  %v336_v43 = vld [vmem:[%s1503_s14 + $0x2b0] sm:$0xf] }
  0x3b   : > { %v338_v44 = vld [vmem:[%s1503_s14 + $0x2c0] sm:$0xf]  ;;  %335 = vst [vmem:[%s1508_s15 + $0xa8] sm:$0xf] %v334_v42  ;;  %337 = vst [vmem:[%s1508_s15 + $0xac] sm:$0xf] %v336_v43 }
  0x3c   : > { %339 = vst [vmem:[%s1508_s15 + $0xb0] sm:$0xf] %v338_v44  ;;  %v340_v45 = vld [vmem:[%s1503_s14 + $0x2d0] sm:$0xf]  ;;  %v342_v46 = vld [vmem:[%s1503_s14 + $0x2e0] sm:$0xf] }
  0x3d   : > { %v344_v47 = vld [vmem:[%s1503_s14 + $0x2f0] sm:$0xf]  ;;  %341 = vst [vmem:[%s1508_s15 + $0xb4] sm:$0xf] %v340_v45  ;;  %343 = vst [vmem:[%s1508_s15 + $0xb8] sm:$0xf] %v342_v46 }
  0x3e   : > { %345 = vst [vmem:[%s1508_s15 + $0xbc] sm:$0xf] %v344_v47  ;;  %v346_v48 = vld [vmem:[%s1503_s14 + $0x300] sm:$0xf]  ;;  %v348_v49 = vld [vmem:[%s1503_s14 + $0x310] sm:$0xf] }
  0x3f   : > { %v350_v50 = vld [vmem:[%s1503_s14 + $0x320] sm:$0xf]  ;;  %347 = vst [vmem:[%s1508_s15 + $0xc0] sm:$0xf] %v346_v48  ;;  %349 = vst [vmem:[%s1508_s15 + $0xc4] sm:$0xf] %v348_v49 }
  0x40   : > { %351 = vst [vmem:[%s1508_s15 + $0xc8] sm:$0xf] %v350_v50  ;;  %v352_v51 = vld [vmem:[%s1503_s14 + $0x330] sm:$0xf]  ;;  %v354_v52 = vld [vmem:[%s1503_s14 + $0x340] sm:$0xf] }
  0x41   : > { %v356_v53 = vld [vmem:[%s1503_s14 + $0x350] sm:$0xf]  ;;  %353 = vst [vmem:[%s1508_s15 + $0xcc] sm:$0xf] %v352_v51  ;;  %355 = vst [vmem:[%s1508_s15 + $0xd0] sm:$0xf] %v354_v52 }
  0x42   : > { %357 = vst [vmem:[%s1508_s15 + $0xd4] sm:$0xf] %v356_v53  ;;  %v358_v54 = vld [vmem:[%s1503_s14 + $0x360] sm:$0xf]  ;;  %v360_v55 = vld [vmem:[%s1503_s14 + $0x370] sm:$0xf] }
  0x43   : > { %v362_v56 = vld [vmem:[%s1503_s14 + $0x380] sm:$0xf]  ;;  %359 = vst [vmem:[%s1508_s15 + $0xd8] sm:$0xf] %v358_v54  ;;  %361 = vst [vmem:[%s1508_s15 + $0xdc] sm:$0xf] %v360_v55 }
  0x44   : > { %363 = vst [vmem:[%s1508_s15 + $0xe0] sm:$0xf] %v362_v56  ;;  %v364_v57 = vld [vmem:[%s1503_s14 + $0x390] sm:$0xf]  ;;  %v366_v58 = vld [vmem:[%s1503_s14 + $0x3a0] sm:$0xf] }
  0x45   : > { %v368_v59 = vld [vmem:[%s1503_s14 + $0x3b0] sm:$0xf]  ;;  %365 = vst [vmem:[%s1508_s15 + $0xe4] sm:$0xf] %v364_v57  ;;  %367 = vst [vmem:[%s1508_s15 + $0xe8] sm:$0xf] %v366_v58 }
  0x46   : > { %369 = vst [vmem:[%s1508_s15 + $0xec] sm:$0xf] %v368_v59  ;;  %v370_v60 = vld [vmem:[%s1503_s14 + $0x3c0] sm:$0xf]  ;;  %v372_v61 = vld [vmem:[%s1503_s14 + $0x3d0] sm:$0xf] }
  0x47   : > { %v374_v62 = vld [vmem:[%s1503_s14 + $0x3e0] sm:$0xf]  ;;  %371 = vst [vmem:[%s1508_s15 + $0xf0] sm:$0xf] %v370_v60  ;;  %373 = vst [vmem:[%s1508_s15 + $0xf4] sm:$0xf] %v372_v61 }
  0x48   : > { %375 = vst [vmem:[%s1508_s15 + $0xf8] sm:$0xf] %v374_v62  ;;  %v376_v63 = vld [vmem:[%s1503_s14 + $0x3f0] sm:$0xf] }
  0x49   : > { %377 = vst [vmem:[%s1508_s15 + $0xfc] sm:$0xf] %v376_v63 }
  0x4a PF: > { %p1179_p7 = scmp.ge.s32.totalorder %s1409_s24, 1  ;;  %p549_p8 = scmp.lt.s32.totalorder %s1409_s24, 37 }
  0x4c   : > { %p550_p9 = pnand %p1179_p7, %p549_p8 }
  0x4d   : > { %s556_s16 = sand.u32 (!%p550_p9), 1, %s1385_s18   ;;  %p606_p10 = scmp.lt.s32.totalorder (!%p550_p9), %s1393_s20, 8 }
  0x4e   : > { %553 = sbr.rel (%p550_p9) target bundleno = 366 (0x16e), region = 77  ;;  %s1180_s17 = sshll.u32 (!%p550_p9), %s556_s16, 8 }
  0x4f   : > { %p614_p11 = scmp.lt.s32.totalorder (!%p550_p9), %s1397_s21, 3  ;;  %s1665_s26 = scalar_lea.vmem (!%p550_p9), [#allocation3], %s1180_s17 }
  0x50   : > { %p1182_p12 = scmp.ne.s32.totalorder (!%p550_p9), %s1393_s20, 0 }
  0x55   : > { %s607_s27 = scalar_select %p606_p10, %s1393_s20, 8 }
  0x56   : > { %s1767_s21 = smov (!%p614_p11, %s1397_s21), 3  ;;  %638 = sbr.rel (%p1182_p12) target bundleno = 93 (0x5d), region = 85 }
  0x57   : > { %s1181_s28 = sshll.u32 %s607_s27, 2  ;;  %s616_s18 = scalar_lea.vmem %s1745_s2, %s1767_s21  ;;  %v1411_v0 = vmov (!%p1182_p12), 0.0  }
  0x58   : > { %s1647_s7 = scalar_lea.vmem %s1743_s0, %s1181_s28  ;;  %s619_s12 = scalar_lea.vmem %s1746_s3, %s1767_s21  ;;  %639 = vst [vmem:[#allocation2] sm:$0x3] (!%p1182_p12), %v1411_v0 }
  0x59   : > { %s626_s15 = scalar_lea.vmem %s1747_s4, %s1767_s21  ;;  %s633_s27 = scalar_lea.vmem %s1748_s5, %s1767_s21 }
  0x5d PF: > { %v1323_v1 = vld [vmem:[%s1665_s26 + $0x40] sm:$0xff]   ;;  %v1327_v5 = vld [vmem:[%s1665_s26 + $0x48] sm:$0xff]   ;;  %v1331_v9 = vld [vmem:[%s1665_s26 + $0x50] sm:$0xff]   ;;  %v718_v31 = vlaneseq  ;;  %v1412_v35 = vmov 1966171168   ;;  %p1216_p13 = scmp.ne.s32.totalorder %s1393_s20, 8 }
  0x5e   : > { %v1324_v2 = vld [vmem:[%s1665_s26 + $0xc0] sm:$0xff]   ;;  %1221 = vmatprep.subr.bf16.mxu0 %v1323_v1  ;;  %v1328_v6 = vld [vmem:[%s1665_s26 + $0xc8] sm:$0xff]   ;;  %v1332_v10 = vld [vmem:[%s1665_s26 + $0xd0] sm:$0xff]   ;;  %v716_v36 = vunpack.c.l.s4 %v1412_v35 }
  0x5f   : > { %v1325_v3 = vld [vmem:[%s1665_s26] sm:$0xff]   ;;  %1243 = vmatprep.subr.bf16.mxu1 %v1324_v2  ;;  %v1329_v7 = vld [vmem:[%s1665_s26 + $0x8] sm:$0xff]   ;;  %v1333_v11 = vld [vmem:[%s1665_s26 + $0x10] sm:$0xff]   ;;  %v719_v37 = vshrl.u32 %v718_v31, 7 }
  0x60   : > { %v1326_v4 = vld [vmem:[%s1665_s26 + $0x80] sm:$0xff]   ;;  %1222 = vmatpush3.bf16.msra.mxu0 %v1325_v3  ;;  %v1330_v8 = vld [vmem:[%s1665_s26 + $0x88] sm:$0xff]   ;;  %v1334_v12 = vld [vmem:[%s1665_s26 + $0x90] sm:$0xff]   ;;  %v717_v39 = vunpack.c.0.s8 %v716_v36 }
  0x61   : > { %1244 = vmatpush3.bf16.msra.mxu1 %v1326_v4  ;;  %1223 = vmatprep.subr.bf16.mxu0 %v1327_v5  ;;  %v1335_v13 = vld [vmem:[%s1665_s26 + $0x58] sm:$0xff]   ;;  %v1339_v17 = vld [vmem:[%s1665_s26 + $0x60] sm:$0xff]   ;;  %v1343_v21 = vld [vmem:[%s1665_s26 + $0x68] sm:$0xff]  }
  0x62   : > { %1245 = vmatprep.subr.bf16.mxu1 %v1328_v6  ;;  %v1336_v14 = vld [vmem:[%s1665_s26 + $0xd8] sm:$0xff]   ;;  %v1340_v18 = vld [vmem:[%s1665_s26 + $0xe0] sm:$0xff]   ;;  %v1344_v22 = vld [vmem:[%s1665_s26 + $0xe8] sm:$0xff]   ;;  %v720_v40 = vsub.s32 %v717_v39, %v719_v37 }
  0x63   : > { %v1337_v15 = vld [vmem:[%s1665_s26 + $0x18] sm:$0xff]   ;;  %v1341_v19 = vld [vmem:[%s1665_s26 + $0x20] sm:$0xff]   ;;  %v1345_v23 = vld [vmem:[%s1665_s26 + $0x28] sm:$0xff]  }
  0x64   : > { %1224 = vmatpush3.bf16.msra.mxu0 %v1329_v7  ;;  %v1338_v16 = vld [vmem:[%s1665_s26 + $0x98] sm:$0xff]   ;;  %v1342_v20 = vld [vmem:[%s1665_s26 + $0xa0] sm:$0xff]   ;;  %v1346_v24 = vld [vmem:[%s1665_s26 + $0xa8] sm:$0xff]  }
  0x65   : > { %1246 = vmatpush3.bf16.msra.mxu1 %v1330_v8  ;;  %1225 = vmatprep.subr.bf16.mxu0 %v1331_v9  ;;  %v1347_v25 = vld [vmem:[%s1665_s26 + $0x70] sm:$0xff]   ;;  %v1351_v29 = vld [vmem:[%s1665_s26 + $0x78] sm:$0xff]  }
  0x66   : > { %1247 = vmatprep.subr.bf16.mxu1 %v1332_v10  ;;  %v1348_v26 = vld [vmem:[%s1665_s26 + $0xf0] sm:$0xff]   ;;  %v1352_v30 = vld [vmem:[%s1665_s26 + $0xf8] sm:$0xff]  }
  0x67   : > { %v1349_v27 = vld [vmem:[%s1665_s26 + $0x30] sm:$0xff]   ;;  %v1353_v32 = vld [vmem:[%s1665_s26 + $0x38] sm:$0xff]  }
  0x68   : > { %1226 = vmatpush3.bf16.msra.mxu0 %v1333_v11  ;;  %v1350_v28 = vld [vmem:[%s1665_s26 + $0xb0] sm:$0xff]   ;;  %v1354_v33 = vld [vmem:[%s1665_s26 + $0xb8] sm:$0xff]  }
  0x69   : > { %1248 = vmatpush3.bf16.msra.mxu1 %v1334_v12  ;;  %1227 = vmatprep.subr.bf16.mxu0 %v1335_v13  ;;  %v1183_v34 = vld.sshfl [vmem:[%s1647_s7] sm:$0x33 pattern:$0x75316420] }
  0x6a   : > { %1249 = vmatprep.subr.bf16.mxu1 %v1336_v14  ;;  %v714_v38 = vcombine.high %v1183_v34, %v1183_v34  ;;  %v721_v42 = vrot.slane %v1183_v34, %v720_v40  ;;  %v640_v54 = vld [vmem:[#allocation2] sm:$0x3] }
  0x6b   : > { %v1217_v59 = vld [vmem:[%s616_s18] ss:$0 sm:$0xff] (!%p1216_p13) }
  0x6c   : > { %1228 = vmatpush3.bf16.msra.mxu0 %v1337_v15  ;;  %v728_v41 = vrot.slane %v714_v38, %v720_v40  ;;  %v729_v44 = vcombine.high %v721_v42, %v721_v42  ;;  %v1218_v60 = vld [vmem:[%s619_s12] ss:$0 sm:$0xff] (!%p1216_p13) }
  0x6d   : > { %1250 = vmatpush3.bf16.msra.mxu1 %v1338_v16  ;;  %1229 = vmatprep.subr.bf16.mxu0 %v1339_v17  ;;  %v1030_v62 = vld [vmem:[%s626_s15] sm:$0x1] (!%p1216_p13) }
  0x6e   : > { %1251 = vmatprep.subr.bf16.mxu1 %v1340_v18  ;;  %959 = vmatprep.mubr.bf16.mxu0 %v728_v41  ;;  %v730_v43 = vcombine.high %v728_v41, %v728_v41  ;;  %v1031_v63 = vunpack.c.l.bf16 (!%p1216_p13), %v1030_v62 }
  0x70   : > { %1230 = vmatpush3.bf16.msra.mxu0 %v1341_v19  ;;  %999 = vmatprep.mubr.bf16.mxu1 %v730_v43 }
  0x71   : > { %1252 = vmatpush3.bf16.msra.mxu1 %v1342_v20  ;;  %1231 = vmatprep.subr.bf16.mxu0 %v1343_v21 }
  0x72   : > { %1253 = vmatprep.subr.bf16.mxu1 %v1344_v22 }
  0x74   : > { %1232 = vmatpush3.bf16.msra.mxu0 %v1345_v23 }
  0x75   : > { %1254 = vmatpush3.bf16.msra.mxu1 %v1346_v24  ;;  %1233 = vmatprep.subr.bf16.mxu0 %v1347_v25 }
  0x76   : > { %1255 = vmatprep.subr.bf16.mxu1 %v1348_v26 }
  0x78   : > { %1234 = vmatpush3.bf16.msra.mxu0 %v1349_v27 }
  0x79   : > { %1256 = vmatpush3.bf16.msra.mxu1 %v1350_v28  ;;  %1235 = vmatprep.subr.bf16.mxu0 %v1351_v29 }
  0x7a   : > { %1257 = vmatprep.subr.bf16.mxu1 %v1352_v30 }
  0x7c   : > { %1236 = vmatpush3.bf16.msra.mxu0 %v1353_v32 }
  0x7d   : > { %1258 = vmatpush3.bf16.msra.mxu1 %v1354_v33 }
  0x7f   : > { %960 = vmatmul.mubr.bf16.vlgmr.msra.gmra.mrb[0].mxu0 %v721_v42 }
  0x80   : > { %1000 = vmatmul.mubr.bf16.vlgmr.msra.gmra.mrb[0].mxu1 %v729_v44 }
 0x152   : > { %v1237_v45 = vpop.f32.mrb[0].mxu0 }
 0x153   : > { %v1238_v46 = vpop.f32.mrb[1].mxu0  ;;  %v1259_v47 = vpop.f32.mrb[0].mxu1 }
 0x154   : > { %v1239_v48 = vadd.f32 %v1238_v46, %v1237_v45  ;;  %v1240_v49 = vpop.f32.mrb[2].mxu0  ;;  %v1260_v50 = vpop.f32.mrb[1].mxu1 }
 0x155   : > { %v1241_v51 = vpop.f32.mrb[3].mxu0  ;;  %v1261_v52 = vadd.f32 %v1260_v50, %v1259_v47  ;;  %v1262_v53 = vpop.f32.mrb[2].mxu1  ;;  %1012 = sbr.rel (%p1216_p13) target bundleno = 366 (0x16e), region = 89 }
 0x156   : > { %v1263_v55 = vpop.f32.mrb[3].mxu1 }
 0x157   : > { %v1002_v56 = vadd.f32 %v1261_v52, %v1239_v48 }
 0x159   : > { %v1007_v57 = vadd.f32 %v1002_v56, %v640_v54 }
 0x15b   : > { %1008 = vst [vmem:[#allocation2] sm:$0x3] %v1007_v57 }
 0x162   : > { %v1013_v58 = vld [vmem:[#allocation2] sm:$0x3] }
 0x163   : > { %v1021_v61 = vmul.f32 %v1217_v59, %v1013_v58 }
 0x165   : > { %v1029_v0 = vadd.f32 %v1218_v60, %v1021_v61 }
 0x167   : > { %v1032_v1 = vadd.f32 %v1031_v63, %v1029_v0 }
 0x169   : > { %v1033_v2 = vmax.f32 %v1032_v1, 0.0 }
 0x16b   : > { %v1034_v3 = vpack.c.bf16 %v1033_v2, %v1033_v2 }
 0x16d   : > { %1035 = vst [vmem:[%s633_s27] sm:$0x1] %v1034_v3 }
 0x16e PF: > { %s15_s24 = sadd.s32 1, %s1409_s24   ;;  %s1753_s8 = sld [smem:[#allocation4_spill]] }
 0x16f   : > { %p12_p0 = scmp.ge.s32.totalorder %s15_s24, 38   ;;  %s1754_s18 = smov %s1389_s19 }
 0x170   : > { %s1755_s19 = smov %s1494_s6  ;;  %s1756_s20 = smov %s1401_s22 }
 0x171   : > { %s1757_s21 = smov %s1405_s23  ;;  %s1758_s22 = smov %s1761_s25 }
 0x172   :  { %14 = sbr.rel (!%p12_p0) target bundleno = 6 (0x6), region = 136 }
 0x174   : > { %s1759_s23 = smov %s1753_s8 }

// kernel: ctr_predictor_forward.43
= control target key start
LH: loop header
LB: loop body
LE: loop exit
PB: predicated region body
PF: predicated region fallthrough
CT: control target
= control target key end

     0   :  { %s1746_s0 = inlined_call_operand.vmem [shape: bf16[9,2,512], index: 0, kind: input, shape index: {}, may-alias: {0,5}]   ;;  %s1747_s1 = inlined_call_operand.vmem [shape: bf16[9,2,512], index: 1, kind: input, shape index: {}]   ;;  %s1748_s2 = inlined_call_operand.vmem [shape: bf16[9,512,512], index: 2, kind: input, shape index: {}]   ;;  %s1749_s3 = inlined_call_operand.vmem [shape: f32[1,512], index: 3, kind: input, shape index: {}]   ;;  %s1750_s4 = inlined_call_operand.vmem [shape: f32[1,512], index: 4, kind: input, shape index: {}]   ;;  %s1751_s5 = inlined_call_operand.vmem [shape: bf16[9,2,512], index: 5, kind: output, shape index: {}, may-alias: {0,5}]  }
   0x1   :  { %1753 = sst [smem:[#allocation6_spill]] %s1748_s2 }
   0x2   :  { %s1420_s18 = smov 0   ;;  %s1422_s19 = smov 0  }
   0x3   :  { %s1424_s0 = smov 0   ;;  %s1426_s20 = smov 0  }
   0x4   :  { %s1428_s21 = smov 0   ;;  %s1430_s22 = smov 0  }
   0x5   :  { %s1432_s23 = smov 0   ;;  %s1434_s24 = smov 0  }
   0x6   :  { %s1436_s25 = smov 0  }
   0x7 LB: > { %s28_s26 = sadd.s32 1, %s1378_s23  ;;  %s31_s27 = sadd.s32 1, %s1382_s24  ;;  %s1386_s25 = sphi %s1436_s25, %s16_s25   ;;  %s1382_s24 = sphi %s1434_s24, %s1766_s24   ;;  %s1378_s23 = sphi %s1432_s23, %s1765_s23   ;;  %s1374_s22 = sphi %s1430_s22, %s1764_s22   ;;  %s1370_s21 = sphi %s1428_s21, %s1763_s21   ;;  %s1366_s20 = sphi %s1426_s20, %s1762_s20   ;;  %s1362_s0 = sphi %s1424_s0, %s1761_s0   ;;  %s1358_s19 = sphi %s1422_s19, %s1760_s19   ;;  %s1354_s18 = sphi %s1420_s18, %s1759_s18  }
   0x8   : > { %p29_p0 = scmp.ge.s32.totalorder %s28_s26, 9  ;;  %p79_p1 = scmp.ne.s32.totalorder %s1366_s20, %s1362_s0 }
   0x9   : > { %s1116_s28 = sadd.s32 4294967295, %s1386_s25   ;;  %p80_p2 = scmp.eq.s32.totalorder %s1386_s25, 0 }
   0xa   : > { %s1768_s26 = smov (%p29_p0, %s28_s26), 0  ;;  %s1770_s27 = smov (!%p29_p0, %s31_s27), %s1382_s24 }
   0xb   : > { %p33_p3 = scmp.ge.s32.totalorder %s1770_s27, 4  ;;  %s67_s29 = ssub.s32 %s1378_s23, %s1768_s26 }
   0xc   : > { %p1476_p4 = por %p80_p2, %p79_p1  ;;  %p162_p5 = scmp.ne.s32.totalorder %s1358_s19, %s1354_s18 }
   0xd   : > { %s1772_s27 = smov (%p33_p3, %s1770_s27), 0  ;;  %s72_s6 = sadd.s32 1, %s1366_s20 }
   0xe   : > { %1755 = sst [smem:[#allocation5_spill]] %s1772_s27  ;;  %p163_p6 = scmp.eq.s32.totalorder %s1116_s28, 35 }
   0xf   : > { %s68_s7 = ssub.s32 %s1382_s24, %s1772_s27  ;;  %s152_s8 = sadd.s32 1, %s1358_s19 }
  0x10   : > { %s69_s9 = sor.u32 %s68_s7, %s67_s29  ;;  %p150_p7 = scmp.eq.s32.totalorder %s68_s7, 0 }
  0x11   : > { %p70_p8 = scmp.eq.s32.totalorder %s69_s9, 0  ;;  %p1488_p9 = por %p163_p6, %p162_p5 }
  0x12   : > { %s1493_s11 = scalar_select %p150_p7, %s1358_s19, %s152_s8  }
  0x13   : > { %s1496_s12 = scalar_select %p70_p8, %s1366_s20, %s72_s6  }
  0x14   : > { %p1119_p10 = scmp.ge.s32.totalorder %s1386_s25, 36 }
  0x16   : > { %185 = sbr.rel (%p1119_p10) target bundleno = 82 (0x52), region = 16 }
  0x1d   : > { %199 = sbr.rel (!%p1476_p4) target bundleno = 82 (0x52), region = 24  ;;  %s201_s13 = sand.u32 (%p1476_p4), 1, %s1366_s20  }
  0x1e   : > { %s1121_s14 = sshll.u32 (%p1476_p4), %s1378_s23, 8  ;;  %s1120_s15 = sshll.u32 (%p1476_p4), %s201_s13, 8 }
  0x1f   : > { %s205_s16 = sadd.s32 (%p1476_p4), %s1382_s24, %s1121_s14  ;;  %s1757_s2 = sld [smem:[#allocation6_spill]] (%p1476_p4) }
  0x20   : > { %s1122_s17 = sshll.u32 (%p1476_p4), %s205_s16, 2  ;;  %s1512_s30 = scalar_lea.vmem (%p1476_p4), [#allocation3], %s1120_s15 }
  0x25   : > { %s1507_s7 = scalar_lea.vmem %s1757_s2, %s1122_s17 }
  0x26   : > { %v223_v0 = vld [vmem:[%s1507_s7] sm:$0xf]  ;;  %v225_v1 = vld [vmem:[%s1507_s7 + $0x10] sm:$0xf] }
  0x27   : > { %v227_v2 = vld [vmem:[%s1507_s7 + $0x20] sm:$0xf]  ;;  %224 = vst [vmem:[%s1512_s30] sm:$0xf] %v223_v0  ;;  %226 = vst [vmem:[%s1512_s30 + $0x4] sm:$0xf] %v225_v1 }
  0x28   : > { %228 = vst [vmem:[%s1512_s30 + $0x8] sm:$0xf] %v227_v2  ;;  %v229_v3 = vld [vmem:[%s1507_s7 + $0x30] sm:$0xf]  ;;  %v231_v4 = vld [vmem:[%s1507_s7 + $0x40] sm:$0xf] }
  0x29   : > { %v233_v5 = vld [vmem:[%s1507_s7 + $0x50] sm:$0xf]  ;;  %230 = vst [vmem:[%s1512_s30 + $0xc] sm:$0xf] %v229_v3  ;;  %232 = vst [vmem:[%s1512_s30 + $0x10] sm:$0xf] %v231_v4 }
  0x2a   : > { %234 = vst [vmem:[%s1512_s30 + $0x14] sm:$0xf] %v233_v5  ;;  %v235_v6 = vld [vmem:[%s1507_s7 + $0x60] sm:$0xf]  ;;  %v237_v7 = vld [vmem:[%s1507_s7 + $0x70] sm:$0xf] }
  0x2b   : > { %v239_v8 = vld [vmem:[%s1507_s7 + $0x80] sm:$0xf]  ;;  %236 = vst [vmem:[%s1512_s30 + $0x18] sm:$0xf] %v235_v6  ;;  %238 = vst [vmem:[%s1512_s30 + $0x1c] sm:$0xf] %v237_v7 }
  0x2c   : > { %240 = vst [vmem:[%s1512_s30 + $0x20] sm:$0xf] %v239_v8  ;;  %v241_v9 = vld [vmem:[%s1507_s7 + $0x90] sm:$0xf]  ;;  %v243_v10 = vld [vmem:[%s1507_s7 + $0xa0] sm:$0xf] }
  0x2d   : > { %v245_v11 = vld [vmem:[%s1507_s7 + $0xb0] sm:$0xf]  ;;  %242 = vst [vmem:[%s1512_s30 + $0x24] sm:$0xf] %v241_v9  ;;  %244 = vst [vmem:[%s1512_s30 + $0x28] sm:$0xf] %v243_v10 }
  0x2e   : > { %246 = vst [vmem:[%s1512_s30 + $0x2c] sm:$0xf] %v245_v11  ;;  %v247_v12 = vld [vmem:[%s1507_s7 + $0xc0] sm:$0xf]  ;;  %v249_v13 = vld [vmem:[%s1507_s7 + $0xd0] sm:$0xf] }
  0x2f   : > { %v251_v14 = vld [vmem:[%s1507_s7 + $0xe0] sm:$0xf]  ;;  %248 = vst [vmem:[%s1512_s30 + $0x30] sm:$0xf] %v247_v12  ;;  %250 = vst [vmem:[%s1512_s30 + $0x34] sm:$0xf] %v249_v13 }
  0x30   : > { %252 = vst [vmem:[%s1512_s30 + $0x38] sm:$0xf] %v251_v14  ;;  %v253_v15 = vld [vmem:[%s1507_s7 + $0xf0] sm:$0xf]  ;;  %v255_v16 = vld [vmem:[%s1507_s7 + $0x100] sm:$0xf] }
  0x31   : > { %v257_v17 = vld [vmem:[%s1507_s7 + $0x110] sm:$0xf]  ;;  %254 = vst [vmem:[%s1512_s30 + $0x3c] sm:$0xf] %v253_v15  ;;  %256 = vst [vmem:[%s1512_s30 + $0x40] sm:$0xf] %v255_v16 }
  0x32   : > { %258 = vst [vmem:[%s1512_s30 + $0x44] sm:$0xf] %v257_v17  ;;  %v259_v18 = vld [vmem:[%s1507_s7 + $0x120] sm:$0xf]  ;;  %v261_v19 = vld [vmem:[%s1507_s7 + $0x130] sm:$0xf] }
  0x33   : > { %v263_v20 = vld [vmem:[%s1507_s7 + $0x140] sm:$0xf]  ;;  %260 = vst [vmem:[%s1512_s30 + $0x48] sm:$0xf] %v259_v18  ;;  %262 = vst [vmem:[%s1512_s30 + $0x4c] sm:$0xf] %v261_v19 }
  0x34   : > { %264 = vst [vmem:[%s1512_s30 + $0x50] sm:$0xf] %v263_v20  ;;  %v265_v21 = vld [vmem:[%s1507_s7 + $0x150] sm:$0xf]  ;;  %v267_v22 = vld [vmem:[%s1507_s7 + $0x160] sm:$0xf] }
  0x35   : > { %v269_v23 = vld [vmem:[%s1507_s7 + $0x170] sm:$0xf]  ;;  %266 = vst [vmem:[%s1512_s30 + $0x54] sm:$0xf] %v265_v21  ;;  %268 = vst [vmem:[%s1512_s30 + $0x58] sm:$0xf] %v267_v22 }
  0x36   : > { %270 = vst [vmem:[%s1512_s30 + $0x5c] sm:$0xf] %v269_v23  ;;  %v271_v24 = vld [vmem:[%s1507_s7 + $0x180] sm:$0xf]  ;;  %v273_v25 = vld [vmem:[%s1507_s7 + $0x190] sm:$0xf] }
  0x37   : > { %v275_v26 = vld [vmem:[%s1507_s7 + $0x1a0] sm:$0xf]  ;;  %272 = vst [vmem:[%s1512_s30 + $0x60] sm:$0xf] %v271_v24  ;;  %274 = vst [vmem:[%s1512_s30 + $0x64] sm:$0xf] %v273_v25 }
  0x38   : > { %276 = vst [vmem:[%s1512_s30 + $0x68] sm:$0xf] %v275_v26  ;;  %v277_v27 = vld [vmem:[%s1507_s7 + $0x1b0] sm:$0xf]  ;;  %v279_v28 = vld [vmem:[%s1507_s7 + $0x1c0] sm:$0xf] }
  0x39   : > { %v281_v29 = vld [vmem:[%s1507_s7 + $0x1d0] sm:$0xf]  ;;  %278 = vst [vmem:[%s1512_s30 + $0x6c] sm:$0xf] %v277_v27  ;;  %280 = vst [vmem:[%s1512_s30 + $0x70] sm:$0xf] %v279_v28 }
  0x3a   : > { %282 = vst [vmem:[%s1512_s30 + $0x74] sm:$0xf] %v281_v29  ;;  %v283_v30 = vld [vmem:[%s1507_s7 + $0x1e0] sm:$0xf]  ;;  %v285_v31 = vld [vmem:[%s1507_s7 + $0x1f0] sm:$0xf] }
  0x3b   : > { %v287_v32 = vld [vmem:[%s1507_s7 + $0x200] sm:$0xf]  ;;  %284 = vst [vmem:[%s1512_s30 + $0x78] sm:$0xf] %v283_v30  ;;  %286 = vst [vmem:[%s1512_s30 + $0x7c] sm:$0xf] %v285_v31 }
  0x3c   : > { %288 = vst [vmem:[%s1512_s30 + $0x80] sm:$0xf] %v287_v32  ;;  %v289_v33 = vld [vmem:[%s1507_s7 + $0x210] sm:$0xf]  ;;  %v291_v34 = vld [vmem:[%s1507_s7 + $0x220] sm:$0xf] }
  0x3d   : > { %v293_v35 = vld [vmem:[%s1507_s7 + $0x230] sm:$0xf]  ;;  %290 = vst [vmem:[%s1512_s30 + $0x84] sm:$0xf] %v289_v33  ;;  %292 = vst [vmem:[%s1512_s30 + $0x88] sm:$0xf] %v291_v34 }
  0x3e   : > { %294 = vst [vmem:[%s1512_s30 + $0x8c] sm:$0xf] %v293_v35  ;;  %v295_v36 = vld [vmem:[%s1507_s7 + $0x240] sm:$0xf]  ;;  %v297_v37 = vld [vmem:[%s1507_s7 + $0x250] sm:$0xf] }
  0x3f   : > { %v299_v38 = vld [vmem:[%s1507_s7 + $0x260] sm:$0xf]  ;;  %296 = vst [vmem:[%s1512_s30 + $0x90] sm:$0xf] %v295_v36  ;;  %298 = vst [vmem:[%s1512_s30 + $0x94] sm:$0xf] %v297_v37 }
  0x40   : > { %300 = vst [vmem:[%s1512_s30 + $0x98] sm:$0xf] %v299_v38  ;;  %v301_v39 = vld [vmem:[%s1507_s7 + $0x270] sm:$0xf]  ;;  %v303_v40 = vld [vmem:[%s1507_s7 + $0x280] sm:$0xf] }
  0x41   : > { %v305_v41 = vld [vmem:[%s1507_s7 + $0x290] sm:$0xf]  ;;  %302 = vst [vmem:[%s1512_s30 + $0x9c] sm:$0xf] %v301_v39  ;;  %304 = vst [vmem:[%s1512_s30 + $0xa0] sm:$0xf] %v303_v40 }
  0x42   : > { %306 = vst [vmem:[%s1512_s30 + $0xa4] sm:$0xf] %v305_v41  ;;  %v307_v42 = vld [vmem:[%s1507_s7 + $0x2a0] sm:$0xf]  ;;  %v309_v43 = vld [vmem:[%s1507_s7 + $0x2b0] sm:$0xf] }
  0x43   : > { %v311_v44 = vld [vmem:[%s1507_s7 + $0x2c0] sm:$0xf]  ;;  %308 = vst [vmem:[%s1512_s30 + $0xa8] sm:$0xf] %v307_v42  ;;  %310 = vst [vmem:[%s1512_s30 + $0xac] sm:$0xf] %v309_v43 }
  0x44   : > { %312 = vst [vmem:[%s1512_s30 + $0xb0] sm:$0xf] %v311_v44  ;;  %v313_v45 = vld [vmem:[%s1507_s7 + $0x2d0] sm:$0xf]  ;;  %v315_v46 = vld [vmem:[%s1507_s7 + $0x2e0] sm:$0xf] }
  0x45   : > { %v317_v47 = vld [vmem:[%s1507_s7 + $0x2f0] sm:$0xf]  ;;  %314 = vst [vmem:[%s1512_s30 + $0xb4] sm:$0xf] %v313_v45  ;;  %316 = vst [vmem:[%s1512_s30 + $0xb8] sm:$0xf] %v315_v46 }
  0x46   : > { %318 = vst [vmem:[%s1512_s30 + $0xbc] sm:$0xf] %v317_v47  ;;  %v319_v48 = vld [vmem:[%s1507_s7 + $0x300] sm:$0xf]  ;;  %v321_v49 = vld [vmem:[%s1507_s7 + $0x310] sm:$0xf] }
  0x47   : > { %v323_v50 = vld [vmem:[%s1507_s7 + $0x320] sm:$0xf]  ;;  %320 = vst [vmem:[%s1512_s30 + $0xc0] sm:$0xf] %v319_v48  ;;  %322 = vst [vmem:[%s1512_s30 + $0xc4] sm:$0xf] %v321_v49 }
  0x48   : > { %324 = vst [vmem:[%s1512_s30 + $0xc8] sm:$0xf] %v323_v50  ;;  %v325_v51 = vld [vmem:[%s1507_s7 + $0x330] sm:$0xf]  ;;  %v327_v52 = vld [vmem:[%s1507_s7 + $0x340] sm:$0xf] }
  0x49   : > { %v329_v53 = vld [vmem:[%s1507_s7 + $0x350] sm:$0xf]  ;;  %326 = vst [vmem:[%s1512_s30 + $0xcc] sm:$0xf] %v325_v51  ;;  %328 = vst [vmem:[%s1512_s30 + $0xd0] sm:$0xf] %v327_v52 }
  0x4a   : > { %330 = vst [vmem:[%s1512_s30 + $0xd4] sm:$0xf] %v329_v53  ;;  %v331_v54 = vld [vmem:[%s1507_s7 + $0x360] sm:$0xf]  ;;  %v333_v55 = vld [vmem:[%s1507_s7 + $0x370] sm:$0xf] }
  0x4b   : > { %v335_v56 = vld [vmem:[%s1507_s7 + $0x380] sm:$0xf]  ;;  %332 = vst [vmem:[%s1512_s30 + $0xd8] sm:$0xf] %v331_v54  ;;  %334 = vst [vmem:[%s1512_s30 + $0xdc] sm:$0xf] %v333_v55 }
  0x4c   : > { %336 = vst [vmem:[%s1512_s30 + $0xe0] sm:$0xf] %v335_v56  ;;  %v337_v57 = vld [vmem:[%s1507_s7 + $0x390] sm:$0xf]  ;;  %v339_v58 = vld [vmem:[%s1507_s7 + $0x3a0] sm:$0xf] }
  0x4d   : > { %v341_v59 = vld [vmem:[%s1507_s7 + $0x3b0] sm:$0xf]  ;;  %338 = vst [vmem:[%s1512_s30 + $0xe4] sm:$0xf] %v337_v57  ;;  %340 = vst [vmem:[%s1512_s30 + $0xe8] sm:$0xf] %v339_v58 }
  0x4e   : > { %342 = vst [vmem:[%s1512_s30 + $0xec] sm:$0xf] %v341_v59  ;;  %v343_v60 = vld [vmem:[%s1507_s7 + $0x3c0] sm:$0xf]  ;;  %v345_v61 = vld [vmem:[%s1507_s7 + $0x3d0] sm:$0xf] }
  0x4f   : > { %v347_v62 = vld [vmem:[%s1507_s7 + $0x3e0] sm:$0xf]  ;;  %344 = vst [vmem:[%s1512_s30 + $0xf0] sm:$0xf] %v343_v60  ;;  %346 = vst [vmem:[%s1512_s30 + $0xf4] sm:$0xf] %v345_v61 }
  0x50   : > { %348 = vst [vmem:[%s1512_s30 + $0xf8] sm:$0xf] %v347_v62  ;;  %v349_v63 = vld [vmem:[%s1507_s7 + $0x3f0] sm:$0xf] }
  0x51   : > { %350 = vst [vmem:[%s1512_s30 + $0xfc] sm:$0xf] %v349_v63 }
  0x52 PF: > { %p1123_p11 = scmp.ge.s32.totalorder %s1386_s25, 1  ;;  %p512_p12 = scmp.lt.s32.totalorder %s1386_s25, 37 }
  0x54   : > { %p513_p13 = pnand %p1123_p11, %p512_p12 }
  0x55   : > { %s519_s6 = sand.u32 (!%p513_p13), 1, %s1362_s0   ;;  %s554_s8 = sand.u32 (!%p513_p13), 1, %s1354_s18  }
  0x56   : > { %516 = sbr.rel (%p513_p13) target bundleno = 381 (0x17d), region = 73  ;;  %s1124_s9 = sshll.u32 (!%p513_p13), %s519_s6, 8 }
  0x57   : > { %p556_p0 = scmp.lt.s32.totalorder (!%p513_p13), %s1370_s21, 8  ;;  %p564_p1 = scmp.lt.s32.totalorder (!%p513_p13), %s1374_s22, 3 }
  0x58   : > { %s1662_s2 = scalar_lea.vmem (!%p513_p13), [#allocation3], %s1124_s9  ;;  %s1664_s27 = scalar_lea.vmem (!%p513_p13), [#allocation4], %s554_s8 }
  0x59   : > { %p1126_p2 = scmp.ne.s32.totalorder (!%p513_p13), %s1370_s21, 0 }
  0x5d   : > { %s557_s13 = scalar_select %p556_p0, %s1370_s21, 8 }
  0x5e   : > { %s1647_s14 = scalar_select %p564_p1, %s1374_s22, 3 }
  0x5f   : > { %s1125_s15 = sshll.u32 %s557_s13, 2  ;;  %574 = sbr.rel (%p1126_p2) target bundleno = 102 (0x66), region = 81  ;;  %v1388_v0 = vmov (!%p1126_p2), 0.0  }
  0x60   : > { %s1652_s28 = scalar_lea.vmem %s1747_s1, %s1125_s15  ;;  %s566_s30 = scalar_lea.vmem %s1749_s3, %s1647_s14  ;;  %575 = vst [vmem:[#allocation2] sm:$0x3] (!%p1126_p2), %v1388_v0 }
  0x61   : > { %s569_s6 = scalar_lea.vmem %s1750_s4, %s1647_s14 }
  0x66 PF: > { %v1284_v1 = vld [vmem:[%s1662_s2 + $0x40] sm:$0xff]   ;;  %v1288_v5 = vld [vmem:[%s1662_s2 + $0x48] sm:$0xff]   ;;  %v1292_v9 = vld [vmem:[%s1662_s2 + $0x50] sm:$0xff]   ;;  %v654_v31 = vlaneseq  ;;  %v1389_v35 = vmov 1966171168   ;;  %p1160_p3 = scmp.ne.s32.totalorder %s1370_s21, 8 }
  0x67   : > { %v1285_v2 = vld [vmem:[%s1662_s2 + $0xc0] sm:$0xff]   ;;  %1166 = vmatprep.subr.bf16.mxu0 %v1284_v1  ;;  %v1289_v6 = vld [vmem:[%s1662_s2 + $0xc8] sm:$0xff]   ;;  %v1293_v10 = vld [vmem:[%s1662_s2 + $0xd0] sm:$0xff]   ;;  %v652_v36 = vunpack.c.l.s4 %v1389_v35 }
  0x68   : > { %v1286_v3 = vld [vmem:[%s1662_s2] sm:$0xff]   ;;  %1188 = vmatprep.subr.bf16.mxu1 %v1285_v2  ;;  %v1290_v7 = vld [vmem:[%s1662_s2 + $0x8] sm:$0xff]   ;;  %v1294_v11 = vld [vmem:[%s1662_s2 + $0x10] sm:$0xff]   ;;  %v655_v37 = vshrl.u32 %v654_v31, 7 }
  0x69   : > { %v1287_v4 = vld [vmem:[%s1662_s2 + $0x80] sm:$0xff]   ;;  %1167 = vmatpush3.bf16.msra.mxu0 %v1286_v3  ;;  %v1291_v8 = vld [vmem:[%s1662_s2 + $0x88] sm:$0xff]   ;;  %v1295_v12 = vld [vmem:[%s1662_s2 + $0x90] sm:$0xff]   ;;  %v653_v39 = vunpack.c.0.s8 %v652_v36 }
  0x6a   : > { %1189 = vmatpush3.bf16.msra.mxu1 %v1287_v4  ;;  %1168 = vmatprep.subr.bf16.mxu0 %v1288_v5  ;;  %v1296_v13 = vld [vmem:[%s1662_s2 + $0x58] sm:$0xff]   ;;  %v1300_v17 = vld [vmem:[%s1662_s2 + $0x60] sm:$0xff]   ;;  %v1304_v21 = vld [vmem:[%s1662_s2 + $0x68] sm:$0xff]  }
  0x6b   : > { %1190 = vmatprep.subr.bf16.mxu1 %v1289_v6  ;;  %v1297_v14 = vld [vmem:[%s1662_s2 + $0xd8] sm:$0xff]   ;;  %v1301_v18 = vld [vmem:[%s1662_s2 + $0xe0] sm:$0xff]   ;;  %v1305_v22 = vld [vmem:[%s1662_s2 + $0xe8] sm:$0xff]   ;;  %v656_v40 = vsub.s32 %v653_v39, %v655_v37 }
  0x6c   : > { %v1298_v15 = vld [vmem:[%s1662_s2 + $0x18] sm:$0xff]   ;;  %v1302_v19 = vld [vmem:[%s1662_s2 + $0x20] sm:$0xff]   ;;  %v1306_v23 = vld [vmem:[%s1662_s2 + $0x28] sm:$0xff]  }
  0x6d   : > { %1169 = vmatpush3.bf16.msra.mxu0 %v1290_v7  ;;  %v1299_v16 = vld [vmem:[%s1662_s2 + $0x98] sm:$0xff]   ;;  %v1303_v20 = vld [vmem:[%s1662_s2 + $0xa0] sm:$0xff]   ;;  %v1307_v24 = vld [vmem:[%s1662_s2 + $0xa8] sm:$0xff]  }
  0x6e   : > { %1191 = vmatpush3.bf16.msra.mxu1 %v1291_v8  ;;  %1170 = vmatprep.subr.bf16.mxu0 %v1292_v9  ;;  %v1308_v25 = vld [vmem:[%s1662_s2 + $0x70] sm:$0xff]   ;;  %v1312_v29 = vld [vmem:[%s1662_s2 + $0x78] sm:$0xff]  }
  0x6f   : > { %1192 = vmatprep.subr.bf16.mxu1 %v1293_v10  ;;  %v1309_v26 = vld [vmem:[%s1662_s2 + $0xf0] sm:$0xff]   ;;  %v1313_v30 = vld [vmem:[%s1662_s2 + $0xf8] sm:$0xff]  }
  0x70   : > { %v1310_v27 = vld [vmem:[%s1662_s2 + $0x30] sm:$0xff]   ;;  %v1314_v32 = vld [vmem:[%s1662_s2 + $0x38] sm:$0xff]  }
  0x71   : > { %1171 = vmatpush3.bf16.msra.mxu0 %v1294_v11  ;;  %v1311_v28 = vld [vmem:[%s1662_s2 + $0xb0] sm:$0xff]   ;;  %v1315_v33 = vld [vmem:[%s1662_s2 + $0xb8] sm:$0xff]  }
  0x72   : > { %1193 = vmatpush3.bf16.msra.mxu1 %v1295_v12  ;;  %1172 = vmatprep.subr.bf16.mxu0 %v1296_v13  ;;  %v1127_v34 = vld.sshfl [vmem:[%s1652_s28] sm:$0x33 pattern:$0x75316420] }
  0x73   : > { %1194 = vmatprep.subr.bf16.mxu1 %v1297_v14  ;;  %v650_v38 = vcombine.high %v1127_v34, %v1127_v34  ;;  %v657_v42 = vrot.slane %v1127_v34, %v656_v40  ;;  %v576_v54 = vld [vmem:[#allocation2] sm:$0x3] }
  0x74   : > { %v1161_v59 = vld [vmem:[%s566_s30] ss:$0 sm:$0xff] (!%p1160_p3) }
  0x75   : > { %1173 = vmatpush3.bf16.msra.mxu0 %v1298_v15  ;;  %v664_v41 = vrot.slane %v650_v38, %v656_v40  ;;  %v665_v44 = vcombine.high %v657_v42, %v657_v42  ;;  %v1162_v60 = vld [vmem:[%s569_s6] ss:$0 sm:$0xff] (!%p1160_p3) }
  0x76   : > { %1195 = vmatpush3.bf16.msra.mxu1 %v1299_v16  ;;  %1174 = vmatprep.subr.bf16.mxu0 %v1300_v17 }
  0x77   : > { %1196 = vmatprep.subr.bf16.mxu1 %v1301_v18  ;;  %895 = vmatprep.mubr.bf16.mxu0 %v664_v41  ;;  %v666_v43 = vcombine.high %v664_v41, %v664_v41 }
  0x79   : > { %1175 = vmatpush3.bf16.msra.mxu0 %v1302_v19  ;;  %935 = vmatprep.mubr.bf16.mxu1 %v666_v43 }
  0x7a   : > { %1197 = vmatpush3.bf16.msra.mxu1 %v1303_v20  ;;  %1176 = vmatprep.subr.bf16.mxu0 %v1304_v21 }
  0x7b   : > { %1198 = vmatprep.subr.bf16.mxu1 %v1305_v22 }
  0x7d   : > { %1177 = vmatpush3.bf16.msra.mxu0 %v1306_v23 }
  0x7e   : > { %1199 = vmatpush3.bf16.msra.mxu1 %v1307_v24  ;;  %1178 = vmatprep.subr.bf16.mxu0 %v1308_v25 }
  0x7f   : > { %1200 = vmatprep.subr.bf16.mxu1 %v1309_v26 }
  0x81   : > { %1179 = vmatpush3.bf16.msra.mxu0 %v1310_v27 }
  0x82   : > { %1201 = vmatpush3.bf16.msra.mxu1 %v1311_v28  ;;  %1180 = vmatprep.subr.bf16.mxu0 %v1312_v29 }
  0x83   : > { %1202 = vmatprep.subr.bf16.mxu1 %v1313_v30 }
  0x85   : > { %1181 = vmatpush3.bf16.msra.mxu0 %v1314_v32 }
  0x86   : > { %1203 = vmatpush3.bf16.msra.mxu1 %v1315_v33 }
  0x88   : > { %896 = vmatmul.mubr.bf16.vlgmr.msra.gmra.mrb[0].mxu0 %v657_v42 }
  0x89   : > { %936 = vmatmul.mubr.bf16.vlgmr.msra.gmra.mrb[0].mxu1 %v665_v44 }
 0x15b   : > { %v1182_v45 = vpop.f32.mrb[0].mxu0 }
 0x15c   : > { %v1183_v46 = vpop.f32.mrb[1].mxu0  ;;  %v1204_v47 = vpop.f32.mrb[0].mxu1 }
 0x15d   : > { %v1184_v48 = vadd.f32 %v1183_v46, %v1182_v45  ;;  %v1185_v49 = vpop.f32.mrb[2].mxu0  ;;  %v1205_v50 = vpop.f32.mrb[1].mxu1 }
 0x15e   : > { %v1186_v51 = vpop.f32.mrb[3].mxu0  ;;  %v1206_v52 = vadd.f32 %v1205_v50, %v1204_v47  ;;  %v1207_v53 = vpop.f32.mrb[2].mxu1  ;;  %948 = sbr.rel (%p1160_p3) target bundleno = 373 (0x175), region = 85 }
 0x15f   : > { %v1208_v55 = vpop.f32.mrb[3].mxu1 }
 0x160   : > { %v938_v56 = vadd.f32 %v1206_v52, %v1184_v48 }
 0x162   : > { %v943_v57 = vadd.f32 %v938_v56, %v576_v54 }
 0x164   : > { %944 = vst [vmem:[#allocation2] sm:$0x3] %v943_v57 }
 0x16b   : > { %v949_v58 = vld [vmem:[#allocation2] sm:$0x3] }
 0x16c   : > { %v957_v61 = vmul.f32 %v1161_v59, %v949_v58 }
 0x16e   : > { %v965_v62 = vadd.f32 %v1162_v60, %v957_v61 }
 0x170   : > { %v966_v63 = vmax.f32 %v965_v62, 0.0 }
 0x172   : > { %v967_v0 = vpack.c.bf16 %v966_v63, %v966_v63 }
 0x174   : > { %968 = vst [vmem:[%s1664_s27] sm:$0x1] %v967_v0 }
 0x175 PF: > { %974 = sbr.rel (!%p1488_p9) target bundleno = 381 (0x17d), region = 89  ;;  %s1052_s16 = scalar_lea.vmem (%p1488_p9), %s1751_s5, %s1374_s22 }
 0x17b   : > { %v993_v1 = vld [vmem:[%s1664_s27] sm:$0x1] (%p1488_p9) }
 0x17c   : > { %1163 = vst [vmem:[%s1052_s16 + $0x10] sm:$0x1] %v993_v1 }
 0x17d PF: > { %s16_s25 = sadd.s32 1, %s1386_s25   ;;  %s1758_s10 = sld [smem:[#allocation5_spill]] }
 0x17e   : > { %p13_p4 = scmp.ge.s32.totalorder %s16_s25, 38   ;;  %s1759_s18 = smov %s1358_s19 }
 0x17f   : > { %s1760_s19 = smov %s1493_s11  ;;  %s1761_s0 = smov %s1366_s20 }
 0x180   : > { %s1762_s20 = smov %s1496_s12  ;;  %s1763_s21 = smov %s1378_s23 }
 0x181   : > { %s1764_s22 = smov %s1382_s24  ;;  %s1765_s23 = smov %s1768_s26 }
 0x182   :  { %15 = sbr.rel (!%p13_p4) target bundleno = 7 (0x7), region = 164 }
 0x183   : > { %s1766_s24 = smov %s1758_s10 }

// kernel: ctr_predictor_forward.41
= control target key start
LH: loop header
LB: loop body
LE: loop exit
PB: predicated region body
PF: predicated region fallthrough
CT: control target
= control target key end

     0   :  { %s297_s6 = smov 0   ;;  %s299_s7 = smov 0   ;;  %s351_s0 = inlined_call_operand.vmem [shape: bf16[2,1,512], index: 0, kind: input, shape index: {}]   ;;  %s352_s1 = inlined_call_operand.vmem [shape: f32[2,512], index: 1, kind: output, shape index: {}]  }
   0x1   :  { %s301_s8 = smov 0  }
   0x2 LB: > { %s229_s9 = sadd.s32 4294967295, %s285_s8   ;;  %s314_s10 = sadd.s32 1, %s285_s8   ;;  %s285_s8 = sphi %s301_s8, %s355_s8   ;;  %s281_s7 = sphi %s299_s7, %s354_s7   ;;  %s277_s6 = sphi %s297_s6, %s353_s6  }
   0x3   : > { %s15_s11 = ssub.s32 %s285_s8, %s314_s10  ;;  %s18_s12 = sadd.s32 1, %s281_s7 }
   0x4   : > { %p16_p0 = scmp.eq.s32.totalorder %s15_s11, 0  ;;  %p25_p1 = scmp.ne.s32.totalorder %s281_s7, %s277_s6 }
   0x5   : > { %p26_p2 = scmp.eq.s32.totalorder %s285_s8, 0  ;;  %p232_p4 = scmp.ge.s32.totalorder %s285_s8, 4 }
   0x6   : > { %s323_s13 = scalar_select %p16_p0, %s281_s7, %s18_s12  }
   0x7   : > { %p27_p3 = por %p26_p2, %p25_p1  ;;  %77 = sbr.rel (%p232_p4) target bundleno = 21 (0x15), region = 16 }
   0xe   : > { %80 = sbr.rel (!%p27_p3) target bundleno = 21 (0x15), region = 20  ;;  %s82_s14 = sand.u32 (%p27_p3), 1, %s281_s7  }
   0xf   : > { %s85_s17 = scalar_lea.vmem (%p27_p3), %s351_s0, %s285_s8  ;;  %s233_s18 = sshll.u32 (%p27_p3), %s82_s14, 1 }
  0x10   : > { %v101_v0 = vld [vmem:[%s85_s17] sm:$0x1] (%p27_p3)  ;;  %v103_v1 = vld [vmem:[%s85_s17 + $0x4] sm:$0x1] (%p27_p3)  ;;  %s84_s19 = scalar_lea.vmem (%p27_p3), [#allocation2], %s233_s18 }
  0x11   : > { %102 = vst [vmem:[%s84_s19] sm:$0x1] (%p27_p3), %v101_v0  ;;  %104 = vst [vmem:[%s84_s19 + $0x1] sm:$0x1] (%p27_p3), %v103_v1 }
  0x15 PF: > { %p234_p5 = scmp.ge.s32.totalorder %s285_s8, 1  ;;  %p122_p6 = scmp.lt.s32.totalorder %s285_s8, 5 }
  0x17   : > { %p123_p7 = pnand %p234_p5, %p122_p6 }
  0x18   : > { %s129_s20 = sand.u32 (!%p123_p7), 1, %s277_s6   ;;  %p147_p8 = scmp.lt.s32.totalorder (!%p123_p7), %s229_s9, 3  ;;  %v159_v2 = vlaneseq (!%p123_p7)  ;;  %vm167_vm0 = vcmask (!%p123_p7), 1041409  }
  0x19   : > { %126 = sbr.rel (%p123_p7) target bundleno = 36 (0x24), region = 54  ;;  %s235_s21 = sshll.u32 (!%p123_p7), %s129_s20, 1 }
  0x1a   : > { %v160_v3 = vshrl.u32 (!%p123_p7), %v159_v2, 7  ;;  %s131_s22 = scalar_lea.vmem (!%p123_p7), [#allocation2], %s235_s21 }
  0x1b   : > { %v151_v4 = vld [vmem:[%s131_s22] sm:$0x1] (!%p123_p7)  ;;  %v152_v5 = vld [vmem:[%s131_s22 + $0x1] sm:$0x1] (!%p123_p7) }
  0x1c   : > { %v153_v6 = vunpack.c.l.bf16 (!%p123_p7), %v151_v4  ;;  %v154_v7 = vunpack.c.l.bf16 (!%p123_p7), %v152_v5  ;;  %v161_v8 = vsub.s32 (!%p123_p7), 0, %v160_v3 }
  0x1e   : > { %v162_v9 = vrot.slane (!%p123_p7), %v153_v6, %v161_v8  ;;  %v166_v10 = vrot.slane (!%p123_p7), %v154_v7, %v161_v8 }
  0x20   : > { %s357_s9 = smov (!%p147_p8, %s229_s9), 3  ;;  %v168_v11 = vsel %vm167_vm0, %v166_v10, %v162_v9 }
  0x21   : > { %s236_s23 = sshll.u32 %s357_s9, 1 }
  0x22   : > { %s150_s26 = scalar_lea.vmem %s352_s1, %s236_s23 }
  0x23   : > { %170 = vst [vmem:[%s150_s26] sm:$0x3] %v168_v11 }
  0x24 PF: > { %p8_p9 = scmp.ge.s32.totalorder %s314_s10, 6   ;;  %s353_s6 = smov %s281_s7 }
  0x25   : > { %s354_s7 = smov %s323_s13  ;;  %s355_s8 = smov %s314_s10 }
  0x26   :  { %10 = sbr.rel (!%p8_p9) target bundleno = 2 (0x2), region = 93 }

</bundles_post_ra>
